<compile_context>
chip_gen: v5e
topology: v5e:2x2
jax: 0.10.0
libtpu: 0.0.40
codegen_flags: <defaults>
</compile_context>

<pallas_src>
import functools

import jax
import jax.numpy as jnp
from jax import lax
from jax.experimental import pallas as pl
from jax.experimental.pallas import tpu as pltpu

# ----- module configuration -----
H = W = 16          # spatial size
HID = 8             # hidden channels of the subnet
NUM_ITER = 4
RESNET_FACTOR = 1.0
FINAL_DC = True

# ----- lane-dense packing -----
IMGS_PER_SLAB = 8                 # 8 images * 16 cols = 128 lanes (one full vreg width)
LANES = IMGS_PER_SLAB * W         # 128
MAX_SLABS_PER_BLOCK = 64          # 64 * 16 * 128 * 4B = 512 KiB per input block

OFFS = (-1, 0, 1)


def _iterative_net_kernel(slabs_per_block,
                          x_ref, y_ref, w1_ref, b1_ref, w2_ref, b2_ref, lam_ref,
                          o_ref):
    f32 = jnp.float32

    # ---------------- hoisted loop invariants (once per grid step) ----------------
    row = lax.broadcasted_iota(jnp.int32, (H, LANES), 0)
    lane = lax.broadcasted_iota(jnp.int32, (H, LANES), 1)
    col = jnp.bitwise_and(lane, W - 1)          # column within each packed image (W = 2^k)
    zeros2d = jnp.zeros((H, LANES), f32)
    # validity of reading z[h+s] / z[w+t] (zero-fill "same" padding, per image)
    row_ok = {1: row < H - 1, -1: row > 0}
    col_ok = {1: col < W - 1, -1: col > 0}

    # pltpu.roll follows the np.roll convention: roll(z, k, ax)[i] = z[(i - k) % n].
    def rshift(z, s):          # r[h, w] = z[h+s, w], zero fill outside the image
        if s == 0:
            return z
        r = pltpu.roll(z, (-s) % H, axis=0)
        return jnp.where(row_ok[s], r, zeros2d)

    def cshift(z, t):          # r[h, w] = z[h, w+t] within each packed image, zero fill
        if t == 0:
            return z
        r = pltpu.roll(z, (-t) % LANES, axis=1)
        return jnp.where(col_ok[t], r, zeros2d)

    # scalar parameters (SMEM), hoisted once (subnet is shared across iterations)
    w1 = [[[w1_ref[co * 9 + (s + 1) * 3 + (t + 1)] for t in OFFS] for s in OFFS]
          for co in range(HID)]
    b1 = [b1_ref[co] for co in range(HID)]
    w2 = [[[w2_ref[ci * 9 + (s + 1) * 3 + (t + 1)] for t in OFFS] for s in OFFS]
          for ci in range(HID)]
    b2 = b2_ref[0]
    lam = [lam_ref[i] for i in range(NUM_ITER)]
    one_minus_lam = [1.0 - lam[i] for i in range(NUM_ITER)]

    # -------- per lane-slab work: each slab is one (16, 128) f32 tile = 8 images ------
    def slab_body(sl, carry):
        x = x_ref[sl]
        y = y_ref[sl]

        xinv = x
        for it in range(NUM_ITER):
            # ----- subnet(xinv): Conv3x3(1->HID) -> ReLU -> Conv3x3(HID->1) -----
            # conv1: tap-outer / channel-inner accumulation keeps <=3 shifted tiles
            # live at a time (8 rolls + 8 selects per iteration).
            feats = [None] * HID
            for si, s in enumerate(OFFS):
                xr = rshift(xinv, s)
                for ti, t in enumerate(OFFS):
                    sh = cshift(xr, t)
                    for co in range(HID):
                        v = w1[co][si][ti] * sh
                        feats[co] = v if feats[co] is None else feats[co] + v
            feats = [jnp.maximum(feats[co] + b1[co], 0.0) for co in range(HID)]

            # conv2: channel-reduce per tap first (linearity), shifts factored as
            # out = sum_s rshift( sum_t cshift(tap_{s,t}, t), s )  -> 8 rolls total.
            out = None
            for si, s in enumerate(OFFS):
                srow = None
                for ti, t in enumerate(OFFS):
                    tap = w2[0][si][ti] * feats[0]
                    for ci in range(1, HID):
                        tap = tap + w2[ci][si][ti] * feats[ci]
                    tap = cshift(tap, t)
                    srow = tap if srow is None else srow + tap
                srow = rshift(srow, s)
                out = srow if out is None else out + srow
            out = out + b2

            # ----- resnet update -----
            xinv = out + xinv if RESNET_FACTOR == 1.0 else RESNET_FACTOR * xinv + out

            # ----- data consistency (A = Id), fused:  xinv -= lam*(xinv - y) -----
            if FINAL_DC or it < NUM_ITER - 1:
                xinv = one_minus_lam[it] * xinv + lam[it] * y

        o_ref[sl] = xinv.astype(o_ref.dtype)
        return carry

    lax.fori_loop(0, slabs_per_block, slab_body, 0)


def _num_tensorcores_per_chip():
    """v7x has 2 TensorCores per chip (megacore); v5e/v6e have 1."""
    try:
        kind = jax.devices()[0].device_kind.lower()
    except Exception:
        return 1
    return 2 if "7" in kind else 1


def _choose_block(num_slabs, target_blocks):
    """Pick slabs-per-block so the grid has ~target_blocks fat blocks (padding allowed)."""
    spb = pl.cdiv(num_slabs, max(1, target_blocks))
    spb = max(1, min(spb, MAX_SLABS_PER_BLOCK))
    num_blocks = pl.cdiv(num_slabs, spb)
    return spb, num_blocks


def _pack_slabs(img):
    """(B, 1, H, W) -> (num_slabs, H, 128): 8 images packed along the lane axis."""
    B = img.shape[0]
    pad = (-B) % IMGS_PER_SLAB
    flat = img.reshape(B, H, W)
    if pad:
        flat = jnp.concatenate([flat, jnp.zeros((pad, H, W), img.dtype)], axis=0)
    g = (B + pad) // IMGS_PER_SLAB
    return flat.reshape(g, IMGS_PER_SLAB, H, W).transpose(0, 2, 1, 3).reshape(g, H, LANES)


def _unpack_slabs(slabs, B):
    """(num_slabs, H, 128) -> (B, 1, H, W)."""
    g = slabs.shape[0]
    out = slabs.reshape(g, H, IMGS_PER_SLAB, W).transpose(0, 2, 1, 3)
    return out.reshape(g * IMGS_PER_SLAB, 1, H, W)[:B]


def iterative_net_forward(x, y, params):
    B, C, Hi, Wi = x.shape
    assert C == 1 and Hi == H and Wi == W

    xs = _pack_slabs(x)
    ys = _pack_slabs(y)
    num_slabs = xs.shape[0]

    spb, num_blocks = _choose_block(num_slabs, _num_tensorcores_per_chip())
    padded = num_blocks * spb
    if padded != num_slabs:
        pad = jnp.zeros((padded - num_slabs, H, LANES), xs.dtype)
        xs = jnp.concatenate([xs, pad], axis=0)
        ys = jnp.concatenate([ys, pad], axis=0)

    slab_spec = pl.BlockSpec((spb, H, LANES), lambda g: (g, 0, 0))
    smem_spec = pl.BlockSpec(memory_space=pltpu.MemorySpace.SMEM)

    kernel = functools.partial(_iterative_net_kernel, spb)

    out_slabs = pl.pallas_call(
        kernel,
        out_shape=jax.ShapeDtypeStruct((padded, H, LANES), jnp.float32),
        grid=(num_blocks,),
        in_specs=[
            slab_spec,        # x slabs (VMEM, lane-dense)
            slab_spec,        # y slabs
            smem_spec,        # w1 flat   (HID*1*3*3,)
            smem_spec,        # b1        (HID,)
            smem_spec,        # w2 flat   (1*HID*3*3,)
            smem_spec,        # b2        (1,)
            smem_spec,        # lam       (NUM_ITER,)
        ],
        out_specs=slab_spec,
        compiler_params=pltpu.CompilerParams(dimension_semantics=("parallel",)),
    )(xs, ys,
      params["w1"].reshape(-1).astype(jnp.float32),
      params["b1"].reshape(-1).astype(jnp.float32),
      params["w2"].reshape(-1).astype(jnp.float32),
      params["b2"].reshape(-1).astype(jnp.float32),
      params["lam"].reshape(-1).astype(jnp.float32))

    return _unpack_slabs(out_slabs[:num_slabs], B)


def reference_forward(x, y, params):
    """Pure-JAX reference of the same IterativeNet configuration (for verification)."""
    def conv(z, w, b):
        o = lax.conv_general_dilated(
            z, w, window_strides=(1, 1), padding=((1, 1), (1, 1)),
            dimension_numbers=("NCHW", "OIHW", "NCHW"),
            precision=lax.Precision.HIGHEST)
        return o + b[None, :, None, None]

    xinv = x
    for it in range(NUM_ITER):
        h = jax.nn.relu(conv(xinv, params["w1"], params["b1"]))
        out = conv(h, params["w2"], params["b2"])
        xinv = RESNET_FACTOR * xinv + out
        if FINAL_DC or it < NUM_ITER - 1:
            xinv = xinv - params["lam"][it] * (xinv - y)
    return xinv


if __name__ == "__main__":
    key = jax.random.PRNGKey(0)
    kx, ky, k1, k2, k3, k4 = jax.random.split(key, 6)
    B = 16   # 16 images -> 2 lane-dense slabs
    x = jax.random.normal(kx, (B, 1, H, W), jnp.float32)
    y = jax.random.normal(ky, (B, 1, H, W), jnp.float32)
    params = {
        "w1": 0.1 * jax.random.normal(k1, (HID, 1, 3, 3), jnp.float32),
        "b1": 0.1 * jax.random.normal(k2, (HID,), jnp.float32),
        "w2": 0.1 * jax.random.normal(k3, (1, HID, 3, 3), jnp.float32),
        "b2": 0.1 * jax.random.normal(k4, (1,), jnp.float32),
        "lam": jnp.full((NUM_ITER,), 0.1, jnp.float32),
    }

    out = iterative_net_forward(x, y, params)
    jax.block_until_ready(out)

    ref = reference_forward(x, y, params)
    assert out.shape == (B, 1, H, W)
    assert jnp.allclose(out, ref, atol=1e-4, rtol=1e-4), float(jnp.max(jnp.abs(out - ref)))

    print("KERNEL_OK")
</pallas_src>

<mosaic_0001>
module attributes {stable_mosaic.version = 11 : i64} {
  func.func @_iterative_net_kernel(%arg0: i32, %arg1: memref<2x16x128xf32, #tpu.memory_space<vmem>>, %arg2: memref<2x16x128xf32, #tpu.memory_space<vmem>>, %arg3: memref<72xf32, #tpu.memory_space<smem>>, %arg4: memref<8xf32, #tpu.memory_space<smem>>, %arg5: memref<72xf32, #tpu.memory_space<smem>>, %arg6: memref<1xf32, #tpu.memory_space<smem>>, %arg7: memref<4xf32, #tpu.memory_space<smem>>, %arg8: memref<2x16x128xf32, #tpu.memory_space<vmem>>) attributes {dimension_semantics = [#tpu.dimension_semantics<parallel>], iteration_bounds = array<i64: 1>, scalar_prefetch = 0 : i64, scratch_operands = 0 : i64, tpu.core_type = #tpu.core_type<tc>, window_params = [{transform_indices = @transform_0, window_bounds = array<i64: 2, 16, 128>}, {transform_indices = @transform_1, window_bounds = array<i64: 2, 16, 128>}, {transform_indices = @transform_2, window_bounds = array<i64: 72>}, {transform_indices = @transform_3, window_bounds = array<i64: 8>}, {transform_indices = @transform_4, window_bounds = array<i64: 72>}, {transform_indices = @transform_5, window_bounds = array<i64: 1>}, {transform_indices = @transform_6, window_bounds = array<i64: 4>}, {transform_indices = @transform_7, window_bounds = array<i64: 2, 16, 128>}]} {
    %0 = tpu.iota {dimensions = array<i32: 0>} : vector<16x128xi32>
    %1 = tpu.iota {dimensions = array<i32: 1>} : vector<16x128xi32>
    %c15_i32 = arith.constant 15 : i32
    %2 = vector.broadcast %c15_i32 : i32 to vector<16x128xi32>
    %3 = arith.andi %1, %2 : vector<16x128xi32>
    %cst = arith.constant 0.000000e+00 : f32
    %4 = vector.broadcast %cst : f32 to vector<16x128xf32>
    %c15_i32_0 = arith.constant 15 : i32
    %5 = vector.broadcast %c15_i32_0 : i32 to vector<16x128xi32>
    %6 = arith.cmpi slt, %0, %5 : vector<16x128xi32>
    %c0_i32 = arith.constant 0 : i32
    %7 = vector.broadcast %c0_i32 : i32 to vector<16x128xi32>
    %8 = arith.cmpi sgt, %0, %7 : vector<16x128xi32>
    %c15_i32_1 = arith.constant 15 : i32
    %9 = vector.broadcast %c15_i32_1 : i32 to vector<16x128xi32>
    %10 = arith.cmpi slt, %3, %9 : vector<16x128xi32>
    %c0_i32_2 = arith.constant 0 : i32
    %11 = vector.broadcast %c0_i32_2 : i32 to vector<16x128xi32>
    %12 = arith.cmpi sgt, %3, %11 : vector<16x128xi32>
    %c0 = arith.constant 0 : index
    %13 = memref.load %arg3[%c0] : memref<72xf32, #tpu.memory_space<smem>>
    %c1 = arith.constant 1 : index
    %14 = memref.load %arg3[%c1] : memref<72xf32, #tpu.memory_space<smem>>
    %c2 = arith.constant 2 : index
    %15 = memref.load %arg3[%c2] : memref<72xf32, #tpu.memory_space<smem>>
    %c3 = arith.constant 3 : index
    %16 = memref.load %arg3[%c3] : memref<72xf32, #tpu.memory_space<smem>>
    %c4 = arith.constant 4 : index
    %17 = memref.load %arg3[%c4] : memref<72xf32, #tpu.memory_space<smem>>
    %c5 = arith.constant 5 : index
    %18 = memref.load %arg3[%c5] : memref<72xf32, #tpu.memory_space<smem>>
    %c6 = arith.constant 6 : index
    %19 = memref.load %arg3[%c6] : memref<72xf32, #tpu.memory_space<smem>>
    %c7 = arith.constant 7 : index
    %20 = memref.load %arg3[%c7] : memref<72xf32, #tpu.memory_space<smem>>
    %c8 = arith.constant 8 : index
    %21 = memref.load %arg3[%c8] : memref<72xf32, #tpu.memory_space<smem>>
    %c9 = arith.constant 9 : index
    %22 = memref.load %arg3[%c9] : memref<72xf32, #tpu.memory_space<smem>>
    %c10 = arith.constant 10 : index
    %23 = memref.load %arg3[%c10] : memref<72xf32, #tpu.memory_space<smem>>
    %c11 = arith.constant 11 : index
    %24 = memref.load %arg3[%c11] : memref<72xf32, #tpu.memory_space<smem>>
    %c12 = arith.constant 12 : index
    %25 = memref.load %arg3[%c12] : memref<72xf32, #tpu.memory_space<smem>>
    %c13 = arith.constant 13 : index
    %26 = memref.load %arg3[%c13] : memref<72xf32, #tpu.memory_space<smem>>
    %c14 = arith.constant 14 : index
    %27 = memref.load %arg3[%c14] : memref<72xf32, #tpu.memory_space<smem>>
    %c15 = arith.constant 15 : index
    %28 = memref.load %arg3[%c15] : memref<72xf32, #tpu.memory_space<smem>>
    %c16 = arith.constant 16 : index
    %29 = memref.load %arg3[%c16] : memref<72xf32, #tpu.memory_space<smem>>
    %c17 = arith.constant 17 : index
    %30 = memref.load %arg3[%c17] : memref<72xf32, #tpu.memory_space<smem>>
    %c18 = arith.constant 18 : index
    %31 = memref.load %arg3[%c18] : memref<72xf32, #tpu.memory_space<smem>>
    %c19 = arith.constant 19 : index
    %32 = memref.load %arg3[%c19] : memref<72xf32, #tpu.memory_space<smem>>
    %c20 = arith.constant 20 : index
    %33 = memref.load %arg3[%c20] : memref<72xf32, #tpu.memory_space<smem>>
    %c21 = arith.constant 21 : index
    %34 = memref.load %arg3[%c21] : memref<72xf32, #tpu.memory_space<smem>>
    %c22 = arith.constant 22 : index
    %35 = memref.load %arg3[%c22] : memref<72xf32, #tpu.memory_space<smem>>
    %c23 = arith.constant 23 : index
    %36 = memref.load %arg3[%c23] : memref<72xf32, #tpu.memory_space<smem>>
    %c24 = arith.constant 24 : index
    %37 = memref.load %arg3[%c24] : memref<72xf32, #tpu.memory_space<smem>>
    %c25 = arith.constant 25 : index
    %38 = memref.load %arg3[%c25] : memref<72xf32, #tpu.memory_space<smem>>
    %c26 = arith.constant 26 : index
    %39 = memref.load %arg3[%c26] : memref<72xf32, #tpu.memory_space<smem>>
    %c27 = arith.constant 27 : index
    %40 = memref.load %arg3[%c27] : memref<72xf32, #tpu.memory_space<smem>>
    %c28 = arith.constant 28 : index
    %41 = memref.load %arg3[%c28] : memref<72xf32, #tpu.memory_space<smem>>
    %c29 = arith.constant 29 : index
    %42 = memref.load %arg3[%c29] : memref<72xf32, #tpu.memory_space<smem>>
    %c30 = arith.constant 30 : index
    %43 = memref.load %arg3[%c30] : memref<72xf32, #tpu.memory_space<smem>>
    %c31 = arith.constant 31 : index
    %44 = memref.load %arg3[%c31] : memref<72xf32, #tpu.memory_space<smem>>
    %c32 = arith.constant 32 : index
    %45 = memref.load %arg3[%c32] : memref<72xf32, #tpu.memory_space<smem>>
    %c33 = arith.constant 33 : index
    %46 = memref.load %arg3[%c33] : memref<72xf32, #tpu.memory_space<smem>>
    %c34 = arith.constant 34 : index
    %47 = memref.load %arg3[%c34] : memref<72xf32, #tpu.memory_space<smem>>
    %c35 = arith.constant 35 : index
    %48 = memref.load %arg3[%c35] : memref<72xf32, #tpu.memory_space<smem>>
    %c36 = arith.constant 36 : index
    %49 = memref.load %arg3[%c36] : memref<72xf32, #tpu.memory_space<smem>>
    %c37 = arith.constant 37 : index
    %50 = memref.load %arg3[%c37] : memref<72xf32, #tpu.memory_space<smem>>
    %c38 = arith.constant 38 : index
    %51 = memref.load %arg3[%c38] : memref<72xf32, #tpu.memory_space<smem>>
    %c39 = arith.constant 39 : index
    %52 = memref.load %arg3[%c39] : memref<72xf32, #tpu.memory_space<smem>>
    %c40 = arith.constant 40 : index
    %53 = memref.load %arg3[%c40] : memref<72xf32, #tpu.memory_space<smem>>
    %c41 = arith.constant 41 : index
    %54 = memref.load %arg3[%c41] : memref<72xf32, #tpu.memory_space<smem>>
    %c42 = arith.constant 42 : index
    %55 = memref.load %arg3[%c42] : memref<72xf32, #tpu.memory_space<smem>>
    %c43 = arith.constant 43 : index
    %56 = memref.load %arg3[%c43] : memref<72xf32, #tpu.memory_space<smem>>
    %c44 = arith.constant 44 : index
    %57 = memref.load %arg3[%c44] : memref<72xf32, #tpu.memory_space<smem>>
    %c45 = arith.constant 45 : index
    %58 = memref.load %arg3[%c45] : memref<72xf32, #tpu.memory_space<smem>>
    %c46 = arith.constant 46 : index
    %59 = memref.load %arg3[%c46] : memref<72xf32, #tpu.memory_space<smem>>
    %c47 = arith.constant 47 : index
    %60 = memref.load %arg3[%c47] : memref<72xf32, #tpu.memory_space<smem>>
    %c48 = arith.constant 48 : index
    %61 = memref.load %arg3[%c48] : memref<72xf32, #tpu.memory_space<smem>>
    %c49 = arith.constant 49 : index
    %62 = memref.load %arg3[%c49] : memref<72xf32, #tpu.memory_space<smem>>
    %c50 = arith.constant 50 : index
    %63 = memref.load %arg3[%c50] : memref<72xf32, #tpu.memory_space<smem>>
    %c51 = arith.constant 51 : index
    %64 = memref.load %arg3[%c51] : memref<72xf32, #tpu.memory_space<smem>>
    %c52 = arith.constant 52 : index
    %65 = memref.load %arg3[%c52] : memref<72xf32, #tpu.memory_space<smem>>
    %c53 = arith.constant 53 : index
    %66 = memref.load %arg3[%c53] : memref<72xf32, #tpu.memory_space<smem>>
    %c54 = arith.constant 54 : index
    %67 = memref.load %arg3[%c54] : memref<72xf32, #tpu.memory_space<smem>>
    %c55 = arith.constant 55 : index
    %68 = memref.load %arg3[%c55] : memref<72xf32, #tpu.memory_space<smem>>
    %c56 = arith.constant 56 : index
    %69 = memref.load %arg3[%c56] : memref<72xf32, #tpu.memory_space<smem>>
    %c57 = arith.constant 57 : index
    %70 = memref.load %arg3[%c57] : memref<72xf32, #tpu.memory_space<smem>>
    %c58 = arith.constant 58 : index
    %71 = memref.load %arg3[%c58] : memref<72xf32, #tpu.memory_space<smem>>
    %c59 = arith.constant 59 : index
    %72 = memref.load %arg3[%c59] : memref<72xf32, #tpu.memory_space<smem>>
    %c60 = arith.constant 60 : index
    %73 = memref.load %arg3[%c60] : memref<72xf32, #tpu.memory_space<smem>>
    %c61 = arith.constant 61 : index
    %74 = memref.load %arg3[%c61] : memref<72xf32, #tpu.memory_space<smem>>
    %c62 = arith.constant 62 : index
    %75 = memref.load %arg3[%c62] : memref<72xf32, #tpu.memory_space<smem>>
    %c63 = arith.constant 63 : index
    %76 = memref.load %arg3[%c63] : memref<72xf32, #tpu.memory_space<smem>>
    %c64 = arith.constant 64 : index
    %77 = memref.load %arg3[%c64] : memref<72xf32, #tpu.memory_space<smem>>
    %c65 = arith.constant 65 : index
    %78 = memref.load %arg3[%c65] : memref<72xf32, #tpu.memory_space<smem>>
    %c66 = arith.constant 66 : index
    %79 = memref.load %arg3[%c66] : memref<72xf32, #tpu.memory_space<smem>>
    %c67 = arith.constant 67 : index
    %80 = memref.load %arg3[%c67] : memref<72xf32, #tpu.memory_space<smem>>
    %c68 = arith.constant 68 : index
    %81 = memref.load %arg3[%c68] : memref<72xf32, #tpu.memory_space<smem>>
    %c69 = arith.constant 69 : index
    %82 = memref.load %arg3[%c69] : memref<72xf32, #tpu.memory_space<smem>>
    %c70 = arith.constant 70 : index
    %83 = memref.load %arg3[%c70] : memref<72xf32, #tpu.memory_space<smem>>
    %c71 = arith.constant 71 : index
    %84 = memref.load %arg3[%c71] : memref<72xf32, #tpu.memory_space<smem>>
    %c0_3 = arith.constant 0 : index
    %85 = memref.load %arg4[%c0_3] : memref<8xf32, #tpu.memory_space<smem>>
    %c1_4 = arith.constant 1 : index
    %86 = memref.load %arg4[%c1_4] : memref<8xf32, #tpu.memory_space<smem>>
    %c2_5 = arith.constant 2 : index
    %87 = memref.load %arg4[%c2_5] : memref<8xf32, #tpu.memory_space<smem>>
    %c3_6 = arith.constant 3 : index
    %88 = memref.load %arg4[%c3_6] : memref<8xf32, #tpu.memory_space<smem>>
    %c4_7 = arith.constant 4 : index
    %89 = memref.load %arg4[%c4_7] : memref<8xf32, #tpu.memory_space<smem>>
    %c5_8 = arith.constant 5 : index
    %90 = memref.load %arg4[%c5_8] : memref<8xf32, #tpu.memory_space<smem>>
    %c6_9 = arith.constant 6 : index
    %91 = memref.load %arg4[%c6_9] : memref<8xf32, #tpu.memory_space<smem>>
    %c7_10 = arith.constant 7 : index
    %92 = memref.load %arg4[%c7_10] : memref<8xf32, #tpu.memory_space<smem>>
    %c0_11 = arith.constant 0 : index
    %93 = memref.load %arg5[%c0_11] : memref<72xf32, #tpu.memory_space<smem>>
    %c1_12 = arith.constant 1 : index
    %94 = memref.load %arg5[%c1_12] : memref<72xf32, #tpu.memory_space<smem>>
    %c2_13 = arith.constant 2 : index
    %95 = memref.load %arg5[%c2_13] : memref<72xf32, #tpu.memory_space<smem>>
    %c3_14 = arith.constant 3 : index
    %96 = memref.load %arg5[%c3_14] : memref<72xf32, #tpu.memory_space<smem>>
    %c4_15 = arith.constant 4 : index
    %97 = memref.load %arg5[%c4_15] : memref<72xf32, #tpu.memory_space<smem>>
    %c5_16 = arith.constant 5 : index
    %98 = memref.load %arg5[%c5_16] : memref<72xf32, #tpu.memory_space<smem>>
    %c6_17 = arith.constant 6 : index
    %99 = memref.load %arg5[%c6_17] : memref<72xf32, #tpu.memory_space<smem>>
    %c7_18 = arith.constant 7 : index
    %100 = memref.load %arg5[%c7_18] : memref<72xf32, #tpu.memory_space<smem>>
    %c8_19 = arith.constant 8 : index
    %101 = memref.load %arg5[%c8_19] : memref<72xf32, #tpu.memory_space<smem>>
    %c9_20 = arith.constant 9 : index
    %102 = memref.load %arg5[%c9_20] : memref<72xf32, #tpu.memory_space<smem>>
    %c10_21 = arith.constant 10 : index
    %103 = memref.load %arg5[%c10_21] : memref<72xf32, #tpu.memory_space<smem>>
    %c11_22 = arith.constant 11 : index
    %104 = memref.load %arg5[%c11_22] : memref<72xf32, #tpu.memory_space<smem>>
    %c12_23 = arith.constant 12 : index
    %105 = memref.load %arg5[%c12_23] : memref<72xf32, #tpu.memory_space<smem>>
    %c13_24 = arith.constant 13 : index
    %106 = memref.load %arg5[%c13_24] : memref<72xf32, #tpu.memory_space<smem>>
    %c14_25 = arith.constant 14 : index
    %107 = memref.load %arg5[%c14_25] : memref<72xf32, #tpu.memory_space<smem>>
    %c15_26 = arith.constant 15 : index
    %108 = memref.load %arg5[%c15_26] : memref<72xf32, #tpu.memory_space<smem>>
    %c16_27 = arith.constant 16 : index
    %109 = memref.load %arg5[%c16_27] : memref<72xf32, #tpu.memory_space<smem>>
    %c17_28 = arith.constant 17 : index
    %110 = memref.load %arg5[%c17_28] : memref<72xf32, #tpu.memory_space<smem>>
    %c18_29 = arith.constant 18 : index
    %111 = memref.load %arg5[%c18_29] : memref<72xf32, #tpu.memory_space<smem>>
    %c19_30 = arith.constant 19 : index
    %112 = memref.load %arg5[%c19_30] : memref<72xf32, #tpu.memory_space<smem>>
    %c20_31 = arith.constant 20 : index
    %113 = memref.load %arg5[%c20_31] : memref<72xf32, #tpu.memory_space<smem>>
    %c21_32 = arith.constant 21 : index
    %114 = memref.load %arg5[%c21_32] : memref<72xf32, #tpu.memory_space<smem>>
    %c22_33 = arith.constant 22 : index
    %115 = memref.load %arg5[%c22_33] : memref<72xf32, #tpu.memory_space<smem>>
    %c23_34 = arith.constant 23 : index
    %116 = memref.load %arg5[%c23_34] : memref<72xf32, #tpu.memory_space<smem>>
    %c24_35 = arith.constant 24 : index
    %117 = memref.load %arg5[%c24_35] : memref<72xf32, #tpu.memory_space<smem>>
    %c25_36 = arith.constant 25 : index
    %118 = memref.load %arg5[%c25_36] : memref<72xf32, #tpu.memory_space<smem>>
    %c26_37 = arith.constant 26 : index
    %119 = memref.load %arg5[%c26_37] : memref<72xf32, #tpu.memory_space<smem>>
    %c27_38 = arith.constant 27 : index
    %120 = memref.load %arg5[%c27_38] : memref<72xf32, #tpu.memory_space<smem>>
    %c28_39 = arith.constant 28 : index
    %121 = memref.load %arg5[%c28_39] : memref<72xf32, #tpu.memory_space<smem>>
    %c29_40 = arith.constant 29 : index
    %122 = memref.load %arg5[%c29_40] : memref<72xf32, #tpu.memory_space<smem>>
    %c30_41 = arith.constant 30 : index
    %123 = memref.load %arg5[%c30_41] : memref<72xf32, #tpu.memory_space<smem>>
    %c31_42 = arith.constant 31 : index
    %124 = memref.load %arg5[%c31_42] : memref<72xf32, #tpu.memory_space<smem>>
    %c32_43 = arith.constant 32 : index
    %125 = memref.load %arg5[%c32_43] : memref<72xf32, #tpu.memory_space<smem>>
    %c33_44 = arith.constant 33 : index
    %126 = memref.load %arg5[%c33_44] : memref<72xf32, #tpu.memory_space<smem>>
    %c34_45 = arith.constant 34 : index
    %127 = memref.load %arg5[%c34_45] : memref<72xf32, #tpu.memory_space<smem>>
    %c35_46 = arith.constant 35 : index
    %128 = memref.load %arg5[%c35_46] : memref<72xf32, #tpu.memory_space<smem>>
    %c36_47 = arith.constant 36 : index
    %129 = memref.load %arg5[%c36_47] : memref<72xf32, #tpu.memory_space<smem>>
    %c37_48 = arith.constant 37 : index
    %130 = memref.load %arg5[%c37_48] : memref<72xf32, #tpu.memory_space<smem>>
    %c38_49 = arith.constant 38 : index
    %131 = memref.load %arg5[%c38_49] : memref<72xf32, #tpu.memory_space<smem>>
    %c39_50 = arith.constant 39 : index
    %132 = memref.load %arg5[%c39_50] : memref<72xf32, #tpu.memory_space<smem>>
    %c40_51 = arith.constant 40 : index
    %133 = memref.load %arg5[%c40_51] : memref<72xf32, #tpu.memory_space<smem>>
    %c41_52 = arith.constant 41 : index
    %134 = memref.load %arg5[%c41_52] : memref<72xf32, #tpu.memory_space<smem>>
    %c42_53 = arith.constant 42 : index
    %135 = memref.load %arg5[%c42_53] : memref<72xf32, #tpu.memory_space<smem>>
    %c43_54 = arith.constant 43 : index
    %136 = memref.load %arg5[%c43_54] : memref<72xf32, #tpu.memory_space<smem>>
    %c44_55 = arith.constant 44 : index
    %137 = memref.load %arg5[%c44_55] : memref<72xf32, #tpu.memory_space<smem>>
    %c45_56 = arith.constant 45 : index
    %138 = memref.load %arg5[%c45_56] : memref<72xf32, #tpu.memory_space<smem>>
    %c46_57 = arith.constant 46 : index
    %139 = memref.load %arg5[%c46_57] : memref<72xf32, #tpu.memory_space<smem>>
    %c47_58 = arith.constant 47 : index
    %140 = memref.load %arg5[%c47_58] : memref<72xf32, #tpu.memory_space<smem>>
    %c48_59 = arith.constant 48 : index
    %141 = memref.load %arg5[%c48_59] : memref<72xf32, #tpu.memory_space<smem>>
    %c49_60 = arith.constant 49 : index
    %142 = memref.load %arg5[%c49_60] : memref<72xf32, #tpu.memory_space<smem>>
    %c50_61 = arith.constant 50 : index
    %143 = memref.load %arg5[%c50_61] : memref<72xf32, #tpu.memory_space<smem>>
    %c51_62 = arith.constant 51 : index
    %144 = memref.load %arg5[%c51_62] : memref<72xf32, #tpu.memory_space<smem>>
    %c52_63 = arith.constant 52 : index
    %145 = memref.load %arg5[%c52_63] : memref<72xf32, #tpu.memory_space<smem>>
    %c53_64 = arith.constant 53 : index
    %146 = memref.load %arg5[%c53_64] : memref<72xf32, #tpu.memory_space<smem>>
    %c54_65 = arith.constant 54 : index
    %147 = memref.load %arg5[%c54_65] : memref<72xf32, #tpu.memory_space<smem>>
    %c55_66 = arith.constant 55 : index
    %148 = memref.load %arg5[%c55_66] : memref<72xf32, #tpu.memory_space<smem>>
    %c56_67 = arith.constant 56 : index
    %149 = memref.load %arg5[%c56_67] : memref<72xf32, #tpu.memory_space<smem>>
    %c57_68 = arith.constant 57 : index
    %150 = memref.load %arg5[%c57_68] : memref<72xf32, #tpu.memory_space<smem>>
    %c58_69 = arith.constant 58 : index
    %151 = memref.load %arg5[%c58_69] : memref<72xf32, #tpu.memory_space<smem>>
    %c59_70 = arith.constant 59 : index
    %152 = memref.load %arg5[%c59_70] : memref<72xf32, #tpu.memory_space<smem>>
    %c60_71 = arith.constant 60 : index
    %153 = memref.load %arg5[%c60_71] : memref<72xf32, #tpu.memory_space<smem>>
    %c61_72 = arith.constant 61 : index
    %154 = memref.load %arg5[%c61_72] : memref<72xf32, #tpu.memory_space<smem>>
    %c62_73 = arith.constant 62 : index
    %155 = memref.load %arg5[%c62_73] : memref<72xf32, #tpu.memory_space<smem>>
    %c63_74 = arith.constant 63 : index
    %156 = memref.load %arg5[%c63_74] : memref<72xf32, #tpu.memory_space<smem>>
    %c64_75 = arith.constant 64 : index
    %157 = memref.load %arg5[%c64_75] : memref<72xf32, #tpu.memory_space<smem>>
    %c65_76 = arith.constant 65 : index
    %158 = memref.load %arg5[%c65_76] : memref<72xf32, #tpu.memory_space<smem>>
    %c66_77 = arith.constant 66 : index
    %159 = memref.load %arg5[%c66_77] : memref<72xf32, #tpu.memory_space<smem>>
    %c67_78 = arith.constant 67 : index
    %160 = memref.load %arg5[%c67_78] : memref<72xf32, #tpu.memory_space<smem>>
    %c68_79 = arith.constant 68 : index
    %161 = memref.load %arg5[%c68_79] : memref<72xf32, #tpu.memory_space<smem>>
    %c69_80 = arith.constant 69 : index
    %162 = memref.load %arg5[%c69_80] : memref<72xf32, #tpu.memory_space<smem>>
    %c70_81 = arith.constant 70 : index
    %163 = memref.load %arg5[%c70_81] : memref<72xf32, #tpu.memory_space<smem>>
    %c71_82 = arith.constant 71 : index
    %164 = memref.load %arg5[%c71_82] : memref<72xf32, #tpu.memory_space<smem>>
    %c0_83 = arith.constant 0 : index
    %165 = memref.load %arg6[%c0_83] : memref<1xf32, #tpu.memory_space<smem>>
    %c0_84 = arith.constant 0 : index
    %166 = memref.load %arg7[%c0_84] : memref<4xf32, #tpu.memory_space<smem>>
    %c1_85 = arith.constant 1 : index
    %167 = memref.load %arg7[%c1_85] : memref<4xf32, #tpu.memory_space<smem>>
    %c2_86 = arith.constant 2 : index
    %168 = memref.load %arg7[%c2_86] : memref<4xf32, #tpu.memory_space<smem>>
    %c3_87 = arith.constant 3 : index
    %169 = memref.load %arg7[%c3_87] : memref<4xf32, #tpu.memory_space<smem>>
    %cst_88 = arith.constant 1.000000e+00 : f32
    %170 = arith.subf %cst_88, %166 : f32
    %cst_89 = arith.constant 1.000000e+00 : f32
    %171 = arith.subf %cst_89, %167 : f32
    %cst_90 = arith.constant 1.000000e+00 : f32
    %172 = arith.subf %cst_90, %168 : f32
    %cst_91 = arith.constant 1.000000e+00 : f32
    %173 = arith.subf %cst_91, %169 : f32
    %c0_i32_92 = arith.constant 0 : i32
    %c2_i32 = arith.constant 2 : i32
    %174 = arith.addi %c0_i32_92, %c2_i32 : i32
    %c1_i32 = arith.constant 1 : i32
    scf.for %arg9 = %c0_i32_92 to %174 step %c1_i32  : i32 {
      %175 = arith.index_cast %arg9 : i32 to index
      %c0_94 = arith.constant 0 : index
      %c0_95 = arith.constant 0 : index
      %176 = vector.load %arg1[%175, %c0_94, %c0_95] : memref<2x16x128xf32, #tpu.memory_space<vmem>>, vector<1x16x128xf32>
      %177 = vector.shape_cast %176 : vector<1x16x128xf32> to vector<16x128xf32>
      %178 = arith.index_cast %arg9 : i32 to index
      %c0_96 = arith.constant 0 : index
      %c0_97 = arith.constant 0 : index
      %179 = vector.load %arg2[%178, %c0_96, %c0_97] : memref<2x16x128xf32, #tpu.memory_space<vmem>>, vector<1x16x128xf32>
      %180 = vector.shape_cast %179 : vector<1x16x128xf32> to vector<16x128xf32>
      %c1_i32_98 = arith.constant 1 : i32
      %181 = tpu.dynamic_rotate %177 by %c1_i32_98 dim 0 : vector<16x128xf32>, i32 -> vector<16x128xf32>
      %182 = arith.select %8, %181, %4 : vector<16x128xi1>, vector<16x128xf32>
      %c1_i32_99 = arith.constant 1 : i32
      %183 = tpu.dynamic_rotate %182 by %c1_i32_99 dim 1 : vector<16x128xf32>, i32 -> vector<16x128xf32>
      %184 = arith.select %12, %183, %4 : vector<16x128xi1>, vector<16x128xf32>
      %185 = vector.broadcast %13 : f32 to vector<16x128xf32>
      %186 = arith.mulf %185, %184 : vector<16x128xf32>
      %187 = vector.broadcast %22 : f32 to vector<16x128xf32>
      %188 = arith.mulf %187, %184 : vector<16x128xf32>
      %189 = vector.broadcast %31 : f32 to vector<16x128xf32>
      %190 = arith.mulf %189, %184 : vector<16x128xf32>
      %191 = vector.broadcast %40 : f32 to vector<16x128xf32>
      %192 = arith.mulf %191, %184 : vector<16x128xf32>
      %193 = vector.broadcast %49 : f32 to vector<16x128xf32>
      %194 = arith.mulf %193, %184 : vector<16x128xf32>
      %195 = vector.broadcast %58 : f32 to vector<16x128xf32>
      %196 = arith.mulf %195, %184 : vector<16x128xf32>
      %197 = vector.broadcast %67 : f32 to vector<16x128xf32>
      %198 = arith.mulf %197, %184 : vector<16x128xf32>
      %199 = vector.broadcast %76 : f32 to vector<16x128xf32>
      %200 = arith.mulf %199, %184 : vector<16x128xf32>
      %201 = vector.broadcast %14 : f32 to vector<16x128xf32>
      %202 = arith.mulf %201, %182 : vector<16x128xf32>
      %203 = arith.addf %186, %202 : vector<16x128xf32>
      %204 = vector.broadcast %23 : f32 to vector<16x128xf32>
      %205 = arith.mulf %204, %182 : vector<16x128xf32>
      %206 = arith.addf %188, %205 : vector<16x128xf32>
      %207 = vector.broadcast %32 : f32 to vector<16x128xf32>
      %208 = arith.mulf %207, %182 : vector<16x128xf32>
      %209 = arith.addf %190, %208 : vector<16x128xf32>
      %210 = vector.broadcast %41 : f32 to vector<16x128xf32>
      %211 = arith.mulf %210, %182 : vector<16x128xf32>
      %212 = arith.addf %192, %211 : vector<16x128xf32>
      %213 = vector.broadcast %50 : f32 to vector<16x128xf32>
      %214 = arith.mulf %213, %182 : vector<16x128xf32>
      %215 = arith.addf %194, %214 : vector<16x128xf32>
      %216 = vector.broadcast %59 : f32 to vector<16x128xf32>
      %217 = arith.mulf %216, %182 : vector<16x128xf32>
      %218 = arith.addf %196, %217 : vector<16x128xf32>
      %219 = vector.broadcast %68 : f32 to vector<16x128xf32>
      %220 = arith.mulf %219, %182 : vector<16x128xf32>
      %221 = arith.addf %198, %220 : vector<16x128xf32>
      %222 = vector.broadcast %77 : f32 to vector<16x128xf32>
      %223 = arith.mulf %222, %182 : vector<16x128xf32>
      %224 = arith.addf %200, %223 : vector<16x128xf32>
      %c127_i32 = arith.constant 127 : i32
      %225 = tpu.dynamic_rotate %182 by %c127_i32 dim 1 : vector<16x128xf32>, i32 -> vector<16x128xf32>
      %226 = arith.select %10, %225, %4 : vector<16x128xi1>, vector<16x128xf32>
      %227 = vector.broadcast %15 : f32 to vector<16x128xf32>
      %228 = arith.mulf %227, %226 : vector<16x128xf32>
      %229 = arith.addf %203, %228 : vector<16x128xf32>
      %230 = vector.broadcast %24 : f32 to vector<16x128xf32>
      %231 = arith.mulf %230, %226 : vector<16x128xf32>
      %232 = arith.addf %206, %231 : vector<16x128xf32>
      %233 = vector.broadcast %33 : f32 to vector<16x128xf32>
      %234 = arith.mulf %233, %226 : vector<16x128xf32>
      %235 = arith.addf %209, %234 : vector<16x128xf32>
      %236 = vector.broadcast %42 : f32 to vector<16x128xf32>
      %237 = arith.mulf %236, %226 : vector<16x128xf32>
      %238 = arith.addf %212, %237 : vector<16x128xf32>
      %239 = vector.broadcast %51 : f32 to vector<16x128xf32>
      %240 = arith.mulf %239, %226 : vector<16x128xf32>
      %241 = arith.addf %215, %240 : vector<16x128xf32>
      %242 = vector.broadcast %60 : f32 to vector<16x128xf32>
      %243 = arith.mulf %242, %226 : vector<16x128xf32>
      %244 = arith.addf %218, %243 : vector<16x128xf32>
      %245 = vector.broadcast %69 : f32 to vector<16x128xf32>
      %246 = arith.mulf %245, %226 : vector<16x128xf32>
      %247 = arith.addf %221, %246 : vector<16x128xf32>
      %248 = vector.broadcast %78 : f32 to vector<16x128xf32>
      %249 = arith.mulf %248, %226 : vector<16x128xf32>
      %250 = arith.addf %224, %249 : vector<16x128xf32>
      %c1_i32_100 = arith.constant 1 : i32
      %251 = tpu.dynamic_rotate %177 by %c1_i32_100 dim 1 : vector<16x128xf32>, i32 -> vector<16x128xf32>
      %252 = arith.select %12, %251, %4 : vector<16x128xi1>, vector<16x128xf32>
      %253 = vector.broadcast %16 : f32 to vector<16x128xf32>
      %254 = arith.mulf %253, %252 : vector<16x128xf32>
      %255 = arith.addf %229, %254 : vector<16x128xf32>
      %256 = vector.broadcast %25 : f32 to vector<16x128xf32>
      %257 = arith.mulf %256, %252 : vector<16x128xf32>
      %258 = arith.addf %232, %257 : vector<16x128xf32>
      %259 = vector.broadcast %34 : f32 to vector<16x128xf32>
      %260 = arith.mulf %259, %252 : vector<16x128xf32>
      %261 = arith.addf %235, %260 : vector<16x128xf32>
      %262 = vector.broadcast %43 : f32 to vector<16x128xf32>
      %263 = arith.mulf %262, %252 : vector<16x128xf32>
      %264 = arith.addf %238, %263 : vector<16x128xf32>
      %265 = vector.broadcast %52 : f32 to vector<16x128xf32>
      %266 = arith.mulf %265, %252 : vector<16x128xf32>
      %267 = arith.addf %241, %266 : vector<16x128xf32>
      %268 = vector.broadcast %61 : f32 to vector<16x128xf32>
      %269 = arith.mulf %268, %252 : vector<16x128xf32>
      %270 = arith.addf %244, %269 : vector<16x128xf32>
      %271 = vector.broadcast %70 : f32 to vector<16x128xf32>
      %272 = arith.mulf %271, %252 : vector<16x128xf32>
      %273 = arith.addf %247, %272 : vector<16x128xf32>
      %274 = vector.broadcast %79 : f32 to vector<16x128xf32>
      %275 = arith.mulf %274, %252 : vector<16x128xf32>
      %276 = arith.addf %250, %275 : vector<16x128xf32>
      %277 = vector.broadcast %17 : f32 to vector<16x128xf32>
      %278 = arith.mulf %277, %177 : vector<16x128xf32>
      %279 = arith.addf %255, %278 : vector<16x128xf32>
      %280 = vector.broadcast %26 : f32 to vector<16x128xf32>
      %281 = arith.mulf %280, %177 : vector<16x128xf32>
      %282 = arith.addf %258, %281 : vector<16x128xf32>
      %283 = vector.broadcast %35 : f32 to vector<16x128xf32>
      %284 = arith.mulf %283, %177 : vector<16x128xf32>
      %285 = arith.addf %261, %284 : vector<16x128xf32>
      %286 = vector.broadcast %44 : f32 to vector<16x128xf32>
      %287 = arith.mulf %286, %177 : vector<16x128xf32>
      %288 = arith.addf %264, %287 : vector<16x128xf32>
      %289 = vector.broadcast %53 : f32 to vector<16x128xf32>
      %290 = arith.mulf %289, %177 : vector<16x128xf32>
      %291 = arith.addf %267, %290 : vector<16x128xf32>
      %292 = vector.broadcast %62 : f32 to vector<16x128xf32>
      %293 = arith.mulf %292, %177 : vector<16x128xf32>
      %294 = arith.addf %270, %293 : vector<16x128xf32>
      %295 = vector.broadcast %71 : f32 to vector<16x128xf32>
      %296 = arith.mulf %295, %177 : vector<16x128xf32>
      %297 = arith.addf %273, %296 : vector<16x128xf32>
      %298 = vector.broadcast %80 : f32 to vector<16x128xf32>
      %299 = arith.mulf %298, %177 : vector<16x128xf32>
      %300 = arith.addf %276, %299 : vector<16x128xf32>
      %c127_i32_101 = arith.constant 127 : i32
      %301 = tpu.dynamic_rotate %177 by %c127_i32_101 dim 1 : vector<16x128xf32>, i32 -> vector<16x128xf32>
      %302 = arith.select %10, %301, %4 : vector<16x128xi1>, vector<16x128xf32>
      %303 = vector.broadcast %18 : f32 to vector<16x128xf32>
      %304 = arith.mulf %303, %302 : vector<16x128xf32>
      %305 = arith.addf %279, %304 : vector<16x128xf32>
      %306 = vector.broadcast %27 : f32 to vector<16x128xf32>
      %307 = arith.mulf %306, %302 : vector<16x128xf32>
      %308 = arith.addf %282, %307 : vector<16x128xf32>
      %309 = vector.broadcast %36 : f32 to vector<16x128xf32>
      %310 = arith.mulf %309, %302 : vector<16x128xf32>
      %311 = arith.addf %285, %310 : vector<16x128xf32>
      %312 = vector.broadcast %45 : f32 to vector<16x128xf32>
      %313 = arith.mulf %312, %302 : vector<16x128xf32>
      %314 = arith.addf %288, %313 : vector<16x128xf32>
      %315 = vector.broadcast %54 : f32 to vector<16x128xf32>
      %316 = arith.mulf %315, %302 : vector<16x128xf32>
      %317 = arith.addf %291, %316 : vector<16x128xf32>
      %318 = vector.broadcast %63 : f32 to vector<16x128xf32>
      %319 = arith.mulf %318, %302 : vector<16x128xf32>
      %320 = arith.addf %294, %319 : vector<16x128xf32>
      %321 = vector.broadcast %72 : f32 to vector<16x128xf32>
      %322 = arith.mulf %321, %302 : vector<16x128xf32>
      %323 = arith.addf %297, %322 : vector<16x128xf32>
      %324 = vector.broadcast %81 : f32 to vector<16x128xf32>
      %325 = arith.mulf %324, %302 : vector<16x128xf32>
      %326 = arith.addf %300, %325 : vector<16x128xf32>
      %c15_i32_102 = arith.constant 15 : i32
      %327 = tpu.dynamic_rotate %177 by %c15_i32_102 dim 0 : vector<16x128xf32>, i32 -> vector<16x128xf32>
      %328 = arith.select %6, %327, %4 : vector<16x128xi1>, vector<16x128xf32>
      %c1_i32_103 = arith.constant 1 : i32
      %329 = tpu.dynamic_rotate %328 by %c1_i32_103 dim 1 : vector<16x128xf32>, i32 -> vector<16x128xf32>
      %330 = arith.select %12, %329, %4 : vector<16x128xi1>, vector<16x128xf32>
      %331 = vector.broadcast %19 : f32 to vector<16x128xf32>
      %332 = arith.mulf %331, %330 : vector<16x128xf32>
      %333 = arith.addf %305, %332 : vector<16x128xf32>
      %334 = vector.broadcast %28 : f32 to vector<16x128xf32>
      %335 = arith.mulf %334, %330 : vector<16x128xf32>
      %336 = arith.addf %308, %335 : vector<16x128xf32>
      %337 = vector.broadcast %37 : f32 to vector<16x128xf32>
      %338 = arith.mulf %337, %330 : vector<16x128xf32>
      %339 = arith.addf %311, %338 : vector<16x128xf32>
      %340 = vector.broadcast %46 : f32 to vector<16x128xf32>
      %341 = arith.mulf %340, %330 : vector<16x128xf32>
      %342 = arith.addf %314, %341 : vector<16x128xf32>
      %343 = vector.broadcast %55 : f32 to vector<16x128xf32>
      %344 = arith.mulf %343, %330 : vector<16x128xf32>
      %345 = arith.addf %317, %344 : vector<16x128xf32>
      %346 = vector.broadcast %64 : f32 to vector<16x128xf32>
      %347 = arith.mulf %346, %330 : vector<16x128xf32>
      %348 = arith.addf %320, %347 : vector<16x128xf32>
      %349 = vector.broadcast %73 : f32 to vector<16x128xf32>
      %350 = arith.mulf %349, %330 : vector<16x128xf32>
      %351 = arith.addf %323, %350 : vector<16x128xf32>
      %352 = vector.broadcast %82 : f32 to vector<16x128xf32>
      %353 = arith.mulf %352, %330 : vector<16x128xf32>
      %354 = arith.addf %326, %353 : vector<16x128xf32>
      %355 = vector.broadcast %20 : f32 to vector<16x128xf32>
      %356 = arith.mulf %355, %328 : vector<16x128xf32>
      %357 = arith.addf %333, %356 : vector<16x128xf32>
      %358 = vector.broadcast %29 : f32 to vector<16x128xf32>
      %359 = arith.mulf %358, %328 : vector<16x128xf32>
      %360 = arith.addf %336, %359 : vector<16x128xf32>
      %361 = vector.broadcast %38 : f32 to vector<16x128xf32>
      %362 = arith.mulf %361, %328 : vector<16x128xf32>
      %363 = arith.addf %339, %362 : vector<16x128xf32>
      %364 = vector.broadcast %47 : f32 to vector<16x128xf32>
      %365 = arith.mulf %364, %328 : vector<16x128xf32>
      %366 = arith.addf %342, %365 : vector<16x128xf32>
      %367 = vector.broadcast %56 : f32 to vector<16x128xf32>
      %368 = arith.mulf %367, %328 : vector<16x128xf32>
      %369 = arith.addf %345, %368 : vector<16x128xf32>
      %370 = vector.broadcast %65 : f32 to vector<16x128xf32>
      %371 = arith.mulf %370, %328 : vector<16x128xf32>
      %372 = arith.addf %348, %371 : vector<16x128xf32>
      %373 = vector.broadcast %74 : f32 to vector<16x128xf32>
      %374 = arith.mulf %373, %328 : vector<16x128xf32>
      %375 = arith.addf %351, %374 : vector<16x128xf32>
      %376 = vector.broadcast %83 : f32 to vector<16x128xf32>
      %377 = arith.mulf %376, %328 : vector<16x128xf32>
      %378 = arith.addf %354, %377 : vector<16x128xf32>
      %c127_i32_104 = arith.constant 127 : i32
      %379 = tpu.dynamic_rotate %328 by %c127_i32_104 dim 1 : vector<16x128xf32>, i32 -> vector<16x128xf32>
      %380 = arith.select %10, %379, %4 : vector<16x128xi1>, vector<16x128xf32>
      %381 = vector.broadcast %21 : f32 to vector<16x128xf32>
      %382 = arith.mulf %381, %380 : vector<16x128xf32>
      %383 = arith.addf %357, %382 : vector<16x128xf32>
      %384 = vector.broadcast %30 : f32 to vector<16x128xf32>
      %385 = arith.mulf %384, %380 : vector<16x128xf32>
      %386 = arith.addf %360, %385 : vector<16x128xf32>
      %387 = vector.broadcast %39 : f32 to vector<16x128xf32>
      %388 = arith.mulf %387, %380 : vector<16x128xf32>
      %389 = arith.addf %363, %388 : vector<16x128xf32>
      %390 = vector.broadcast %48 : f32 to vector<16x128xf32>
      %391 = arith.mulf %390, %380 : vector<16x128xf32>
      %392 = arith.addf %366, %391 : vector<16x128xf32>
      %393 = vector.broadcast %57 : f32 to vector<16x128xf32>
      %394 = arith.mulf %393, %380 : vector<16x128xf32>
      %395 = arith.addf %369, %394 : vector<16x128xf32>
      %396 = vector.broadcast %66 : f32 to vector<16x128xf32>
      %397 = arith.mulf %396, %380 : vector<16x128xf32>
      %398 = arith.addf %372, %397 : vector<16x128xf32>
      %399 = vector.broadcast %75 : f32 to vector<16x128xf32>
      %400 = arith.mulf %399, %380 : vector<16x128xf32>
      %401 = arith.addf %375, %400 : vector<16x128xf32>
      %402 = vector.broadcast %84 : f32 to vector<16x128xf32>
      %403 = arith.mulf %402, %380 : vector<16x128xf32>
      %404 = arith.addf %378, %403 : vector<16x128xf32>
      %405 = vector.broadcast %85 : f32 to vector<16x128xf32>
      %406 = arith.addf %383, %405 : vector<16x128xf32>
      %cst_105 = arith.constant 0.000000e+00 : f32
      %407 = vector.broadcast %cst_105 : f32 to vector<16x128xf32>
      %408 = arith.maximumf %406, %407 : vector<16x128xf32>
      %409 = vector.broadcast %86 : f32 to vector<16x128xf32>
      %410 = arith.addf %386, %409 : vector<16x128xf32>
      %cst_106 = arith.constant 0.000000e+00 : f32
      %411 = vector.broadcast %cst_106 : f32 to vector<16x128xf32>
      %412 = arith.maximumf %410, %411 : vector<16x128xf32>
      %413 = vector.broadcast %87 : f32 to vector<16x128xf32>
      %414 = arith.addf %389, %413 : vector<16x128xf32>
      %cst_107 = arith.constant 0.000000e+00 : f32
      %415 = vector.broadcast %cst_107 : f32 to vector<16x128xf32>
      %416 = arith.maximumf %414, %415 : vector<16x128xf32>
      %417 = vector.broadcast %88 : f32 to vector<16x128xf32>
      %418 = arith.addf %392, %417 : vector<16x128xf32>
      %cst_108 = arith.constant 0.000000e+00 : f32
      %419 = vector.broadcast %cst_108 : f32 to vector<16x128xf32>
      %420 = arith.maximumf %418, %419 : vector<16x128xf32>
      %421 = vector.broadcast %89 : f32 to vector<16x128xf32>
      %422 = arith.addf %395, %421 : vector<16x128xf32>
      %cst_109 = arith.constant 0.000000e+00 : f32
      %423 = vector.broadcast %cst_109 : f32 to vector<16x128xf32>
      %424 = arith.maximumf %422, %423 : vector<16x128xf32>
      %425 = vector.broadcast %90 : f32 to vector<16x128xf32>
      %426 = arith.addf %398, %425 : vector<16x128xf32>
      %cst_110 = arith.constant 0.000000e+00 : f32
      %427 = vector.broadcast %cst_110 : f32 to vector<16x128xf32>
      %428 = arith.maximumf %426, %427 : vector<16x128xf32>
      %429 = vector.broadcast %91 : f32 to vector<16x128xf32>
      %430 = arith.addf %401, %429 : vector<16x128xf32>
      %cst_111 = arith.constant 0.000000e+00 : f32
      %431 = vector.broadcast %cst_111 : f32 to vector<16x128xf32>
      %432 = arith.maximumf %430, %431 : vector<16x128xf32>
      %433 = vector.broadcast %92 : f32 to vector<16x128xf32>
      %434 = arith.addf %404, %433 : vector<16x128xf32>
      %cst_112 = arith.constant 0.000000e+00 : f32
      %435 = vector.broadcast %cst_112 : f32 to vector<16x128xf32>
      %436 = arith.maximumf %434, %435 : vector<16x128xf32>
      %437 = vector.broadcast %93 : f32 to vector<16x128xf32>
      %438 = arith.mulf %437, %408 : vector<16x128xf32>
      %439 = vector.broadcast %102 : f32 to vector<16x128xf32>
      %440 = arith.mulf %439, %412 : vector<16x128xf32>
      %441 = arith.addf %438, %440 : vector<16x128xf32>
      %442 = vector.broadcast %111 : f32 to vector<16x128xf32>
      %443 = arith.mulf %442, %416 : vector<16x128xf32>
      %444 = arith.addf %441, %443 : vector<16x128xf32>
      %445 = vector.broadcast %120 : f32 to vector<16x128xf32>
      %446 = arith.mulf %445, %420 : vector<16x128xf32>
      %447 = arith.addf %444, %446 : vector<16x128xf32>
      %448 = vector.broadcast %129 : f32 to vector<16x128xf32>
      %449 = arith.mulf %448, %424 : vector<16x128xf32>
      %450 = arith.addf %447, %449 : vector<16x128xf32>
      %451 = vector.broadcast %138 : f32 to vector<16x128xf32>
      %452 = arith.mulf %451, %428 : vector<16x128xf32>
      %453 = arith.addf %450, %452 : vector<16x128xf32>
      %454 = vector.broadcast %147 : f32 to vector<16x128xf32>
      %455 = arith.mulf %454, %432 : vector<16x128xf32>
      %456 = arith.addf %453, %455 : vector<16x128xf32>
      %457 = vector.broadcast %156 : f32 to vector<16x128xf32>
      %458 = arith.mulf %457, %436 : vector<16x128xf32>
      %459 = arith.addf %456, %458 : vector<16x128xf32>
      %c1_i32_113 = arith.constant 1 : i32
      %460 = tpu.dynamic_rotate %459 by %c1_i32_113 dim 1 : vector<16x128xf32>, i32 -> vector<16x128xf32>
      %461 = arith.select %12, %460, %4 : vector<16x128xi1>, vector<16x128xf32>
      %462 = vector.broadcast %94 : f32 to vector<16x128xf32>
      %463 = arith.mulf %462, %408 : vector<16x128xf32>
      %464 = vector.broadcast %103 : f32 to vector<16x128xf32>
      %465 = arith.mulf %464, %412 : vector<16x128xf32>
      %466 = arith.addf %463, %465 : vector<16x128xf32>
      %467 = vector.broadcast %112 : f32 to vector<16x128xf32>
      %468 = arith.mulf %467, %416 : vector<16x128xf32>
      %469 = arith.addf %466, %468 : vector<16x128xf32>
      %470 = vector.broadcast %121 : f32 to vector<16x128xf32>
      %471 = arith.mulf %470, %420 : vector<16x128xf32>
      %472 = arith.addf %469, %471 : vector<16x128xf32>
      %473 = vector.broadcast %130 : f32 to vector<16x128xf32>
      %474 = arith.mulf %473, %424 : vector<16x128xf32>
      %475 = arith.addf %472, %474 : vector<16x128xf32>
      %476 = vector.broadcast %139 : f32 to vector<16x128xf32>
      %477 = arith.mulf %476, %428 : vector<16x128xf32>
      %478 = arith.addf %475, %477 : vector<16x128xf32>
      %479 = vector.broadcast %148 : f32 to vector<16x128xf32>
      %480 = arith.mulf %479, %432 : vector<16x128xf32>
      %481 = arith.addf %478, %480 : vector<16x128xf32>
      %482 = vector.broadcast %157 : f32 to vector<16x128xf32>
      %483 = arith.mulf %482, %436 : vector<16x128xf32>
      %484 = arith.addf %481, %483 : vector<16x128xf32>
      %485 = arith.addf %461, %484 : vector<16x128xf32>
      %486 = vector.broadcast %95 : f32 to vector<16x128xf32>
      %487 = arith.mulf %486, %408 : vector<16x128xf32>
      %488 = vector.broadcast %104 : f32 to vector<16x128xf32>
      %489 = arith.mulf %488, %412 : vector<16x128xf32>
      %490 = arith.addf %487, %489 : vector<16x128xf32>
      %491 = vector.broadcast %113 : f32 to vector<16x128xf32>
      %492 = arith.mulf %491, %416 : vector<16x128xf32>
      %493 = arith.addf %490, %492 : vector<16x128xf32>
      %494 = vector.broadcast %122 : f32 to vector<16x128xf32>
      %495 = arith.mulf %494, %420 : vector<16x128xf32>
      %496 = arith.addf %493, %495 : vector<16x128xf32>
      %497 = vector.broadcast %131 : f32 to vector<16x128xf32>
      %498 = arith.mulf %497, %424 : vector<16x128xf32>
      %499 = arith.addf %496, %498 : vector<16x128xf32>
      %500 = vector.broadcast %140 : f32 to vector<16x128xf32>
      %501 = arith.mulf %500, %428 : vector<16x128xf32>
      %502 = arith.addf %499, %501 : vector<16x128xf32>
      %503 = vector.broadcast %149 : f32 to vector<16x128xf32>
      %504 = arith.mulf %503, %432 : vector<16x128xf32>
      %505 = arith.addf %502, %504 : vector<16x128xf32>
      %506 = vector.broadcast %158 : f32 to vector<16x128xf32>
      %507 = arith.mulf %506, %436 : vector<16x128xf32>
      %508 = arith.addf %505, %507 : vector<16x128xf32>
      %c127_i32_114 = arith.constant 127 : i32
      %509 = tpu.dynamic_rotate %508 by %c127_i32_114 dim 1 : vector<16x128xf32>, i32 -> vector<16x128xf32>
      %510 = arith.select %10, %509, %4 : vector<16x128xi1>, vector<16x128xf32>
      %511 = arith.addf %485, %510 : vector<16x128xf32>
      %c1_i32_115 = arith.constant 1 : i32
      %512 = tpu.dynamic_rotate %511 by %c1_i32_115 dim 0 : vector<16x128xf32>, i32 -> vector<16x128xf32>
      %513 = arith.select %8, %512, %4 : vector<16x128xi1>, vector<16x128xf32>
      %514 = vector.broadcast %96 : f32 to vector<16x128xf32>
      %515 = arith.mulf %514, %408 : vector<16x128xf32>
      %516 = vector.broadcast %105 : f32 to vector<16x128xf32>
      %517 = arith.mulf %516, %412 : vector<16x128xf32>
      %518 = arith.addf %515, %517 : vector<16x128xf32>
      %519 = vector.broadcast %114 : f32 to vector<16x128xf32>
      %520 = arith.mulf %519, %416 : vector<16x128xf32>
      %521 = arith.addf %518, %520 : vector<16x128xf32>
      %522 = vector.broadcast %123 : f32 to vector<16x128xf32>
      %523 = arith.mulf %522, %420 : vector<16x128xf32>
      %524 = arith.addf %521, %523 : vector<16x128xf32>
      %525 = vector.broadcast %132 : f32 to vector<16x128xf32>
      %526 = arith.mulf %525, %424 : vector<16x128xf32>
      %527 = arith.addf %524, %526 : vector<16x128xf32>
      %528 = vector.broadcast %141 : f32 to vector<16x128xf32>
      %529 = arith.mulf %528, %428 : vector<16x128xf32>
      %530 = arith.addf %527, %529 : vector<16x128xf32>
      %531 = vector.broadcast %150 : f32 to vector<16x128xf32>
      %532 = arith.mulf %531, %432 : vector<16x128xf32>
      %533 = arith.addf %530, %532 : vector<16x128xf32>
      %534 = vector.broadcast %159 : f32 to vector<16x128xf32>
      %535 = arith.mulf %534, %436 : vector<16x128xf32>
      %536 = arith.addf %533, %535 : vector<16x128xf32>
      %c1_i32_116 = arith.constant 1 : i32
      %537 = tpu.dynamic_rotate %536 by %c1_i32_116 dim 1 : vector<16x128xf32>, i32 -> vector<16x128xf32>
      %538 = arith.select %12, %537, %4 : vector<16x128xi1>, vector<16x128xf32>
      %539 = vector.broadcast %97 : f32 to vector<16x128xf32>
      %540 = arith.mulf %539, %408 : vector<16x128xf32>
      %541 = vector.broadcast %106 : f32 to vector<16x128xf32>
      %542 = arith.mulf %541, %412 : vector<16x128xf32>
      %543 = arith.addf %540, %542 : vector<16x128xf32>
      %544 = vector.broadcast %115 : f32 to vector<16x128xf32>
      %545 = arith.mulf %544, %416 : vector<16x128xf32>
      %546 = arith.addf %543, %545 : vector<16x128xf32>
      %547 = vector.broadcast %124 : f32 to vector<16x128xf32>
      %548 = arith.mulf %547, %420 : vector<16x128xf32>
      %549 = arith.addf %546, %548 : vector<16x128xf32>
      %550 = vector.broadcast %133 : f32 to vector<16x128xf32>
      %551 = arith.mulf %550, %424 : vector<16x128xf32>
      %552 = arith.addf %549, %551 : vector<16x128xf32>
      %553 = vector.broadcast %142 : f32 to vector<16x128xf32>
      %554 = arith.mulf %553, %428 : vector<16x128xf32>
      %555 = arith.addf %552, %554 : vector<16x128xf32>
      %556 = vector.broadcast %151 : f32 to vector<16x128xf32>
      %557 = arith.mulf %556, %432 : vector<16x128xf32>
      %558 = arith.addf %555, %557 : vector<16x128xf32>
      %559 = vector.broadcast %160 : f32 to vector<16x128xf32>
      %560 = arith.mulf %559, %436 : vector<16x128xf32>
      %561 = arith.addf %558, %560 : vector<16x128xf32>
      %562 = arith.addf %538, %561 : vector<16x128xf32>
      %563 = vector.broadcast %98 : f32 to vector<16x128xf32>
      %564 = arith.mulf %563, %408 : vector<16x128xf32>
      %565 = vector.broadcast %107 : f32 to vector<16x128xf32>
      %566 = arith.mulf %565, %412 : vector<16x128xf32>
      %567 = arith.addf %564, %566 : vector<16x128xf32>
      %568 = vector.broadcast %116 : f32 to vector<16x128xf32>
      %569 = arith.mulf %568, %416 : vector<16x128xf32>
      %570 = arith.addf %567, %569 : vector<16x128xf32>
      %571 = vector.broadcast %125 : f32 to vector<16x128xf32>
      %572 = arith.mulf %571, %420 : vector<16x128xf32>
      %573 = arith.addf %570, %572 : vector<16x128xf32>
      %574 = vector.broadcast %134 : f32 to vector<16x128xf32>
      %575 = arith.mulf %574, %424 : vector<16x128xf32>
      %576 = arith.addf %573, %575 : vector<16x128xf32>
      %577 = vector.broadcast %143 : f32 to vector<16x128xf32>
      %578 = arith.mulf %577, %428 : vector<16x128xf32>
      %579 = arith.addf %576, %578 : vector<16x128xf32>
      %580 = vector.broadcast %152 : f32 to vector<16x128xf32>
      %581 = arith.mulf %580, %432 : vector<16x128xf32>
      %582 = arith.addf %579, %581 : vector<16x128xf32>
      %583 = vector.broadcast %161 : f32 to vector<16x128xf32>
      %584 = arith.mulf %583, %436 : vector<16x128xf32>
      %585 = arith.addf %582, %584 : vector<16x128xf32>
      %c127_i32_117 = arith.constant 127 : i32
      %586 = tpu.dynamic_rotate %585 by %c127_i32_117 dim 1 : vector<16x128xf32>, i32 -> vector<16x128xf32>
      %587 = arith.select %10, %586, %4 : vector<16x128xi1>, vector<16x128xf32>
      %588 = arith.addf %562, %587 : vector<16x128xf32>
      %589 = arith.addf %513, %588 : vector<16x128xf32>
      %590 = vector.broadcast %99 : f32 to vector<16x128xf32>
      %591 = arith.mulf %590, %408 : vector<16x128xf32>
      %592 = vector.broadcast %108 : f32 to vector<16x128xf32>
      %593 = arith.mulf %592, %412 : vector<16x128xf32>
      %594 = arith.addf %591, %593 : vector<16x128xf32>
      %595 = vector.broadcast %117 : f32 to vector<16x128xf32>
      %596 = arith.mulf %595, %416 : vector<16x128xf32>
      %597 = arith.addf %594, %596 : vector<16x128xf32>
      %598 = vector.broadcast %126 : f32 to vector<16x128xf32>
      %599 = arith.mulf %598, %420 : vector<16x128xf32>
      %600 = arith.addf %597, %599 : vector<16x128xf32>
      %601 = vector.broadcast %135 : f32 to vector<16x128xf32>
      %602 = arith.mulf %601, %424 : vector<16x128xf32>
      %603 = arith.addf %600, %602 : vector<16x128xf32>
      %604 = vector.broadcast %144 : f32 to vector<16x128xf32>
      %605 = arith.mulf %604, %428 : vector<16x128xf32>
      %606 = arith.addf %603, %605 : vector<16x128xf32>
      %607 = vector.broadcast %153 : f32 to vector<16x128xf32>
      %608 = arith.mulf %607, %432 : vector<16x128xf32>
      %609 = arith.addf %606, %608 : vector<16x128xf32>
      %610 = vector.broadcast %162 : f32 to vector<16x128xf32>
      %611 = arith.mulf %610, %436 : vector<16x128xf32>
      %612 = arith.addf %609, %611 : vector<16x128xf32>
      %c1_i32_118 = arith.constant 1 : i32
      %613 = tpu.dynamic_rotate %612 by %c1_i32_118 dim 1 : vector<16x128xf32>, i32 -> vector<16x128xf32>
      %614 = arith.select %12, %613, %4 : vector<16x128xi1>, vector<16x128xf32>
      %615 = vector.broadcast %100 : f32 to vector<16x128xf32>
      %616 = arith.mulf %615, %408 : vector<16x128xf32>
      %617 = vector.broadcast %109 : f32 to vector<16x128xf32>
      %618 = arith.mulf %617, %412 : vector<16x128xf32>
      %619 = arith.addf %616, %618 : vector<16x128xf32>
      %620 = vector.broadcast %118 : f32 to vector<16x128xf32>
      %621 = arith.mulf %620, %416 : vector<16x128xf32>
      %622 = arith.addf %619, %621 : vector<16x128xf32>
      %623 = vector.broadcast %127 : f32 to vector<16x128xf32>
      %624 = arith.mulf %623, %420 : vector<16x128xf32>
      %625 = arith.addf %622, %624 : vector<16x128xf32>
      %626 = vector.broadcast %136 : f32 to vector<16x128xf32>
      %627 = arith.mulf %626, %424 : vector<16x128xf32>
      %628 = arith.addf %625, %627 : vector<16x128xf32>
      %629 = vector.broadcast %145 : f32 to vector<16x128xf32>
      %630 = arith.mulf %629, %428 : vector<16x128xf32>
      %631 = arith.addf %628, %630 : vector<16x128xf32>
      %632 = vector.broadcast %154 : f32 to vector<16x128xf32>
      %633 = arith.mulf %632, %432 : vector<16x128xf32>
      %634 = arith.addf %631, %633 : vector<16x128xf32>
      %635 = vector.broadcast %163 : f32 to vector<16x128xf32>
      %636 = arith.mulf %635, %436 : vector<16x128xf32>
      %637 = arith.addf %634, %636 : vector<16x128xf32>
      %638 = arith.addf %614, %637 : vector<16x128xf32>
      %639 = vector.broadcast %101 : f32 to vector<16x128xf32>
      %640 = arith.mulf %639, %408 : vector<16x128xf32>
      %641 = vector.broadcast %110 : f32 to vector<16x128xf32>
      %642 = arith.mulf %641, %412 : vector<16x128xf32>
      %643 = arith.addf %640, %642 : vector<16x128xf32>
      %644 = vector.broadcast %119 : f32 to vector<16x128xf32>
      %645 = arith.mulf %644, %416 : vector<16x128xf32>
      %646 = arith.addf %643, %645 : vector<16x128xf32>
      %647 = vector.broadcast %128 : f32 to vector<16x128xf32>
      %648 = arith.mulf %647, %420 : vector<16x128xf32>
      %649 = arith.addf %646, %648 : vector<16x128xf32>
      %650 = vector.broadcast %137 : f32 to vector<16x128xf32>
      %651 = arith.mulf %650, %424 : vector<16x128xf32>
      %652 = arith.addf %649, %651 : vector<16x128xf32>
      %653 = vector.broadcast %146 : f32 to vector<16x128xf32>
      %654 = arith.mulf %653, %428 : vector<16x128xf32>
      %655 = arith.addf %652, %654 : vector<16x128xf32>
      %656 = vector.broadcast %155 : f32 to vector<16x128xf32>
      %657 = arith.mulf %656, %432 : vector<16x128xf32>
      %658 = arith.addf %655, %657 : vector<16x128xf32>
      %659 = vector.broadcast %164 : f32 to vector<16x128xf32>
      %660 = arith.mulf %659, %436 : vector<16x128xf32>
      %661 = arith.addf %658, %660 : vector<16x128xf32>
      %c127_i32_119 = arith.constant 127 : i32
      %662 = tpu.dynamic_rotate %661 by %c127_i32_119 dim 1 : vector<16x128xf32>, i32 -> vector<16x128xf32>
      %663 = arith.select %10, %662, %4 : vector<16x128xi1>, vector<16x128xf32>
      %664 = arith.addf %638, %663 : vector<16x128xf32>
      %c15_i32_120 = arith.constant 15 : i32
      %665 = tpu.dynamic_rotate %664 by %c15_i32_120 dim 0 : vector<16x128xf32>, i32 -> vector<16x128xf32>
      %666 = arith.select %6, %665, %4 : vector<16x128xi1>, vector<16x128xf32>
      %667 = arith.addf %589, %666 : vector<16x128xf32>
      %668 = vector.broadcast %165 : f32 to vector<16x128xf32>
      %669 = arith.addf %667, %668 : vector<16x128xf32>
      %670 = arith.addf %669, %177 : vector<16x128xf32>
      %671 = vector.broadcast %170 : f32 to vector<16x128xf32>
      %672 = arith.mulf %671, %670 : vector<16x128xf32>
      %673 = vector.broadcast %166 : f32 to vector<16x128xf32>
      %674 = arith.mulf %673, %180 : vector<16x128xf32>
      %675 = arith.addf %672, %674 : vector<16x128xf32>
      %c1_i32_121 = arith.constant 1 : i32
      %676 = tpu.dynamic_rotate %675 by %c1_i32_121 dim 0 : vector<16x128xf32>, i32 -> vector<16x128xf32>
      %677 = arith.select %8, %676, %4 : vector<16x128xi1>, vector<16x128xf32>
      %c1_i32_122 = arith.constant 1 : i32
      %678 = tpu.dynamic_rotate %677 by %c1_i32_122 dim 1 : vector<16x128xf32>, i32 -> vector<16x128xf32>
      %679 = arith.select %12, %678, %4 : vector<16x128xi1>, vector<16x128xf32>
      %680 = vector.broadcast %13 : f32 to vector<16x128xf32>
      %681 = arith.mulf %680, %679 : vector<16x128xf32>
      %682 = vector.broadcast %22 : f32 to vector<16x128xf32>
      %683 = arith.mulf %682, %679 : vector<16x128xf32>
      %684 = vector.broadcast %31 : f32 to vector<16x128xf32>
      %685 = arith.mulf %684, %679 : vector<16x128xf32>
      %686 = vector.broadcast %40 : f32 to vector<16x128xf32>
      %687 = arith.mulf %686, %679 : vector<16x128xf32>
      %688 = vector.broadcast %49 : f32 to vector<16x128xf32>
      %689 = arith.mulf %688, %679 : vector<16x128xf32>
      %690 = vector.broadcast %58 : f32 to vector<16x128xf32>
      %691 = arith.mulf %690, %679 : vector<16x128xf32>
      %692 = vector.broadcast %67 : f32 to vector<16x128xf32>
      %693 = arith.mulf %692, %679 : vector<16x128xf32>
      %694 = vector.broadcast %76 : f32 to vector<16x128xf32>
      %695 = arith.mulf %694, %679 : vector<16x128xf32>
      %696 = vector.broadcast %14 : f32 to vector<16x128xf32>
      %697 = arith.mulf %696, %677 : vector<16x128xf32>
      %698 = arith.addf %681, %697 : vector<16x128xf32>
      %699 = vector.broadcast %23 : f32 to vector<16x128xf32>
      %700 = arith.mulf %699, %677 : vector<16x128xf32>
      %701 = arith.addf %683, %700 : vector<16x128xf32>
      %702 = vector.broadcast %32 : f32 to vector<16x128xf32>
      %703 = arith.mulf %702, %677 : vector<16x128xf32>
      %704 = arith.addf %685, %703 : vector<16x128xf32>
      %705 = vector.broadcast %41 : f32 to vector<16x128xf32>
      %706 = arith.mulf %705, %677 : vector<16x128xf32>
      %707 = arith.addf %687, %706 : vector<16x128xf32>
      %708 = vector.broadcast %50 : f32 to vector<16x128xf32>
      %709 = arith.mulf %708, %677 : vector<16x128xf32>
      %710 = arith.addf %689, %709 : vector<16x128xf32>
      %711 = vector.broadcast %59 : f32 to vector<16x128xf32>
      %712 = arith.mulf %711, %677 : vector<16x128xf32>
      %713 = arith.addf %691, %712 : vector<16x128xf32>
      %714 = vector.broadcast %68 : f32 to vector<16x128xf32>
      %715 = arith.mulf %714, %677 : vector<16x128xf32>
      %716 = arith.addf %693, %715 : vector<16x128xf32>
      %717 = vector.broadcast %77 : f32 to vector<16x128xf32>
      %718 = arith.mulf %717, %677 : vector<16x128xf32>
      %719 = arith.addf %695, %718 : vector<16x128xf32>
      %c127_i32_123 = arith.constant 127 : i32
      %720 = tpu.dynamic_rotate %677 by %c127_i32_123 dim 1 : vector<16x128xf32>, i32 -> vector<16x128xf32>
      %721 = arith.select %10, %720, %4 : vector<16x128xi1>, vector<16x128xf32>
      %722 = vector.broadcast %15 : f32 to vector<16x128xf32>
      %723 = arith.mulf %722, %721 : vector<16x128xf32>
      %724 = arith.addf %698, %723 : vector<16x128xf32>
      %725 = vector.broadcast %24 : f32 to vector<16x128xf32>
      %726 = arith.mulf %725, %721 : vector<16x128xf32>
      %727 = arith.addf %701, %726 : vector<16x128xf32>
      %728 = vector.broadcast %33 : f32 to vector<16x128xf32>
      %729 = arith.mulf %728, %721 : vector<16x128xf32>
      %730 = arith.addf %704, %729 : vector<16x128xf32>
      %731 = vector.broadcast %42 : f32 to vector<16x128xf32>
      %732 = arith.mulf %731, %721 : vector<16x128xf32>
      %733 = arith.addf %707, %732 : vector<16x128xf32>
      %734 = vector.broadcast %51 : f32 to vector<16x128xf32>
      %735 = arith.mulf %734, %721 : vector<16x128xf32>
      %736 = arith.addf %710, %735 : vector<16x128xf32>
      %737 = vector.broadcast %60 : f32 to vector<16x128xf32>
      %738 = arith.mulf %737, %721 : vector<16x128xf32>
      %739 = arith.addf %713, %738 : vector<16x128xf32>
      %740 = vector.broadcast %69 : f32 to vector<16x128xf32>
      %741 = arith.mulf %740, %721 : vector<16x128xf32>
      %742 = arith.addf %716, %741 : vector<16x128xf32>
      %743 = vector.broadcast %78 : f32 to vector<16x128xf32>
      %744 = arith.mulf %743, %721 : vector<16x128xf32>
      %745 = arith.addf %719, %744 : vector<16x128xf32>
      %c1_i32_124 = arith.constant 1 : i32
      %746 = tpu.dynamic_rotate %675 by %c1_i32_124 dim 1 : vector<16x128xf32>, i32 -> vector<16x128xf32>
      %747 = arith.select %12, %746, %4 : vector<16x128xi1>, vector<16x128xf32>
      %748 = vector.broadcast %16 : f32 to vector<16x128xf32>
      %749 = arith.mulf %748, %747 : vector<16x128xf32>
      %750 = arith.addf %724, %749 : vector<16x128xf32>
      %751 = vector.broadcast %25 : f32 to vector<16x128xf32>
      %752 = arith.mulf %751, %747 : vector<16x128xf32>
      %753 = arith.addf %727, %752 : vector<16x128xf32>
      %754 = vector.broadcast %34 : f32 to vector<16x128xf32>
      %755 = arith.mulf %754, %747 : vector<16x128xf32>
      %756 = arith.addf %730, %755 : vector<16x128xf32>
      %757 = vector.broadcast %43 : f32 to vector<16x128xf32>
      %758 = arith.mulf %757, %747 : vector<16x128xf32>
      %759 = arith.addf %733, %758 : vector<16x128xf32>
      %760 = vector.broadcast %52 : f32 to vector<16x128xf32>
      %761 = arith.mulf %760, %747 : vector<16x128xf32>
      %762 = arith.addf %736, %761 : vector<16x128xf32>
      %763 = vector.broadcast %61 : f32 to vector<16x128xf32>
      %764 = arith.mulf %763, %747 : vector<16x128xf32>
      %765 = arith.addf %739, %764 : vector<16x128xf32>
      %766 = vector.broadcast %70 : f32 to vector<16x128xf32>
      %767 = arith.mulf %766, %747 : vector<16x128xf32>
      %768 = arith.addf %742, %767 : vector<16x128xf32>
      %769 = vector.broadcast %79 : f32 to vector<16x128xf32>
      %770 = arith.mulf %769, %747 : vector<16x128xf32>
      %771 = arith.addf %745, %770 : vector<16x128xf32>
      %772 = vector.broadcast %17 : f32 to vector<16x128xf32>
      %773 = arith.mulf %772, %675 : vector<16x128xf32>
      %774 = arith.addf %750, %773 : vector<16x128xf32>
      %775 = vector.broadcast %26 : f32 to vector<16x128xf32>
      %776 = arith.mulf %775, %675 : vector<16x128xf32>
      %777 = arith.addf %753, %776 : vector<16x128xf32>
      %778 = vector.broadcast %35 : f32 to vector<16x128xf32>
      %779 = arith.mulf %778, %675 : vector<16x128xf32>
      %780 = arith.addf %756, %779 : vector<16x128xf32>
      %781 = vector.broadcast %44 : f32 to vector<16x128xf32>
      %782 = arith.mulf %781, %675 : vector<16x128xf32>
      %783 = arith.addf %759, %782 : vector<16x128xf32>
      %784 = vector.broadcast %53 : f32 to vector<16x128xf32>
      %785 = arith.mulf %784, %675 : vector<16x128xf32>
      %786 = arith.addf %762, %785 : vector<16x128xf32>
      %787 = vector.broadcast %62 : f32 to vector<16x128xf32>
      %788 = arith.mulf %787, %675 : vector<16x128xf32>
      %789 = arith.addf %765, %788 : vector<16x128xf32>
      %790 = vector.broadcast %71 : f32 to vector<16x128xf32>
      %791 = arith.mulf %790, %675 : vector<16x128xf32>
      %792 = arith.addf %768, %791 : vector<16x128xf32>
      %793 = vector.broadcast %80 : f32 to vector<16x128xf32>
      %794 = arith.mulf %793, %675 : vector<16x128xf32>
      %795 = arith.addf %771, %794 : vector<16x128xf32>
      %c127_i32_125 = arith.constant 127 : i32
      %796 = tpu.dynamic_rotate %675 by %c127_i32_125 dim 1 : vector<16x128xf32>, i32 -> vector<16x128xf32>
      %797 = arith.select %10, %796, %4 : vector<16x128xi1>, vector<16x128xf32>
      %798 = vector.broadcast %18 : f32 to vector<16x128xf32>
      %799 = arith.mulf %798, %797 : vector<16x128xf32>
      %800 = arith.addf %774, %799 : vector<16x128xf32>
      %801 = vector.broadcast %27 : f32 to vector<16x128xf32>
      %802 = arith.mulf %801, %797 : vector<16x128xf32>
      %803 = arith.addf %777, %802 : vector<16x128xf32>
      %804 = vector.broadcast %36 : f32 to vector<16x128xf32>
      %805 = arith.mulf %804, %797 : vector<16x128xf32>
      %806 = arith.addf %780, %805 : vector<16x128xf32>
      %807 = vector.broadcast %45 : f32 to vector<16x128xf32>
      %808 = arith.mulf %807, %797 : vector<16x128xf32>
      %809 = arith.addf %783, %808 : vector<16x128xf32>
      %810 = vector.broadcast %54 : f32 to vector<16x128xf32>
      %811 = arith.mulf %810, %797 : vector<16x128xf32>
      %812 = arith.addf %786, %811 : vector<16x128xf32>
      %813 = vector.broadcast %63 : f32 to vector<16x128xf32>
      %814 = arith.mulf %813, %797 : vector<16x128xf32>
      %815 = arith.addf %789, %814 : vector<16x128xf32>
      %816 = vector.broadcast %72 : f32 to vector<16x128xf32>
      %817 = arith.mulf %816, %797 : vector<16x128xf32>
      %818 = arith.addf %792, %817 : vector<16x128xf32>
      %819 = vector.broadcast %81 : f32 to vector<16x128xf32>
      %820 = arith.mulf %819, %797 : vector<16x128xf32>
      %821 = arith.addf %795, %820 : vector<16x128xf32>
      %c15_i32_126 = arith.constant 15 : i32
      %822 = tpu.dynamic_rotate %675 by %c15_i32_126 dim 0 : vector<16x128xf32>, i32 -> vector<16x128xf32>
      %823 = arith.select %6, %822, %4 : vector<16x128xi1>, vector<16x128xf32>
      %c1_i32_127 = arith.constant 1 : i32
      %824 = tpu.dynamic_rotate %823 by %c1_i32_127 dim 1 : vector<16x128xf32>, i32 -> vector<16x128xf32>
      %825 = arith.select %12, %824, %4 : vector<16x128xi1>, vector<16x128xf32>
      %826 = vector.broadcast %19 : f32 to vector<16x128xf32>
      %827 = arith.mulf %826, %825 : vector<16x128xf32>
      %828 = arith.addf %800, %827 : vector<16x128xf32>
      %829 = vector.broadcast %28 : f32 to vector<16x128xf32>
      %830 = arith.mulf %829, %825 : vector<16x128xf32>
      %831 = arith.addf %803, %830 : vector<16x128xf32>
      %832 = vector.broadcast %37 : f32 to vector<16x128xf32>
      %833 = arith.mulf %832, %825 : vector<16x128xf32>
      %834 = arith.addf %806, %833 : vector<16x128xf32>
      %835 = vector.broadcast %46 : f32 to vector<16x128xf32>
      %836 = arith.mulf %835, %825 : vector<16x128xf32>
      %837 = arith.addf %809, %836 : vector<16x128xf32>
      %838 = vector.broadcast %55 : f32 to vector<16x128xf32>
      %839 = arith.mulf %838, %825 : vector<16x128xf32>
      %840 = arith.addf %812, %839 : vector<16x128xf32>
      %841 = vector.broadcast %64 : f32 to vector<16x128xf32>
      %842 = arith.mulf %841, %825 : vector<16x128xf32>
      %843 = arith.addf %815, %842 : vector<16x128xf32>
      %844 = vector.broadcast %73 : f32 to vector<16x128xf32>
      %845 = arith.mulf %844, %825 : vector<16x128xf32>
      %846 = arith.addf %818, %845 : vector<16x128xf32>
      %847 = vector.broadcast %82 : f32 to vector<16x128xf32>
      %848 = arith.mulf %847, %825 : vector<16x128xf32>
      %849 = arith.addf %821, %848 : vector<16x128xf32>
      %850 = vector.broadcast %20 : f32 to vector<16x128xf32>
      %851 = arith.mulf %850, %823 : vector<16x128xf32>
      %852 = arith.addf %828, %851 : vector<16x128xf32>
      %853 = vector.broadcast %29 : f32 to vector<16x128xf32>
      %854 = arith.mulf %853, %823 : vector<16x128xf32>
      %855 = arith.addf %831, %854 : vector<16x128xf32>
      %856 = vector.broadcast %38 : f32 to vector<16x128xf32>
      %857 = arith.mulf %856, %823 : vector<16x128xf32>
      %858 = arith.addf %834, %857 : vector<16x128xf32>
      %859 = vector.broadcast %47 : f32 to vector<16x128xf32>
      %860 = arith.mulf %859, %823 : vector<16x128xf32>
      %861 = arith.addf %837, %860 : vector<16x128xf32>
      %862 = vector.broadcast %56 : f32 to vector<16x128xf32>
      %863 = arith.mulf %862, %823 : vector<16x128xf32>
      %864 = arith.addf %840, %863 : vector<16x128xf32>
      %865 = vector.broadcast %65 : f32 to vector<16x128xf32>
      %866 = arith.mulf %865, %823 : vector<16x128xf32>
      %867 = arith.addf %843, %866 : vector<16x128xf32>
      %868 = vector.broadcast %74 : f32 to vector<16x128xf32>
      %869 = arith.mulf %868, %823 : vector<16x128xf32>
      %870 = arith.addf %846, %869 : vector<16x128xf32>
      %871 = vector.broadcast %83 : f32 to vector<16x128xf32>
      %872 = arith.mulf %871, %823 : vector<16x128xf32>
      %873 = arith.addf %849, %872 : vector<16x128xf32>
      %c127_i32_128 = arith.constant 127 : i32
      %874 = tpu.dynamic_rotate %823 by %c127_i32_128 dim 1 : vector<16x128xf32>, i32 -> vector<16x128xf32>
      %875 = arith.select %10, %874, %4 : vector<16x128xi1>, vector<16x128xf32>
      %876 = vector.broadcast %21 : f32 to vector<16x128xf32>
      %877 = arith.mulf %876, %875 : vector<16x128xf32>
      %878 = arith.addf %852, %877 : vector<16x128xf32>
      %879 = vector.broadcast %30 : f32 to vector<16x128xf32>
      %880 = arith.mulf %879, %875 : vector<16x128xf32>
      %881 = arith.addf %855, %880 : vector<16x128xf32>
      %882 = vector.broadcast %39 : f32 to vector<16x128xf32>
      %883 = arith.mulf %882, %875 : vector<16x128xf32>
      %884 = arith.addf %858, %883 : vector<16x128xf32>
      %885 = vector.broadcast %48 : f32 to vector<16x128xf32>
      %886 = arith.mulf %885, %875 : vector<16x128xf32>
      %887 = arith.addf %861, %886 : vector<16x128xf32>
      %888 = vector.broadcast %57 : f32 to vector<16x128xf32>
      %889 = arith.mulf %888, %875 : vector<16x128xf32>
      %890 = arith.addf %864, %889 : vector<16x128xf32>
      %891 = vector.broadcast %66 : f32 to vector<16x128xf32>
      %892 = arith.mulf %891, %875 : vector<16x128xf32>
      %893 = arith.addf %867, %892 : vector<16x128xf32>
      %894 = vector.broadcast %75 : f32 to vector<16x128xf32>
      %895 = arith.mulf %894, %875 : vector<16x128xf32>
      %896 = arith.addf %870, %895 : vector<16x128xf32>
      %897 = vector.broadcast %84 : f32 to vector<16x128xf32>
      %898 = arith.mulf %897, %875 : vector<16x128xf32>
      %899 = arith.addf %873, %898 : vector<16x128xf32>
      %900 = vector.broadcast %85 : f32 to vector<16x128xf32>
      %901 = arith.addf %878, %900 : vector<16x128xf32>
      %cst_129 = arith.constant 0.000000e+00 : f32
      %902 = vector.broadcast %cst_129 : f32 to vector<16x128xf32>
      %903 = arith.maximumf %901, %902 : vector<16x128xf32>
      %904 = vector.broadcast %86 : f32 to vector<16x128xf32>
      %905 = arith.addf %881, %904 : vector<16x128xf32>
      %cst_130 = arith.constant 0.000000e+00 : f32
      %906 = vector.broadcast %cst_130 : f32 to vector<16x128xf32>
      %907 = arith.maximumf %905, %906 : vector<16x128xf32>
      %908 = vector.broadcast %87 : f32 to vector<16x128xf32>
      %909 = arith.addf %884, %908 : vector<16x128xf32>
      %cst_131 = arith.constant 0.000000e+00 : f32
      %910 = vector.broadcast %cst_131 : f32 to vector<16x128xf32>
      %911 = arith.maximumf %909, %910 : vector<16x128xf32>
      %912 = vector.broadcast %88 : f32 to vector<16x128xf32>
      %913 = arith.addf %887, %912 : vector<16x128xf32>
      %cst_132 = arith.constant 0.000000e+00 : f32
      %914 = vector.broadcast %cst_132 : f32 to vector<16x128xf32>
      %915 = arith.maximumf %913, %914 : vector<16x128xf32>
      %916 = vector.broadcast %89 : f32 to vector<16x128xf32>
      %917 = arith.addf %890, %916 : vector<16x128xf32>
      %cst_133 = arith.constant 0.000000e+00 : f32
      %918 = vector.broadcast %cst_133 : f32 to vector<16x128xf32>
      %919 = arith.maximumf %917, %918 : vector<16x128xf32>
      %920 = vector.broadcast %90 : f32 to vector<16x128xf32>
      %921 = arith.addf %893, %920 : vector<16x128xf32>
      %cst_134 = arith.constant 0.000000e+00 : f32
      %922 = vector.broadcast %cst_134 : f32 to vector<16x128xf32>
      %923 = arith.maximumf %921, %922 : vector<16x128xf32>
      %924 = vector.broadcast %91 : f32 to vector<16x128xf32>
      %925 = arith.addf %896, %924 : vector<16x128xf32>
      %cst_135 = arith.constant 0.000000e+00 : f32
      %926 = vector.broadcast %cst_135 : f32 to vector<16x128xf32>
      %927 = arith.maximumf %925, %926 : vector<16x128xf32>
      %928 = vector.broadcast %92 : f32 to vector<16x128xf32>
      %929 = arith.addf %899, %928 : vector<16x128xf32>
      %cst_136 = arith.constant 0.000000e+00 : f32
      %930 = vector.broadcast %cst_136 : f32 to vector<16x128xf32>
      %931 = arith.maximumf %929, %930 : vector<16x128xf32>
      %932 = vector.broadcast %93 : f32 to vector<16x128xf32>
      %933 = arith.mulf %932, %903 : vector<16x128xf32>
      %934 = vector.broadcast %102 : f32 to vector<16x128xf32>
      %935 = arith.mulf %934, %907 : vector<16x128xf32>
      %936 = arith.addf %933, %935 : vector<16x128xf32>
      %937 = vector.broadcast %111 : f32 to vector<16x128xf32>
      %938 = arith.mulf %937, %911 : vector<16x128xf32>
      %939 = arith.addf %936, %938 : vector<16x128xf32>
      %940 = vector.broadcast %120 : f32 to vector<16x128xf32>
      %941 = arith.mulf %940, %915 : vector<16x128xf32>
      %942 = arith.addf %939, %941 : vector<16x128xf32>
      %943 = vector.broadcast %129 : f32 to vector<16x128xf32>
      %944 = arith.mulf %943, %919 : vector<16x128xf32>
      %945 = arith.addf %942, %944 : vector<16x128xf32>
      %946 = vector.broadcast %138 : f32 to vector<16x128xf32>
      %947 = arith.mulf %946, %923 : vector<16x128xf32>
      %948 = arith.addf %945, %947 : vector<16x128xf32>
      %949 = vector.broadcast %147 : f32 to vector<16x128xf32>
      %950 = arith.mulf %949, %927 : vector<16x128xf32>
      %951 = arith.addf %948, %950 : vector<16x128xf32>
      %952 = vector.broadcast %156 : f32 to vector<16x128xf32>
      %953 = arith.mulf %952, %931 : vector<16x128xf32>
      %954 = arith.addf %951, %953 : vector<16x128xf32>
      %c1_i32_137 = arith.constant 1 : i32
      %955 = tpu.dynamic_rotate %954 by %c1_i32_137 dim 1 : vector<16x128xf32>, i32 -> vector<16x128xf32>
      %956 = arith.select %12, %955, %4 : vector<16x128xi1>, vector<16x128xf32>
      %957 = vector.broadcast %94 : f32 to vector<16x128xf32>
      %958 = arith.mulf %957, %903 : vector<16x128xf32>
      %959 = vector.broadcast %103 : f32 to vector<16x128xf32>
      %960 = arith.mulf %959, %907 : vector<16x128xf32>
      %961 = arith.addf %958, %960 : vector<16x128xf32>
      %962 = vector.broadcast %112 : f32 to vector<16x128xf32>
      %963 = arith.mulf %962, %911 : vector<16x128xf32>
      %964 = arith.addf %961, %963 : vector<16x128xf32>
      %965 = vector.broadcast %121 : f32 to vector<16x128xf32>
      %966 = arith.mulf %965, %915 : vector<16x128xf32>
      %967 = arith.addf %964, %966 : vector<16x128xf32>
      %968 = vector.broadcast %130 : f32 to vector<16x128xf32>
      %969 = arith.mulf %968, %919 : vector<16x128xf32>
      %970 = arith.addf %967, %969 : vector<16x128xf32>
      %971 = vector.broadcast %139 : f32 to vector<16x128xf32>
      %972 = arith.mulf %971, %923 : vector<16x128xf32>
      %973 = arith.addf %970, %972 : vector<16x128xf32>
      %974 = vector.broadcast %148 : f32 to vector<16x128xf32>
      %975 = arith.mulf %974, %927 : vector<16x128xf32>
      %976 = arith.addf %973, %975 : vector<16x128xf32>
      %977 = vector.broadcast %157 : f32 to vector<16x128xf32>
      %978 = arith.mulf %977, %931 : vector<16x128xf32>
      %979 = arith.addf %976, %978 : vector<16x128xf32>
      %980 = arith.addf %956, %979 : vector<16x128xf32>
      %981 = vector.broadcast %95 : f32 to vector<16x128xf32>
      %982 = arith.mulf %981, %903 : vector<16x128xf32>
      %983 = vector.broadcast %104 : f32 to vector<16x128xf32>
      %984 = arith.mulf %983, %907 : vector<16x128xf32>
      %985 = arith.addf %982, %984 : vector<16x128xf32>
      %986 = vector.broadcast %113 : f32 to vector<16x128xf32>
      %987 = arith.mulf %986, %911 : vector<16x128xf32>
      %988 = arith.addf %985, %987 : vector<16x128xf32>
      %989 = vector.broadcast %122 : f32 to vector<16x128xf32>
      %990 = arith.mulf %989, %915 : vector<16x128xf32>
      %991 = arith.addf %988, %990 : vector<16x128xf32>
      %992 = vector.broadcast %131 : f32 to vector<16x128xf32>
      %993 = arith.mulf %992, %919 : vector<16x128xf32>
      %994 = arith.addf %991, %993 : vector<16x128xf32>
      %995 = vector.broadcast %140 : f32 to vector<16x128xf32>
      %996 = arith.mulf %995, %923 : vector<16x128xf32>
      %997 = arith.addf %994, %996 : vector<16x128xf32>
      %998 = vector.broadcast %149 : f32 to vector<16x128xf32>
      %999 = arith.mulf %998, %927 : vector<16x128xf32>
      %1000 = arith.addf %997, %999 : vector<16x128xf32>
      %1001 = vector.broadcast %158 : f32 to vector<16x128xf32>
      %1002 = arith.mulf %1001, %931 : vector<16x128xf32>
      %1003 = arith.addf %1000, %1002 : vector<16x128xf32>
      %c127_i32_138 = arith.constant 127 : i32
      %1004 = tpu.dynamic_rotate %1003 by %c127_i32_138 dim 1 : vector<16x128xf32>, i32 -> vector<16x128xf32>
      %1005 = arith.select %10, %1004, %4 : vector<16x128xi1>, vector<16x128xf32>
      %1006 = arith.addf %980, %1005 : vector<16x128xf32>
      %c1_i32_139 = arith.constant 1 : i32
      %1007 = tpu.dynamic_rotate %1006 by %c1_i32_139 dim 0 : vector<16x128xf32>, i32 -> vector<16x128xf32>
      %1008 = arith.select %8, %1007, %4 : vector<16x128xi1>, vector<16x128xf32>
      %1009 = vector.broadcast %96 : f32 to vector<16x128xf32>
      %1010 = arith.mulf %1009, %903 : vector<16x128xf32>
      %1011 = vector.broadcast %105 : f32 to vector<16x128xf32>
      %1012 = arith.mulf %1011, %907 : vector<16x128xf32>
      %1013 = arith.addf %1010, %1012 : vector<16x128xf32>
      %1014 = vector.broadcast %114 : f32 to vector<16x128xf32>
      %1015 = arith.mulf %1014, %911 : vector<16x128xf32>
      %1016 = arith.addf %1013, %1015 : vector<16x128xf32>
      %1017 = vector.broadcast %123 : f32 to vector<16x128xf32>
      %1018 = arith.mulf %1017, %915 : vector<16x128xf32>
      %1019 = arith.addf %1016, %1018 : vector<16x128xf32>
      %1020 = vector.broadcast %132 : f32 to vector<16x128xf32>
      %1021 = arith.mulf %1020, %919 : vector<16x128xf32>
      %1022 = arith.addf %1019, %1021 : vector<16x128xf32>
      %1023 = vector.broadcast %141 : f32 to vector<16x128xf32>
      %1024 = arith.mulf %1023, %923 : vector<16x128xf32>
      %1025 = arith.addf %1022, %1024 : vector<16x128xf32>
      %1026 = vector.broadcast %150 : f32 to vector<16x128xf32>
      %1027 = arith.mulf %1026, %927 : vector<16x128xf32>
      %1028 = arith.addf %1025, %1027 : vector<16x128xf32>
      %1029 = vector.broadcast %159 : f32 to vector<16x128xf32>
      %1030 = arith.mulf %1029, %931 : vector<16x128xf32>
      %1031 = arith.addf %1028, %1030 : vector<16x128xf32>
      %c1_i32_140 = arith.constant 1 : i32
      %1032 = tpu.dynamic_rotate %1031 by %c1_i32_140 dim 1 : vector<16x128xf32>, i32 -> vector<16x128xf32>
      %1033 = arith.select %12, %1032, %4 : vector<16x128xi1>, vector<16x128xf32>
      %1034 = vector.broadcast %97 : f32 to vector<16x128xf32>
      %1035 = arith.mulf %1034, %903 : vector<16x128xf32>
      %1036 = vector.broadcast %106 : f32 to vector<16x128xf32>
      %1037 = arith.mulf %1036, %907 : vector<16x128xf32>
      %1038 = arith.addf %1035, %1037 : vector<16x128xf32>
      %1039 = vector.broadcast %115 : f32 to vector<16x128xf32>
      %1040 = arith.mulf %1039, %911 : vector<16x128xf32>
      %1041 = arith.addf %1038, %1040 : vector<16x128xf32>
      %1042 = vector.broadcast %124 : f32 to vector<16x128xf32>
      %1043 = arith.mulf %1042, %915 : vector<16x128xf32>
      %1044 = arith.addf %1041, %1043 : vector<16x128xf32>
      %1045 = vector.broadcast %133 : f32 to vector<16x128xf32>
      %1046 = arith.mulf %1045, %919 : vector<16x128xf32>
      %1047 = arith.addf %1044, %1046 : vector<16x128xf32>
      %1048 = vector.broadcast %142 : f32 to vector<16x128xf32>
      %1049 = arith.mulf %1048, %923 : vector<16x128xf32>
      %1050 = arith.addf %1047, %1049 : vector<16x128xf32>
      %1051 = vector.broadcast %151 : f32 to vector<16x128xf32>
      %1052 = arith.mulf %1051, %927 : vector<16x128xf32>
      %1053 = arith.addf %1050, %1052 : vector<16x128xf32>
      %1054 = vector.broadcast %160 : f32 to vector<16x128xf32>
      %1055 = arith.mulf %1054, %931 : vector<16x128xf32>
      %1056 = arith.addf %1053, %1055 : vector<16x128xf32>
      %1057 = arith.addf %1033, %1056 : vector<16x128xf32>
      %1058 = vector.broadcast %98 : f32 to vector<16x128xf32>
      %1059 = arith.mulf %1058, %903 : vector<16x128xf32>
      %1060 = vector.broadcast %107 : f32 to vector<16x128xf32>
      %1061 = arith.mulf %1060, %907 : vector<16x128xf32>
      %1062 = arith.addf %1059, %1061 : vector<16x128xf32>
      %1063 = vector.broadcast %116 : f32 to vector<16x128xf32>
      %1064 = arith.mulf %1063, %911 : vector<16x128xf32>
      %1065 = arith.addf %1062, %1064 : vector<16x128xf32>
      %1066 = vector.broadcast %125 : f32 to vector<16x128xf32>
      %1067 = arith.mulf %1066, %915 : vector<16x128xf32>
      %1068 = arith.addf %1065, %1067 : vector<16x128xf32>
      %1069 = vector.broadcast %134 : f32 to vector<16x128xf32>
      %1070 = arith.mulf %1069, %919 : vector<16x128xf32>
      %1071 = arith.addf %1068, %1070 : vector<16x128xf32>
      %1072 = vector.broadcast %143 : f32 to vector<16x128xf32>
      %1073 = arith.mulf %1072, %923 : vector<16x128xf32>
      %1074 = arith.addf %1071, %1073 : vector<16x128xf32>
      %1075 = vector.broadcast %152 : f32 to vector<16x128xf32>
      %1076 = arith.mulf %1075, %927 : vector<16x128xf32>
      %1077 = arith.addf %1074, %1076 : vector<16x128xf32>
      %1078 = vector.broadcast %161 : f32 to vector<16x128xf32>
      %1079 = arith.mulf %1078, %931 : vector<16x128xf32>
      %1080 = arith.addf %1077, %1079 : vector<16x128xf32>
      %c127_i32_141 = arith.constant 127 : i32
      %1081 = tpu.dynamic_rotate %1080 by %c127_i32_141 dim 1 : vector<16x128xf32>, i32 -> vector<16x128xf32>
      %1082 = arith.select %10, %1081, %4 : vector<16x128xi1>, vector<16x128xf32>
      %1083 = arith.addf %1057, %1082 : vector<16x128xf32>
      %1084 = arith.addf %1008, %1083 : vector<16x128xf32>
      %1085 = vector.broadcast %99 : f32 to vector<16x128xf32>
      %1086 = arith.mulf %1085, %903 : vector<16x128xf32>
      %1087 = vector.broadcast %108 : f32 to vector<16x128xf32>
      %1088 = arith.mulf %1087, %907 : vector<16x128xf32>
      %1089 = arith.addf %1086, %1088 : vector<16x128xf32>
      %1090 = vector.broadcast %117 : f32 to vector<16x128xf32>
      %1091 = arith.mulf %1090, %911 : vector<16x128xf32>
      %1092 = arith.addf %1089, %1091 : vector<16x128xf32>
      %1093 = vector.broadcast %126 : f32 to vector<16x128xf32>
      %1094 = arith.mulf %1093, %915 : vector<16x128xf32>
      %1095 = arith.addf %1092, %1094 : vector<16x128xf32>
      %1096 = vector.broadcast %135 : f32 to vector<16x128xf32>
      %1097 = arith.mulf %1096, %919 : vector<16x128xf32>
      %1098 = arith.addf %1095, %1097 : vector<16x128xf32>
      %1099 = vector.broadcast %144 : f32 to vector<16x128xf32>
      %1100 = arith.mulf %1099, %923 : vector<16x128xf32>
      %1101 = arith.addf %1098, %1100 : vector<16x128xf32>
      %1102 = vector.broadcast %153 : f32 to vector<16x128xf32>
      %1103 = arith.mulf %1102, %927 : vector<16x128xf32>
      %1104 = arith.addf %1101, %1103 : vector<16x128xf32>
      %1105 = vector.broadcast %162 : f32 to vector<16x128xf32>
      %1106 = arith.mulf %1105, %931 : vector<16x128xf32>
      %1107 = arith.addf %1104, %1106 : vector<16x128xf32>
      %c1_i32_142 = arith.constant 1 : i32
      %1108 = tpu.dynamic_rotate %1107 by %c1_i32_142 dim 1 : vector<16x128xf32>, i32 -> vector<16x128xf32>
      %1109 = arith.select %12, %1108, %4 : vector<16x128xi1>, vector<16x128xf32>
      %1110 = vector.broadcast %100 : f32 to vector<16x128xf32>
      %1111 = arith.mulf %1110, %903 : vector<16x128xf32>
      %1112 = vector.broadcast %109 : f32 to vector<16x128xf32>
      %1113 = arith.mulf %1112, %907 : vector<16x128xf32>
      %1114 = arith.addf %1111, %1113 : vector<16x128xf32>
      %1115 = vector.broadcast %118 : f32 to vector<16x128xf32>
      %1116 = arith.mulf %1115, %911 : vector<16x128xf32>
      %1117 = arith.addf %1114, %1116 : vector<16x128xf32>
      %1118 = vector.broadcast %127 : f32 to vector<16x128xf32>
      %1119 = arith.mulf %1118, %915 : vector<16x128xf32>
      %1120 = arith.addf %1117, %1119 : vector<16x128xf32>
      %1121 = vector.broadcast %136 : f32 to vector<16x128xf32>
      %1122 = arith.mulf %1121, %919 : vector<16x128xf32>
      %1123 = arith.addf %1120, %1122 : vector<16x128xf32>
      %1124 = vector.broadcast %145 : f32 to vector<16x128xf32>
      %1125 = arith.mulf %1124, %923 : vector<16x128xf32>
      %1126 = arith.addf %1123, %1125 : vector<16x128xf32>
      %1127 = vector.broadcast %154 : f32 to vector<16x128xf32>
      %1128 = arith.mulf %1127, %927 : vector<16x128xf32>
      %1129 = arith.addf %1126, %1128 : vector<16x128xf32>
      %1130 = vector.broadcast %163 : f32 to vector<16x128xf32>
      %1131 = arith.mulf %1130, %931 : vector<16x128xf32>
      %1132 = arith.addf %1129, %1131 : vector<16x128xf32>
      %1133 = arith.addf %1109, %1132 : vector<16x128xf32>
      %1134 = vector.broadcast %101 : f32 to vector<16x128xf32>
      %1135 = arith.mulf %1134, %903 : vector<16x128xf32>
      %1136 = vector.broadcast %110 : f32 to vector<16x128xf32>
      %1137 = arith.mulf %1136, %907 : vector<16x128xf32>
      %1138 = arith.addf %1135, %1137 : vector<16x128xf32>
      %1139 = vector.broadcast %119 : f32 to vector<16x128xf32>
      %1140 = arith.mulf %1139, %911 : vector<16x128xf32>
      %1141 = arith.addf %1138, %1140 : vector<16x128xf32>
      %1142 = vector.broadcast %128 : f32 to vector<16x128xf32>
      %1143 = arith.mulf %1142, %915 : vector<16x128xf32>
      %1144 = arith.addf %1141, %1143 : vector<16x128xf32>
      %1145 = vector.broadcast %137 : f32 to vector<16x128xf32>
      %1146 = arith.mulf %1145, %919 : vector<16x128xf32>
      %1147 = arith.addf %1144, %1146 : vector<16x128xf32>
      %1148 = vector.broadcast %146 : f32 to vector<16x128xf32>
      %1149 = arith.mulf %1148, %923 : vector<16x128xf32>
      %1150 = arith.addf %1147, %1149 : vector<16x128xf32>
      %1151 = vector.broadcast %155 : f32 to vector<16x128xf32>
      %1152 = arith.mulf %1151, %927 : vector<16x128xf32>
      %1153 = arith.addf %1150, %1152 : vector<16x128xf32>
      %1154 = vector.broadcast %164 : f32 to vector<16x128xf32>
      %1155 = arith.mulf %1154, %931 : vector<16x128xf32>
      %1156 = arith.addf %1153, %1155 : vector<16x128xf32>
      %c127_i32_143 = arith.constant 127 : i32
      %1157 = tpu.dynamic_rotate %1156 by %c127_i32_143 dim 1 : vector<16x128xf32>, i32 -> vector<16x128xf32>
      %1158 = arith.select %10, %1157, %4 : vector<16x128xi1>, vector<16x128xf32>
      %1159 = arith.addf %1133, %1158 : vector<16x128xf32>
      %c15_i32_144 = arith.constant 15 : i32
      %1160 = tpu.dynamic_rotate %1159 by %c15_i32_144 dim 0 : vector<16x128xf32>, i32 -> vector<16x128xf32>
      %1161 = arith.select %6, %1160, %4 : vector<16x128xi1>, vector<16x128xf32>
      %1162 = arith.addf %1084, %1161 : vector<16x128xf32>
      %1163 = vector.broadcast %165 : f32 to vector<16x128xf32>
      %1164 = arith.addf %1162, %1163 : vector<16x128xf32>
      %1165 = arith.addf %1164, %675 : vector<16x128xf32>
      %1166 = vector.broadcast %171 : f32 to vector<16x128xf32>
      %1167 = arith.mulf %1166, %1165 : vector<16x128xf32>
      %1168 = vector.broadcast %167 : f32 to vector<16x128xf32>
      %1169 = arith.mulf %1168, %180 : vector<16x128xf32>
      %1170 = arith.addf %1167, %1169 : vector<16x128xf32>
      %c1_i32_145 = arith.constant 1 : i32
      %1171 = tpu.dynamic_rotate %1170 by %c1_i32_145 dim 0 : vector<16x128xf32>, i32 -> vector<16x128xf32>
      %1172 = arith.select %8, %1171, %4 : vector<16x128xi1>, vector<16x128xf32>
      %c1_i32_146 = arith.constant 1 : i32
      %1173 = tpu.dynamic_rotate %1172 by %c1_i32_146 dim 1 : vector<16x128xf32>, i32 -> vector<16x128xf32>
      %1174 = arith.select %12, %1173, %4 : vector<16x128xi1>, vector<16x128xf32>
      %1175 = vector.broadcast %13 : f32 to vector<16x128xf32>
      %1176 = arith.mulf %1175, %1174 : vector<16x128xf32>
      %1177 = vector.broadcast %22 : f32 to vector<16x128xf32>
      %1178 = arith.mulf %1177, %1174 : vector<16x128xf32>
      %1179 = vector.broadcast %31 : f32 to vector<16x128xf32>
      %1180 = arith.mulf %1179, %1174 : vector<16x128xf32>
      %1181 = vector.broadcast %40 : f32 to vector<16x128xf32>
      %1182 = arith.mulf %1181, %1174 : vector<16x128xf32>
      %1183 = vector.broadcast %49 : f32 to vector<16x128xf32>
      %1184 = arith.mulf %1183, %1174 : vector<16x128xf32>
      %1185 = vector.broadcast %58 : f32 to vector<16x128xf32>
      %1186 = arith.mulf %1185, %1174 : vector<16x128xf32>
      %1187 = vector.broadcast %67 : f32 to vector<16x128xf32>
      %1188 = arith.mulf %1187, %1174 : vector<16x128xf32>
      %1189 = vector.broadcast %76 : f32 to vector<16x128xf32>
      %1190 = arith.mulf %1189, %1174 : vector<16x128xf32>
      %1191 = vector.broadcast %14 : f32 to vector<16x128xf32>
      %1192 = arith.mulf %1191, %1172 : vector<16x128xf32>
      %1193 = arith.addf %1176, %1192 : vector<16x128xf32>
      %1194 = vector.broadcast %23 : f32 to vector<16x128xf32>
      %1195 = arith.mulf %1194, %1172 : vector<16x128xf32>
      %1196 = arith.addf %1178, %1195 : vector<16x128xf32>
      %1197 = vector.broadcast %32 : f32 to vector<16x128xf32>
      %1198 = arith.mulf %1197, %1172 : vector<16x128xf32>
      %1199 = arith.addf %1180, %1198 : vector<16x128xf32>
      %1200 = vector.broadcast %41 : f32 to vector<16x128xf32>
      %1201 = arith.mulf %1200, %1172 : vector<16x128xf32>
      %1202 = arith.addf %1182, %1201 : vector<16x128xf32>
      %1203 = vector.broadcast %50 : f32 to vector<16x128xf32>
      %1204 = arith.mulf %1203, %1172 : vector<16x128xf32>
      %1205 = arith.addf %1184, %1204 : vector<16x128xf32>
      %1206 = vector.broadcast %59 : f32 to vector<16x128xf32>
      %1207 = arith.mulf %1206, %1172 : vector<16x128xf32>
      %1208 = arith.addf %1186, %1207 : vector<16x128xf32>
      %1209 = vector.broadcast %68 : f32 to vector<16x128xf32>
      %1210 = arith.mulf %1209, %1172 : vector<16x128xf32>
      %1211 = arith.addf %1188, %1210 : vector<16x128xf32>
      %1212 = vector.broadcast %77 : f32 to vector<16x128xf32>
      %1213 = arith.mulf %1212, %1172 : vector<16x128xf32>
      %1214 = arith.addf %1190, %1213 : vector<16x128xf32>
      %c127_i32_147 = arith.constant 127 : i32
      %1215 = tpu.dynamic_rotate %1172 by %c127_i32_147 dim 1 : vector<16x128xf32>, i32 -> vector<16x128xf32>
      %1216 = arith.select %10, %1215, %4 : vector<16x128xi1>, vector<16x128xf32>
      %1217 = vector.broadcast %15 : f32 to vector<16x128xf32>
      %1218 = arith.mulf %1217, %1216 : vector<16x128xf32>
      %1219 = arith.addf %1193, %1218 : vector<16x128xf32>
      %1220 = vector.broadcast %24 : f32 to vector<16x128xf32>
      %1221 = arith.mulf %1220, %1216 : vector<16x128xf32>
      %1222 = arith.addf %1196, %1221 : vector<16x128xf32>
      %1223 = vector.broadcast %33 : f32 to vector<16x128xf32>
      %1224 = arith.mulf %1223, %1216 : vector<16x128xf32>
      %1225 = arith.addf %1199, %1224 : vector<16x128xf32>
      %1226 = vector.broadcast %42 : f32 to vector<16x128xf32>
      %1227 = arith.mulf %1226, %1216 : vector<16x128xf32>
      %1228 = arith.addf %1202, %1227 : vector<16x128xf32>
      %1229 = vector.broadcast %51 : f32 to vector<16x128xf32>
      %1230 = arith.mulf %1229, %1216 : vector<16x128xf32>
      %1231 = arith.addf %1205, %1230 : vector<16x128xf32>
      %1232 = vector.broadcast %60 : f32 to vector<16x128xf32>
      %1233 = arith.mulf %1232, %1216 : vector<16x128xf32>
      %1234 = arith.addf %1208, %1233 : vector<16x128xf32>
      %1235 = vector.broadcast %69 : f32 to vector<16x128xf32>
      %1236 = arith.mulf %1235, %1216 : vector<16x128xf32>
      %1237 = arith.addf %1211, %1236 : vector<16x128xf32>
      %1238 = vector.broadcast %78 : f32 to vector<16x128xf32>
      %1239 = arith.mulf %1238, %1216 : vector<16x128xf32>
      %1240 = arith.addf %1214, %1239 : vector<16x128xf32>
      %c1_i32_148 = arith.constant 1 : i32
      %1241 = tpu.dynamic_rotate %1170 by %c1_i32_148 dim 1 : vector<16x128xf32>, i32 -> vector<16x128xf32>
      %1242 = arith.select %12, %1241, %4 : vector<16x128xi1>, vector<16x128xf32>
      %1243 = vector.broadcast %16 : f32 to vector<16x128xf32>
      %1244 = arith.mulf %1243, %1242 : vector<16x128xf32>
      %1245 = arith.addf %1219, %1244 : vector<16x128xf32>
      %1246 = vector.broadcast %25 : f32 to vector<16x128xf32>
      %1247 = arith.mulf %1246, %1242 : vector<16x128xf32>
      %1248 = arith.addf %1222, %1247 : vector<16x128xf32>
      %1249 = vector.broadcast %34 : f32 to vector<16x128xf32>
      %1250 = arith.mulf %1249, %1242 : vector<16x128xf32>
      %1251 = arith.addf %1225, %1250 : vector<16x128xf32>
      %1252 = vector.broadcast %43 : f32 to vector<16x128xf32>
      %1253 = arith.mulf %1252, %1242 : vector<16x128xf32>
      %1254 = arith.addf %1228, %1253 : vector<16x128xf32>
      %1255 = vector.broadcast %52 : f32 to vector<16x128xf32>
      %1256 = arith.mulf %1255, %1242 : vector<16x128xf32>
      %1257 = arith.addf %1231, %1256 : vector<16x128xf32>
      %1258 = vector.broadcast %61 : f32 to vector<16x128xf32>
      %1259 = arith.mulf %1258, %1242 : vector<16x128xf32>
      %1260 = arith.addf %1234, %1259 : vector<16x128xf32>
      %1261 = vector.broadcast %70 : f32 to vector<16x128xf32>
      %1262 = arith.mulf %1261, %1242 : vector<16x128xf32>
      %1263 = arith.addf %1237, %1262 : vector<16x128xf32>
      %1264 = vector.broadcast %79 : f32 to vector<16x128xf32>
      %1265 = arith.mulf %1264, %1242 : vector<16x128xf32>
      %1266 = arith.addf %1240, %1265 : vector<16x128xf32>
      %1267 = vector.broadcast %17 : f32 to vector<16x128xf32>
      %1268 = arith.mulf %1267, %1170 : vector<16x128xf32>
      %1269 = arith.addf %1245, %1268 : vector<16x128xf32>
      %1270 = vector.broadcast %26 : f32 to vector<16x128xf32>
      %1271 = arith.mulf %1270, %1170 : vector<16x128xf32>
      %1272 = arith.addf %1248, %1271 : vector<16x128xf32>
      %1273 = vector.broadcast %35 : f32 to vector<16x128xf32>
      %1274 = arith.mulf %1273, %1170 : vector<16x128xf32>
      %1275 = arith.addf %1251, %1274 : vector<16x128xf32>
      %1276 = vector.broadcast %44 : f32 to vector<16x128xf32>
      %1277 = arith.mulf %1276, %1170 : vector<16x128xf32>
      %1278 = arith.addf %1254, %1277 : vector<16x128xf32>
      %1279 = vector.broadcast %53 : f32 to vector<16x128xf32>
      %1280 = arith.mulf %1279, %1170 : vector<16x128xf32>
      %1281 = arith.addf %1257, %1280 : vector<16x128xf32>
      %1282 = vector.broadcast %62 : f32 to vector<16x128xf32>
      %1283 = arith.mulf %1282, %1170 : vector<16x128xf32>
      %1284 = arith.addf %1260, %1283 : vector<16x128xf32>
      %1285 = vector.broadcast %71 : f32 to vector<16x128xf32>
      %1286 = arith.mulf %1285, %1170 : vector<16x128xf32>
      %1287 = arith.addf %1263, %1286 : vector<16x128xf32>
      %1288 = vector.broadcast %80 : f32 to vector<16x128xf32>
      %1289 = arith.mulf %1288, %1170 : vector<16x128xf32>
      %1290 = arith.addf %1266, %1289 : vector<16x128xf32>
      %c127_i32_149 = arith.constant 127 : i32
      %1291 = tpu.dynamic_rotate %1170 by %c127_i32_149 dim 1 : vector<16x128xf32>, i32 -> vector<16x128xf32>
      %1292 = arith.select %10, %1291, %4 : vector<16x128xi1>, vector<16x128xf32>
      %1293 = vector.broadcast %18 : f32 to vector<16x128xf32>
      %1294 = arith.mulf %1293, %1292 : vector<16x128xf32>
      %1295 = arith.addf %1269, %1294 : vector<16x128xf32>
      %1296 = vector.broadcast %27 : f32 to vector<16x128xf32>
      %1297 = arith.mulf %1296, %1292 : vector<16x128xf32>
      %1298 = arith.addf %1272, %1297 : vector<16x128xf32>
      %1299 = vector.broadcast %36 : f32 to vector<16x128xf32>
      %1300 = arith.mulf %1299, %1292 : vector<16x128xf32>
      %1301 = arith.addf %1275, %1300 : vector<16x128xf32>
      %1302 = vector.broadcast %45 : f32 to vector<16x128xf32>
      %1303 = arith.mulf %1302, %1292 : vector<16x128xf32>
      %1304 = arith.addf %1278, %1303 : vector<16x128xf32>
      %1305 = vector.broadcast %54 : f32 to vector<16x128xf32>
      %1306 = arith.mulf %1305, %1292 : vector<16x128xf32>
      %1307 = arith.addf %1281, %1306 : vector<16x128xf32>
      %1308 = vector.broadcast %63 : f32 to vector<16x128xf32>
      %1309 = arith.mulf %1308, %1292 : vector<16x128xf32>
      %1310 = arith.addf %1284, %1309 : vector<16x128xf32>
      %1311 = vector.broadcast %72 : f32 to vector<16x128xf32>
      %1312 = arith.mulf %1311, %1292 : vector<16x128xf32>
      %1313 = arith.addf %1287, %1312 : vector<16x128xf32>
      %1314 = vector.broadcast %81 : f32 to vector<16x128xf32>
      %1315 = arith.mulf %1314, %1292 : vector<16x128xf32>
      %1316 = arith.addf %1290, %1315 : vector<16x128xf32>
      %c15_i32_150 = arith.constant 15 : i32
      %1317 = tpu.dynamic_rotate %1170 by %c15_i32_150 dim 0 : vector<16x128xf32>, i32 -> vector<16x128xf32>
      %1318 = arith.select %6, %1317, %4 : vector<16x128xi1>, vector<16x128xf32>
      %c1_i32_151 = arith.constant 1 : i32
      %1319 = tpu.dynamic_rotate %1318 by %c1_i32_151 dim 1 : vector<16x128xf32>, i32 -> vector<16x128xf32>
      %1320 = arith.select %12, %1319, %4 : vector<16x128xi1>, vector<16x128xf32>
      %1321 = vector.broadcast %19 : f32 to vector<16x128xf32>
      %1322 = arith.mulf %1321, %1320 : vector<16x128xf32>
      %1323 = arith.addf %1295, %1322 : vector<16x128xf32>
      %1324 = vector.broadcast %28 : f32 to vector<16x128xf32>
      %1325 = arith.mulf %1324, %1320 : vector<16x128xf32>
      %1326 = arith.addf %1298, %1325 : vector<16x128xf32>
      %1327 = vector.broadcast %37 : f32 to vector<16x128xf32>
      %1328 = arith.mulf %1327, %1320 : vector<16x128xf32>
      %1329 = arith.addf %1301, %1328 : vector<16x128xf32>
      %1330 = vector.broadcast %46 : f32 to vector<16x128xf32>
      %1331 = arith.mulf %1330, %1320 : vector<16x128xf32>
      %1332 = arith.addf %1304, %1331 : vector<16x128xf32>
      %1333 = vector.broadcast %55 : f32 to vector<16x128xf32>
      %1334 = arith.mulf %1333, %1320 : vector<16x128xf32>
      %1335 = arith.addf %1307, %1334 : vector<16x128xf32>
      %1336 = vector.broadcast %64 : f32 to vector<16x128xf32>
      %1337 = arith.mulf %1336, %1320 : vector<16x128xf32>
      %1338 = arith.addf %1310, %1337 : vector<16x128xf32>
      %1339 = vector.broadcast %73 : f32 to vector<16x128xf32>
      %1340 = arith.mulf %1339, %1320 : vector<16x128xf32>
      %1341 = arith.addf %1313, %1340 : vector<16x128xf32>
      %1342 = vector.broadcast %82 : f32 to vector<16x128xf32>
      %1343 = arith.mulf %1342, %1320 : vector<16x128xf32>
      %1344 = arith.addf %1316, %1343 : vector<16x128xf32>
      %1345 = vector.broadcast %20 : f32 to vector<16x128xf32>
      %1346 = arith.mulf %1345, %1318 : vector<16x128xf32>
      %1347 = arith.addf %1323, %1346 : vector<16x128xf32>
      %1348 = vector.broadcast %29 : f32 to vector<16x128xf32>
      %1349 = arith.mulf %1348, %1318 : vector<16x128xf32>
      %1350 = arith.addf %1326, %1349 : vector<16x128xf32>
      %1351 = vector.broadcast %38 : f32 to vector<16x128xf32>
      %1352 = arith.mulf %1351, %1318 : vector<16x128xf32>
      %1353 = arith.addf %1329, %1352 : vector<16x128xf32>
      %1354 = vector.broadcast %47 : f32 to vector<16x128xf32>
      %1355 = arith.mulf %1354, %1318 : vector<16x128xf32>
      %1356 = arith.addf %1332, %1355 : vector<16x128xf32>
      %1357 = vector.broadcast %56 : f32 to vector<16x128xf32>
      %1358 = arith.mulf %1357, %1318 : vector<16x128xf32>
      %1359 = arith.addf %1335, %1358 : vector<16x128xf32>
      %1360 = vector.broadcast %65 : f32 to vector<16x128xf32>
      %1361 = arith.mulf %1360, %1318 : vector<16x128xf32>
      %1362 = arith.addf %1338, %1361 : vector<16x128xf32>
      %1363 = vector.broadcast %74 : f32 to vector<16x128xf32>
      %1364 = arith.mulf %1363, %1318 : vector<16x128xf32>
      %1365 = arith.addf %1341, %1364 : vector<16x128xf32>
      %1366 = vector.broadcast %83 : f32 to vector<16x128xf32>
      %1367 = arith.mulf %1366, %1318 : vector<16x128xf32>
      %1368 = arith.addf %1344, %1367 : vector<16x128xf32>
      %c127_i32_152 = arith.constant 127 : i32
      %1369 = tpu.dynamic_rotate %1318 by %c127_i32_152 dim 1 : vector<16x128xf32>, i32 -> vector<16x128xf32>
      %1370 = arith.select %10, %1369, %4 : vector<16x128xi1>, vector<16x128xf32>
      %1371 = vector.broadcast %21 : f32 to vector<16x128xf32>
      %1372 = arith.mulf %1371, %1370 : vector<16x128xf32>
      %1373 = arith.addf %1347, %1372 : vector<16x128xf32>
      %1374 = vector.broadcast %30 : f32 to vector<16x128xf32>
      %1375 = arith.mulf %1374, %1370 : vector<16x128xf32>
      %1376 = arith.addf %1350, %1375 : vector<16x128xf32>
      %1377 = vector.broadcast %39 : f32 to vector<16x128xf32>
      %1378 = arith.mulf %1377, %1370 : vector<16x128xf32>
      %1379 = arith.addf %1353, %1378 : vector<16x128xf32>
      %1380 = vector.broadcast %48 : f32 to vector<16x128xf32>
      %1381 = arith.mulf %1380, %1370 : vector<16x128xf32>
      %1382 = arith.addf %1356, %1381 : vector<16x128xf32>
      %1383 = vector.broadcast %57 : f32 to vector<16x128xf32>
      %1384 = arith.mulf %1383, %1370 : vector<16x128xf32>
      %1385 = arith.addf %1359, %1384 : vector<16x128xf32>
      %1386 = vector.broadcast %66 : f32 to vector<16x128xf32>
      %1387 = arith.mulf %1386, %1370 : vector<16x128xf32>
      %1388 = arith.addf %1362, %1387 : vector<16x128xf32>
      %1389 = vector.broadcast %75 : f32 to vector<16x128xf32>
      %1390 = arith.mulf %1389, %1370 : vector<16x128xf32>
      %1391 = arith.addf %1365, %1390 : vector<16x128xf32>
      %1392 = vector.broadcast %84 : f32 to vector<16x128xf32>
      %1393 = arith.mulf %1392, %1370 : vector<16x128xf32>
      %1394 = arith.addf %1368, %1393 : vector<16x128xf32>
      %1395 = vector.broadcast %85 : f32 to vector<16x128xf32>
      %1396 = arith.addf %1373, %1395 : vector<16x128xf32>
      %cst_153 = arith.constant 0.000000e+00 : f32
      %1397 = vector.broadcast %cst_153 : f32 to vector<16x128xf32>
      %1398 = arith.maximumf %1396, %1397 : vector<16x128xf32>
      %1399 = vector.broadcast %86 : f32 to vector<16x128xf32>
      %1400 = arith.addf %1376, %1399 : vector<16x128xf32>
      %cst_154 = arith.constant 0.000000e+00 : f32
      %1401 = vector.broadcast %cst_154 : f32 to vector<16x128xf32>
      %1402 = arith.maximumf %1400, %1401 : vector<16x128xf32>
      %1403 = vector.broadcast %87 : f32 to vector<16x128xf32>
      %1404 = arith.addf %1379, %1403 : vector<16x128xf32>
      %cst_155 = arith.constant 0.000000e+00 : f32
      %1405 = vector.broadcast %cst_155 : f32 to vector<16x128xf32>
      %1406 = arith.maximumf %1404, %1405 : vector<16x128xf32>
      %1407 = vector.broadcast %88 : f32 to vector<16x128xf32>
      %1408 = arith.addf %1382, %1407 : vector<16x128xf32>
      %cst_156 = arith.constant 0.000000e+00 : f32
      %1409 = vector.broadcast %cst_156 : f32 to vector<16x128xf32>
      %1410 = arith.maximumf %1408, %1409 : vector<16x128xf32>
      %1411 = vector.broadcast %89 : f32 to vector<16x128xf32>
      %1412 = arith.addf %1385, %1411 : vector<16x128xf32>
      %cst_157 = arith.constant 0.000000e+00 : f32
      %1413 = vector.broadcast %cst_157 : f32 to vector<16x128xf32>
      %1414 = arith.maximumf %1412, %1413 : vector<16x128xf32>
      %1415 = vector.broadcast %90 : f32 to vector<16x128xf32>
      %1416 = arith.addf %1388, %1415 : vector<16x128xf32>
      %cst_158 = arith.constant 0.000000e+00 : f32
      %1417 = vector.broadcast %cst_158 : f32 to vector<16x128xf32>
      %1418 = arith.maximumf %1416, %1417 : vector<16x128xf32>
      %1419 = vector.broadcast %91 : f32 to vector<16x128xf32>
      %1420 = arith.addf %1391, %1419 : vector<16x128xf32>
      %cst_159 = arith.constant 0.000000e+00 : f32
      %1421 = vector.broadcast %cst_159 : f32 to vector<16x128xf32>
      %1422 = arith.maximumf %1420, %1421 : vector<16x128xf32>
      %1423 = vector.broadcast %92 : f32 to vector<16x128xf32>
      %1424 = arith.addf %1394, %1423 : vector<16x128xf32>
      %cst_160 = arith.constant 0.000000e+00 : f32
      %1425 = vector.broadcast %cst_160 : f32 to vector<16x128xf32>
      %1426 = arith.maximumf %1424, %1425 : vector<16x128xf32>
      %1427 = vector.broadcast %93 : f32 to vector<16x128xf32>
      %1428 = arith.mulf %1427, %1398 : vector<16x128xf32>
      %1429 = vector.broadcast %102 : f32 to vector<16x128xf32>
      %1430 = arith.mulf %1429, %1402 : vector<16x128xf32>
      %1431 = arith.addf %1428, %1430 : vector<16x128xf32>
      %1432 = vector.broadcast %111 : f32 to vector<16x128xf32>
      %1433 = arith.mulf %1432, %1406 : vector<16x128xf32>
      %1434 = arith.addf %1431, %1433 : vector<16x128xf32>
      %1435 = vector.broadcast %120 : f32 to vector<16x128xf32>
      %1436 = arith.mulf %1435, %1410 : vector<16x128xf32>
      %1437 = arith.addf %1434, %1436 : vector<16x128xf32>
      %1438 = vector.broadcast %129 : f32 to vector<16x128xf32>
      %1439 = arith.mulf %1438, %1414 : vector<16x128xf32>
      %1440 = arith.addf %1437, %1439 : vector<16x128xf32>
      %1441 = vector.broadcast %138 : f32 to vector<16x128xf32>
      %1442 = arith.mulf %1441, %1418 : vector<16x128xf32>
      %1443 = arith.addf %1440, %1442 : vector<16x128xf32>
      %1444 = vector.broadcast %147 : f32 to vector<16x128xf32>
      %1445 = arith.mulf %1444, %1422 : vector<16x128xf32>
      %1446 = arith.addf %1443, %1445 : vector<16x128xf32>
      %1447 = vector.broadcast %156 : f32 to vector<16x128xf32>
      %1448 = arith.mulf %1447, %1426 : vector<16x128xf32>
      %1449 = arith.addf %1446, %1448 : vector<16x128xf32>
      %c1_i32_161 = arith.constant 1 : i32
      %1450 = tpu.dynamic_rotate %1449 by %c1_i32_161 dim 1 : vector<16x128xf32>, i32 -> vector<16x128xf32>
      %1451 = arith.select %12, %1450, %4 : vector<16x128xi1>, vector<16x128xf32>
      %1452 = vector.broadcast %94 : f32 to vector<16x128xf32>
      %1453 = arith.mulf %1452, %1398 : vector<16x128xf32>
      %1454 = vector.broadcast %103 : f32 to vector<16x128xf32>
      %1455 = arith.mulf %1454, %1402 : vector<16x128xf32>
      %1456 = arith.addf %1453, %1455 : vector<16x128xf32>
      %1457 = vector.broadcast %112 : f32 to vector<16x128xf32>
      %1458 = arith.mulf %1457, %1406 : vector<16x128xf32>
      %1459 = arith.addf %1456, %1458 : vector<16x128xf32>
      %1460 = vector.broadcast %121 : f32 to vector<16x128xf32>
      %1461 = arith.mulf %1460, %1410 : vector<16x128xf32>
      %1462 = arith.addf %1459, %1461 : vector<16x128xf32>
      %1463 = vector.broadcast %130 : f32 to vector<16x128xf32>
      %1464 = arith.mulf %1463, %1414 : vector<16x128xf32>
      %1465 = arith.addf %1462, %1464 : vector<16x128xf32>
      %1466 = vector.broadcast %139 : f32 to vector<16x128xf32>
      %1467 = arith.mulf %1466, %1418 : vector<16x128xf32>
      %1468 = arith.addf %1465, %1467 : vector<16x128xf32>
      %1469 = vector.broadcast %148 : f32 to vector<16x128xf32>
      %1470 = arith.mulf %1469, %1422 : vector<16x128xf32>
      %1471 = arith.addf %1468, %1470 : vector<16x128xf32>
      %1472 = vector.broadcast %157 : f32 to vector<16x128xf32>
      %1473 = arith.mulf %1472, %1426 : vector<16x128xf32>
      %1474 = arith.addf %1471, %1473 : vector<16x128xf32>
      %1475 = arith.addf %1451, %1474 : vector<16x128xf32>
      %1476 = vector.broadcast %95 : f32 to vector<16x128xf32>
      %1477 = arith.mulf %1476, %1398 : vector<16x128xf32>
      %1478 = vector.broadcast %104 : f32 to vector<16x128xf32>
      %1479 = arith.mulf %1478, %1402 : vector<16x128xf32>
      %1480 = arith.addf %1477, %1479 : vector<16x128xf32>
      %1481 = vector.broadcast %113 : f32 to vector<16x128xf32>
      %1482 = arith.mulf %1481, %1406 : vector<16x128xf32>
      %1483 = arith.addf %1480, %1482 : vector<16x128xf32>
      %1484 = vector.broadcast %122 : f32 to vector<16x128xf32>
      %1485 = arith.mulf %1484, %1410 : vector<16x128xf32>
      %1486 = arith.addf %1483, %1485 : vector<16x128xf32>
      %1487 = vector.broadcast %131 : f32 to vector<16x128xf32>
      %1488 = arith.mulf %1487, %1414 : vector<16x128xf32>
      %1489 = arith.addf %1486, %1488 : vector<16x128xf32>
      %1490 = vector.broadcast %140 : f32 to vector<16x128xf32>
      %1491 = arith.mulf %1490, %1418 : vector<16x128xf32>
      %1492 = arith.addf %1489, %1491 : vector<16x128xf32>
      %1493 = vector.broadcast %149 : f32 to vector<16x128xf32>
      %1494 = arith.mulf %1493, %1422 : vector<16x128xf32>
      %1495 = arith.addf %1492, %1494 : vector<16x128xf32>
      %1496 = vector.broadcast %158 : f32 to vector<16x128xf32>
      %1497 = arith.mulf %1496, %1426 : vector<16x128xf32>
      %1498 = arith.addf %1495, %1497 : vector<16x128xf32>
      %c127_i32_162 = arith.constant 127 : i32
      %1499 = tpu.dynamic_rotate %1498 by %c127_i32_162 dim 1 : vector<16x128xf32>, i32 -> vector<16x128xf32>
      %1500 = arith.select %10, %1499, %4 : vector<16x128xi1>, vector<16x128xf32>
      %1501 = arith.addf %1475, %1500 : vector<16x128xf32>
      %c1_i32_163 = arith.constant 1 : i32
      %1502 = tpu.dynamic_rotate %1501 by %c1_i32_163 dim 0 : vector<16x128xf32>, i32 -> vector<16x128xf32>
      %1503 = arith.select %8, %1502, %4 : vector<16x128xi1>, vector<16x128xf32>
      %1504 = vector.broadcast %96 : f32 to vector<16x128xf32>
      %1505 = arith.mulf %1504, %1398 : vector<16x128xf32>
      %1506 = vector.broadcast %105 : f32 to vector<16x128xf32>
      %1507 = arith.mulf %1506, %1402 : vector<16x128xf32>
      %1508 = arith.addf %1505, %1507 : vector<16x128xf32>
      %1509 = vector.broadcast %114 : f32 to vector<16x128xf32>
      %1510 = arith.mulf %1509, %1406 : vector<16x128xf32>
      %1511 = arith.addf %1508, %1510 : vector<16x128xf32>
      %1512 = vector.broadcast %123 : f32 to vector<16x128xf32>
      %1513 = arith.mulf %1512, %1410 : vector<16x128xf32>
      %1514 = arith.addf %1511, %1513 : vector<16x128xf32>
      %1515 = vector.broadcast %132 : f32 to vector<16x128xf32>
      %1516 = arith.mulf %1515, %1414 : vector<16x128xf32>
      %1517 = arith.addf %1514, %1516 : vector<16x128xf32>
      %1518 = vector.broadcast %141 : f32 to vector<16x128xf32>
      %1519 = arith.mulf %1518, %1418 : vector<16x128xf32>
      %1520 = arith.addf %1517, %1519 : vector<16x128xf32>
      %1521 = vector.broadcast %150 : f32 to vector<16x128xf32>
      %1522 = arith.mulf %1521, %1422 : vector<16x128xf32>
      %1523 = arith.addf %1520, %1522 : vector<16x128xf32>
      %1524 = vector.broadcast %159 : f32 to vector<16x128xf32>
      %1525 = arith.mulf %1524, %1426 : vector<16x128xf32>
      %1526 = arith.addf %1523, %1525 : vector<16x128xf32>
      %c1_i32_164 = arith.constant 1 : i32
      %1527 = tpu.dynamic_rotate %1526 by %c1_i32_164 dim 1 : vector<16x128xf32>, i32 -> vector<16x128xf32>
      %1528 = arith.select %12, %1527, %4 : vector<16x128xi1>, vector<16x128xf32>
      %1529 = vector.broadcast %97 : f32 to vector<16x128xf32>
      %1530 = arith.mulf %1529, %1398 : vector<16x128xf32>
      %1531 = vector.broadcast %106 : f32 to vector<16x128xf32>
      %1532 = arith.mulf %1531, %1402 : vector<16x128xf32>
      %1533 = arith.addf %1530, %1532 : vector<16x128xf32>
      %1534 = vector.broadcast %115 : f32 to vector<16x128xf32>
      %1535 = arith.mulf %1534, %1406 : vector<16x128xf32>
      %1536 = arith.addf %1533, %1535 : vector<16x128xf32>
      %1537 = vector.broadcast %124 : f32 to vector<16x128xf32>
      %1538 = arith.mulf %1537, %1410 : vector<16x128xf32>
      %1539 = arith.addf %1536, %1538 : vector<16x128xf32>
      %1540 = vector.broadcast %133 : f32 to vector<16x128xf32>
      %1541 = arith.mulf %1540, %1414 : vector<16x128xf32>
      %1542 = arith.addf %1539, %1541 : vector<16x128xf32>
      %1543 = vector.broadcast %142 : f32 to vector<16x128xf32>
      %1544 = arith.mulf %1543, %1418 : vector<16x128xf32>
      %1545 = arith.addf %1542, %1544 : vector<16x128xf32>
      %1546 = vector.broadcast %151 : f32 to vector<16x128xf32>
      %1547 = arith.mulf %1546, %1422 : vector<16x128xf32>
      %1548 = arith.addf %1545, %1547 : vector<16x128xf32>
      %1549 = vector.broadcast %160 : f32 to vector<16x128xf32>
      %1550 = arith.mulf %1549, %1426 : vector<16x128xf32>
      %1551 = arith.addf %1548, %1550 : vector<16x128xf32>
      %1552 = arith.addf %1528, %1551 : vector<16x128xf32>
      %1553 = vector.broadcast %98 : f32 to vector<16x128xf32>
      %1554 = arith.mulf %1553, %1398 : vector<16x128xf32>
      %1555 = vector.broadcast %107 : f32 to vector<16x128xf32>
      %1556 = arith.mulf %1555, %1402 : vector<16x128xf32>
      %1557 = arith.addf %1554, %1556 : vector<16x128xf32>
      %1558 = vector.broadcast %116 : f32 to vector<16x128xf32>
      %1559 = arith.mulf %1558, %1406 : vector<16x128xf32>
      %1560 = arith.addf %1557, %1559 : vector<16x128xf32>
      %1561 = vector.broadcast %125 : f32 to vector<16x128xf32>
      %1562 = arith.mulf %1561, %1410 : vector<16x128xf32>
      %1563 = arith.addf %1560, %1562 : vector<16x128xf32>
      %1564 = vector.broadcast %134 : f32 to vector<16x128xf32>
      %1565 = arith.mulf %1564, %1414 : vector<16x128xf32>
      %1566 = arith.addf %1563, %1565 : vector<16x128xf32>
      %1567 = vector.broadcast %143 : f32 to vector<16x128xf32>
      %1568 = arith.mulf %1567, %1418 : vector<16x128xf32>
      %1569 = arith.addf %1566, %1568 : vector<16x128xf32>
      %1570 = vector.broadcast %152 : f32 to vector<16x128xf32>
      %1571 = arith.mulf %1570, %1422 : vector<16x128xf32>
      %1572 = arith.addf %1569, %1571 : vector<16x128xf32>
      %1573 = vector.broadcast %161 : f32 to vector<16x128xf32>
      %1574 = arith.mulf %1573, %1426 : vector<16x128xf32>
      %1575 = arith.addf %1572, %1574 : vector<16x128xf32>
      %c127_i32_165 = arith.constant 127 : i32
      %1576 = tpu.dynamic_rotate %1575 by %c127_i32_165 dim 1 : vector<16x128xf32>, i32 -> vector<16x128xf32>
      %1577 = arith.select %10, %1576, %4 : vector<16x128xi1>, vector<16x128xf32>
      %1578 = arith.addf %1552, %1577 : vector<16x128xf32>
      %1579 = arith.addf %1503, %1578 : vector<16x128xf32>
      %1580 = vector.broadcast %99 : f32 to vector<16x128xf32>
      %1581 = arith.mulf %1580, %1398 : vector<16x128xf32>
      %1582 = vector.broadcast %108 : f32 to vector<16x128xf32>
      %1583 = arith.mulf %1582, %1402 : vector<16x128xf32>
      %1584 = arith.addf %1581, %1583 : vector<16x128xf32>
      %1585 = vector.broadcast %117 : f32 to vector<16x128xf32>
      %1586 = arith.mulf %1585, %1406 : vector<16x128xf32>
      %1587 = arith.addf %1584, %1586 : vector<16x128xf32>
      %1588 = vector.broadcast %126 : f32 to vector<16x128xf32>
      %1589 = arith.mulf %1588, %1410 : vector<16x128xf32>
      %1590 = arith.addf %1587, %1589 : vector<16x128xf32>
      %1591 = vector.broadcast %135 : f32 to vector<16x128xf32>
      %1592 = arith.mulf %1591, %1414 : vector<16x128xf32>
      %1593 = arith.addf %1590, %1592 : vector<16x128xf32>
      %1594 = vector.broadcast %144 : f32 to vector<16x128xf32>
      %1595 = arith.mulf %1594, %1418 : vector<16x128xf32>
      %1596 = arith.addf %1593, %1595 : vector<16x128xf32>
      %1597 = vector.broadcast %153 : f32 to vector<16x128xf32>
      %1598 = arith.mulf %1597, %1422 : vector<16x128xf32>
      %1599 = arith.addf %1596, %1598 : vector<16x128xf32>
      %1600 = vector.broadcast %162 : f32 to vector<16x128xf32>
      %1601 = arith.mulf %1600, %1426 : vector<16x128xf32>
      %1602 = arith.addf %1599, %1601 : vector<16x128xf32>
      %c1_i32_166 = arith.constant 1 : i32
      %1603 = tpu.dynamic_rotate %1602 by %c1_i32_166 dim 1 : vector<16x128xf32>, i32 -> vector<16x128xf32>
      %1604 = arith.select %12, %1603, %4 : vector<16x128xi1>, vector<16x128xf32>
      %1605 = vector.broadcast %100 : f32 to vector<16x128xf32>
      %1606 = arith.mulf %1605, %1398 : vector<16x128xf32>
      %1607 = vector.broadcast %109 : f32 to vector<16x128xf32>
      %1608 = arith.mulf %1607, %1402 : vector<16x128xf32>
      %1609 = arith.addf %1606, %1608 : vector<16x128xf32>
      %1610 = vector.broadcast %118 : f32 to vector<16x128xf32>
      %1611 = arith.mulf %1610, %1406 : vector<16x128xf32>
      %1612 = arith.addf %1609, %1611 : vector<16x128xf32>
      %1613 = vector.broadcast %127 : f32 to vector<16x128xf32>
      %1614 = arith.mulf %1613, %1410 : vector<16x128xf32>
      %1615 = arith.addf %1612, %1614 : vector<16x128xf32>
      %1616 = vector.broadcast %136 : f32 to vector<16x128xf32>
      %1617 = arith.mulf %1616, %1414 : vector<16x128xf32>
      %1618 = arith.addf %1615, %1617 : vector<16x128xf32>
      %1619 = vector.broadcast %145 : f32 to vector<16x128xf32>
      %1620 = arith.mulf %1619, %1418 : vector<16x128xf32>
      %1621 = arith.addf %1618, %1620 : vector<16x128xf32>
      %1622 = vector.broadcast %154 : f32 to vector<16x128xf32>
      %1623 = arith.mulf %1622, %1422 : vector<16x128xf32>
      %1624 = arith.addf %1621, %1623 : vector<16x128xf32>
      %1625 = vector.broadcast %163 : f32 to vector<16x128xf32>
      %1626 = arith.mulf %1625, %1426 : vector<16x128xf32>
      %1627 = arith.addf %1624, %1626 : vector<16x128xf32>
      %1628 = arith.addf %1604, %1627 : vector<16x128xf32>
      %1629 = vector.broadcast %101 : f32 to vector<16x128xf32>
      %1630 = arith.mulf %1629, %1398 : vector<16x128xf32>
      %1631 = vector.broadcast %110 : f32 to vector<16x128xf32>
      %1632 = arith.mulf %1631, %1402 : vector<16x128xf32>
      %1633 = arith.addf %1630, %1632 : vector<16x128xf32>
      %1634 = vector.broadcast %119 : f32 to vector<16x128xf32>
      %1635 = arith.mulf %1634, %1406 : vector<16x128xf32>
      %1636 = arith.addf %1633, %1635 : vector<16x128xf32>
      %1637 = vector.broadcast %128 : f32 to vector<16x128xf32>
      %1638 = arith.mulf %1637, %1410 : vector<16x128xf32>
      %1639 = arith.addf %1636, %1638 : vector<16x128xf32>
      %1640 = vector.broadcast %137 : f32 to vector<16x128xf32>
      %1641 = arith.mulf %1640, %1414 : vector<16x128xf32>
      %1642 = arith.addf %1639, %1641 : vector<16x128xf32>
      %1643 = vector.broadcast %146 : f32 to vector<16x128xf32>
      %1644 = arith.mulf %1643, %1418 : vector<16x128xf32>
      %1645 = arith.addf %1642, %1644 : vector<16x128xf32>
      %1646 = vector.broadcast %155 : f32 to vector<16x128xf32>
      %1647 = arith.mulf %1646, %1422 : vector<16x128xf32>
      %1648 = arith.addf %1645, %1647 : vector<16x128xf32>
      %1649 = vector.broadcast %164 : f32 to vector<16x128xf32>
      %1650 = arith.mulf %1649, %1426 : vector<16x128xf32>
      %1651 = arith.addf %1648, %1650 : vector<16x128xf32>
      %c127_i32_167 = arith.constant 127 : i32
      %1652 = tpu.dynamic_rotate %1651 by %c127_i32_167 dim 1 : vector<16x128xf32>, i32 -> vector<16x128xf32>
      %1653 = arith.select %10, %1652, %4 : vector<16x128xi1>, vector<16x128xf32>
      %1654 = arith.addf %1628, %1653 : vector<16x128xf32>
      %c15_i32_168 = arith.constant 15 : i32
      %1655 = tpu.dynamic_rotate %1654 by %c15_i32_168 dim 0 : vector<16x128xf32>, i32 -> vector<16x128xf32>
      %1656 = arith.select %6, %1655, %4 : vector<16x128xi1>, vector<16x128xf32>
      %1657 = arith.addf %1579, %1656 : vector<16x128xf32>
      %1658 = vector.broadcast %165 : f32 to vector<16x128xf32>
      %1659 = arith.addf %1657, %1658 : vector<16x128xf32>
      %1660 = arith.addf %1659, %1170 : vector<16x128xf32>
      %1661 = vector.broadcast %172 : f32 to vector<16x128xf32>
      %1662 = arith.mulf %1661, %1660 : vector<16x128xf32>
      %1663 = vector.broadcast %168 : f32 to vector<16x128xf32>
      %1664 = arith.mulf %1663, %180 : vector<16x128xf32>
      %1665 = arith.addf %1662, %1664 : vector<16x128xf32>
      %c1_i32_169 = arith.constant 1 : i32
      %1666 = tpu.dynamic_rotate %1665 by %c1_i32_169 dim 0 : vector<16x128xf32>, i32 -> vector<16x128xf32>
      %1667 = arith.select %8, %1666, %4 : vector<16x128xi1>, vector<16x128xf32>
      %c1_i32_170 = arith.constant 1 : i32
      %1668 = tpu.dynamic_rotate %1667 by %c1_i32_170 dim 1 : vector<16x128xf32>, i32 -> vector<16x128xf32>
      %1669 = arith.select %12, %1668, %4 : vector<16x128xi1>, vector<16x128xf32>
      %1670 = vector.broadcast %13 : f32 to vector<16x128xf32>
      %1671 = arith.mulf %1670, %1669 : vector<16x128xf32>
      %1672 = vector.broadcast %22 : f32 to vector<16x128xf32>
      %1673 = arith.mulf %1672, %1669 : vector<16x128xf32>
      %1674 = vector.broadcast %31 : f32 to vector<16x128xf32>
      %1675 = arith.mulf %1674, %1669 : vector<16x128xf32>
      %1676 = vector.broadcast %40 : f32 to vector<16x128xf32>
      %1677 = arith.mulf %1676, %1669 : vector<16x128xf32>
      %1678 = vector.broadcast %49 : f32 to vector<16x128xf32>
      %1679 = arith.mulf %1678, %1669 : vector<16x128xf32>
      %1680 = vector.broadcast %58 : f32 to vector<16x128xf32>
      %1681 = arith.mulf %1680, %1669 : vector<16x128xf32>
      %1682 = vector.broadcast %67 : f32 to vector<16x128xf32>
      %1683 = arith.mulf %1682, %1669 : vector<16x128xf32>
      %1684 = vector.broadcast %76 : f32 to vector<16x128xf32>
      %1685 = arith.mulf %1684, %1669 : vector<16x128xf32>
      %1686 = vector.broadcast %14 : f32 to vector<16x128xf32>
      %1687 = arith.mulf %1686, %1667 : vector<16x128xf32>
      %1688 = arith.addf %1671, %1687 : vector<16x128xf32>
      %1689 = vector.broadcast %23 : f32 to vector<16x128xf32>
      %1690 = arith.mulf %1689, %1667 : vector<16x128xf32>
      %1691 = arith.addf %1673, %1690 : vector<16x128xf32>
      %1692 = vector.broadcast %32 : f32 to vector<16x128xf32>
      %1693 = arith.mulf %1692, %1667 : vector<16x128xf32>
      %1694 = arith.addf %1675, %1693 : vector<16x128xf32>
      %1695 = vector.broadcast %41 : f32 to vector<16x128xf32>
      %1696 = arith.mulf %1695, %1667 : vector<16x128xf32>
      %1697 = arith.addf %1677, %1696 : vector<16x128xf32>
      %1698 = vector.broadcast %50 : f32 to vector<16x128xf32>
      %1699 = arith.mulf %1698, %1667 : vector<16x128xf32>
      %1700 = arith.addf %1679, %1699 : vector<16x128xf32>
      %1701 = vector.broadcast %59 : f32 to vector<16x128xf32>
      %1702 = arith.mulf %1701, %1667 : vector<16x128xf32>
      %1703 = arith.addf %1681, %1702 : vector<16x128xf32>
      %1704 = vector.broadcast %68 : f32 to vector<16x128xf32>
      %1705 = arith.mulf %1704, %1667 : vector<16x128xf32>
      %1706 = arith.addf %1683, %1705 : vector<16x128xf32>
      %1707 = vector.broadcast %77 : f32 to vector<16x128xf32>
      %1708 = arith.mulf %1707, %1667 : vector<16x128xf32>
      %1709 = arith.addf %1685, %1708 : vector<16x128xf32>
      %c127_i32_171 = arith.constant 127 : i32
      %1710 = tpu.dynamic_rotate %1667 by %c127_i32_171 dim 1 : vector<16x128xf32>, i32 -> vector<16x128xf32>
      %1711 = arith.select %10, %1710, %4 : vector<16x128xi1>, vector<16x128xf32>
      %1712 = vector.broadcast %15 : f32 to vector<16x128xf32>
      %1713 = arith.mulf %1712, %1711 : vector<16x128xf32>
      %1714 = arith.addf %1688, %1713 : vector<16x128xf32>
      %1715 = vector.broadcast %24 : f32 to vector<16x128xf32>
      %1716 = arith.mulf %1715, %1711 : vector<16x128xf32>
      %1717 = arith.addf %1691, %1716 : vector<16x128xf32>
      %1718 = vector.broadcast %33 : f32 to vector<16x128xf32>
      %1719 = arith.mulf %1718, %1711 : vector<16x128xf32>
      %1720 = arith.addf %1694, %1719 : vector<16x128xf32>
      %1721 = vector.broadcast %42 : f32 to vector<16x128xf32>
      %1722 = arith.mulf %1721, %1711 : vector<16x128xf32>
      %1723 = arith.addf %1697, %1722 : vector<16x128xf32>
      %1724 = vector.broadcast %51 : f32 to vector<16x128xf32>
      %1725 = arith.mulf %1724, %1711 : vector<16x128xf32>
      %1726 = arith.addf %1700, %1725 : vector<16x128xf32>
      %1727 = vector.broadcast %60 : f32 to vector<16x128xf32>
      %1728 = arith.mulf %1727, %1711 : vector<16x128xf32>
      %1729 = arith.addf %1703, %1728 : vector<16x128xf32>
      %1730 = vector.broadcast %69 : f32 to vector<16x128xf32>
      %1731 = arith.mulf %1730, %1711 : vector<16x128xf32>
      %1732 = arith.addf %1706, %1731 : vector<16x128xf32>
      %1733 = vector.broadcast %78 : f32 to vector<16x128xf32>
      %1734 = arith.mulf %1733, %1711 : vector<16x128xf32>
      %1735 = arith.addf %1709, %1734 : vector<16x128xf32>
      %c1_i32_172 = arith.constant 1 : i32
      %1736 = tpu.dynamic_rotate %1665 by %c1_i32_172 dim 1 : vector<16x128xf32>, i32 -> vector<16x128xf32>
      %1737 = arith.select %12, %1736, %4 : vector<16x128xi1>, vector<16x128xf32>
      %1738 = vector.broadcast %16 : f32 to vector<16x128xf32>
      %1739 = arith.mulf %1738, %1737 : vector<16x128xf32>
      %1740 = arith.addf %1714, %1739 : vector<16x128xf32>
      %1741 = vector.broadcast %25 : f32 to vector<16x128xf32>
      %1742 = arith.mulf %1741, %1737 : vector<16x128xf32>
      %1743 = arith.addf %1717, %1742 : vector<16x128xf32>
      %1744 = vector.broadcast %34 : f32 to vector<16x128xf32>
      %1745 = arith.mulf %1744, %1737 : vector<16x128xf32>
      %1746 = arith.addf %1720, %1745 : vector<16x128xf32>
      %1747 = vector.broadcast %43 : f32 to vector<16x128xf32>
      %1748 = arith.mulf %1747, %1737 : vector<16x128xf32>
      %1749 = arith.addf %1723, %1748 : vector<16x128xf32>
      %1750 = vector.broadcast %52 : f32 to vector<16x128xf32>
      %1751 = arith.mulf %1750, %1737 : vector<16x128xf32>
      %1752 = arith.addf %1726, %1751 : vector<16x128xf32>
      %1753 = vector.broadcast %61 : f32 to vector<16x128xf32>
      %1754 = arith.mulf %1753, %1737 : vector<16x128xf32>
      %1755 = arith.addf %1729, %1754 : vector<16x128xf32>
      %1756 = vector.broadcast %70 : f32 to vector<16x128xf32>
      %1757 = arith.mulf %1756, %1737 : vector<16x128xf32>
      %1758 = arith.addf %1732, %1757 : vector<16x128xf32>
      %1759 = vector.broadcast %79 : f32 to vector<16x128xf32>
      %1760 = arith.mulf %1759, %1737 : vector<16x128xf32>
      %1761 = arith.addf %1735, %1760 : vector<16x128xf32>
      %1762 = vector.broadcast %17 : f32 to vector<16x128xf32>
      %1763 = arith.mulf %1762, %1665 : vector<16x128xf32>
      %1764 = arith.addf %1740, %1763 : vector<16x128xf32>
      %1765 = vector.broadcast %26 : f32 to vector<16x128xf32>
      %1766 = arith.mulf %1765, %1665 : vector<16x128xf32>
      %1767 = arith.addf %1743, %1766 : vector<16x128xf32>
      %1768 = vector.broadcast %35 : f32 to vector<16x128xf32>
      %1769 = arith.mulf %1768, %1665 : vector<16x128xf32>
      %1770 = arith.addf %1746, %1769 : vector<16x128xf32>
      %1771 = vector.broadcast %44 : f32 to vector<16x128xf32>
      %1772 = arith.mulf %1771, %1665 : vector<16x128xf32>
      %1773 = arith.addf %1749, %1772 : vector<16x128xf32>
      %1774 = vector.broadcast %53 : f32 to vector<16x128xf32>
      %1775 = arith.mulf %1774, %1665 : vector<16x128xf32>
      %1776 = arith.addf %1752, %1775 : vector<16x128xf32>
      %1777 = vector.broadcast %62 : f32 to vector<16x128xf32>
      %1778 = arith.mulf %1777, %1665 : vector<16x128xf32>
      %1779 = arith.addf %1755, %1778 : vector<16x128xf32>
      %1780 = vector.broadcast %71 : f32 to vector<16x128xf32>
      %1781 = arith.mulf %1780, %1665 : vector<16x128xf32>
      %1782 = arith.addf %1758, %1781 : vector<16x128xf32>
      %1783 = vector.broadcast %80 : f32 to vector<16x128xf32>
      %1784 = arith.mulf %1783, %1665 : vector<16x128xf32>
      %1785 = arith.addf %1761, %1784 : vector<16x128xf32>
      %c127_i32_173 = arith.constant 127 : i32
      %1786 = tpu.dynamic_rotate %1665 by %c127_i32_173 dim 1 : vector<16x128xf32>, i32 -> vector<16x128xf32>
      %1787 = arith.select %10, %1786, %4 : vector<16x128xi1>, vector<16x128xf32>
      %1788 = vector.broadcast %18 : f32 to vector<16x128xf32>
      %1789 = arith.mulf %1788, %1787 : vector<16x128xf32>
      %1790 = arith.addf %1764, %1789 : vector<16x128xf32>
      %1791 = vector.broadcast %27 : f32 to vector<16x128xf32>
      %1792 = arith.mulf %1791, %1787 : vector<16x128xf32>
      %1793 = arith.addf %1767, %1792 : vector<16x128xf32>
      %1794 = vector.broadcast %36 : f32 to vector<16x128xf32>
      %1795 = arith.mulf %1794, %1787 : vector<16x128xf32>
      %1796 = arith.addf %1770, %1795 : vector<16x128xf32>
      %1797 = vector.broadcast %45 : f32 to vector<16x128xf32>
      %1798 = arith.mulf %1797, %1787 : vector<16x128xf32>
      %1799 = arith.addf %1773, %1798 : vector<16x128xf32>
      %1800 = vector.broadcast %54 : f32 to vector<16x128xf32>
      %1801 = arith.mulf %1800, %1787 : vector<16x128xf32>
      %1802 = arith.addf %1776, %1801 : vector<16x128xf32>
      %1803 = vector.broadcast %63 : f32 to vector<16x128xf32>
      %1804 = arith.mulf %1803, %1787 : vector<16x128xf32>
      %1805 = arith.addf %1779, %1804 : vector<16x128xf32>
      %1806 = vector.broadcast %72 : f32 to vector<16x128xf32>
      %1807 = arith.mulf %1806, %1787 : vector<16x128xf32>
      %1808 = arith.addf %1782, %1807 : vector<16x128xf32>
      %1809 = vector.broadcast %81 : f32 to vector<16x128xf32>
      %1810 = arith.mulf %1809, %1787 : vector<16x128xf32>
      %1811 = arith.addf %1785, %1810 : vector<16x128xf32>
      %c15_i32_174 = arith.constant 15 : i32
      %1812 = tpu.dynamic_rotate %1665 by %c15_i32_174 dim 0 : vector<16x128xf32>, i32 -> vector<16x128xf32>
      %1813 = arith.select %6, %1812, %4 : vector<16x128xi1>, vector<16x128xf32>
      %c1_i32_175 = arith.constant 1 : i32
      %1814 = tpu.dynamic_rotate %1813 by %c1_i32_175 dim 1 : vector<16x128xf32>, i32 -> vector<16x128xf32>
      %1815 = arith.select %12, %1814, %4 : vector<16x128xi1>, vector<16x128xf32>
      %1816 = vector.broadcast %19 : f32 to vector<16x128xf32>
      %1817 = arith.mulf %1816, %1815 : vector<16x128xf32>
      %1818 = arith.addf %1790, %1817 : vector<16x128xf32>
      %1819 = vector.broadcast %28 : f32 to vector<16x128xf32>
      %1820 = arith.mulf %1819, %1815 : vector<16x128xf32>
      %1821 = arith.addf %1793, %1820 : vector<16x128xf32>
      %1822 = vector.broadcast %37 : f32 to vector<16x128xf32>
      %1823 = arith.mulf %1822, %1815 : vector<16x128xf32>
      %1824 = arith.addf %1796, %1823 : vector<16x128xf32>
      %1825 = vector.broadcast %46 : f32 to vector<16x128xf32>
      %1826 = arith.mulf %1825, %1815 : vector<16x128xf32>
      %1827 = arith.addf %1799, %1826 : vector<16x128xf32>
      %1828 = vector.broadcast %55 : f32 to vector<16x128xf32>
      %1829 = arith.mulf %1828, %1815 : vector<16x128xf32>
      %1830 = arith.addf %1802, %1829 : vector<16x128xf32>
      %1831 = vector.broadcast %64 : f32 to vector<16x128xf32>
      %1832 = arith.mulf %1831, %1815 : vector<16x128xf32>
      %1833 = arith.addf %1805, %1832 : vector<16x128xf32>
      %1834 = vector.broadcast %73 : f32 to vector<16x128xf32>
      %1835 = arith.mulf %1834, %1815 : vector<16x128xf32>
      %1836 = arith.addf %1808, %1835 : vector<16x128xf32>
      %1837 = vector.broadcast %82 : f32 to vector<16x128xf32>
      %1838 = arith.mulf %1837, %1815 : vector<16x128xf32>
      %1839 = arith.addf %1811, %1838 : vector<16x128xf32>
      %1840 = vector.broadcast %20 : f32 to vector<16x128xf32>
      %1841 = arith.mulf %1840, %1813 : vector<16x128xf32>
      %1842 = arith.addf %1818, %1841 : vector<16x128xf32>
      %1843 = vector.broadcast %29 : f32 to vector<16x128xf32>
      %1844 = arith.mulf %1843, %1813 : vector<16x128xf32>
      %1845 = arith.addf %1821, %1844 : vector<16x128xf32>
      %1846 = vector.broadcast %38 : f32 to vector<16x128xf32>
      %1847 = arith.mulf %1846, %1813 : vector<16x128xf32>
      %1848 = arith.addf %1824, %1847 : vector<16x128xf32>
      %1849 = vector.broadcast %47 : f32 to vector<16x128xf32>
      %1850 = arith.mulf %1849, %1813 : vector<16x128xf32>
      %1851 = arith.addf %1827, %1850 : vector<16x128xf32>
      %1852 = vector.broadcast %56 : f32 to vector<16x128xf32>
      %1853 = arith.mulf %1852, %1813 : vector<16x128xf32>
      %1854 = arith.addf %1830, %1853 : vector<16x128xf32>
      %1855 = vector.broadcast %65 : f32 to vector<16x128xf32>
      %1856 = arith.mulf %1855, %1813 : vector<16x128xf32>
      %1857 = arith.addf %1833, %1856 : vector<16x128xf32>
      %1858 = vector.broadcast %74 : f32 to vector<16x128xf32>
      %1859 = arith.mulf %1858, %1813 : vector<16x128xf32>
      %1860 = arith.addf %1836, %1859 : vector<16x128xf32>
      %1861 = vector.broadcast %83 : f32 to vector<16x128xf32>
      %1862 = arith.mulf %1861, %1813 : vector<16x128xf32>
      %1863 = arith.addf %1839, %1862 : vector<16x128xf32>
      %c127_i32_176 = arith.constant 127 : i32
      %1864 = tpu.dynamic_rotate %1813 by %c127_i32_176 dim 1 : vector<16x128xf32>, i32 -> vector<16x128xf32>
      %1865 = arith.select %10, %1864, %4 : vector<16x128xi1>, vector<16x128xf32>
      %1866 = vector.broadcast %21 : f32 to vector<16x128xf32>
      %1867 = arith.mulf %1866, %1865 : vector<16x128xf32>
      %1868 = arith.addf %1842, %1867 : vector<16x128xf32>
      %1869 = vector.broadcast %30 : f32 to vector<16x128xf32>
      %1870 = arith.mulf %1869, %1865 : vector<16x128xf32>
      %1871 = arith.addf %1845, %1870 : vector<16x128xf32>
      %1872 = vector.broadcast %39 : f32 to vector<16x128xf32>
      %1873 = arith.mulf %1872, %1865 : vector<16x128xf32>
      %1874 = arith.addf %1848, %1873 : vector<16x128xf32>
      %1875 = vector.broadcast %48 : f32 to vector<16x128xf32>
      %1876 = arith.mulf %1875, %1865 : vector<16x128xf32>
      %1877 = arith.addf %1851, %1876 : vector<16x128xf32>
      %1878 = vector.broadcast %57 : f32 to vector<16x128xf32>
      %1879 = arith.mulf %1878, %1865 : vector<16x128xf32>
      %1880 = arith.addf %1854, %1879 : vector<16x128xf32>
      %1881 = vector.broadcast %66 : f32 to vector<16x128xf32>
      %1882 = arith.mulf %1881, %1865 : vector<16x128xf32>
      %1883 = arith.addf %1857, %1882 : vector<16x128xf32>
      %1884 = vector.broadcast %75 : f32 to vector<16x128xf32>
      %1885 = arith.mulf %1884, %1865 : vector<16x128xf32>
      %1886 = arith.addf %1860, %1885 : vector<16x128xf32>
      %1887 = vector.broadcast %84 : f32 to vector<16x128xf32>
      %1888 = arith.mulf %1887, %1865 : vector<16x128xf32>
      %1889 = arith.addf %1863, %1888 : vector<16x128xf32>
      %1890 = vector.broadcast %85 : f32 to vector<16x128xf32>
      %1891 = arith.addf %1868, %1890 : vector<16x128xf32>
      %cst_177 = arith.constant 0.000000e+00 : f32
      %1892 = vector.broadcast %cst_177 : f32 to vector<16x128xf32>
      %1893 = arith.maximumf %1891, %1892 : vector<16x128xf32>
      %1894 = vector.broadcast %86 : f32 to vector<16x128xf32>
      %1895 = arith.addf %1871, %1894 : vector<16x128xf32>
      %cst_178 = arith.constant 0.000000e+00 : f32
      %1896 = vector.broadcast %cst_178 : f32 to vector<16x128xf32>
      %1897 = arith.maximumf %1895, %1896 : vector<16x128xf32>
      %1898 = vector.broadcast %87 : f32 to vector<16x128xf32>
      %1899 = arith.addf %1874, %1898 : vector<16x128xf32>
      %cst_179 = arith.constant 0.000000e+00 : f32
      %1900 = vector.broadcast %cst_179 : f32 to vector<16x128xf32>
      %1901 = arith.maximumf %1899, %1900 : vector<16x128xf32>
      %1902 = vector.broadcast %88 : f32 to vector<16x128xf32>
      %1903 = arith.addf %1877, %1902 : vector<16x128xf32>
      %cst_180 = arith.constant 0.000000e+00 : f32
      %1904 = vector.broadcast %cst_180 : f32 to vector<16x128xf32>
      %1905 = arith.maximumf %1903, %1904 : vector<16x128xf32>
      %1906 = vector.broadcast %89 : f32 to vector<16x128xf32>
      %1907 = arith.addf %1880, %1906 : vector<16x128xf32>
      %cst_181 = arith.constant 0.000000e+00 : f32
      %1908 = vector.broadcast %cst_181 : f32 to vector<16x128xf32>
      %1909 = arith.maximumf %1907, %1908 : vector<16x128xf32>
      %1910 = vector.broadcast %90 : f32 to vector<16x128xf32>
      %1911 = arith.addf %1883, %1910 : vector<16x128xf32>
      %cst_182 = arith.constant 0.000000e+00 : f32
      %1912 = vector.broadcast %cst_182 : f32 to vector<16x128xf32>
      %1913 = arith.maximumf %1911, %1912 : vector<16x128xf32>
      %1914 = vector.broadcast %91 : f32 to vector<16x128xf32>
      %1915 = arith.addf %1886, %1914 : vector<16x128xf32>
      %cst_183 = arith.constant 0.000000e+00 : f32
      %1916 = vector.broadcast %cst_183 : f32 to vector<16x128xf32>
      %1917 = arith.maximumf %1915, %1916 : vector<16x128xf32>
      %1918 = vector.broadcast %92 : f32 to vector<16x128xf32>
      %1919 = arith.addf %1889, %1918 : vector<16x128xf32>
      %cst_184 = arith.constant 0.000000e+00 : f32
      %1920 = vector.broadcast %cst_184 : f32 to vector<16x128xf32>
      %1921 = arith.maximumf %1919, %1920 : vector<16x128xf32>
      %1922 = vector.broadcast %93 : f32 to vector<16x128xf32>
      %1923 = arith.mulf %1922, %1893 : vector<16x128xf32>
      %1924 = vector.broadcast %102 : f32 to vector<16x128xf32>
      %1925 = arith.mulf %1924, %1897 : vector<16x128xf32>
      %1926 = arith.addf %1923, %1925 : vector<16x128xf32>
      %1927 = vector.broadcast %111 : f32 to vector<16x128xf32>
      %1928 = arith.mulf %1927, %1901 : vector<16x128xf32>
      %1929 = arith.addf %1926, %1928 : vector<16x128xf32>
      %1930 = vector.broadcast %120 : f32 to vector<16x128xf32>
      %1931 = arith.mulf %1930, %1905 : vector<16x128xf32>
      %1932 = arith.addf %1929, %1931 : vector<16x128xf32>
      %1933 = vector.broadcast %129 : f32 to vector<16x128xf32>
      %1934 = arith.mulf %1933, %1909 : vector<16x128xf32>
      %1935 = arith.addf %1932, %1934 : vector<16x128xf32>
      %1936 = vector.broadcast %138 : f32 to vector<16x128xf32>
      %1937 = arith.mulf %1936, %1913 : vector<16x128xf32>
      %1938 = arith.addf %1935, %1937 : vector<16x128xf32>
      %1939 = vector.broadcast %147 : f32 to vector<16x128xf32>
      %1940 = arith.mulf %1939, %1917 : vector<16x128xf32>
      %1941 = arith.addf %1938, %1940 : vector<16x128xf32>
      %1942 = vector.broadcast %156 : f32 to vector<16x128xf32>
      %1943 = arith.mulf %1942, %1921 : vector<16x128xf32>
      %1944 = arith.addf %1941, %1943 : vector<16x128xf32>
      %c1_i32_185 = arith.constant 1 : i32
      %1945 = tpu.dynamic_rotate %1944 by %c1_i32_185 dim 1 : vector<16x128xf32>, i32 -> vector<16x128xf32>
      %1946 = arith.select %12, %1945, %4 : vector<16x128xi1>, vector<16x128xf32>
      %1947 = vector.broadcast %94 : f32 to vector<16x128xf32>
      %1948 = arith.mulf %1947, %1893 : vector<16x128xf32>
      %1949 = vector.broadcast %103 : f32 to vector<16x128xf32>
      %1950 = arith.mulf %1949, %1897 : vector<16x128xf32>
      %1951 = arith.addf %1948, %1950 : vector<16x128xf32>
      %1952 = vector.broadcast %112 : f32 to vector<16x128xf32>
      %1953 = arith.mulf %1952, %1901 : vector<16x128xf32>
      %1954 = arith.addf %1951, %1953 : vector<16x128xf32>
      %1955 = vector.broadcast %121 : f32 to vector<16x128xf32>
      %1956 = arith.mulf %1955, %1905 : vector<16x128xf32>
      %1957 = arith.addf %1954, %1956 : vector<16x128xf32>
      %1958 = vector.broadcast %130 : f32 to vector<16x128xf32>
      %1959 = arith.mulf %1958, %1909 : vector<16x128xf32>
      %1960 = arith.addf %1957, %1959 : vector<16x128xf32>
      %1961 = vector.broadcast %139 : f32 to vector<16x128xf32>
      %1962 = arith.mulf %1961, %1913 : vector<16x128xf32>
      %1963 = arith.addf %1960, %1962 : vector<16x128xf32>
      %1964 = vector.broadcast %148 : f32 to vector<16x128xf32>
      %1965 = arith.mulf %1964, %1917 : vector<16x128xf32>
      %1966 = arith.addf %1963, %1965 : vector<16x128xf32>
      %1967 = vector.broadcast %157 : f32 to vector<16x128xf32>
      %1968 = arith.mulf %1967, %1921 : vector<16x128xf32>
      %1969 = arith.addf %1966, %1968 : vector<16x128xf32>
      %1970 = arith.addf %1946, %1969 : vector<16x128xf32>
      %1971 = vector.broadcast %95 : f32 to vector<16x128xf32>
      %1972 = arith.mulf %1971, %1893 : vector<16x128xf32>
      %1973 = vector.broadcast %104 : f32 to vector<16x128xf32>
      %1974 = arith.mulf %1973, %1897 : vector<16x128xf32>
      %1975 = arith.addf %1972, %1974 : vector<16x128xf32>
      %1976 = vector.broadcast %113 : f32 to vector<16x128xf32>
      %1977 = arith.mulf %1976, %1901 : vector<16x128xf32>
      %1978 = arith.addf %1975, %1977 : vector<16x128xf32>
      %1979 = vector.broadcast %122 : f32 to vector<16x128xf32>
      %1980 = arith.mulf %1979, %1905 : vector<16x128xf32>
      %1981 = arith.addf %1978, %1980 : vector<16x128xf32>
      %1982 = vector.broadcast %131 : f32 to vector<16x128xf32>
      %1983 = arith.mulf %1982, %1909 : vector<16x128xf32>
      %1984 = arith.addf %1981, %1983 : vector<16x128xf32>
      %1985 = vector.broadcast %140 : f32 to vector<16x128xf32>
      %1986 = arith.mulf %1985, %1913 : vector<16x128xf32>
      %1987 = arith.addf %1984, %1986 : vector<16x128xf32>
      %1988 = vector.broadcast %149 : f32 to vector<16x128xf32>
      %1989 = arith.mulf %1988, %1917 : vector<16x128xf32>
      %1990 = arith.addf %1987, %1989 : vector<16x128xf32>
      %1991 = vector.broadcast %158 : f32 to vector<16x128xf32>
      %1992 = arith.mulf %1991, %1921 : vector<16x128xf32>
      %1993 = arith.addf %1990, %1992 : vector<16x128xf32>
      %c127_i32_186 = arith.constant 127 : i32
      %1994 = tpu.dynamic_rotate %1993 by %c127_i32_186 dim 1 : vector<16x128xf32>, i32 -> vector<16x128xf32>
      %1995 = arith.select %10, %1994, %4 : vector<16x128xi1>, vector<16x128xf32>
      %1996 = arith.addf %1970, %1995 : vector<16x128xf32>
      %c1_i32_187 = arith.constant 1 : i32
      %1997 = tpu.dynamic_rotate %1996 by %c1_i32_187 dim 0 : vector<16x128xf32>, i32 -> vector<16x128xf32>
      %1998 = arith.select %8, %1997, %4 : vector<16x128xi1>, vector<16x128xf32>
      %1999 = vector.broadcast %96 : f32 to vector<16x128xf32>
      %2000 = arith.mulf %1999, %1893 : vector<16x128xf32>
      %2001 = vector.broadcast %105 : f32 to vector<16x128xf32>
      %2002 = arith.mulf %2001, %1897 : vector<16x128xf32>
      %2003 = arith.addf %2000, %2002 : vector<16x128xf32>
      %2004 = vector.broadcast %114 : f32 to vector<16x128xf32>
      %2005 = arith.mulf %2004, %1901 : vector<16x128xf32>
      %2006 = arith.addf %2003, %2005 : vector<16x128xf32>
      %2007 = vector.broadcast %123 : f32 to vector<16x128xf32>
      %2008 = arith.mulf %2007, %1905 : vector<16x128xf32>
      %2009 = arith.addf %2006, %2008 : vector<16x128xf32>
      %2010 = vector.broadcast %132 : f32 to vector<16x128xf32>
      %2011 = arith.mulf %2010, %1909 : vector<16x128xf32>
      %2012 = arith.addf %2009, %2011 : vector<16x128xf32>
      %2013 = vector.broadcast %141 : f32 to vector<16x128xf32>
      %2014 = arith.mulf %2013, %1913 : vector<16x128xf32>
      %2015 = arith.addf %2012, %2014 : vector<16x128xf32>
      %2016 = vector.broadcast %150 : f32 to vector<16x128xf32>
      %2017 = arith.mulf %2016, %1917 : vector<16x128xf32>
      %2018 = arith.addf %2015, %2017 : vector<16x128xf32>
      %2019 = vector.broadcast %159 : f32 to vector<16x128xf32>
      %2020 = arith.mulf %2019, %1921 : vector<16x128xf32>
      %2021 = arith.addf %2018, %2020 : vector<16x128xf32>
      %c1_i32_188 = arith.constant 1 : i32
      %2022 = tpu.dynamic_rotate %2021 by %c1_i32_188 dim 1 : vector<16x128xf32>, i32 -> vector<16x128xf32>
      %2023 = arith.select %12, %2022, %4 : vector<16x128xi1>, vector<16x128xf32>
      %2024 = vector.broadcast %97 : f32 to vector<16x128xf32>
      %2025 = arith.mulf %2024, %1893 : vector<16x128xf32>
      %2026 = vector.broadcast %106 : f32 to vector<16x128xf32>
      %2027 = arith.mulf %2026, %1897 : vector<16x128xf32>
      %2028 = arith.addf %2025, %2027 : vector<16x128xf32>
      %2029 = vector.broadcast %115 : f32 to vector<16x128xf32>
      %2030 = arith.mulf %2029, %1901 : vector<16x128xf32>
      %2031 = arith.addf %2028, %2030 : vector<16x128xf32>
      %2032 = vector.broadcast %124 : f32 to vector<16x128xf32>
      %2033 = arith.mulf %2032, %1905 : vector<16x128xf32>
      %2034 = arith.addf %2031, %2033 : vector<16x128xf32>
      %2035 = vector.broadcast %133 : f32 to vector<16x128xf32>
      %2036 = arith.mulf %2035, %1909 : vector<16x128xf32>
      %2037 = arith.addf %2034, %2036 : vector<16x128xf32>
      %2038 = vector.broadcast %142 : f32 to vector<16x128xf32>
      %2039 = arith.mulf %2038, %1913 : vector<16x128xf32>
      %2040 = arith.addf %2037, %2039 : vector<16x128xf32>
      %2041 = vector.broadcast %151 : f32 to vector<16x128xf32>
      %2042 = arith.mulf %2041, %1917 : vector<16x128xf32>
      %2043 = arith.addf %2040, %2042 : vector<16x128xf32>
      %2044 = vector.broadcast %160 : f32 to vector<16x128xf32>
      %2045 = arith.mulf %2044, %1921 : vector<16x128xf32>
      %2046 = arith.addf %2043, %2045 : vector<16x128xf32>
      %2047 = arith.addf %2023, %2046 : vector<16x128xf32>
      %2048 = vector.broadcast %98 : f32 to vector<16x128xf32>
      %2049 = arith.mulf %2048, %1893 : vector<16x128xf32>
      %2050 = vector.broadcast %107 : f32 to vector<16x128xf32>
      %2051 = arith.mulf %2050, %1897 : vector<16x128xf32>
      %2052 = arith.addf %2049, %2051 : vector<16x128xf32>
      %2053 = vector.broadcast %116 : f32 to vector<16x128xf32>
      %2054 = arith.mulf %2053, %1901 : vector<16x128xf32>
      %2055 = arith.addf %2052, %2054 : vector<16x128xf32>
      %2056 = vector.broadcast %125 : f32 to vector<16x128xf32>
      %2057 = arith.mulf %2056, %1905 : vector<16x128xf32>
      %2058 = arith.addf %2055, %2057 : vector<16x128xf32>
      %2059 = vector.broadcast %134 : f32 to vector<16x128xf32>
      %2060 = arith.mulf %2059, %1909 : vector<16x128xf32>
      %2061 = arith.addf %2058, %2060 : vector<16x128xf32>
      %2062 = vector.broadcast %143 : f32 to vector<16x128xf32>
      %2063 = arith.mulf %2062, %1913 : vector<16x128xf32>
      %2064 = arith.addf %2061, %2063 : vector<16x128xf32>
      %2065 = vector.broadcast %152 : f32 to vector<16x128xf32>
      %2066 = arith.mulf %2065, %1917 : vector<16x128xf32>
      %2067 = arith.addf %2064, %2066 : vector<16x128xf32>
      %2068 = vector.broadcast %161 : f32 to vector<16x128xf32>
      %2069 = arith.mulf %2068, %1921 : vector<16x128xf32>
      %2070 = arith.addf %2067, %2069 : vector<16x128xf32>
      %c127_i32_189 = arith.constant 127 : i32
      %2071 = tpu.dynamic_rotate %2070 by %c127_i32_189 dim 1 : vector<16x128xf32>, i32 -> vector<16x128xf32>
      %2072 = arith.select %10, %2071, %4 : vector<16x128xi1>, vector<16x128xf32>
      %2073 = arith.addf %2047, %2072 : vector<16x128xf32>
      %2074 = arith.addf %1998, %2073 : vector<16x128xf32>
      %2075 = vector.broadcast %99 : f32 to vector<16x128xf32>
      %2076 = arith.mulf %2075, %1893 : vector<16x128xf32>
      %2077 = vector.broadcast %108 : f32 to vector<16x128xf32>
      %2078 = arith.mulf %2077, %1897 : vector<16x128xf32>
      %2079 = arith.addf %2076, %2078 : vector<16x128xf32>
      %2080 = vector.broadcast %117 : f32 to vector<16x128xf32>
      %2081 = arith.mulf %2080, %1901 : vector<16x128xf32>
      %2082 = arith.addf %2079, %2081 : vector<16x128xf32>
      %2083 = vector.broadcast %126 : f32 to vector<16x128xf32>
      %2084 = arith.mulf %2083, %1905 : vector<16x128xf32>
      %2085 = arith.addf %2082, %2084 : vector<16x128xf32>
      %2086 = vector.broadcast %135 : f32 to vector<16x128xf32>
      %2087 = arith.mulf %2086, %1909 : vector<16x128xf32>
      %2088 = arith.addf %2085, %2087 : vector<16x128xf32>
      %2089 = vector.broadcast %144 : f32 to vector<16x128xf32>
      %2090 = arith.mulf %2089, %1913 : vector<16x128xf32>
      %2091 = arith.addf %2088, %2090 : vector<16x128xf32>
      %2092 = vector.broadcast %153 : f32 to vector<16x128xf32>
      %2093 = arith.mulf %2092, %1917 : vector<16x128xf32>
      %2094 = arith.addf %2091, %2093 : vector<16x128xf32>
      %2095 = vector.broadcast %162 : f32 to vector<16x128xf32>
      %2096 = arith.mulf %2095, %1921 : vector<16x128xf32>
      %2097 = arith.addf %2094, %2096 : vector<16x128xf32>
      %c1_i32_190 = arith.constant 1 : i32
      %2098 = tpu.dynamic_rotate %2097 by %c1_i32_190 dim 1 : vector<16x128xf32>, i32 -> vector<16x128xf32>
      %2099 = arith.select %12, %2098, %4 : vector<16x128xi1>, vector<16x128xf32>
      %2100 = vector.broadcast %100 : f32 to vector<16x128xf32>
      %2101 = arith.mulf %2100, %1893 : vector<16x128xf32>
      %2102 = vector.broadcast %109 : f32 to vector<16x128xf32>
      %2103 = arith.mulf %2102, %1897 : vector<16x128xf32>
      %2104 = arith.addf %2101, %2103 : vector<16x128xf32>
      %2105 = vector.broadcast %118 : f32 to vector<16x128xf32>
      %2106 = arith.mulf %2105, %1901 : vector<16x128xf32>
      %2107 = arith.addf %2104, %2106 : vector<16x128xf32>
      %2108 = vector.broadcast %127 : f32 to vector<16x128xf32>
      %2109 = arith.mulf %2108, %1905 : vector<16x128xf32>
      %2110 = arith.addf %2107, %2109 : vector<16x128xf32>
      %2111 = vector.broadcast %136 : f32 to vector<16x128xf32>
      %2112 = arith.mulf %2111, %1909 : vector<16x128xf32>
      %2113 = arith.addf %2110, %2112 : vector<16x128xf32>
      %2114 = vector.broadcast %145 : f32 to vector<16x128xf32>
      %2115 = arith.mulf %2114, %1913 : vector<16x128xf32>
      %2116 = arith.addf %2113, %2115 : vector<16x128xf32>
      %2117 = vector.broadcast %154 : f32 to vector<16x128xf32>
      %2118 = arith.mulf %2117, %1917 : vector<16x128xf32>
      %2119 = arith.addf %2116, %2118 : vector<16x128xf32>
      %2120 = vector.broadcast %163 : f32 to vector<16x128xf32>
      %2121 = arith.mulf %2120, %1921 : vector<16x128xf32>
      %2122 = arith.addf %2119, %2121 : vector<16x128xf32>
      %2123 = arith.addf %2099, %2122 : vector<16x128xf32>
      %2124 = vector.broadcast %101 : f32 to vector<16x128xf32>
      %2125 = arith.mulf %2124, %1893 : vector<16x128xf32>
      %2126 = vector.broadcast %110 : f32 to vector<16x128xf32>
      %2127 = arith.mulf %2126, %1897 : vector<16x128xf32>
      %2128 = arith.addf %2125, %2127 : vector<16x128xf32>
      %2129 = vector.broadcast %119 : f32 to vector<16x128xf32>
      %2130 = arith.mulf %2129, %1901 : vector<16x128xf32>
      %2131 = arith.addf %2128, %2130 : vector<16x128xf32>
      %2132 = vector.broadcast %128 : f32 to vector<16x128xf32>
      %2133 = arith.mulf %2132, %1905 : vector<16x128xf32>
      %2134 = arith.addf %2131, %2133 : vector<16x128xf32>
      %2135 = vector.broadcast %137 : f32 to vector<16x128xf32>
      %2136 = arith.mulf %2135, %1909 : vector<16x128xf32>
      %2137 = arith.addf %2134, %2136 : vector<16x128xf32>
      %2138 = vector.broadcast %146 : f32 to vector<16x128xf32>
      %2139 = arith.mulf %2138, %1913 : vector<16x128xf32>
      %2140 = arith.addf %2137, %2139 : vector<16x128xf32>
      %2141 = vector.broadcast %155 : f32 to vector<16x128xf32>
      %2142 = arith.mulf %2141, %1917 : vector<16x128xf32>
      %2143 = arith.addf %2140, %2142 : vector<16x128xf32>
      %2144 = vector.broadcast %164 : f32 to vector<16x128xf32>
      %2145 = arith.mulf %2144, %1921 : vector<16x128xf32>
      %2146 = arith.addf %2143, %2145 : vector<16x128xf32>
      %c127_i32_191 = arith.constant 127 : i32
      %2147 = tpu.dynamic_rotate %2146 by %c127_i32_191 dim 1 : vector<16x128xf32>, i32 -> vector<16x128xf32>
      %2148 = arith.select %10, %2147, %4 : vector<16x128xi1>, vector<16x128xf32>
      %2149 = arith.addf %2123, %2148 : vector<16x128xf32>
      %c15_i32_192 = arith.constant 15 : i32
      %2150 = tpu.dynamic_rotate %2149 by %c15_i32_192 dim 0 : vector<16x128xf32>, i32 -> vector<16x128xf32>
      %2151 = arith.select %6, %2150, %4 : vector<16x128xi1>, vector<16x128xf32>
      %2152 = arith.addf %2074, %2151 : vector<16x128xf32>
      %2153 = vector.broadcast %165 : f32 to vector<16x128xf32>
      %2154 = arith.addf %2152, %2153 : vector<16x128xf32>
      %2155 = arith.addf %2154, %1665 : vector<16x128xf32>
      %2156 = vector.broadcast %173 : f32 to vector<16x128xf32>
      %2157 = arith.mulf %2156, %2155 : vector<16x128xf32>
      %2158 = vector.broadcast %169 : f32 to vector<16x128xf32>
      %2159 = arith.mulf %2158, %180 : vector<16x128xf32>
      %2160 = arith.addf %2157, %2159 : vector<16x128xf32>
      %2161 = arith.index_cast %arg9 : i32 to index
      %c0_193 = arith.constant 0 : index
      %c0_194 = arith.constant 0 : index
      %2162 = vector.load %arg8[%2161, %c0_193, %c0_194] : memref<2x16x128xf32, #tpu.memory_space<vmem>>, vector<1x16x128xf32>
      %2163 = vector.shape_cast %2162 : vector<1x16x128xf32> to vector<16x128xf32>
      %2164 = vector.shape_cast %2160 : vector<16x128xf32> to vector<1x16x128xf32>
      tpu.vector_store %arg8[%2161, %c0_193, %c0_194], %2164 {strides = array<i32>} : memref<2x16x128xf32, #tpu.memory_space<vmem>>, vector<1x16x128xf32>,
    }
    %c2_i32_93 = arith.constant 2 : i32
    return
  }
  func.func @transform_0(%arg0: i32) -> (i32, i32, i32) {
    %c0_i32 = arith.constant 0 : i32
    %c0_i32_0 = arith.constant 0 : i32
    %c0_i32_1 = arith.constant 0 : i32
    return %arg0, %c0_i32, %c0_i32_0 : i32, i32, i32
  }
  func.func @transform_1(%arg0: i32) -> (i32, i32, i32) {
    %c0_i32 = arith.constant 0 : i32
    %c0_i32_0 = arith.constant 0 : i32
    %c0_i32_1 = arith.constant 0 : i32
    return %arg0, %c0_i32, %c0_i32_0 : i32, i32, i32
  }
  func.func @transform_2(%arg0: i32) -> i32 {
    %c0_i32 = arith.constant 0 : i32
    %c0_i32_0 = arith.constant 0 : i32
    return %c0_i32 : i32
  }
  func.func @transform_3(%arg0: i32) -> i32 {
    %c0_i32 = arith.constant 0 : i32
    %c0_i32_0 = arith.constant 0 : i32
    return %c0_i32 : i32
  }
  func.func @transform_4(%arg0: i32) -> i32 {
    %c0_i32 = arith.constant 0 : i32
    %c0_i32_0 = arith.constant 0 : i32
    return %c0_i32 : i32
  }
  func.func @transform_5(%arg0: i32) -> i32 {
    %c0_i32 = arith.constant 0 : i32
    %c0_i32_0 = arith.constant 0 : i32
    return %c0_i32 : i32
  }
  func.func @transform_6(%arg0: i32) -> i32 {
    %c0_i32 = arith.constant 0 : i32
    %c0_i32_0 = arith.constant 0 : i32
    return %c0_i32 : i32
  }
  func.func @transform_7(%arg0: i32) -> (i32, i32, i32) {
    %c0_i32 = arith.constant 0 : i32
    %c0_i32_0 = arith.constant 0 : i32
    %c0_i32_1 = arith.constant 0 : i32
    return %arg0, %c0_i32, %c0_i32_0 : i32, i32, i32
  }
}

</mosaic_0001>

<bundles_post_ra>
// kernel: tpu_custom_call.1
= control target key start
LH: loop header
LB: loop body
LE: loop exit
PB: predicated region body
PF: predicated region fallthrough
CT: control target
= control target key end

     0   :  { %s8157_s0 = inlined_call_operand.hbm [shape: f32[2,16,128], index: 0, kind: input, shape index: {}]   ;;  %s8158_s1 = inlined_call_operand.hbm [shape: f32[2,16,128], index: 1, kind: input, shape index: {}]   ;;  %s8159_s2 = inlined_call_operand.vmem [shape: f32[72], index: 2, kind: input, shape index: {}]   ;;  %s8160_s3 = inlined_call_operand.vmem [shape: f32[8], index: 3, kind: input, shape index: {}]   ;;  %s8161_s4 = inlined_call_operand.vmem [shape: f32[72], index: 4, kind: input, shape index: {}]   ;;  %s8162_s5 = inlined_call_operand.<no memory space> [shape: f32[1], index: 5, kind: input, shape index: {}]   ;;  %s8163_s6 = inlined_call_operand.vmem [shape: f32[4], index: 6, kind: input, shape index: {}]   ;;  %s8164_s7 = inlined_call_operand.hbm [shape: f32[2,16,128], index: 7, kind: output, shape index: {}]  }
   0x1   :  { %8772 = sst [smem:[#allocation384_spill]] %s8162_s5 }
   0x2   :  { %8773 = sst [smem:[#allocation385_spill]] %s8164_s7 }
   0x3   :  { %13 = vsyncpa [#allocation4], 0 }
   0x4   :  { %14 = vsyncpa [#allocation8], 0 }
   0x5   :  { %15 = vsyncpa [#allocation6], 0 }
   0x6   :  { %16 = vsyncpa [#allocation11], 0 }
   0x7   :  { %17 = vsyncpa [#allocation14], 0  ;;  %s59_s26 = sshll.u32 %s8160_s3, 4  ;;  %s60_s26 = int_to_ptr.vmem [resolvable:$true] %s59_s26 }
   0x8   :  { %18 = vsyncpa [#allocation5], 0  ;;  %s23_s29 = sshll.u32 %s8157_s0, 4  ;;  %s3598_s30 = smov [#allocation10]   ;;  %s24_s29 = int_to_ptr.hbm [resolvable:$true] %s23_s29 }
   0x9   :  { %62 = dma.vmem_to_smem %s60_s26, 16, %s3598_s30, [#allocation11]  }
   0xa   :  { %s3599_s8 = smov [#allocation3]   ;;  %s8165_s10 = smov 128  }
   0xb   :  { %s25_s9 = sshll.u32 %s3599_s8, 4  ;;  %s8166_s11 = smov 8   ;;  %s26_s9 = int_to_ptr.vmem [resolvable:$true] %s25_s9 }
   0xc   :  { %31 = dma.hbm_to_vmem [thread:$0]  %s24_s29, 512, %s26_s9, [#allocation4], %s8165_s10, %s8165_s10, %s8166_s11  }
   0xd   :  { %s36_s13 = sshll.u32 %s8158_s1, 4  ;;  %s3602_s14 = smov [#allocation7]   ;;  %s37_s13 = int_to_ptr.hbm [resolvable:$true] %s36_s13 }
   0xe   :  { %s38_s15 = sshll.u32 %s3602_s14, 4  ;;  %s50_s17 = sshll.u32 %s8159_s2, 4  ;;  %s39_s15 = int_to_ptr.vmem [resolvable:$true] %s38_s15  ;;  %s51_s17 = int_to_ptr.vmem [resolvable:$true] %s50_s17 }
   0xf   :  { %44 = dma.hbm_to_vmem [thread:$0]  %s37_s13, 512, %s39_s15, [#allocation8], %s8165_s10, %s8165_s10, %s8166_s11  }
  0x10   :  { %s3603_s18 = smov [#allocation9]   ;;  %s68_s21 = sshll.u32 %s8161_s4, 4  ;;  %s69_s21 = int_to_ptr.vmem [resolvable:$true] %s68_s21 }
  0x11   :  { %53 = dma.vmem_to_smem %s51_s17, 16, %s3603_s18, [#allocation6]  }
  0x12   :  { %s79_s23 = sshll.u32 %s8163_s6, 4  ;;  %s3604_s24 = smov [#allocation12]   ;;  %s80_s23 = int_to_ptr.vmem [resolvable:$true] %s79_s23 }
  0x13   :  { %71 = dma.vmem_to_smem %s69_s21, 16, %s3604_s24, [#allocation11]  }
  0x14   :  { %s3605_s2 = smov [#allocation13]  }
  0x15   :  { %82 = dma.vmem_to_smem %s80_s23, 16, %s3605_s2, [#allocation14]  }
  0x16   :  { %3582 = dma.done.wait [#allocation4], 512  }
  0x17   :  { %3583 = vsyncadd [#allocation4], 4294966784 }
  0x18   :  { %3584 = dma.done.wait [#allocation8], 512  }
  0x19   :  { %3585 = vsyncadd [#allocation8], 4294966784 }
  0x1a   :  { %3586 = dma.done.wait [#allocation6], 16  }
  0x1b   :  { %3587 = vsyncadd [#allocation6], 4294967280 }
  0x1c   :  { %3588 = dma.done.wait [#allocation11], 32  }
  0x1d   :  { %3589 = vsyncadd [#allocation11], 4294967264 }
  0x1e   :  { %3590 = dma.done.wait [#allocation14], 16  }
  0x1f   :  { %3591 = vsyncadd [#allocation14], 4294967280 }
  0x20   :  { %107 = sfence }
  0x21   :  { %v108_v0 = vlaneseq  ;;  %s3673_s4 = sld [smem:[#allocation9]]  ;;  %v8781_v5 = vmov 0 }
  0x22   :  { %s3675_s6 = sld [smem:[#allocation9 + $0x1]] }
  0x23   :  { %v3677_v1 = vshrl.u32 %v108_v0, 7  ;;  %v112_v2 = vand.u32 127, %v108_v0  ;;  %s3679_s25 = sld [smem:[#allocation9 + $0x2]] }
  0x24   :  { %s3681_s26 = sld [smem:[#allocation9 + $0x3]] }
  0x25   :  { %8776 = vst [vmem:[#allocation24_spill] sm:$0xff] %v3677_v1  ;;  %v3684_v3 = vadd.s32 8, %v3677_v1  ;;  %v113_v4 = vand.u32 15, %v112_v2  ;;  %vm116_vm0 = vcmp.gt.s32.totalorder %v3677_v1, 0  ;;  %s3687_s27 = sld [smem:[#allocation9 + $0x4]] }
  0x26   :  { %s3689_s28 = sld [smem:[#allocation9 + $0x5]] }
  0x27   :  { %8774 = sst [smem:[#allocation22_spill]] %s3673_s4  ;;  %8778 = vst [vmem:[#allocation26_spill] sm:$0xff] %v3684_v3  ;;  %vm115_vm1 = vcmp.lt.s32.totalorder %v3684_v3, 15  ;;  %vm3692_vm2 = vcmp.lt.s32.totalorder %v113_v4, 15  ;;  %vm3696_vm3 = vcmp.gt.s32.totalorder %v113_v4, 0 }
  0x28   :  { %8775 = sst [smem:[#allocation23_spill]] %s3675_s6  ;;  %v8782_v5 = vsel %vm3692_vm2, 4294967295, %v8781_v5 }
  0x29   :  { %8777 = sst [smem:[#allocation25_spill]] %s3679_s25  ;;  %8783 = vst [vmem:[#allocation29_spill] sm:$0xff] %v8782_v5 }
  0x2a   :  { %s3700_s29 = sld [smem:[#allocation9 + $0x6]] }
  0x2b   :  { %8779 = sst [smem:[#allocation27_spill]] %s3687_s27 }
  0x2c   :  { %8780 = sst [smem:[#allocation28_spill]] %s3689_s28 }
  0x2d   :  { %s3702_s30 = sld [smem:[#allocation9 + $0x7]] }
  0x2e   :  { %s3704_s8 = sld [smem:[#allocation9 + $0x8]] }
  0x2f   :  { %s3706_s9 = sld [smem:[#allocation9 + $0x9]] }
  0x30   :  { %8786 = sst [smem:[#allocation30_spill]] %s3700_s29 }
  0x31   :  { %s3708_s12 = sld [smem:[#allocation9 + $0xa]] }
  0x32   :  { %s3710_s3 = sld [smem:[#allocation9 + $0xb]] }
  0x33   :  { %8787 = sst [smem:[#allocation31_spill]] %s3702_s30 }
  0x34   :  { %8788 = sst [smem:[#allocation32_spill]] %s3704_s8 }
  0x35   :  { %s3712_s13 = sld [smem:[#allocation9 + $0xc]] }
  0x36   :  { %s3714_s14 = sld [smem:[#allocation9 + $0xd]] }
  0x37   :  { %8789 = sst [smem:[#allocation33_spill]] %s3708_s12 }
  0x38   :  { %8790 = sst [smem:[#allocation34_spill]] %s3710_s3 }
  0x39   :  { %s3716_s15 = sld [smem:[#allocation9 + $0xe]] }
  0x3a   :  { %s3718_s0 = sld [smem:[#allocation9 + $0xf]] }
  0x3b   :  { %8791 = sst [smem:[#allocation35_spill]] %s3712_s13 }
  0x3c   :  { %8792 = sst [smem:[#allocation36_spill]] %s3714_s14 }
  0x3d   :  { %s3720_s16 = sld [smem:[#allocation9 + $0x10]] }
  0x3e   :  { %s3722_s17 = sld [smem:[#allocation9 + $0x11]] }
  0x3f   :  { %8793 = sst [smem:[#allocation37_spill]] %s3716_s15 }
  0x40   :  { %8794 = sst [smem:[#allocation38_spill]] %s3718_s0 }
  0x41   :  { %s3724_s18 = sld [smem:[#allocation9 + $0x12]] }
  0x42   :  { %s3726_s19 = sld [smem:[#allocation9 + $0x13]] }
  0x43   :  { %8795 = sst [smem:[#allocation39_spill]] %s3720_s16 }
  0x44   :  { %8796 = sst [smem:[#allocation40_spill]] %s3722_s17 }
  0x45   :  { %s3728_s20 = sld [smem:[#allocation9 + $0x14]] }
  0x46   :  { %s3730_s21 = sld [smem:[#allocation9 + $0x15]] }
  0x47   :  { %s3732_s1 = sld [smem:[#allocation9 + $0x16]] }
  0x48   :  { %8797 = sst [smem:[#allocation41_spill]] %s3726_s19 }
  0x49   :  { %s3734_s22 = sld [smem:[#allocation9 + $0x17]] }
  0x4a   :  { %s3736_s23 = sld [smem:[#allocation9 + $0x18]] }
  0x4b   :  { %s3738_s24 = sld [smem:[#allocation9 + $0x19]] }
  0x4c   :  { %8798 = sst [smem:[#allocation42_spill]] %s3730_s21 }
  0x4d   :  { %8799 = sst [smem:[#allocation43_spill]] %s3732_s1 }
  0x4e   :  { %s3740_s2 = sld [smem:[#allocation9 + $0x1a]] }
  0x4f   :  { %8800 = sst [smem:[#allocation44_spill]] %s3734_s22 }
  0x50   :  { %8801 = sst [smem:[#allocation45_spill]] %s3736_s23 }
  0x51   :  { %8802 = sst [smem:[#allocation46_spill]] %s3738_s24 }
  0x52   :  { %s3742_s10 = sld [smem:[#allocation9 + $0x1b]] }
  0x53   :  { %s3744_s11 = sld [smem:[#allocation9 + $0x1c]] }
  0x54   :  { %8803 = sst [smem:[#allocation47_spill]] %s3740_s2 }
  0x55   :  { %s3746_s7 = sld [smem:[#allocation9 + $0x1d]] }
  0x56   :  { %s3748_s5 = sld [smem:[#allocation9 + $0x1e]] }
  0x57   :  { %s3750_s17 = sld [smem:[#allocation9 + $0x1f]] }
  0x58   :  { %s3752_s8 = sld [smem:[#allocation9 + $0x20]] }
  0x59   :  { %8804 = sst [smem:[#allocation48_spill]] %s3744_s11 }
  0x5a   :  { %s3754_s16 = sld [smem:[#allocation9 + $0x21]] }
  0x5b   :  { %8805 = sst [smem:[#allocation49_spill]] %s3746_s7 }
  0x5c   :  { %8806 = sst [smem:[#allocation50_spill]] %s3748_s5 }
  0x5d   :  { %8807 = sst [smem:[#allocation51_spill]] %s3750_s17 }
  0x5e   :  { %8808 = sst [smem:[#allocation52_spill]] %s3752_s8 }
  0x5f   :  { %s3756_s30 = sld [smem:[#allocation9 + $0x22]] }
  0x60   :  { %8809 = sst [smem:[#allocation53_spill]] %s3754_s16 }
  0x61   :  { %s3758_s23 = sld [smem:[#allocation9 + $0x23]] }
  0x62   :  { %s3760_s24 = sld [smem:[#allocation9 + $0x24]] }
  0x63   :  { %s3762_s2 = sld [smem:[#allocation9 + $0x25]] }
  0x64   :  { %s3764_s0 = sld [smem:[#allocation9 + $0x26]] }
  0x65   :  { %8810 = sst [smem:[#allocation54_spill]] %s3756_s30 }
  0x66   :  { %s3766_s29 = sld [smem:[#allocation9 + $0x27]] }
  0x67   :  { %8811 = sst [smem:[#allocation55_spill]] %s3758_s23 }
  0x68   :  { %8812 = sst [smem:[#allocation56_spill]] %s3760_s24 }
  0x69   :  { %8813 = sst [smem:[#allocation57_spill]] %s3762_s2 }
  0x6a   :  { %8814 = sst [smem:[#allocation58_spill]] %s3764_s0 }
  0x6b   :  { %s3768_s22 = sld [smem:[#allocation9 + $0x28]] }
  0x6c   :  { %s3770_s15 = sld [smem:[#allocation9 + $0x29]] }
  0x6d   :  { %s3772_s28 = sld [smem:[#allocation9 + $0x2a]] }
  0x6e   :  { %s3774_s8 = sld [smem:[#allocation9 + $0x2b]] }
  0x6f   :  { %s3776_s16 = sld [smem:[#allocation9 + $0x2c]] }
  0x70   :  { %s3778_s30 = sld [smem:[#allocation9 + $0x2d]] }
  0x71   :  { %8815 = sst [smem:[#allocation59_spill]] %s3768_s22 }
  0x72   :  { %8816 = sst [smem:[#allocation60_spill]] %s3770_s15 }
  0x73   :  { %8817 = sst [smem:[#allocation61_spill]] %s3772_s28 }
  0x74   :  { %8818 = sst [smem:[#allocation62_spill]] %s3774_s8 }
  0x75   :  { %8819 = sst [smem:[#allocation63_spill]] %s3776_s16 }
  0x76   :  { %8820 = sst [smem:[#allocation64_spill]] %s3778_s30 }
  0x77   :  { %s3780_s23 = sld [smem:[#allocation9 + $0x2e]] }
  0x78   :  { %s3782_s17 = sld [smem:[#allocation9 + $0x2f]] }
  0x79   :  { %s3784_s1 = sld [smem:[#allocation9 + $0x30]] }
  0x7a   :  { %s3786_s14 = sld [smem:[#allocation9 + $0x31]] }
  0x7b   :  { %s3788_s27 = sld [smem:[#allocation9 + $0x32]] }
  0x7c   :  { %s3790_s22 = sld [smem:[#allocation9 + $0x33]] }
  0x7d   :  { %8821 = sst [smem:[#allocation65_spill]] %s3780_s23 }
  0x7e   :  { %s3792_s15 = sld [smem:[#allocation9 + $0x34]] }
  0x7f   :  { %8822 = sst [smem:[#allocation66_spill]] %s3784_s1 }
  0x80   :  { %8823 = sst [smem:[#allocation67_spill]] %s3786_s14 }
  0x81   :  { %8824 = sst [smem:[#allocation68_spill]] %s3788_s27 }
  0x82   :  { %8825 = sst [smem:[#allocation69_spill]] %s3790_s22 }
  0x83   :  { %s3794_s28 = sld [smem:[#allocation9 + $0x35]] }
  0x84   :  { %8826 = sst [smem:[#allocation70_spill]] %s3792_s15 }
  0x85   :  { %s3796_s8 = sld [smem:[#allocation9 + $0x36]] }
  0x86   :  { %s3798_s16 = sld [smem:[#allocation9 + $0x37]] }
  0x87   :  { %s3800_s30 = sld [smem:[#allocation9 + $0x38]] }
  0x88   :  { %s3802_s23 = sld [smem:[#allocation9 + $0x39]] }
  0x89   :  { %8827 = sst [smem:[#allocation71_spill]] %s3794_s28 }
  0x8a   :  { %s3804_s2 = sld [smem:[#allocation9 + $0x3a]] }
  0x8b   :  { %8828 = sst [smem:[#allocation72_spill]] %s3796_s8 }
  0x8c   :  { %8829 = sst [smem:[#allocation73_spill]] %s3798_s16 }
  0x8d   :  { %s3806_s11 = sld [smem:[#allocation9 + $0x3b]] }
  0x8e   :  { %8830 = sst [smem:[#allocation74_spill]] %s3802_s23 }
  0x8f   :  { %s3808_s14 = sld [smem:[#allocation9 + $0x3c]] }
  0x90   :  { %8831 = sst [smem:[#allocation75_spill]] %s3804_s2 }
  0x91   :  { %s3810_s27 = sld [smem:[#allocation9 + $0x3d]] }
  0x92   :  { %s3812_s22 = sld [smem:[#allocation9 + $0x3e]] }
  0x93   :  { %8832 = sst [smem:[#allocation76_spill]] %s3806_s11 }
  0x94   :  { %s3814_s15 = sld [smem:[#allocation9 + $0x3f]] }
  0x95   :  { %8833 = sst [smem:[#allocation77_spill]] %s3808_s14 }
  0x96   :  { %s3816_s28 = sld [smem:[#allocation9 + $0x40]] }
  0x97   :  { %8834 = sst [smem:[#allocation78_spill]] %s3810_s27 }
  0x98   :  { %8835 = sst [smem:[#allocation79_spill]] %s3812_s22 }
  0x99   :  { %s3818_s8 = sld [smem:[#allocation9 + $0x41]] }
  0x9a   :  { %8836 = sst [smem:[#allocation80_spill]] %s3814_s15 }
  0x9b   :  { %s3820_s16 = sld [smem:[#allocation9 + $0x42]] }
  0x9c   :  { %8837 = sst [smem:[#allocation81_spill]] %s3816_s28 }
  0x9d   :  { %s3822_s19 = sld [smem:[#allocation9 + $0x43]] }
  0x9e   :  { %s3824_s12 = sld [smem:[#allocation9 + $0x44]] }
  0x9f   :  { %8838 = sst [smem:[#allocation82_spill]] %s3818_s8 }
  0xa0   :  { %s3826_s2 = sld [smem:[#allocation9 + $0x45]] }
  0xa1   :  { %8839 = sst [smem:[#allocation83_spill]] %s3820_s16 }
  0xa2   :  { %s3828_s11 = sld [smem:[#allocation9 + $0x46]] }
  0xa3   :  { %8840 = sst [smem:[#allocation84_spill]] %s3822_s19 }
  0xa4   :  { %8841 = sst [smem:[#allocation85_spill]] %s3824_s12 }
  0xa5   :  { %s3830_s14 = sld [smem:[#allocation9 + $0x47]] }
  0xa6   :  { %8842 = sst [smem:[#allocation86_spill]] %s3826_s2 }
  0xa7   :  { %s3832_s27 = sld [smem:[#allocation10]] }
  0xa8   :  { %8843 = sst [smem:[#allocation87_spill]] %s3828_s11 }
  0xa9   :  { %s3834_s22 = sld [smem:[#allocation10 + $0x1]] }
  0xaa   :  { %s3836_s15 = sld [smem:[#allocation10 + $0x2]] }
  0xab   :  { %8844 = sst [smem:[#allocation88_spill]] %s3830_s14 }
  0xac   :  { %s3838_s28 = sld [smem:[#allocation10 + $0x3]] }
  0xad   :  { %8845 = sst [smem:[#allocation89_spill]] %s3832_s27 }
  0xae   :  { %s3840_s6 = sld [smem:[#allocation10 + $0x4]] }
  0xaf   :  { %8846 = sst [smem:[#allocation90_spill]] %s3834_s22 }
  0xb0   :  { %8847 = sst [smem:[#allocation91_spill]] %s3836_s15 }
  0xb1   :  { %s3842_s24 = sld [smem:[#allocation10 + $0x5]] }
  0xb2   :  { %8848 = sst [smem:[#allocation92_spill]] %s3838_s28 }
  0xb3   :  { %s3844_s19 = sld [smem:[#allocation10 + $0x6]] }
  0xb4   :  { %8849 = sst [smem:[#allocation93_spill]] %s3840_s6 }
  0xb5   :  { %s3846_s12 = sld [smem:[#allocation10 + $0x7]] }
  0xb6   :  { %s3848_s2 = sld [smem:[#allocation12]] }
  0xb7   :  { %8850 = sst [smem:[#allocation94_spill]] %s3842_s24 }
  0xb8   :  { %s3850_s11 = sld [smem:[#allocation12 + $0x1]] }
  0xb9   :  { %8851 = sst [smem:[#allocation95_spill]] %s3844_s19 }
  0xba   :  { %s3852_s14 = sld [smem:[#allocation12 + $0x2]] }
  0xbb   :  { %8852 = sst [smem:[#allocation96_spill]] %s3846_s12 }
  0xbc   :  { %8853 = sst [smem:[#allocation97_spill]] %s3848_s2 }
  0xbd   :  { %s3854_s27 = sld [smem:[#allocation12 + $0x3]] }
  0xbe   :  { %8854 = sst [smem:[#allocation98_spill]] %s3850_s11 }
  0xbf   :  { %s3856_s22 = sld [smem:[#allocation12 + $0x4]] }
  0xc0   :  { %8855 = sst [smem:[#allocation99_spill]] %s3852_s14 }
  0xc1   :  { %s3858_s15 = sld [smem:[#allocation12 + $0x5]] }
  0xc2   :  { %s3860_s28 = sld [smem:[#allocation12 + $0x6]] }
  0xc3   :  { %8856 = sst [smem:[#allocation100_spill]] %s3854_s27 }
  0xc4   :  { %s3862_s6 = sld [smem:[#allocation12 + $0x7]] }
  0xc5   :  { %8857 = sst [smem:[#allocation101_spill]] %s3856_s22 }
  0xc6   :  { %s3864_s24 = sld [smem:[#allocation12 + $0x8]] }
  0xc7   :  { %8858 = sst [smem:[#allocation102_spill]] %s3858_s15 }
  0xc8   :  { %8859 = sst [smem:[#allocation103_spill]] %s3860_s28 }
  0xc9   :  { %s3866_s19 = sld [smem:[#allocation12 + $0x9]] }
  0xca   :  { %8860 = sst [smem:[#allocation104_spill]] %s3862_s6 }
  0xcb   :  { %s3868_s12 = sld [smem:[#allocation12 + $0xa]] }
  0xcc   :  { %8861 = sst [smem:[#allocation105_spill]] %s3864_s24 }
  0xcd   :  { %s3870_s2 = sld [smem:[#allocation12 + $0xb]] }
  0xce   :  { %s3872_s11 = sld [smem:[#allocation12 + $0xc]] }
  0xcf   :  { %8862 = sst [smem:[#allocation106_spill]] %s3866_s19 }
  0xd0   :  { %s3874_s14 = sld [smem:[#allocation12 + $0xd]] }
  0xd1   :  { %8863 = sst [smem:[#allocation107_spill]] %s3868_s12 }
  0xd2   :  { %s3876_s27 = sld [smem:[#allocation12 + $0xe]] }
  0xd3   :  { %8864 = sst [smem:[#allocation108_spill]] %s3870_s2 }
  0xd4   :  { %8865 = sst [smem:[#allocation109_spill]] %s3872_s11 }
  0xd5   :  { %s3878_s22 = sld [smem:[#allocation12 + $0xf]] }
  0xd6   :  { %8866 = sst [smem:[#allocation110_spill]] %s3874_s14 }
  0xd7   :  { %s3880_s15 = sld [smem:[#allocation12 + $0x10]] }
  0xd8   :  { %8867 = sst [smem:[#allocation111_spill]] %s3876_s27 }
  0xd9   :  { %s3882_s28 = sld [smem:[#allocation12 + $0x11]] }
  0xda   :  { %s3884_s6 = sld [smem:[#allocation12 + $0x12]] }
  0xdb   :  { %8868 = sst [smem:[#allocation112_spill]] %s3878_s22 }
  0xdc   :  { %s3886_s24 = sld [smem:[#allocation12 + $0x13]] }
  0xdd   :  { %8869 = sst [smem:[#allocation113_spill]] %s3880_s15 }
  0xde   :  { %s3888_s19 = sld [smem:[#allocation12 + $0x14]] }
  0xdf   :  { %8870 = sst [smem:[#allocation114_spill]] %s3882_s28 }
  0xe0   :  { %8871 = sst [smem:[#allocation115_spill]] %s3884_s6 }
  0xe1   :  { %s3890_s12 = sld [smem:[#allocation12 + $0x15]] }
  0xe2   :  { %8872 = sst [smem:[#allocation116_spill]] %s3886_s24 }
  0xe3   :  { %s3892_s2 = sld [smem:[#allocation12 + $0x16]] }
  0xe4   :  { %8873 = sst [smem:[#allocation117_spill]] %s3888_s19 }
  0xe5   :  { %s3894_s11 = sld [smem:[#allocation12 + $0x17]] }
  0xe6   :  { %s3896_s14 = sld [smem:[#allocation12 + $0x18]] }
  0xe7   :  { %8874 = sst [smem:[#allocation118_spill]] %s3890_s12 }
  0xe8   :  { %s3898_s27 = sld [smem:[#allocation12 + $0x19]] }
  0xe9   :  { %8875 = sst [smem:[#allocation119_spill]] %s3892_s2 }
  0xea   :  { %s3900_s22 = sld [smem:[#allocation12 + $0x1a]] }
  0xeb   :  { %8876 = sst [smem:[#allocation120_spill]] %s3894_s11 }
  0xec   :  { %8877 = sst [smem:[#allocation121_spill]] %s3896_s14 }
  0xed   :  { %s3902_s15 = sld [smem:[#allocation12 + $0x1b]] }
  0xee   :  { %8878 = sst [smem:[#allocation122_spill]] %s3898_s27 }
  0xef   :  { %s3904_s28 = sld [smem:[#allocation12 + $0x1c]] }
  0xf0   :  { %8879 = sst [smem:[#allocation123_spill]] %s3900_s22 }
  0xf1   :  { %s3906_s6 = sld [smem:[#allocation12 + $0x1d]] }
  0xf2   :  { %s3908_s24 = sld [smem:[#allocation12 + $0x1e]] }
  0xf3   :  { %8880 = sst [smem:[#allocation124_spill]] %s3902_s15 }
  0xf4   :  { %s3910_s19 = sld [smem:[#allocation12 + $0x1f]] }
  0xf5   :  { %8881 = sst [smem:[#allocation125_spill]] %s3904_s28 }
  0xf6   :  { %s3912_s12 = sld [smem:[#allocation12 + $0x20]] }
  0xf7   :  { %8882 = sst [smem:[#allocation126_spill]] %s3906_s6 }
  0xf8   :  { %8883 = sst [smem:[#allocation127_spill]] %s3908_s24 }
  0xf9   :  { %s3914_s2 = sld [smem:[#allocation12 + $0x21]] }
  0xfa   :  { %8884 = sst [smem:[#allocation128_spill]] %s3910_s19 }
  0xfb   :  { %s3916_s11 = sld [smem:[#allocation12 + $0x22]] }
  0xfc   :  { %8885 = sst [smem:[#allocation129_spill]] %s3912_s12 }
  0xfd   :  { %s3918_s14 = sld [smem:[#allocation12 + $0x23]] }
  0xfe   :  { %s3920_s27 = sld [smem:[#allocation12 + $0x24]] }
  0xff   :  { %8886 = sst [smem:[#allocation130_spill]] %s3914_s2 }
 0x100   :  { %s3922_s22 = sld [smem:[#allocation12 + $0x25]] }
 0x101   :  { %8887 = sst [smem:[#allocation131_spill]] %s3916_s11 }
 0x102   :  { %s3924_s15 = sld [smem:[#allocation12 + $0x26]] }
 0x103   :  { %8888 = sst [smem:[#allocation132_spill]] %s3918_s14 }
 0x104   :  { %8889 = sst [smem:[#allocation133_spill]] %s3920_s27 }
 0x105   :  { %s3926_s28 = sld [smem:[#allocation12 + $0x27]] }
 0x106   :  { %8890 = sst [smem:[#allocation134_spill]] %s3922_s22 }
 0x107   :  { %s3928_s6 = sld [smem:[#allocation12 + $0x28]] }
 0x108   :  { %8891 = sst [smem:[#allocation135_spill]] %s3924_s15 }
 0x109   :  { %s3930_s24 = sld [smem:[#allocation12 + $0x29]] }
 0x10a   :  { %s3932_s19 = sld [smem:[#allocation12 + $0x2a]] }
 0x10b   :  { %8892 = sst [smem:[#allocation136_spill]] %s3926_s28 }
 0x10c   :  { %s3934_s12 = sld [smem:[#allocation12 + $0x2b]] }
 0x10d   :  { %8893 = sst [smem:[#allocation137_spill]] %s3928_s6 }
 0x10e   :  { %s3936_s2 = sld [smem:[#allocation12 + $0x2c]] }
 0x10f   :  { %8894 = sst [smem:[#allocation138_spill]] %s3930_s24 }
 0x110   :  { %8895 = sst [smem:[#allocation139_spill]] %s3932_s19 }
 0x111   :  { %s3938_s11 = sld [smem:[#allocation12 + $0x2d]] }
 0x112   :  { %8896 = sst [smem:[#allocation140_spill]] %s3934_s12 }
 0x113   :  { %s3940_s14 = sld [smem:[#allocation12 + $0x2e]] }
 0x114   :  { %8897 = sst [smem:[#allocation141_spill]] %s3936_s2 }
 0x115   :  { %s3942_s27 = sld [smem:[#allocation12 + $0x2f]] }
 0x116   :  { %s3944_s22 = sld [smem:[#allocation12 + $0x30]] }
 0x117   :  { %8898 = sst [smem:[#allocation142_spill]] %s3938_s11 }
 0x118   :  { %s3946_s15 = sld [smem:[#allocation12 + $0x31]] }
 0x119   :  { %8899 = sst [smem:[#allocation143_spill]] %s3940_s14 }
 0x11a   :  { %s3948_s28 = sld [smem:[#allocation12 + $0x32]] }
 0x11b   :  { %8900 = sst [smem:[#allocation144_spill]] %s3942_s27 }
 0x11c   :  { %8901 = sst [smem:[#allocation145_spill]] %s3944_s22 }
 0x11d   :  { %s3950_s6 = sld [smem:[#allocation12 + $0x33]] }
 0x11e   :  { %8902 = sst [smem:[#allocation146_spill]] %s3946_s15 }
 0x11f   :  { %s3952_s24 = sld [smem:[#allocation12 + $0x34]] }
 0x120   :  { %8903 = sst [smem:[#allocation147_spill]] %s3948_s28 }
 0x121   :  { %s3954_s19 = sld [smem:[#allocation12 + $0x35]] }
 0x122   :  { %s3956_s12 = sld [smem:[#allocation12 + $0x36]] }
 0x123   :  { %8904 = sst [smem:[#allocation148_spill]] %s3950_s6 }
 0x124   :  { %s3958_s2 = sld [smem:[#allocation12 + $0x37]] }
 0x125   :  { %8905 = sst [smem:[#allocation149_spill]] %s3952_s24 }
 0x126   :  { %s3960_s11 = sld [smem:[#allocation12 + $0x38]] }
 0x127   :  { %8906 = sst [smem:[#allocation150_spill]] %s3954_s19 }
 0x128   :  { %8907 = sst [smem:[#allocation151_spill]] %s3956_s12 }
 0x129   :  { %s3962_s14 = sld [smem:[#allocation12 + $0x39]] }
 0x12a   :  { %8908 = sst [smem:[#allocation152_spill]] %s3958_s2 }
 0x12b   :  { %s3964_s27 = sld [smem:[#allocation12 + $0x3a]] }
 0x12c   :  { %8909 = sst [smem:[#allocation153_spill]] %s3960_s11 }
 0x12d   :  { %s3966_s22 = sld [smem:[#allocation12 + $0x3b]] }
 0x12e   :  { %s3968_s15 = sld [smem:[#allocation12 + $0x3c]] }
 0x12f   :  { %8910 = sst [smem:[#allocation154_spill]] %s3962_s14 }
 0x130   :  { %s3970_s28 = sld [smem:[#allocation12 + $0x3d]] }
 0x131   :  { %8911 = sst [smem:[#allocation155_spill]] %s3964_s27 }
 0x132   :  { %s3972_s6 = sld [smem:[#allocation12 + $0x3e]] }
 0x133   :  { %8912 = sst [smem:[#allocation156_spill]] %s3966_s22 }
 0x134   :  { %8913 = sst [smem:[#allocation157_spill]] %s3968_s15 }
 0x135   :  { %s3974_s24 = sld [smem:[#allocation12 + $0x3f]] }
 0x136   :  { %8914 = sst [smem:[#allocation158_spill]] %s3970_s28 }
 0x137   :  { %s3976_s19 = sld [smem:[#allocation12 + $0x40]] }
 0x138   :  { %8915 = sst [smem:[#allocation159_spill]] %s3972_s6 }
 0x139   :  { %s3978_s12 = sld [smem:[#allocation12 + $0x41]] }
 0x13a   :  { %s3980_s2 = sld [smem:[#allocation12 + $0x42]] }
 0x13b   :  { %8916 = sst [smem:[#allocation160_spill]] %s3974_s24 }
 0x13c   :  { %s3982_s11 = sld [smem:[#allocation12 + $0x43]] }
 0x13d   :  { %8917 = sst [smem:[#allocation161_spill]] %s3976_s19 }
 0x13e   :  { %s3984_s14 = sld [smem:[#allocation12 + $0x44]] }
 0x13f   :  { %8918 = sst [smem:[#allocation162_spill]] %s3978_s12 }
 0x140   :  { %8919 = sst [smem:[#allocation163_spill]] %s3980_s2 }
 0x141   :  { %s3986_s27 = sld [smem:[#allocation12 + $0x45]] }
 0x142   :  { %8920 = sst [smem:[#allocation164_spill]] %s3982_s11 }
 0x143   :  { %s3988_s22 = sld [smem:[#allocation12 + $0x46]] }
 0x144   :  { %8921 = sst [smem:[#allocation165_spill]] %s3984_s14 }
 0x145   :  { %s3990_s15 = sld [smem:[#allocation12 + $0x47]] }
 0x146   :  { %s3992_s28 = sld [smem:[#allocation13]] }
 0x147   :  { %8922 = sst [smem:[#allocation166_spill]] %s3986_s27  ;;  %s4004_s27 = smov 0  }
 0x148   :  { %s3994_s6 = sld [smem:[#allocation13 + $0x1]] }
 0x149   :  { %8923 = sst [smem:[#allocation167_spill]] %s3988_s22 }
 0x14a   :  { %s3996_s19 = sld [smem:[#allocation13 + $0x2]] }
 0x14b   :  { %8924 = sst [smem:[#allocation168_spill]] %s3990_s15 }
 0x14c   :  { %s3998_s2 = sld [smem:[#allocation13 + $0x3]] }
 0x14d LB: > { %v8926_v1 = vld [vmem:[#allocation24_spill] sm:$0xff]  ;;  %s4010_s22 = sshll.u32 %s3596_s27, 4  ;;  %s8169_s12 = smov 1   ;;  %v4072_v20 = vstv %s3681_s26  ;;  %v4084_v24 = vstv %s3766_s29  ;;  %v4102_v30 = vstv %s3728_s20  ;;  %v4111_v33 = vstv %s3782_s17  ;;  %s3596_s27 = sphi %s4004_s27, %s286_s27  }
 0x14e   : > { %s4013_s15 = scalar_lea.vmem [#allocation3], %s4010_s22  ;;  %vm296_vm4 = vcmp.lt.s32.totalorder %v8926_v1, 1  ;;  %s8167_s24 = smov 127   ;;  %vm551_vm5 = vcmp.lt.s32.totalorder %v8926_v1, 7  ;;  %8941 = vst [vmem:[#allocation171_spill] sm:$0xff] %v4072_v20  ;;  %v4114_v34 = vstv %s3800_s30  ;;  %v4123_v37 = vstv %s3706_s9 }
 0x14f   : > { %v4016_v7 = vld [vmem:[%s4013_s15] sm:$0xff]  ;;  %v4019_v8 = vld [vmem:[%s4013_s15 + $0x8] sm:$0xff]  ;;  %s8927_s13 = sld [smem:[#allocation35_spill]]  ;;  %8946 = vst [vmem:[#allocation175_spill] sm:$0xff] %v4084_v24  ;;  %v4126_v38 = vstv %s3724_s18  ;;  %v4129_v39 = vstv %s3742_s10  ;;  %s286_s27 = sadd.s32 1, %s3596_s27  }
 0x150   : > { %v294_v9 = vrot.slane %v4016_v7, 7  ;;  %v295_v10 = vrot.slane %v4019_v8, 7  ;;  %417 = vrot.lane.b32.xlu2 %v4016_v7, %s8169_s12  ;;  %s8928_s21 = sld [smem:[#allocation42_spill]]  ;;  %v549_v14 = vrot.slane %v4016_v7, 1  ;;  %v550_v15 = vrot.slane %v4019_v8, 1  ;;  %8957 = vst [vmem:[#allocation181_spill] sm:$0xff] %v4102_v30 }
 0x151   : > { %s8929_s5 = sld [smem:[#allocation50_spill]]  ;;  %8963 = vst [vmem:[#allocation184_spill] sm:$0xff] %v4111_v33  ;;  %p283_p0 = scmp.ge.s32.totalorder %s286_s27, 2  }
 0x152   : > { %v4028_v11 = vsel %vm296_vm4, %v294_v9, %v295_v10  ;;  %v298_v12 = vsel %vm296_vm4, %v295_v10, %v294_v9  ;;  %s8930_s1 = sld [smem:[#allocation66_spill]]  ;;  %v4051_v16 = vsel %vm551_vm5, %v549_v14, %v550_v15  ;;  %v553_v17 = vsel %vm551_vm5, %v550_v15, %v549_v14  ;;  %8965 = vst [vmem:[#allocation185_spill] sm:$0xff] %v4114_v34 }
 0x153   : > { %373 = vrot.lane.b32.xlu1 %v4028_v11, %s8167_s24  ;;  %303 = vrot.lane.b32.xlu0 %v4028_v11, %s8169_s12  ;;  %v4038_v13 = vsel %vm116_vm0, %v298_v12, 0.0  ;;  %8931 = vst [vmem:[#allocation169_spill] sm:$0xff] %v4051_v16  ;;  %s8932_s23 = sld [smem:[#allocation74_spill]]  ;;  %v4063_v18 = vsel %vm115_vm1, %v553_v17, 0.0 }
 0x154   : > { %s8933_s16 = sld [smem:[#allocation83_spill]]  ;;  %8937 = vst [vmem:[#allocation170_spill] sm:$0xff] %v4063_v18 }
 0x155   : > { %s8934_s25 = sld [smem:[#allocation25_spill]]  ;;  %v4075_v21 = vstv %s8927_s13  ;;  %8971 = vst [vmem:[#allocation188_spill] sm:$0xff] %v4123_v37 }
 0x156   : > { %s8935_s3 = sld [smem:[#allocation34_spill]]  ;;  %8943 = vst [vmem:[#allocation172_spill] sm:$0xff] %v4075_v21  ;;  %v4078_v22 = vstv %s8928_s21 }
 0x157   : > { %s8938_s7 = sld [smem:[#allocation49_spill]]  ;;  %8944 = vst [vmem:[#allocation173_spill] sm:$0xff] %v4078_v22  ;;  %v4081_v23 = vstv %s8929_s5 }
 0x158   : > { %419 = vrot.lane.b32.xlu2 %v4019_v8, %s8169_s12  ;;  %s8939_s0 = sld [smem:[#allocation58_spill]]  ;;  %8945 = vst [vmem:[#allocation174_spill] sm:$0xff] %v4081_v23  ;;  %v4087_v25 = vstv %s8930_s1 }
 0x159   : > { %s8940_s8 = sld [smem:[#allocation82_spill]]  ;;  %8948 = vst [vmem:[#allocation176_spill] sm:$0xff] %v4087_v25  ;;  %v4090_v26 = vstv %s8932_s23 }
 0x15a   : > { %s8942_s4 = sld [smem:[#allocation22_spill]]  ;;  %8950 = vst [vmem:[#allocation177_spill] sm:$0xff] %v4090_v26  ;;  %v4093_v27 = vstv %s8933_s16 }
 0x15b   : > { %371 = vrot.lane.b32.xlu1 %v4038_v13, %s8167_s24  ;;  %301 = vrot.lane.b32.xlu0 %v4038_v13, %s8169_s12  ;;  %s8947_s14 = sld [smem:[#allocation56_spill]]  ;;  %8952 = vst [vmem:[#allocation178_spill] sm:$0xff] %v4093_v27  ;;  %v4096_v28 = vstv %s8934_s25 }
 0x15c   : > { %s8949_s11 = sld [smem:[#allocation23_spill]]  ;;  %8954 = vst [vmem:[#allocation179_spill] sm:$0xff] %v4096_v28  ;;  %v4099_v29 = vstv %s8935_s3 }
 0x15d   : > { %s8955_s13 = sld [smem:[#allocation48_spill]]  ;;  %8956 = vst [vmem:[#allocation180_spill] sm:$0xff] %v4099_v29  ;;  %v4105_v31 = vstv %s8938_s7 }
 0x15e   : > { %s8958_s5 = sld [smem:[#allocation57_spill]]  ;;  %8959 = vst [vmem:[#allocation182_spill] sm:$0xff] %v4105_v31  ;;  %v4108_v32 = vstv %s8939_s0 }
 0x15f   : > { %s8960_s21 = sld [smem:[#allocation65_spill]]  ;;  %8961 = vst [vmem:[#allocation183_spill] sm:$0xff] %v4108_v32  ;;  %v4117_v35 = vstv %s8940_s8 }
 0x160   : > { %556 = vrot.lane.b32.xlu2 %v4051_v16, %s8169_s12  ;;  %s8962_s1 = sld [smem:[#allocation73_spill]]  ;;  %8967 = vst [vmem:[#allocation186_spill] sm:$0xff] %v4117_v35  ;;  %v4120_v36 = vstv %s8942_s4 }
 0x161   : > { %s8964_s23 = sld [smem:[#allocation64_spill]]  ;;  %8969 = vst [vmem:[#allocation187_spill] sm:$0xff] %v4120_v36  ;;  %v4132_v40 = vstv %s8947_s14 }
 0x162   : > { %s8966_s16 = sld [smem:[#allocation72_spill]]  ;;  %8972 = vst [vmem:[#allocation189_spill] sm:$0xff] %v4126_v38  ;;  %v4135_v41 = vstv %s8949_s11 }
 0x163   : > { %505 = vrot.lane.b32.xlu1 %v4019_v8, %s8167_s24  ;;  %503 = vrot.lane.b32.xlu0 %v4016_v7, %s8167_s24  ;;  %s8968_s25 = sld [smem:[#allocation80_spill]]  ;;  %8973 = vst [vmem:[#allocation190_spill] sm:$0xff] %v4129_v39  ;;  %v4144_v44 = vstv %s8955_s13  ;;  %v4171_v53 = vmul.f32 %v4135_v41, %v4028_v11  ;;  %v4229_v15 = vmul.f32 %v4135_v41, %v4038_v13 }
 0x164   : > { %s8970_s3 = sld [smem:[#allocation81_spill]]  ;;  %8974 = vst [vmem:[#allocation191_spill] sm:$0xff] %v4132_v40  ;;  %v4149_v46 = vstv %s8958_s5  ;;  %v4183_v56 = vmul.f32 %v4144_v44, %v4028_v11 }
 0x165   : > { %8975 = vst [vmem:[#allocation192_spill] sm:$0xff] %v4135_v41  ;;  %v4152_v47 = vstv %s8960_s21  ;;  %v4190_v59 = vmul.f32 %v4149_v46, %v4028_v11  ;;  %s8993_s5 = sld [smem:[#allocation27_spill]] }
 0x166   : > { %8978 = vst [vmem:[#allocation195_spill] sm:$0xff] %v4144_v44  ;;  %v4155_v48 = vstv %s8962_s1  ;;  %v4194_v60 = vmul.f32 %v4152_v47, %v4028_v11  ;;  %s8995_s11 = sld [smem:[#allocation36_spill]] }
 0x167   : > { %8979 = vst [vmem:[#allocation196_spill] sm:$0xff] %v4149_v46  ;;  %v4158_v49 = vstv %s8964_s23  ;;  %v4198_v61 = vmul.f32 %v4155_v48, %v4028_v11  ;;  %s8999_s13 = sld [smem:[#allocation67_spill]] }
 0x168   : > { %644 = vrot.lane.b32.xlu2 %v4063_v18, %s8167_s24  ;;  %8980 = vst [vmem:[#allocation197_spill] sm:$0xff] %v4152_v47  ;;  %v4161_v50 = vstv %s8966_s16  ;;  %s9001_s14 = sld [smem:[#allocation75_spill]] }
 0x169   : > { %8981 = vst [vmem:[#allocation198_spill] sm:$0xff] %v4155_v48  ;;  %v4164_v51 = vstv %s8968_s25  ;;  %s8996_s25 = sld [smem:[#allocation43_spill]] }
 0x16a   : > { %8982 = vst [vmem:[#allocation199_spill] sm:$0xff] %v4158_v49  ;;  %v4167_v52 = vstv %s8970_s3  ;;  %s8998_s3 = sld [smem:[#allocation59_spill]] }
 0x16b   : > { %642 = vrot.lane.b32.xlu1 %v4051_v16, %s8167_s24  ;;  %558 = vrot.lane.b32.xlu0 %v4063_v18, %s8169_s12  ;;  %s8951_s24 = sld [smem:[#allocation33_spill]]  ;;  %8983 = vst [vmem:[#allocation200_spill] sm:$0xff] %v4161_v50  ;;  %v4225_v14 = vmul.f32 %v4167_v52, %v4028_v11  ;;  %v4271_v3 = vstv %s8993_s5 }
 0x16c   : > { %s8953_s12 = sld [smem:[#allocation41_spill]]  ;;  %8984 = vst [vmem:[#allocation201_spill] sm:$0xff] %v4164_v51 }
 0x16d   : > { %8985 = vst [vmem:[#allocation202_spill] sm:$0xff] %v4167_v52  ;;  %s9006_s16 = sld [smem:[#allocation84_spill]] }
 0x16e   : > { %9007 = vst [vmem:[#allocation216_spill] sm:$0xff] %v4271_v3  ;;  %s9012_s21 = sld [smem:[#allocation28_spill]] }
 0x16f   : > { %v4277_v1 = vstv %s8996_s25  ;;  %s9014_s1 = sld [smem:[#allocation37_spill]] }
 0x170   : > { %9009 = vst [vmem:[#allocation218_spill] sm:$0xff] %v4277_v1  ;;  %v4283_v18 = vstv %s8998_s3  ;;  %s9016_s23 = sld [smem:[#allocation44_spill]] }
 0x171   : > { %v4138_v42 = vstv %s8951_s24  ;;  %9011 = vst [vmem:[#allocation220_spill] sm:$0xff] %v4283_v18  ;;  %s9018_s24 = sld [smem:[#allocation52_spill]] }
 0x172   : > { %8976 = vst [vmem:[#allocation193_spill] sm:$0xff] %v4138_v42  ;;  %v4141_v43 = vstv %s8953_s12  ;;  %v4175_v54 = vmul.f32 %v4138_v42, %v4028_v11  ;;  %s8997_s12 = sld [smem:[#allocation51_spill]]  ;;  %v4233_v17 = vmul.f32 %v4138_v42, %v4038_v13  ;;  %v4253_v42 = vmul.f32 %v4155_v48, %v4038_v13 }
 0x173   : > { %8977 = vst [vmem:[#allocation194_spill] sm:$0xff] %v4141_v43  ;;  %v4179_v55 = vmul.f32 %v4141_v43, %v4028_v11  ;;  %v4241_v11 = vmul.f32 %v4144_v44, %v4038_v13  ;;  %v4274_v48 = vstv %s8995_s11  ;;  %s9020_s5 = sld [smem:[#allocation60_spill]] }
 0x174   : > { %9005 = vst [vmem:[#allocation215_spill] sm:$0xff] %v4253_v42  ;;  %s9022_s11 = sld [smem:[#allocation68_spill]] }
 0x175   : > { %9002 = vst [vmem:[#allocation212_spill] sm:$0xff] %v4241_v11  ;;  %s9024_s25 = sld [smem:[#allocation76_spill]] }
 0x176   : > { %9008 = vst [vmem:[#allocation217_spill] sm:$0xff] %v4274_v48  ;;  %s9048_s3 = sld [smem:[#allocation30_spill]] }
 0x177   : > { %s9124_s0 = sld [smem:[#allocation71_spill]] }
 0x178   : > { %s9130_s4 = sld [smem:[#allocation90_spill]] }
 0x179   : > { %s9132_s7 = sld [smem:[#allocation91_spill]] }
 0x17a   : > { %s9134_s8 = sld [smem:[#allocation92_spill]] }
 0x1aa   : > { %v418_v19 = vpop.permute.xlu2 %417 }
 0x1ab   : > { %v421_v45 = vsel %vm3696_vm3, %v418_v19, 0.0  ;;  %v4237_v19 = vmul.f32 %v4141_v43, %v4038_v13 }
 0x1ac   : > { %v4186_v58 = vmul.f32 %v4072_v20, %v421_v45  ;;  %v4201_v62 = vmul.f32 %v4075_v21, %v421_v45  ;;  %v4204_v63 = vmul.f32 %v4078_v22, %v421_v45  ;;  %v4207_v0 = vmul.f32 %v4081_v23, %v421_v45 }
 0x1ad   : > { %v4210_v2 = vmul.f32 %v4084_v24, %v421_v45  ;;  %v4213_v4 = vmul.f32 %v4087_v25, %v421_v45  ;;  %v4216_v9 = vmul.f32 %v4090_v26, %v421_v45  ;;  %v4219_v10 = vmul.f32 %v4093_v27, %v421_v45  ;;  %9000 = vst [vmem:[#allocation211_spill] sm:$0xff] %v4237_v19 }
 0x1ae   : > { %8986 = vst [vmem:[#allocation203_spill] sm:$0xff] %v4186_v58  ;;  %v4245_v45 = vmul.f32 %v4149_v46, %v4038_v13  ;;  %v4349_v58 = vstv %s9018_s24  ;;  %s9098_s24 = sld [smem:[#allocation86_spill]] }
 0x1af   : > { %8987 = vst [vmem:[#allocation204_spill] sm:$0xff] %v4201_v62  ;;  %v4346_v62 = vstv %s9016_s23  ;;  %s9097_s23 = sld [smem:[#allocation77_spill]] }
 0x1b0   : > { %8988 = vst [vmem:[#allocation205_spill] sm:$0xff] %v4204_v63  ;;  %v4343_v63 = vstv %s9014_s1  ;;  %s9096_s1 = sld [smem:[#allocation69_spill]] }
 0x1b1   : > { %8989 = vst [vmem:[#allocation206_spill] sm:$0xff] %v4207_v0  ;;  %v4340_v0 = vstv %s9012_s21  ;;  %s9095_s21 = sld [smem:[#allocation61_spill]] }
 0x1b2   : > { %v420_v57 = vpop.permute.xlu2 %419  ;;  %8990 = vst [vmem:[#allocation207_spill] sm:$0xff] %v4210_v2 }
 0x1b3   : > { %8991 = vst [vmem:[#allocation208_spill] sm:$0xff] %v4213_v4  ;;  %v422_v12 = vsel %vm3696_vm3, %v420_v57, 0.0  ;;  %v4249_v57 = vmul.f32 %v4152_v47, %v4038_v13 }
 0x1b4   : > { %8992 = vst [vmem:[#allocation209_spill] sm:$0xff] %v4216_v9  ;;  %v4256_v43 = vmul.f32 %v4072_v20, %v422_v12  ;;  %v4259_v41 = vmul.f32 %v4075_v21, %v422_v12  ;;  %v4262_v44 = vmul.f32 %v4078_v22, %v422_v12  ;;  %v4265_v46 = vmul.f32 %v4081_v23, %v422_v12 }
 0x1b5   : > { %8994 = vst [vmem:[#allocation210_spill] sm:$0xff] %v4219_v10  ;;  %v4268_v47 = vmul.f32 %v4084_v24, %v422_v12  ;;  %v4280_v20 = vstv %s8997_s12  ;;  %v4286_v21 = vstv %s8999_s13  ;;  %v4289_v22 = vstv %s9001_s14  ;;  %s9028_s12 = sld [smem:[#allocation85_spill]] }
 0x1b6   : > { %9003 = vst [vmem:[#allocation213_spill] sm:$0xff] %v4245_v45  ;;  %v4292_v24 = vmul.f32 %v4087_v25, %v422_v12  ;;  %v4295_v23 = vmul.f32 %v4090_v26, %v422_v12  ;;  %v4298_v16 = vmul.f32 %v4093_v27, %v422_v12  ;;  %v4301_v10 = vstv %s9006_s16  ;;  %s9049_s13 = sld [smem:[#allocation38_spill]] }
 0x1b7   : > { %9004 = vst [vmem:[#allocation214_spill] sm:$0xff] %v4249_v57  ;;  %v4305_v9 = vmul.f32 %v4167_v52, %v4038_v13  ;;  %v4309_v25 = vmul.f32 %v4271_v3, %v4019_v8  ;;  %v4313_v26 = vmul.f32 %v4274_v48, %v4019_v8  ;;  %v4317_v12 = vmul.f32 %v4277_v1, %v4019_v8  ;;  %s9093_s14 = sld [smem:[#allocation45_spill]] }
 0x1b8   : > { %9010 = vst [vmem:[#allocation219_spill] sm:$0xff] %v4280_v20  ;;  %v4321_v27 = vmul.f32 %v4280_v20, %v4019_v8  ;;  %v4325_v13 = vmul.f32 %v4283_v18, %v4019_v8  ;;  %v4329_v52 = vmul.f32 %v4286_v21, %v4019_v8  ;;  %v4333_v4 = vmul.f32 %v4289_v22, %v4019_v8  ;;  %s9094_s16 = sld [smem:[#allocation53_spill]] }
 0x1b9   : > { %9013 = vst [vmem:[#allocation221_spill] sm:$0xff] %v4286_v21  ;;  %v4337_v2 = vmul.f32 %v4301_v10, %v4019_v8  ;;  %v4365_v8 = vmul.f32 %v4271_v3, %v4016_v7  ;;  %v4385_v3 = vmul.f32 %v4283_v18, %v4016_v7 }
 0x1ba   : > { %9015 = vst [vmem:[#allocation222_spill] sm:$0xff] %v4289_v22 }
 0x1bb   : > { %9017 = vst [vmem:[#allocation223_spill] sm:$0xff] %v4292_v24 }
 0x1bc   : > { %9019 = vst [vmem:[#allocation224_spill] sm:$0xff] %v4295_v23 }
 0x1bd   : > { %9021 = vst [vmem:[#allocation225_spill] sm:$0xff] %v4298_v16 }
 0x1be   : > { %9023 = vst [vmem:[#allocation226_spill] sm:$0xff] %v4301_v10 }
 0x1bf   : > { %9025 = vst [vmem:[#allocation227_spill] sm:$0xff] %v4305_v9 }
 0x1c0   : > { %9026 = vst [vmem:[#allocation228_spill] sm:$0xff] %v4309_v25 }
 0x1c1   : > { %9027 = vst [vmem:[#allocation229_spill] sm:$0xff] %v4313_v26  ;;  %v4361_v26 = vstv %s9028_s12  ;;  %s9109_s12 = sld [smem:[#allocation54_spill]] }
 0x1c2   : > { %9029 = vst [vmem:[#allocation230_spill] sm:$0xff] %v4317_v12 }
 0x1c3   : > { %9030 = vst [vmem:[#allocation231_spill] sm:$0xff] %v4321_v27  ;;  %v4355_v27 = vstv %s9022_s11  ;;  %s9107_s11 = sld [smem:[#allocation39_spill]] }
 0x1c4   : > { %9031 = vst [vmem:[#allocation232_spill] sm:$0xff] %v4325_v13  ;;  %v4352_v13 = vstv %s9020_s5  ;;  %s9104_s5 = sld [smem:[#allocation31_spill]] }
 0x1c5   : > { %9032 = vst [vmem:[#allocation233_spill] sm:$0xff] %v4329_v52  ;;  %v4358_v52 = vstv %s9024_s25  ;;  %v374_v12 = vpop.permute.xlu1 %373  ;;  %s9108_s25 = sld [smem:[#allocation46_spill]] }
 0x1c6   : > { %9033 = vst [vmem:[#allocation234_spill] sm:$0xff] %v4333_v4  ;;  %v304_v4 = vpop.permute.xlu0 %303 }
 0x1c7   : > { %9034 = vst [vmem:[#allocation235_spill] sm:$0xff] %v4337_v2  ;;  %v4369_v2 = vmul.f32 %v4274_v48, %v4016_v7 }
 0x1c8   : > { %9035 = vst [vmem:[#allocation236_spill] sm:$0xff] %v4340_v0 }
 0x1c9   : > { %9036 = vst [vmem:[#allocation237_spill] sm:$0xff] %v4343_v63 }
 0x1ca   : > { %9037 = vst [vmem:[#allocation238_spill] sm:$0xff] %v4346_v62 }
 0x1cb   : > { %9038 = vst [vmem:[#allocation239_spill] sm:$0xff] %v4349_v58  ;;  %v4373_v58 = vmul.f32 %v4277_v1, %v4016_v7 }
 0x1cc   : > { %9039 = vst [vmem:[#allocation240_spill] sm:$0xff] %v4352_v13 }
 0x1cd   : > { %9040 = vst [vmem:[#allocation241_spill] sm:$0xff] %v4355_v27  ;;  %v376_v27 = vsel %vm3692_vm2, %v374_v12, 0.0 }
 0x1ce   : > { %9041 = vst [vmem:[#allocation242_spill] sm:$0xff] %v4358_v52  ;;  %v306_v52 = vsel %vm3696_vm3, %v304_v4, 0.0  ;;  %v379_v48 = vmul.f32 %v4096_v28, %v376_v27  ;;  %v389_v1 = vmul.f32 %v4102_v30, %v376_v27  ;;  %v399_v12 = vmul.f32 %v4108_v32, %v376_v27 }
 0x1cf   : > { %9042 = vst [vmem:[#allocation243_spill] sm:$0xff] %v4361_v26  ;;  %v4381_v26 = vmul.f32 %v4280_v20, %v4016_v7  ;;  %v404_v4 = vmul.f32 %v4111_v33, %v376_v27  ;;  %v414_v20 = vmul.f32 %v4117_v35, %v376_v27  ;;  %v312_v18 = vmul.f32 %v4123_v37, %v306_v52 }
 0x1d0   : > { %9043 = vst [vmem:[#allocation244_spill] sm:$0xff] %v4365_v8  ;;  %v409_v8 = vmul.f32 %v4114_v34, %v376_v27  ;;  %v318_v13 = vmul.f32 %v4129_v39, %v306_v52  ;;  %v321_v62 = vmul.f32 %v4132_v40, %v306_v52  ;;  %v324_v63 = vmul.f32 %v4158_v49, %v306_v52 }
 0x1d1   : > { %9044 = vst [vmem:[#allocation245_spill] sm:$0xff] %v4369_v2  ;;  %v384_v2 = vmul.f32 %v4099_v29, %v376_v27  ;;  %v327_v0 = vmul.f32 %v4161_v50, %v306_v52  ;;  %v330_v25 = vmul.f32 %v4164_v51, %v306_v52 }
 0x1d2   : > { %9045 = vst [vmem:[#allocation246_spill] sm:$0xff] %v4373_v58  ;;  %v394_v58 = vmul.f32 %v4105_v31, %v376_v27  ;;  %v340_v27 = vadd.f32 %v4175_v54, %v312_v18  ;;  %v350_v24 = vadd.f32 %v4183_v56, %v318_v13  ;;  %v355_v9 = vadd.f32 %v4190_v59, %v321_v62  ;;  %v372_v18 = vpop.permute.xlu1 %371  ;;  %v302_v54 = vpop.permute.xlu0 %301 }
 0x1d3   : > { %9046 = vst [vmem:[#allocation247_spill] sm:$0xff] %v4381_v26  ;;  %v309_v26 = vmul.f32 %v4120_v36, %v306_v52  ;;  %v360_v42 = vadd.f32 %v4194_v60, %v324_v63  ;;  %v365_v57 = vadd.f32 %v4198_v61, %v327_v0  ;;  %v370_v45 = vadd.f32 %v4225_v14, %v330_v25 }
 0x1d4   : > { %9047 = vst [vmem:[#allocation248_spill] sm:$0xff] %v4385_v3  ;;  %v315_v3 = vmul.f32 %v4126_v38, %v306_v52  ;;  %v386_v52 = vadd.f32 %v384_v2, %v340_v27  ;;  %v4421_v56 = vmul.f32 %v4301_v10, %v4016_v7  ;;  %v9053_v27 = vld [vmem:[#allocation212_spill] sm:$0xff] }
 0x1d5   : > { %v335_v16 = vadd.f32 %v4171_v53, %v309_v26  ;;  %v396_v26 = vadd.f32 %v394_v58, %v350_v24  ;;  %v401_v53 = vadd.f32 %v399_v12, %v355_v9  ;;  %v406_v25 = vadd.f32 %v404_v4, %v360_v42  ;;  %v9052_v12 = vld [vmem:[#allocation211_spill] sm:$0xff] }
 0x1d6   : > { %v345_v23 = vadd.f32 %v4179_v55, %v315_v3  ;;  %v4413_v3 = vmul.f32 %v4286_v21, %v4016_v7  ;;  %v4417_v55 = vmul.f32 %v4289_v22, %v4016_v7  ;;  %v432_v58 = vadd.f32 %v4259_v41, %v386_v52 }
 0x1d7   : > { %v381_v11 = vadd.f32 %v379_v48, %v335_v16  ;;  %v411_v16 = vadd.f32 %v409_v8, %v365_v57  ;;  %v4424_v48 = vstv %s9048_s3  ;;  %v442_v60 = vadd.f32 %v4265_v46, %v396_v26  ;;  %v9054_v26 = vld [vmem:[#allocation213_spill] sm:$0xff]  ;;  %s9110_s3 = sld [smem:[#allocation62_spill]] }
 0x1d8   : > { %v391_v19 = vadd.f32 %v389_v1, %v345_v23  ;;  %9050 = vst [vmem:[#allocation249_spill] sm:$0xff] %v4424_v48  ;;  %v4427_v1 = vstv %s9049_s13  ;;  %v416_v23 = vadd.f32 %v414_v20, %v370_v45  ;;  %v447_v61 = vadd.f32 %v4268_v47, %v401_v53  ;;  %s9111_s13 = sld [smem:[#allocation70_spill]] }
 0x1d9   : > { %9051 = vst [vmem:[#allocation250_spill] sm:$0xff] %v4427_v1  ;;  %v427_v24 = vadd.f32 %v4256_v43, %v381_v11  ;;  %v375_v7 = vsel %vm3692_vm2, %v372_v18, 0.0  ;;  %v305_v42 = vsel %vm3696_vm3, %v302_v54, 0.0  ;;  %v9055_v18 = vld [vmem:[#allocation214_spill] sm:$0xff] }
 0x1da   : > { %v437_v59 = vadd.f32 %v4262_v44, %v391_v19  ;;  %v378_v62 = vmul.f32 %v4096_v28, %v375_v7  ;;  %v383_v20 = vmul.f32 %v4099_v29, %v375_v7  ;;  %v388_v43 = vmul.f32 %v4102_v30, %v375_v7 }
 0x1db   : > { %v393_v41 = vmul.f32 %v4105_v31, %v375_v7  ;;  %v398_v44 = vmul.f32 %v4108_v32, %v375_v7  ;;  %v403_v46 = vmul.f32 %v4111_v33, %v375_v7  ;;  %v408_v47 = vmul.f32 %v4114_v34, %v375_v7  ;;  %v9089_v34 = vld [vmem:[#allocation245_spill] sm:$0xff]  ;;  %v9090_v33 = vld [vmem:[#allocation246_spill] sm:$0xff] }
 0x1dc   : > { %v413_v63 = vmul.f32 %v4117_v35, %v375_v7  ;;  %v308_v0 = vmul.f32 %v4120_v36, %v305_v42  ;;  %v311_v2 = vmul.f32 %v4123_v37, %v305_v42  ;;  %v314_v9 = vmul.f32 %v4126_v38, %v305_v42  ;;  %v9056_v7 = vld [vmem:[#allocation215_spill] sm:$0xff]  ;;  %v9059_v37 = vld [vmem:[#allocation224_spill] sm:$0xff] }
 0x1dd   : > { %v317_v14 = vmul.f32 %v4129_v39, %v305_v42  ;;  %v320_v19 = vmul.f32 %v4132_v40, %v305_v42  ;;  %v323_v11 = vmul.f32 %v4158_v49, %v305_v42  ;;  %v326_v45 = vmul.f32 %v4161_v50, %v305_v42  ;;  %v9057_v39 = vld [vmem:[#allocation227_spill] sm:$0xff]  ;;  %v9085_v36 = vld [vmem:[#allocation208_spill] sm:$0xff] }
 0x1de   : > { %v329_v57 = vmul.f32 %v4164_v51, %v305_v42  ;;  %v334_v13 = vadd.f32 %v4229_v15, %v308_v0  ;;  %v339_v8 = vadd.f32 %v4233_v17, %v311_v2  ;;  %v344_v4 = vadd.f32 %v9052_v12, %v314_v9  ;;  %v9058_v38 = vld [vmem:[#allocation223_spill] sm:$0xff]  ;;  %v9060_v51 = vld [vmem:[#allocation225_spill] sm:$0xff]  ;;  %v506_v0 = vpop.permute.xlu1 %505  ;;  %v9061_v17 = vld [vmem:[#allocation228_spill] sm:$0xff] }
 0x1df   : > { %v349_v52 = vadd.f32 %v9053_v27, %v317_v14  ;;  %v354_v53 = vadd.f32 %v9054_v26, %v320_v19  ;;  %v359_v54 = vadd.f32 %v9055_v18, %v323_v11  ;;  %v364_v40 = vadd.f32 %v9056_v7, %v326_v45  ;;  %v9062_v27 = vld [vmem:[#allocation229_spill] sm:$0xff] }
 0x1e0   : > { %v369_v49 = vadd.f32 %v9057_v39, %v329_v57  ;;  %v452_v50 = vadd.f32 %v9058_v38, %v406_v25  ;;  %v457_v42 = vadd.f32 %v9059_v37, %v411_v16  ;;  %v462_v15 = vadd.f32 %v9060_v51, %v416_v23  ;;  %v9063_v39 = vld [vmem:[#allocation230_spill] sm:$0xff]  ;;  %v9064_v38 = vld [vmem:[#allocation231_spill] sm:$0xff]  ;;  %v9065_v51 = vld [vmem:[#allocation232_spill] sm:$0xff] }
 0x1e1   : > { %v467_v2 = vadd.f32 %v9061_v17, %v427_v24  ;;  %v380_v9 = vadd.f32 %v378_v62, %v334_v13  ;;  %v385_v12 = vadd.f32 %v383_v20, %v339_v8  ;;  %v390_v14 = vadd.f32 %v388_v43, %v344_v4  ;;  %v9066_v23 = vld [vmem:[#allocation236_spill] sm:$0xff]  ;;  %v9067_v62 = vld [vmem:[#allocation237_spill] sm:$0xff] }
 0x1e2   : > { %v472_v19 = vadd.f32 %v9062_v27, %v432_v58  ;;  %v395_v26 = vadd.f32 %v393_v41, %v349_v52  ;;  %v400_v11 = vadd.f32 %v398_v44, %v354_v53  ;;  %v405_v18 = vadd.f32 %v403_v46, %v359_v54  ;;  %v9068_v58 = vld [vmem:[#allocation238_spill] sm:$0xff]  ;;  %v9069_v41 = vld [vmem:[#allocation233_spill] sm:$0xff]  ;;  %v9072_v46 = vld [vmem:[#allocation203_spill] sm:$0xff] }
 0x1e3   : > { %v410_v45 = vadd.f32 %v408_v47, %v364_v40  ;;  %v415_v7 = vadd.f32 %v413_v63, %v369_v49  ;;  %v477_v57 = vadd.f32 %v9063_v39, %v437_v59  ;;  %v482_v25 = vadd.f32 %v9064_v38, %v442_v60  ;;  %v9070_v40 = vld [vmem:[#allocation234_spill] sm:$0xff]  ;;  %v9071_v59 = vld [vmem:[#allocation235_spill] sm:$0xff]  ;;  %v9074_v13 = vld [vmem:[#allocation240_spill] sm:$0xff] }
 0x1e4   : > { %v508_v37 = vsel %vm3692_vm2, %v506_v0, 0.0  ;;  %v4472_v16 = vadd.f32 %v9065_v51, %v447_v61  ;;  %v4478_v44 = vadd.f32 %v9069_v41, %v452_v50  ;;  %v4481_v49 = vadd.f32 %v9070_v40, %v457_v42  ;;  %v9073_v63 = vld [vmem:[#allocation239_spill] sm:$0xff]  ;;  %v9075_v4 = vld [vmem:[#allocation241_spill] sm:$0xff]  ;;  %v9076_v53 = vld [vmem:[#allocation242_spill] sm:$0xff] }
 0x1e5   : > { %v511_v24 = vmul.f32 %v9066_v23, %v508_v37  ;;  %v516_v20 = vmul.f32 %v9067_v62, %v508_v37  ;;  %v521_v43 = vmul.f32 %v9068_v58, %v508_v37  ;;  %v4484_v60 = vadd.f32 %v9071_v59, %v462_v15  ;;  %v9080_v15 = vld [vmem:[#allocation243_spill] sm:$0xff]  ;;  %v9082_v39 = vld [vmem:[#allocation205_spill] sm:$0xff]  ;;  %v9083_v51 = vld [vmem:[#allocation206_spill] sm:$0xff] }
 0x1e6   : > { %v426_v47 = vadd.f32 %v9072_v46, %v380_v9  ;;  %v526_v61 = vmul.f32 %v9073_v63, %v508_v37  ;;  %v4489_v8 = vmul.f32 %v9074_v13, %v508_v37  ;;  %v4492_v52 = vmul.f32 %v9075_v4, %v508_v37  ;;  %v9081_v9 = vld [vmem:[#allocation204_spill] sm:$0xff]  ;;  %v9084_v40 = vld [vmem:[#allocation207_spill] sm:$0xff]  ;;  %v504_v46 = vpop.permute.xlu0 %503  ;;  %v643_v30 = vpop.permute.xlu1 %642 }
 0x1e7   : > { %v4495_v54 = vmul.f32 %v9076_v53, %v508_v37  ;;  %v4497_v50 = vadd.f32 %v511_v24, %v467_v2  ;;  %v4499_v42 = vadd.f32 %v516_v20, %v472_v19  ;;  %v4501_v0 = vadd.f32 %v521_v43, %v477_v57  ;;  %v9086_v2 = vld [vmem:[#allocation209_spill] sm:$0xff]  ;;  %v9087_v19 = vld [vmem:[#allocation210_spill] sm:$0xff]  ;;  %v9088_v57 = vld [vmem:[#allocation244_spill] sm:$0xff] }
 0x1e8   : > { %v4504_v17 = vmul.f32 %v9080_v15, %v508_v37  ;;  %v431_v27 = vadd.f32 %v9081_v9, %v385_v12  ;;  %v436_v38 = vadd.f32 %v9082_v39, %v390_v14  ;;  %v441_v41 = vadd.f32 %v9083_v51, %v395_v26  ;;  %v9091_v12 = vld [vmem:[#allocation247_spill] sm:$0xff]  ;;  %v9092_v14 = vld [vmem:[#allocation248_spill] sm:$0xff] }
 0x1e9   : > { %9077 = vst [vmem:[#allocation211_spill] sm:$0xff] %v4497_v50  ;;  %v446_v59 = vadd.f32 %v9084_v40, %v400_v11  ;;  %v451_v35 = vadd.f32 %v9085_v36, %v405_v18  ;;  %v456_v24 = vadd.f32 %v9086_v2, %v410_v45  ;;  %v461_v20 = vadd.f32 %v9087_v19, %v415_v7 }
 0x1ea   : > { %9078 = vst [vmem:[#allocation212_spill] sm:$0xff] %v4499_v42  ;;  %v466_v43 = vadd.f32 %v9088_v57, %v426_v47  ;;  %v471_v37 = vadd.f32 %v9089_v34, %v431_v27  ;;  %v476_v32 = vadd.f32 %v9090_v33, %v436_v38  ;;  %v481_v9 = vadd.f32 %v9091_v12, %v441_v41  ;;  %v557_v41 = vpop.permute.xlu2 %556 }
 0x1eb   : > { %9079 = vst [vmem:[#allocation213_spill] sm:$0xff] %v4501_v0  ;;  %v486_v39 = vadd.f32 %v9092_v14, %v446_v59  ;;  %v491_v26 = vadd.f32 %v4413_v3, %v451_v35  ;;  %v496_v11 = vadd.f32 %v4417_v55, %v456_v24  ;;  %v501_v36 = vadd.f32 %v4421_v56, %v461_v20 }
 0x1ec   : > { %v507_v18 = vsel %vm3692_vm2, %v504_v46, 0.0  ;;  %v4531_v47 = vadd.f32 %v526_v61, %v482_v25  ;;  %v4534_v24 = vstv %s9093_s14  ;;  %v4537_v19 = vstv %s9094_s16  ;;  %s9112_s14 = sld [smem:[#allocation78_spill]] }
 0x1ed   : > { %v510_v45 = vmul.f32 %v9066_v23, %v507_v18  ;;  %v515_v7 = vmul.f32 %v9067_v62, %v507_v18  ;;  %v520_v33 = vmul.f32 %v9068_v58, %v507_v18  ;;  %v525_v34 = vmul.f32 %v9073_v63, %v507_v18  ;;  %9100 = vst [vmem:[#allocation215_spill] sm:$0xff] %v4534_v24  ;;  %s9114_s16 = sld [smem:[#allocation87_spill]] }
 0x1ee   : > { %v530_v35 = vmul.f32 %v9074_v13, %v507_v18  ;;  %v535_v3 = vmul.f32 %v9075_v4, %v507_v18  ;;  %v540_v55 = vmul.f32 %v9076_v53, %v507_v18  ;;  %v545_v56 = vmul.f32 %v9080_v15, %v507_v18  ;;  %9099 = vst [vmem:[#allocation214_spill] sm:$0xff] %v4531_v47 }
 0x1ef   : > { %v512_v27 = vadd.f32 %v510_v45, %v466_v43  ;;  %v517_v38 = vadd.f32 %v515_v7, %v471_v37  ;;  %v522_v51 = vadd.f32 %v520_v33, %v476_v32  ;;  %v527_v40 = vadd.f32 %v525_v34, %v481_v9  ;;  %9101 = vst [vmem:[#allocation227_spill] sm:$0xff] %v4537_v19 }
 0x1f0   : > { %v532_v59 = vadd.f32 %v530_v35, %v486_v39  ;;  %v537_v46 = vadd.f32 %v535_v3, %v491_v26  ;;  %v542_v2 = vadd.f32 %v540_v55, %v496_v11  ;;  %v4540_v20 = vstv %s9095_s21  ;;  %s9115_s21 = sld [smem:[#allocation32_spill]] }
 0x1f1   : > { %9102 = vst [vmem:[#allocation223_spill] sm:$0xff] %v4540_v20  ;;  %v4543_v57 = vstv %s9096_s1  ;;  %v547_v12 = vadd.f32 %v545_v56, %v501_v36  ;;  %v4546_v25 = vstv %s9097_s23  ;;  %v4549_v61 = vstv %s9098_s24  ;;  %s9117_s1 = sld [smem:[#allocation40_spill]] }
 0x1f2   : > { %9103 = vst [vmem:[#allocation224_spill] sm:$0xff] %v4543_v57  ;;  %v560_v32 = vsel %vm3696_vm3, %v557_v41, 0.0  ;;  %v4562_v33 = vstv %s9104_s5  ;;  %v4565_v41 = vstv %s9107_s11  ;;  %v4568_v15 = vstv %s9108_s25  ;;  %s9119_s23 = sld [smem:[#allocation47_spill]] }
 0x1f3   : > { %9105 = vst [vmem:[#allocation225_spill] sm:$0xff] %v4546_v25  ;;  %v563_v43 = vmul.f32 %v4424_v48, %v560_v32  ;;  %v568_v37 = vmul.f32 %v4427_v1, %v560_v32  ;;  %v573_v9 = vmul.f32 %v4534_v24, %v560_v32  ;;  %v578_v14 = vmul.f32 %v4537_v19, %v560_v32  ;;  %s9122_s24 = sld [smem:[#allocation55_spill]] }
 0x1f4   : > { %9106 = vst [vmem:[#allocation228_spill] sm:$0xff] %v4549_v61  ;;  %v583_v39 = vmul.f32 %v4540_v20, %v560_v32  ;;  %v588_v26 = vmul.f32 %v4543_v57, %v560_v32  ;;  %v593_v11 = vmul.f32 %v4546_v25, %v560_v32  ;;  %v598_v36 = vmul.f32 %v4549_v61, %v560_v32  ;;  %s9123_s5 = sld [smem:[#allocation63_spill]] }
 0x1f5   : > { %v565_v18 = vadd.f32 %v563_v43, %v512_v27  ;;  %v570_v45 = vadd.f32 %v568_v37, %v517_v38  ;;  %v575_v7 = vadd.f32 %v573_v9, %v522_v51  ;;  %9113 = vst [vmem:[#allocation229_spill] sm:$0xff] %v4562_v33  ;;  %v580_v34 = vadd.f32 %v578_v14, %v527_v40  ;;  %v9121_v38 = vld [vmem:[#allocation169_spill] sm:$0xff]  ;;  %s9125_s11 = sld [smem:[#allocation79_spill]] }
 0x1f6   : > { %v585_v35 = vadd.f32 %v583_v39, %v532_v59  ;;  %v590_v3 = vadd.f32 %v588_v26, %v537_v46  ;;  %v595_v55 = vadd.f32 %v593_v11, %v542_v2  ;;  %v600_v56 = vadd.f32 %v598_v36, %v547_v12  ;;  %9116 = vst [vmem:[#allocation230_spill] sm:$0xff] %v4565_v41  ;;  %s9127_s25 = sld [smem:[#allocation88_spill]] }
 0x1f7   : > { %9118 = vst [vmem:[#allocation231_spill] sm:$0xff] %v4568_v15  ;;  %v4571_v27 = vstv %s9109_s12  ;;  %v603_v51 = vmul.f32 %v4562_v33, %v9121_v38  ;;  %v608_v40 = vmul.f32 %v4565_v41, %v9121_v38  ;;  %v613_v59 = vmul.f32 %v4568_v15, %v9121_v38  ;;  %s9128_s12 = sld [smem:[#allocation89_spill]] }
 0x1f8   : > { %9120 = vst [vmem:[#allocation232_spill] sm:$0xff] %v4571_v27  ;;  %v4580_v46 = vstv %s9110_s3  ;;  %v618_v2 = vmul.f32 %v4571_v27, %v9121_v38  ;;  %v4585_v12 = vstv %s9111_s13  ;;  %v4588_v32 = vstv %s9112_s14  ;;  %s9135_s3 = sld [smem:[#allocation93_spill]] }
 0x1f9   : > { %9126 = vst [vmem:[#allocation233_spill] sm:$0xff] %v4580_v46  ;;  %v4591_v43 = vstv %s9114_s16  ;;  %v623_v37 = vmul.f32 %v4580_v46, %v9121_v38  ;;  %v628_v9 = vmul.f32 %v4585_v12, %v9121_v38  ;;  %v633_v14 = vmul.f32 %v4588_v32, %v9121_v38  ;;  %s9136_s13 = sld [smem:[#allocation94_spill]] }
 0x1fa   : > { %9129 = vst [vmem:[#allocation234_spill] sm:$0xff] %v4585_v12  ;;  %v638_v39 = vmul.f32 %v4591_v43, %v9121_v38  ;;  %s9137_s14 = sld [smem:[#allocation95_spill]]  ;;  %v4602_v26 = vstv %s9115_s21  ;;  %v4605_v11 = vstv %s9117_s1  ;;  %v4608_v36 = vstv %s9119_s23 }
 0x1fb   : > { %9131 = vst [vmem:[#allocation235_spill] sm:$0xff] %v4588_v32  ;;  %v4611_v53 = vstv %s9122_s24  ;;  %v4614_v4 = vstv %s9123_s5  ;;  %v4617_v13 = vstv %s9124_s0  ;;  %v4620_v63 = vstv %s9125_s11  ;;  %s9169_s0 = sld [smem:[#allocation121_spill]] }
 0x1fc   : > { %9133 = vst [vmem:[#allocation203_spill] sm:$0xff] %v4591_v43  ;;  %v4623_v58 = vstv %s9127_s25  ;;  %v4629_v38 = vstv %s9130_s4  ;;  %v4632_v23 = vstv %s9132_s7  ;;  %v4635_v31 = vstv %s9134_s8  ;;  %s9153_s7 = sld [smem:[#allocation96_spill]] }
 0x1fd   : > { %9138 = vst [vmem:[#allocation204_spill] sm:$0xff] %v4602_v26  ;;  %v4626_v62 = vstv %s9128_s12  ;;  %v605_v22 = vadd.f32 %v603_v51, %v565_v18  ;;  %v610_v21 = vadd.f32 %v608_v40, %v570_v45  ;;  %v615_v43 = vadd.f32 %v613_v59, %v575_v7  ;;  %s9167_s4 = sld [smem:[#allocation103_spill]] }
 0x1fe   : > { %9139 = vst [vmem:[#allocation205_spill] sm:$0xff] %v4605_v11  ;;  %v4638_v29 = vstv %s9135_s3  ;;  %v620_v32 = vadd.f32 %v618_v2, %v580_v34  ;;  %v625_v12 = vadd.f32 %v623_v37, %v585_v35  ;;  %v630_v46 = vadd.f32 %v628_v9, %v590_v3  ;;  %s9168_s8 = sld [smem:[#allocation112_spill]] }
 0x1ff   : > { %9140 = vst [vmem:[#allocation206_spill] sm:$0xff] %v4608_v36  ;;  %v4641_v28 = vstv %s9136_s13  ;;  %v635_v27 = vadd.f32 %v633_v14, %v595_v55  ;;  %v640_v47 = vadd.f32 %v638_v39, %v600_v56  ;;  %v646_v0 = vsel %vm3692_vm2, %v643_v30, 0.0  ;;  %s9170_s16 = sld [smem:[#allocation130_spill]] }
 0x200   : > { %9141 = vst [vmem:[#allocation207_spill] sm:$0xff] %v4611_v53  ;;  %v4644_v10 = vstv %s9137_s14  ;;  %v649_v42 = vmul.f32 %v4602_v26, %v646_v0  ;;  %v654_v50 = vmul.f32 %v4605_v11, %v646_v0  ;;  %v659_v61 = vmul.f32 %v4608_v36, %v646_v0  ;;  %s9171_s21 = sld [smem:[#allocation139_spill]] }
 0x201   : > { %9142 = vst [vmem:[#allocation208_spill] sm:$0xff] %v4614_v4  ;;  %v664_v25 = vmul.f32 %v4611_v53, %v646_v0  ;;  %v669_v18 = vmul.f32 %v4614_v4, %v646_v0  ;;  %v674_v45 = vmul.f32 %v4617_v13, %v646_v0  ;;  %v679_v7 = vmul.f32 %v4620_v63, %v646_v0  ;;  %s9172_s1 = sld [smem:[#allocation148_spill]] }
 0x202   : > { %9143 = vst [vmem:[#allocation209_spill] sm:$0xff] %v4617_v13  ;;  %v684_v34 = vmul.f32 %v4623_v58, %v646_v0  ;;  %v651_v35 = vadd.f32 %v649_v42, %v605_v22  ;;  %v656_v3 = vadd.f32 %v654_v50, %v610_v21  ;;  %v661_v30 = vadd.f32 %v659_v61, %v615_v43  ;;  %v559_v42 = vpop.permute.xlu0 %558  ;;  %s9174_s23 = sld [smem:[#allocation99_spill]] }
 0x203   : > { %9144 = vst [vmem:[#allocation210_spill] sm:$0xff] %v4620_v63  ;;  %v666_v55 = vadd.f32 %v664_v25, %v620_v32  ;;  %v671_v56 = vadd.f32 %v669_v18, %v625_v12  ;;  %v676_v51 = vadd.f32 %v674_v45, %v630_v46  ;;  %v681_v40 = vadd.f32 %v679_v7, %v635_v27  ;;  %v9156_v7 = vld [vmem:[#allocation225_spill] sm:$0xff]  ;;  %s9176_s24 = sld [smem:[#allocation108_spill]] }
 0x204   : > { %9145 = vst [vmem:[#allocation244_spill] sm:$0xff] %v4623_v58  ;;  %v686_v59 = vadd.f32 %v684_v34, %v640_v47  ;;  %v4657_v2 = vstv %s9153_s7  ;;  %v689_v37 = vadd.f32 %v4626_v62, %v651_v35  ;;  %v694_v9 = vadd.f32 %v4629_v38, %v656_v3  ;;  %v9157_v35 = vld [vmem:[#allocation228_spill] sm:$0xff]  ;;  %s9177_s5 = sld [smem:[#allocation157_spill]] }
 0x205   : > { %9146 = vst [vmem:[#allocation245_spill] sm:$0xff] %v4626_v62  ;;  %v699_v14 = vadd.f32 %v4632_v23, %v661_v30  ;;  %v533_v39 = vadd.f32 %v4489_v8, %v4472_v16  ;;  %v538_v21 = vadd.f32 %v4492_v52, %v4478_v44  ;;  %v543_v22 = vadd.f32 %v4495_v54, %v4481_v49  ;;  %v9155_v52 = vld [vmem:[#allocation170_spill] sm:$0xff]  ;;  %v9158_v30 = vld [vmem:[#allocation211_spill] sm:$0xff]  ;;  %s9180_s11 = sld [smem:[#allocation117_spill]] }
 0x206   : > { %9147 = vst [vmem:[#allocation246_spill] sm:$0xff] %v4629_v38  ;;  %v548_v50 = vadd.f32 %v4504_v17, %v4484_v60  ;;  %v704_v0 = vadd.f32 %v4635_v31, %v666_v55  ;;  %v709_v47 = vadd.f32 %v4638_v29, %v671_v56  ;;  %v4673_v25 = vadd.f32 %v4641_v28, %v676_v51  ;;  %v9159_v56 = vld [vmem:[#allocation212_spill] sm:$0xff]  ;;  %s9181_s25 = sld [smem:[#allocation166_spill]] }
 0x207   : > { %9148 = vst [vmem:[#allocation247_spill] sm:$0xff] %v4632_v23  ;;  %v4676_v61 = vadd.f32 %v4644_v10, %v681_v40  ;;  %v4678_v16 = vmax.f32 %v689_v37, 0.0  ;;  %v4680_v44 = vmax.f32 %v694_v9, 0.0  ;;  %v4682_v8 = vmax.f32 %v699_v14, 0.0  ;;  %v9160_v40 = vld [vmem:[#allocation213_spill] sm:$0xff]  ;;  %v9161_v37 = vld [vmem:[#allocation214_spill] sm:$0xff] }
 0x208   : > { %9149 = vst [vmem:[#allocation248_spill] sm:$0xff] %v4635_v31  ;;  %v4685_v49 = vadd.f32 %v4657_v2, %v686_v59  ;;  %v561_v60 = vsel %vm3696_vm3, %v559_v42, 0.0  ;;  %v604_v54 = vmul.f32 %v4562_v33, %v9155_v52  ;;  %v609_v17 = vmul.f32 %v4565_v41, %v9155_v52  ;;  %s9184_s12 = sld [smem:[#allocation126_spill]] }
 0x209   : > { %9150 = vst [vmem:[#allocation169_spill] sm:$0xff] %v4638_v29  ;;  %v614_v27 = vmul.f32 %v4568_v15, %v9155_v52  ;;  %v564_v46 = vmul.f32 %v4424_v48, %v561_v60  ;;  %v569_v12 = vmul.f32 %v4427_v1, %v561_v60  ;;  %v574_v32 = vmul.f32 %v4534_v24, %v561_v60  ;;  %s9186_s3 = sld [smem:[#allocation135_spill]] }
 0x20a   : > { %9151 = vst [vmem:[#allocation251_spill] sm:$0xff] %v4641_v28  ;;  %v579_v43 = vmul.f32 %v4537_v19, %v561_v60  ;;  %v584_v18 = vmul.f32 %v4540_v20, %v561_v60  ;;  %v589_v45 = vmul.f32 %v4543_v57, %v561_v60  ;;  %v594_v34 = vmul.f32 %v9156_v7, %v561_v60  ;;  %v9162_v20 = vld [vmem:[#allocation232_spill] sm:$0xff]  ;;  %v9163_v57 = vld [vmem:[#allocation233_spill] sm:$0xff]  ;;  %s9188_s13 = sld [smem:[#allocation144_spill]] }
 0x20b   : > { %9152 = vst [vmem:[#allocation252_spill] sm:$0xff] %v4644_v10  ;;  %v599_v3 = vmul.f32 %v9157_v35, %v561_v60  ;;  %v566_v55 = vadd.f32 %v564_v46, %v9158_v30  ;;  %v571_v51 = vadd.f32 %v569_v12, %v9159_v56  ;;  %v576_v59 = vadd.f32 %v574_v32, %v9160_v40  ;;  %v9164_v60 = vld [vmem:[#allocation234_spill] sm:$0xff]  ;;  %v9165_v46 = vld [vmem:[#allocation235_spill] sm:$0xff]  ;;  %v645_v30 = vpop.permute.xlu2 %644  ;;  %s9190_s14 = sld [smem:[#allocation153_spill]] }
 0x20c   : > { %9154 = vst [vmem:[#allocation253_spill] sm:$0xff] %v4657_v2  ;;  %v581_v9 = vadd.f32 %v579_v43, %v9161_v37  ;;  %v586_v14 = vadd.f32 %v584_v18, %v533_v39  ;;  %v591_v42 = vadd.f32 %v589_v45, %v538_v21  ;;  %v596_v24 = vadd.f32 %v594_v34, %v543_v22  ;;  %v9166_v39 = vld [vmem:[#allocation203_spill] sm:$0xff]  ;;  %s9191_s7 = sld [smem:[#allocation97_spill]] }
 0x20d   : > { %v601_v19 = vadd.f32 %v599_v3, %v548_v50  ;;  %v619_v1 = vmul.f32 %v9162_v20, %v9155_v52  ;;  %v624_v7 = vmul.f32 %v9163_v57, %v9155_v52  ;;  %v629_v35 = vmul.f32 %v9164_v60, %v9155_v52 }
 0x20e   : > { %v634_v12 = vmul.f32 %v9165_v46, %v9155_v52  ;;  %v4715_v32 = vmax.f32 %v704_v0, 0.0  ;;  %v4717_v43 = vmax.f32 %v709_v47, 0.0  ;;  %v639_v21 = vmul.f32 %v9166_v39, %v9155_v52 }
 0x20f   : > { %v606_v22 = vadd.f32 %v604_v54, %v566_v55  ;;  %v611_v50 = vadd.f32 %v609_v17, %v571_v51  ;;  %v616_v18 = vadd.f32 %v614_v27, %v576_v59  ;;  %v621_v45 = vadd.f32 %v619_v1, %v581_v9 }
 0x210   : > { %v626_v34 = vadd.f32 %v624_v7, %v586_v14  ;;  %v631_v3 = vadd.f32 %v629_v35, %v591_v42  ;;  %v636_v56 = vadd.f32 %v634_v12, %v596_v24  ;;  %v641_v40 = vadd.f32 %v639_v21, %v601_v19 }
 0x211   : > { %v647_v37 = vsel %vm3692_vm2, %v645_v30, 0.0 }
 0x212   : > { %v650_v48 = vmul.f32 %v4602_v26, %v647_v37  ;;  %v655_v0 = vmul.f32 %v4605_v11, %v647_v37  ;;  %v660_v47 = vmul.f32 %v4608_v36, %v647_v37  ;;  %v665_v46 = vmul.f32 %v4611_v53, %v647_v37 }
 0x213   : > { %v670_v52 = vmul.f32 %v4614_v4, %v647_v37  ;;  %v675_v54 = vmul.f32 %v4617_v13, %v647_v37  ;;  %v680_v1 = vmul.f32 %v4620_v63, %v647_v37  ;;  %v685_v24 = vmul.f32 %v4623_v58, %v647_v37 }
 0x214   : > { %v652_v19 = vadd.f32 %v650_v48, %v606_v22  ;;  %v657_v17 = vadd.f32 %v655_v0, %v611_v50  ;;  %v662_v27 = vadd.f32 %v660_v47, %v616_v18  ;;  %v667_v7 = vadd.f32 %v665_v46, %v621_v45 }
 0x215   : > { %v672_v35 = vadd.f32 %v670_v52, %v626_v34  ;;  %v677_v55 = vadd.f32 %v675_v54, %v631_v3  ;;  %v682_v51 = vadd.f32 %v680_v1, %v636_v56  ;;  %v687_v59 = vadd.f32 %v685_v24, %v641_v40 }
 0x216   : > { %v690_v9 = vadd.f32 %v4626_v62, %v652_v19  ;;  %v695_v14 = vadd.f32 %v4629_v38, %v657_v17  ;;  %v700_v42 = vadd.f32 %v4632_v23, %v662_v27  ;;  %v705_v12 = vadd.f32 %v4635_v31, %v667_v7 }
 0x217   : > { %v710_v30 = vadd.f32 %v4638_v29, %v672_v35  ;;  %v715_v48 = vadd.f32 %v4641_v28, %v677_v55  ;;  %v720_v46 = vadd.f32 %v4644_v10, %v682_v51  ;;  %v725_v21 = vadd.f32 %v4657_v2, %v687_v59 }
 0x218   : > { %v4739_v22 = vmax.f32 %v690_v9, 0.0  ;;  %v4741_v50 = vmax.f32 %v695_v14, 0.0  ;;  %v4743_v18 = vmax.f32 %v700_v42, 0.0  ;;  %v4745_v45 = vmax.f32 %v705_v12, 0.0 }
 0x219   : > { %v4748_v34 = vmax.f32 %v4673_v25, 0.0  ;;  %v4751_v3 = vmax.f32 %v4676_v61, 0.0  ;;  %v4754_v56 = vstv %s9167_s4  ;;  %v4757_v40 = vstv %s9168_s8  ;;  %s9193_s4 = sld [smem:[#allocation106_spill]] }
 0x21a   : > { %9173 = vst [vmem:[#allocation170_spill] sm:$0xff] %v4754_v56  ;;  %v4760_v37 = vmax.f32 %v4685_v49, 0.0  ;;  %v4762_v0 = vmax.f32 %v710_v30, 0.0  ;;  %v998_v25 = vmul.f32 %v4754_v56, %v4739_v22  ;;  %v1001_v61 = vmul.f32 %v4757_v40, %v4741_v50  ;;  %s9196_s8 = sld [smem:[#allocation162_spill]] }
 0x21b   : > { %9175 = vst [vmem:[#allocation211_spill] sm:$0xff] %v4757_v40  ;;  %v4768_v47 = vmax.f32 %v715_v48, 0.0  ;;  %v4770_v52 = vmax.f32 %v720_v46, 0.0  ;;  %v4773_v54 = vstv %s9169_s0  ;;  %v4776_v1 = vstv %s9170_s16  ;;  %s9198_s0 = sld [smem:[#allocation115_spill]] }
 0x21c   : > { %9178 = vst [vmem:[#allocation212_spill] sm:$0xff] %v4773_v54  ;;  %v4778_v49 = vmax.f32 %v725_v21, 0.0  ;;  %v1003_v24 = vadd.f32 %v1001_v61, %v998_v25  ;;  %v1006_v19 = vmul.f32 %v4773_v54, %v4743_v18  ;;  %v1011_v17 = vmul.f32 %v4776_v1, %v4745_v45  ;;  %s9200_s16 = sld [smem:[#allocation124_spill]] }
 0x21d   : > { %9179 = vst [vmem:[#allocation213_spill] sm:$0xff] %v4776_v1  ;;  %v4785_v27 = vstv %s9171_s21  ;;  %v4788_v7 = vstv %s9172_s1  ;;  %v4791_v35 = vstv %s9174_s23  ;;  %v4794_v55 = vstv %s9176_s24  ;;  %s9203_s21 = sld [smem:[#allocation133_spill]] }
 0x21e   : > { %9182 = vst [vmem:[#allocation214_spill] sm:$0xff] %v4785_v27  ;;  %v1008_v51 = vadd.f32 %v1006_v19, %v1003_v24  ;;  %v4797_v59 = vstv %s9177_s5  ;;  %v814_v9 = vmul.f32 %v4791_v35, %v4739_v22  ;;  %v817_v14 = vmul.f32 %v4794_v55, %v4741_v50  ;;  %s9205_s1 = sld [smem:[#allocation142_spill]]  ;;  %s9214_s5 = smov 1  }
 0x21f   : > { %9183 = vst [vmem:[#allocation254_spill] sm:$0xff] %v4788_v7  ;;  %v1016_v42 = vmul.f32 %v4785_v27, %v4762_v0  ;;  %v1021_v12 = vmul.f32 %v4788_v7, %v4768_v47  ;;  %v1026_v30 = vmul.f32 %v4797_v59, %v4770_v52  ;;  %v4810_v48 = vstv %s9180_s11  ;;  %s9208_s23 = sld [smem:[#allocation151_spill]] }
 0x220   : > { %9185 = vst [vmem:[#allocation255_spill] sm:$0xff] %v4791_v35  ;;  %v1013_v46 = vadd.f32 %v1011_v17, %v1008_v51  ;;  %v4813_v21 = vstv %s9181_s25  ;;  %v819_v25 = vadd.f32 %v817_v14, %v814_v9  ;;  %v822_v61 = vmul.f32 %v4810_v48, %v4743_v18  ;;  %s9210_s24 = sld [smem:[#allocation160_spill]] }
 0x221   : > { %9187 = vst [vmem:[#allocation256_spill] sm:$0xff] %v4794_v55  ;;  %v1031_v24 = vmul.f32 %v4813_v21, %v4778_v49  ;;  %v4820_v19 = vstv %s9184_s12  ;;  %v4823_v2 = vstv %s9186_s3  ;;  %v4826_v10 = vstv %s9188_s13  ;;  %s9216_s11 = sld [smem:[#allocation100_spill]]  ;;  %s9218_s12 = smov 127  }
 0x222   : > { %9189 = vst [vmem:[#allocation257_spill] sm:$0xff] %v4797_v59  ;;  %v1018_v28 = vadd.f32 %v1016_v42, %v1013_v46  ;;  %v824_v17 = vadd.f32 %v822_v61, %v819_v25  ;;  %v827_v51 = vmul.f32 %v4820_v19, %v4745_v45  ;;  %v832_v9 = vmul.f32 %v4823_v2, %v4762_v0  ;;  %s9217_s25 = sld [smem:[#allocation109_spill]] }
 0x223   : > { %9192 = vst [vmem:[#allocation258_spill] sm:$0xff] %v4810_v48  ;;  %v837_v14 = vmul.f32 %v4826_v10, %v4768_v47  ;;  %v4835_v29 = vstv %s9190_s14  ;;  %v4838_v31 = vstv %s9191_s7  ;;  %v4841_v23 = vstv %s9193_s4  ;;  %s9219_s3 = sld [smem:[#allocation118_spill]] }
 0x224   : > { %9194 = vst [vmem:[#allocation259_spill] sm:$0xff] %v4813_v21  ;;  %v1023_v38 = vadd.f32 %v1021_v12, %v1018_v28  ;;  %v829_v62 = vadd.f32 %v827_v51, %v824_v17  ;;  %v730_v42 = vmul.f32 %v4838_v31, %v4739_v22  ;;  %v733_v46 = vmul.f32 %v4841_v23, %v4741_v50  ;;  %s9222_s13 = sld [smem:[#allocation127_spill]] }
 0x225   : > { %9195 = vst [vmem:[#allocation260_spill] sm:$0xff] %v4820_v19  ;;  %v842_v25 = vmul.f32 %v4835_v29, %v4770_v52  ;;  %v4850_v61 = vstv %s9196_s8  ;;  %v4853_v58 = vstv %s9198_s0  ;;  %v4856_v63 = vstv %s9200_s16  ;;  %s9223_s14 = sld [smem:[#allocation136_spill]] }
 0x226   : > { %9197 = vst [vmem:[#allocation261_spill] sm:$0xff] %v4823_v2  ;;  %v1028_v13 = vadd.f32 %v1026_v30, %v1023_v38  ;;  %v834_v28 = vadd.f32 %v832_v9, %v829_v62  ;;  %v735_v12 = vadd.f32 %v733_v46, %v730_v42  ;;  %v738_v17 = vmul.f32 %v4853_v58, %v4743_v18  ;;  %s9225_s7 = sld [smem:[#allocation105_spill]] }
 0x227   : > { %9199 = vst [vmem:[#allocation262_spill] sm:$0xff] %v4826_v10  ;;  %v847_v51 = vmul.f32 %v4850_v61, %v4778_v49  ;;  %v743_v4 = vmul.f32 %v4856_v63, %v4745_v45  ;;  %v4865_v53 = vstv %s9203_s21  ;;  %v813_v36 = vmul.f32 %v4791_v35, %v4678_v16  ;;  %s9226_s4 = sld [smem:[#allocation114_spill]] }
 0x228   : > { %9201 = vst [vmem:[#allocation263_spill] sm:$0xff] %v4835_v29  ;;  %v1033_v11 = vadd.f32 %v1031_v24, %v1028_v13  ;;  %v839_v26 = vadd.f32 %v837_v14, %v834_v28  ;;  %v740_v38 = vadd.f32 %v738_v17, %v735_v12  ;;  %v4870_v62 = vstv %s9205_s1  ;;  %s9227_s8 = sld [smem:[#allocation145_spill]] }
 0x229   : > { %9202 = vst [vmem:[#allocation264_spill] sm:$0xff] %v4838_v31  ;;  %v748_v30 = vmul.f32 %v4865_v53, %v4762_v0  ;;  %v753_v9 = vmul.f32 %v4870_v62, %v4768_v47  ;;  %v4877_v42 = vstv %s9208_s23  ;;  %v816_v46 = vmul.f32 %v4794_v55, %v4680_v44  ;;  %s9228_s0 = sld [smem:[#allocation154_spill]] }
 0x22a   : > { %9204 = vst [vmem:[#allocation265_spill] sm:$0xff] %v4841_v23  ;;  %1036 = vrot.lane.b32.xlu2 %v1033_v11, %s9214_s5  ;;  %v844_v39 = vadd.f32 %v842_v25, %v839_v26  ;;  %v745_v35 = vadd.f32 %v743_v4, %v740_v38  ;;  %v758_v13 = vmul.f32 %v4877_v42, %v4770_v52  ;;  %v4885_v24 = vstv %s9210_s24  ;;  %s9230_s16 = sld [smem:[#allocation123_spill]] }
 0x22b   : > { %9206 = vst [vmem:[#allocation266_spill] sm:$0xff] %v4850_v61  ;;  %v763_v14 = vmul.f32 %v4885_v24, %v4778_v49  ;;  %v818_v28 = vadd.f32 %v816_v46, %v813_v36  ;;  %v821_v12 = vmul.f32 %v4810_v48, %v4682_v8  ;;  %v729_v17 = vmul.f32 %v4838_v31, %v4678_v16  ;;  %s9232_s21 = sld [smem:[#allocation132_spill]] }
 0x22c   : > { %9207 = vst [vmem:[#allocation267_spill] sm:$0xff] %v4853_v58  ;;  %v849_v55 = vadd.f32 %v847_v51, %v844_v39  ;;  %v750_v26 = vadd.f32 %v748_v30, %v745_v35  ;;  %v826_v4 = vmul.f32 %v4820_v19, %v4715_v32  ;;  %v732_v11 = vmul.f32 %v4841_v23, %v4680_v44  ;;  %s9236_s1 = sld [smem:[#allocation163_spill]] }
 0x22d   : > { %9209 = vst [vmem:[#allocation268_spill] sm:$0xff] %v4856_v63  ;;  %v823_v25 = vadd.f32 %v821_v12, %v818_v28  ;;  %v831_v36 = vmul.f32 %v4823_v2, %v4717_v43  ;;  %v836_v38 = vmul.f32 %v4826_v10, %v4748_v34  ;;  %v841_v46 = vmul.f32 %v4835_v29, %v4751_v3  ;;  %s9237_s23 = sld [smem:[#allocation141_spill]] }
 0x22e   : > { %9211 = vst [vmem:[#allocation269_spill] sm:$0xff] %v4865_v53  ;;  %852 = vrot.lane.b32.xlu0 %v849_v55, %s9218_s12  ;;  %v755_v39 = vadd.f32 %v753_v9, %v750_v26  ;;  %v846_v35 = vmul.f32 %v4850_v61, %v4760_v37  ;;  %v734_v51 = vadd.f32 %v732_v11, %v729_v17  ;;  %v4911_v23 = vstv %s9216_s11  ;;  %s9239_s24 = sld [smem:[#allocation150_spill]] }
 0x22f   : > { %9212 = vst [vmem:[#allocation270_spill] sm:$0xff] %v4870_v62  ;;  %v737_v30 = vmul.f32 %v4853_v58, %v4682_v8  ;;  %v828_v28 = vadd.f32 %v826_v4, %v823_v25  ;;  %v742_v12 = vmul.f32 %v4856_v63, %v4715_v32  ;;  %v4914_v10 = vstv %s9217_s25  ;;  %s9242_s11 = sld [smem:[#allocation159_spill]] }
 0x230   : > { %9213 = vst [vmem:[#allocation271_spill] sm:$0xff] %v4877_v42  ;;  %v760_v29 = vadd.f32 %v758_v13, %v755_v39  ;;  %v866_v9 = vmul.f32 %v4911_v23, %v4739_v22  ;;  %v869_v17 = vmul.f32 %v4914_v10, %v4741_v50  ;;  %v747_v4 = vmul.f32 %v4865_v53, %v4717_v43  ;;  %s9243_s25 = sld [smem:[#allocation168_spill]] }
 0x231   : > { %9215 = vst [vmem:[#allocation272_spill] sm:$0xff] %v4885_v24  ;;  %v739_v55 = vadd.f32 %v737_v30, %v734_v51  ;;  %v833_v26 = vadd.f32 %v831_v36, %v828_v28  ;;  %v752_v11 = vmul.f32 %v4870_v62, %v4748_v34  ;;  %v4925_v25 = vstv %s9219_s3  ;;  %s9249_s3 = sld [smem:[#allocation102_spill]] }
 0x232   : > { %9220 = vst [vmem:[#allocation273_spill] sm:$0xff] %v4911_v23  ;;  %v765_v63 = vadd.f32 %v763_v14, %v760_v29  ;;  %v871_v39 = vadd.f32 %v869_v17, %v866_v9  ;;  %v874_v51 = vmul.f32 %v4925_v25, %v4743_v18  ;;  %v757_v36 = vmul.f32 %v4877_v42, %v4751_v3 }
 0x233   : > { %9221 = vst [vmem:[#allocation274_spill] sm:$0xff] %v4914_v10  ;;  %v744_v13 = vadd.f32 %v742_v12, %v739_v55  ;;  %v838_v30 = vadd.f32 %v836_v38, %v833_v26  ;;  %v762_v28 = vmul.f32 %v4885_v24, %v4760_v37  ;;  %v4934_v62 = vstv %s9222_s13  ;;  %s9250_s13 = sld [smem:[#allocation111_spill]] }
 0x234   : > { %9224 = vst [vmem:[#allocation275_spill] sm:$0xff] %v4925_v25  ;;  %768 = vrot.lane.b32.xlu1 %v765_v63, %s9214_s5  ;;  %v876_v14 = vadd.f32 %v874_v51, %v871_v39  ;;  %v879_v12 = vmul.f32 %v4934_v62, %v4745_v45  ;;  %v4940_v55 = vstv %s9223_s14  ;;  %v4945_v17 = vstv %s9225_s7  ;;  %s9251_s14 = sld [smem:[#allocation120_spill]] }
 0x235   : > { %9229 = vst [vmem:[#allocation276_spill] sm:$0xff] %v4934_v62  ;;  %v749_v29 = vadd.f32 %v747_v4, %v744_v13  ;;  %v843_v38 = vadd.f32 %v841_v46, %v838_v30  ;;  %v884_v9 = vmul.f32 %v4940_v55, %v4762_v0  ;;  %v4948_v26 = vstv %s9226_s4  ;;  %s9254_s7 = sld [smem:[#allocation129_spill]] }
 0x236   : > { %9231 = vst [vmem:[#allocation277_spill] sm:$0xff] %v4940_v55  ;;  %v881_v42 = vadd.f32 %v879_v12, %v876_v14  ;;  %v4951_v63 = vstv %s9227_s8  ;;  %v1081_v4 = vmul.f32 %v4945_v17, %v4678_v16  ;;  %v4956_v39 = vstv %s9228_s0  ;;  %s9255_s4 = sld [smem:[#allocation138_spill]] }
 0x237   : > { %9233 = vst [vmem:[#allocation278_spill] sm:$0xff] %v4945_v17  ;;  %v754_v24 = vadd.f32 %v752_v11, %v749_v29  ;;  %v848_v13 = vadd.f32 %v846_v35, %v843_v38  ;;  %v1084_v46 = vmul.f32 %v4948_v26, %v4680_v44  ;;  %v4961_v51 = vstv %s9230_s16  ;;  %s9257_s8 = sld [smem:[#allocation147_spill]] }
 0x238   : > { %9234 = vst [vmem:[#allocation279_spill] sm:$0xff] %v4948_v26  ;;  %v886_v53 = vadd.f32 %v884_v9, %v881_v42  ;;  %v889_v11 = vmul.f32 %v4951_v63, %v4768_v47  ;;  %v4966_v29 = vstv %s9232_s21  ;;  %v894_v35 = vmul.f32 %v4956_v39, %v4770_v52  ;;  %s9259_s0 = sld [smem:[#allocation156_spill]] }
 0x239   : > { %9235 = vst [vmem:[#allocation280_spill] sm:$0xff] %v4951_v63  ;;  %v759_v30 = vadd.f32 %v757_v36, %v754_v24  ;;  %850 = vrot.lane.b32.xlu2 %v848_v13, %s9218_s12  ;;  %v1086_v14 = vadd.f32 %v1084_v46, %v1081_v4  ;;  %v1089_v12 = vmul.f32 %v4961_v51, %v4682_v8  ;;  %v4974_v24 = vstv %s9236_s1  ;;  %s9261_s16 = sld [smem:[#allocation165_spill]] }
 0x23a   : > { %9238 = vst [vmem:[#allocation281_spill] sm:$0xff] %v4956_v39  ;;  %v891_v61 = vadd.f32 %v889_v11, %v886_v53  ;;  %v4977_v42 = vstv %s9237_s23  ;;  %v1094_v9 = vmul.f32 %v4966_v29, %v4715_v32  ;;  %v4982_v58 = vstv %s9239_s24  ;;  %s9265_s21 = sld [smem:[#allocation98_spill]] }
 0x23b   : > { %9240 = vst [vmem:[#allocation282_spill] sm:$0xff] %v4961_v51  ;;  %v764_v38 = vadd.f32 %v762_v28, %v759_v30  ;;  %v1091_v36 = vadd.f32 %v1089_v12, %v1086_v14  ;;  %v865_v13 = vmul.f32 %v4911_v23, %v4678_v16  ;;  %v899_v28 = vmul.f32 %v4974_v24, %v4778_v49  ;;  %s9266_s1 = sld [smem:[#allocation107_spill]] }
 0x23c   : > { %9241 = vst [vmem:[#allocation283_spill] sm:$0xff] %v4966_v29  ;;  %v896_v4 = vadd.f32 %v894_v35, %v891_v61  ;;  %v4990_v53 = vstv %s9242_s11  ;;  %v868_v46 = vmul.f32 %v4914_v10, %v4680_v44  ;;  %v1099_v11 = vmul.f32 %v4977_v42, %v4717_v43  ;;  %s9267_s23 = sld [smem:[#allocation116_spill]] }
 0x23d   : > { %9244 = vst [vmem:[#allocation284_spill] sm:$0xff] %v4974_v24  ;;  %766 = vrot.lane.b32.xlu0 %v764_v38, %s9214_s5  ;;  %v1096_v30 = vadd.f32 %v1094_v9, %v1091_v36  ;;  %v4997_v14 = vstv %s9243_s25  ;;  %v1104_v23 = vmul.f32 %v4982_v58, %v4748_v34  ;;  %v873_v61 = vmul.f32 %v4925_v25, %v4682_v8  ;;  %s9268_s24 = sld [smem:[#allocation125_spill]] }
 0x23e   : > { %9245 = vst [vmem:[#allocation285_spill] sm:$0xff] %v4977_v42  ;;  %v901_v12 = vadd.f32 %v899_v28, %v896_v4  ;;  %v870_v38 = vadd.f32 %v868_v46, %v865_v13  ;;  %v1109_v10 = vmul.f32 %v4990_v53, %v4751_v3  ;;  %v997_v36 = vmul.f32 %v4754_v56, %v4678_v16  ;;  %s9269_s11 = sld [smem:[#allocation134_spill]] }
 0x23f   : > { %9246 = vst [vmem:[#allocation286_spill] sm:$0xff] %v4982_v58  ;;  %v1101_v35 = vadd.f32 %v1099_v11, %v1096_v30  ;;  %v1000_v9 = vmul.f32 %v4757_v40, %v4680_v44  ;;  %v1114_v13 = vmul.f32 %v4997_v14, %v4760_v37  ;;  %v878_v28 = vmul.f32 %v4934_v62, %v4715_v32  ;;  %s9270_s25 = sld [smem:[#allocation143_spill]] }
 0x240   : > { %9247 = vst [vmem:[#allocation287_spill] sm:$0xff] %v4990_v53  ;;  %904 = vrot.lane.b32.xlu1 %v901_v12, %s9214_s5  ;;  %v875_v4 = vadd.f32 %v873_v61, %v870_v38  ;;  %v883_v46 = vmul.f32 %v4940_v55, %v4717_v43  ;;  %v888_v11 = vmul.f32 %v4951_v63, %v4748_v34  ;;  %v5023_v38 = vstv %s9249_s3  ;;  %s9272_s3 = sld [smem:[#allocation101_spill]] }
 0x241   : > { %9248 = vst [vmem:[#allocation288_spill] sm:$0xff] %v4997_v14  ;;  %v1106_v30 = vadd.f32 %v1104_v23, %v1101_v35  ;;  %v1002_v25 = vadd.f32 %v1000_v9, %v997_v36  ;;  %v1005_v2 = vmul.f32 %v4773_v54, %v4682_v8  ;;  %v1010_v19 = vmul.f32 %v4776_v1, %v4715_v32 }
 0x242   : > { %v880_v12 = vadd.f32 %v878_v28, %v875_v4  ;;  %9252 = vst [vmem:[#allocation289_spill] sm:$0xff] %v5023_v38  ;;  %v5026_v61 = vstv %s9250_s13  ;;  %v950_v23 = vmul.f32 %v5023_v38, %v4739_v22  ;;  %v893_v9 = vmul.f32 %v4956_v39, %v4751_v3  ;;  %s9274_s13 = sld [smem:[#allocation110_spill]] }
 0x243   : > { %9253 = vst [vmem:[#allocation290_spill] sm:$0xff] %v5026_v61  ;;  %v1111_v62 = vadd.f32 %v1109_v10, %v1106_v30  ;;  %v1007_v55 = vadd.f32 %v1005_v2, %v1002_v25  ;;  %v953_v35 = vmul.f32 %v5026_v61, %v4741_v50  ;;  %v1015_v4 = vmul.f32 %v4785_v27, %v4717_v43 }
 0x244   : > { %v885_v36 = vadd.f32 %v883_v46, %v880_v12  ;;  %v5037_v28 = vstv %s9251_s14  ;;  %v898_v30 = vmul.f32 %v4974_v24, %v4760_v37  ;;  %v1020_v46 = vmul.f32 %v4788_v7, %v4748_v34  ;;  %s9275_s14 = sld [smem:[#allocation152_spill]] }
 0x245   : > { %9256 = vst [vmem:[#allocation291_spill] sm:$0xff] %v5037_v28  ;;  %v1116_v63 = vadd.f32 %v1114_v13, %v1111_v62  ;;  %v1012_v31 = vadd.f32 %v1010_v19, %v1007_v55  ;;  %v955_v10 = vadd.f32 %v953_v35, %v950_v23  ;;  %v958_v2 = vmul.f32 %v5037_v28, %v4743_v18 }
 0x246   : > { %v890_v25 = vadd.f32 %v888_v11, %v885_v36  ;;  %v5046_v12 = vstv %s9254_s7  ;;  %v1025_v19 = vmul.f32 %v4797_v59, %v4751_v3  ;;  %v5054_v11 = vstv %s9255_s4  ;;  %s9277_s7 = sld [smem:[#allocation119_spill]] }
 0x247   : > { %9258 = vst [vmem:[#allocation292_spill] sm:$0xff] %v5046_v12  ;;  %1118 = vrot.lane.b32.xlu2 %v1116_v63, %s9218_s12  ;;  %v1017_v39 = vadd.f32 %v1015_v4, %v1012_v31  ;;  %v960_v62 = vadd.f32 %v958_v2, %v955_v10  ;;  %v963_v55 = vmul.f32 %v5046_v12, %v4745_v45  ;;  %v5065_v2 = vstv %s9257_s8  ;;  %s9278_s4 = sld [smem:[#allocation104_spill]] }
 0x248   : > { %v895_v13 = vadd.f32 %v893_v9, %v890_v25  ;;  %9260 = vst [vmem:[#allocation293_spill] sm:$0xff] %v5054_v11  ;;  %v1082_v23 = vmul.f32 %v4945_v17, %v4739_v22  ;;  %v1085_v35 = vmul.f32 %v4948_v26, %v4741_v50  ;;  %v1030_v31 = vmul.f32 %v4813_v21, %v4760_v37  ;;  %s9280_s8 = sld [smem:[#allocation161_spill]] }
 0x249   : > { %v1022_v36 = vadd.f32 %v1020_v46, %v1017_v39  ;;  %v965_v63 = vadd.f32 %v963_v55, %v960_v62  ;;  %v968_v4 = vmul.f32 %v5054_v11, %v4762_v0  ;;  %9262 = vst [vmem:[#allocation294_spill] sm:$0xff] %v5065_v2  ;;  %v1090_v25 = vmul.f32 %v4961_v51, %v4743_v18 }
 0x24a   : > { %v900_v10 = vadd.f32 %v898_v30, %v895_v13  ;;  %v1087_v9 = vadd.f32 %v1085_v35, %v1082_v23  ;;  %v973_v39 = vmul.f32 %v5065_v2, %v4768_v47  ;;  %v5072_v46 = vstv %s9259_s0  ;;  %s9282_s0 = sld [smem:[#allocation113_spill]] }
 0x24b   : > { %v1027_v24 = vadd.f32 %v1025_v19, %v1022_v36  ;;  %v970_v17 = vadd.f32 %v968_v4, %v965_v63  ;;  %9263 = vst [vmem:[#allocation295_spill] sm:$0xff] %v5072_v46  ;;  %v1095_v30 = vmul.f32 %v4966_v29, %v4745_v45  ;;  %v949_v55 = vmul.f32 %v5023_v38, %v4678_v16 }
 0x24c   : > { %902 = vrot.lane.b32.xlu0 %v900_v10, %s9214_s5  ;;  %v1092_v62 = vadd.f32 %v1090_v25, %v1087_v9  ;;  %v952_v13 = vmul.f32 %v5026_v61, %v4680_v44  ;;  %v978_v35 = vmul.f32 %v5072_v46, %v4770_v52  ;;  %v5084_v36 = vstv %s9261_s16  ;;  %s9284_s16 = sld [smem:[#allocation128_spill]] }
 0x24d   : > { %v1032_v23 = vadd.f32 %v1030_v31, %v1027_v24  ;;  %v975_v19 = vadd.f32 %v973_v39, %v970_v17  ;;  %9264 = vst [vmem:[#allocation296_spill] sm:$0xff] %v5084_v36  ;;  %v1100_v4 = vmul.f32 %v4977_v42, %v4762_v0  ;;  %v957_v9 = vmul.f32 %v5037_v28, %v4682_v8 }
 0x24e   : > { %v1097_v63 = vadd.f32 %v1095_v30, %v1092_v62  ;;  %v954_v10 = vadd.f32 %v952_v13, %v949_v55  ;;  %v983_v24 = vmul.f32 %v5084_v36, %v4778_v49  ;;  %v1105_v31 = vmul.f32 %v4982_v58, %v4768_v47 }
 0x24f   : > { %1034 = vrot.lane.b32.xlu1 %v1032_v23, %s9214_s5  ;;  %v980_v25 = vadd.f32 %v978_v35, %v975_v19  ;;  %v962_v62 = vmul.f32 %v5046_v12, %v4715_v32  ;;  %v1110_v13 = vmul.f32 %v4990_v53, %v4770_v52  ;;  %v967_v19 = vmul.f32 %v5054_v11, %v4717_v43 }
 0x250   : > { %v1102_v17 = vadd.f32 %v1100_v4, %v1097_v63  ;;  %v959_v39 = vadd.f32 %v957_v9, %v954_v10  ;;  %v1115_v63 = vmul.f32 %v4997_v14, %v4778_v49  ;;  %v972_v10 = vmul.f32 %v5065_v2, %v4748_v34 }
 0x251   : > { %v985_v30 = vadd.f32 %v983_v24, %v980_v25  ;;  %v977_v24 = vmul.f32 %v5072_v46, %v4751_v3  ;;  %v5165_v2 = vstv %s9282_s0  ;;  %s9314_s0 = sld [smem:[#allocation384_spill]] }
 0x252   : > { %v1107_v55 = vadd.f32 %v1105_v31, %v1102_v17  ;;  %v964_v23 = vadd.f32 %v962_v62, %v959_v39  ;;  %v982_v31 = vmul.f32 %v5084_v36, %v4760_v37  ;;  %v5112_v39 = vstv %s9265_s21  ;;  %s9285_s21 = sld [smem:[#allocation122_spill]]  ;;  %9294 = vst [vmem:[#allocation309_spill] sm:$0xff] %v5165_v2 }
 0x253   : > { %988 = vrot.lane.b32.xlu2 %v985_v30, %s9218_s12  ;;  %9271 = vst [vmem:[#allocation297_spill] sm:$0xff] %v5112_v39  ;;  %v5115_v62 = vstv %s9266_s1  ;;  %s9289_s1 = sld [smem:[#allocation137_spill]]  ;;  %v5155_v36 = vstv %s9278_s4  ;;  %v5170_v11 = vstv %s9284_s16  ;;  %s5331_s16 = scalar_lea.vmem [#allocation7], %s4010_s22 }
 0x254   : > { %v1112_v35 = vadd.f32 %v1110_v13, %v1107_v55  ;;  %v969_v4 = vadd.f32 %v967_v19, %v964_v23  ;;  %9273 = vst [vmem:[#allocation298_spill] sm:$0xff] %v5115_v62  ;;  %v5118_v55 = vstv %s9267_s23  ;;  %v773_v13 = vmul.f32 %v5112_v39, %v4678_v16  ;;  %s9293_s23 = sld [smem:[#allocation131_spill]] }
 0x255   : > { %9276 = vst [vmem:[#allocation299_spill] sm:$0xff] %v5118_v55  ;;  %v776_v23 = vmul.f32 %v5115_v62, %v4680_v44  ;;  %v5126_v19 = vstv %s9268_s24  ;;  %s9295_s24 = sld [smem:[#allocation146_spill]]  ;;  %v922_v58 = vmul.f32 %v5170_v11, %v4715_v32 }
 0x256   : > { %v1117_v9 = vadd.f32 %v1115_v63, %v1112_v35  ;;  %v974_v25 = vadd.f32 %v972_v10, %v969_v4  ;;  %9279 = vst [vmem:[#allocation300_spill] sm:$0xff] %v5126_v19  ;;  %v781_v63 = vmul.f32 %v5118_v55, %v4682_v8  ;;  %v5131_v4 = vstv %s9269_s11  ;;  %s9298_s11 = sld [smem:[#allocation140_spill]] }
 0x257   : > { %v778_v35 = vadd.f32 %v776_v23, %v773_v13  ;;  %9281 = vst [vmem:[#allocation301_spill] sm:$0xff] %v5131_v4  ;;  %v5147_v13 = vstv %s9275_s14  ;;  %s9305_s14 = sld [smem:[#allocation158_spill]] }
 0x258   : > { %1120 = vrot.lane.b32.xlu0 %v1117_v9, %s9218_s12  ;;  %v979_v17 = vadd.f32 %v977_v24, %v974_v25  ;;  %v786_v9 = vmul.f32 %v5126_v19, %v4715_v32  ;;  %v5136_v25 = vstv %s9270_s25  ;;  %9288 = vst [vmem:[#allocation305_spill] sm:$0xff] %v5147_v13  ;;  %v5173_v12 = vstv %s9285_s21  ;;  %s9299_s25 = sld [smem:[#allocation155_spill]] }
 0x259   : > { %v783_v10 = vadd.f32 %v781_v63, %v778_v35  ;;  %9283 = vst [vmem:[#allocation302_spill] sm:$0xff] %v5136_v25  ;;  %v796_v35 = vmul.f32 %v5136_v25, %v4748_v34  ;;  %v5152_v63 = vstv %s9277_s7  ;;  %v5180_v53 = vstv %s9289_s1  ;;  %s9308_s7 = sld [smem:[#allocation167_spill]] }
 0x25a   : > { %v984_v30 = vadd.f32 %v982_v31, %v979_v17  ;;  %v791_v17 = vmul.f32 %v5131_v4, %v4717_v43  ;;  %v5141_v31 = vstv %s9272_s3  ;;  %9290 = vst [vmem:[#allocation306_spill] sm:$0xff] %v5152_v63  ;;  %v917_v61 = vmul.f32 %v5152_v63, %v4682_v8  ;;  %s9301_s3 = sld [smem:[#allocation149_spill]] }
 0x25b   : > { %v788_v24 = vadd.f32 %v786_v9, %v783_v10  ;;  %9286 = vst [vmem:[#allocation303_spill] sm:$0xff] %v5141_v31  ;;  %v5158_v10 = vstv %s9280_s8  ;;  %v909_v9 = vmul.f32 %v5141_v31, %v4678_v16  ;;  %s9317_s21 = ssub.f32 1.0, %s3992_s28 }
 0x25c   : > { %986 = vrot.lane.b32.xlu1 %v984_v30, %s9218_s12  ;;  %v5144_v30 = vstv %s9274_s13  ;;  %9291 = vst [vmem:[#allocation307_spill] sm:$0xff] %v5155_v36  ;;  %v806_v14 = vmul.f32 %v5158_v10, %v4760_v37  ;;  %s9302_s13 = sld [smem:[#allocation164_spill]]  ;;  %v5201_v29 = vstv %s9298_s11 }
 0x25d   : > { %9287 = vst [vmem:[#allocation304_spill] sm:$0xff] %v5144_v30  ;;  %v793_v23 = vadd.f32 %v791_v17, %v788_v24  ;;  %v912_v46 = vmul.f32 %v5144_v30, %v4680_v44  ;;  %v801_v17 = vmul.f32 %v5147_v13, %v4751_v3  ;;  %v1059_v21 = vmul.f32 %v5201_v29, %v4717_v43  ;;  %s9906_s1 = ssub.f32 1.0, %s3996_s19 }
 0x25e   : > { %9292 = vst [vmem:[#allocation308_spill] sm:$0xff] %v5158_v10  ;;  %v5204_v51 = vstv %s9299_s25  ;;  %s10207_s11 = sld [smem:[#allocation385_spill]] (%p283_p0) }
 0x25f   : > { %v798_v24 = vadd.f32 %v796_v35, %v793_v23  ;;  %9296 = vst [vmem:[#allocation310_spill] sm:$0xff] %v5170_v11  ;;  %v914_v28 = vadd.f32 %v912_v46, %v909_v9  ;;  %v1041_v23 = vmul.f32 %v5155_v36, %v4678_v16  ;;  %v1044_v46 = vmul.f32 %v5165_v2, %v4680_v44 }
 0x260   : > { %9297 = vst [vmem:[#allocation311_spill] sm:$0xff] %v5173_v12  ;;  %v5189_v9 = vstv %s9293_s23  ;;  %v927_v16 = vmul.f32 %v5180_v53, %v4717_v43  ;;  %v5228_v48 = vstv %s9308_s7  ;;  %s10209_s7 = smov (%p283_p0), 128  }
 0x261   : > { %v803_v38 = vadd.f32 %v801_v17, %v798_v24  ;;  %9300 = vst [vmem:[#allocation312_spill] sm:$0xff] %v5180_v53  ;;  %v919_v35 = vadd.f32 %v917_v61, %v914_v28  ;;  %v5194_v17 = vstv %s9295_s24  ;;  %v1046_v61 = vadd.f32 %v1044_v46, %v1041_v23 }
 0x262   : > { %9303 = vst [vmem:[#allocation313_spill] sm:$0xff] %v5189_v9  ;;  %v1049_v28 = vmul.f32 %v5173_v12, %v4682_v8  ;;  %v5214_v26 = vstv %s9302_s13  ;;  %v937_v8 = vmul.f32 %v5204_v51, %v4751_v3  ;;  %v1074_v43 = vmul.f32 %v5228_v48, %v4760_v37 }
 0x263   : > { %v5191_v24 = vadd.f32 %v806_v14, %v803_v38  ;;  %9304 = vst [vmem:[#allocation314_spill] sm:$0xff] %v5194_v17  ;;  %v924_v42 = vadd.f32 %v922_v58, %v919_v35  ;;  %v932_v14 = vmul.f32 %v5194_v17, %v4748_v34  ;;  %v1054_v58 = vmul.f32 %v5189_v9, %v4715_v32 }
 0x264   : > { %9306 = vst [vmem:[#allocation315_spill] sm:$0xff] %v5201_v29  ;;  %v1051_v38 = vadd.f32 %v1049_v28, %v1046_v61  ;;  %v5211_v35 = vstv %s9301_s3  ;;  %v942_v61 = vmul.f32 %v5214_v26, %v4760_v37  ;;  %v1042_v37 = vmul.f32 %v5155_v36, %v4739_v22  ;;  %s3250_s25 = sshll.u32 (%p283_p0), %s10207_s11, 4  ;;  %s3608_s3 = smov (%p283_p0), [#allocation15]   ;;  %s3251_s25 = int_to_ptr.hbm [resolvable:$true] %s3250_s25 }
 0x265   : > { %9307 = vst [vmem:[#allocation316_spill] sm:$0xff] %v5204_v51  ;;  %v929_v44 = vadd.f32 %v927_v16, %v924_v42  ;;  %v5221_v42 = vstv %s9305_s14  ;;  %v1064_v32 = vmul.f32 %v5211_v35, %v4748_v34  ;;  %s3248_s13 = sshll.u32 (%p283_p0), %s3608_s3, 4  ;;  %s10208_s14 = smov (%p283_p0), 8   ;;  %s3249_s13 = int_to_ptr.vmem [resolvable:$true] %s3248_s13 }
 0x266   : > { %9309 = vst [vmem:[#allocation317_spill] sm:$0xff] %v5211_v35  ;;  %v1056_v46 = vadd.f32 %v1054_v58, %v1051_v38  ;;  %v1069_v38 = vmul.f32 %v5221_v42, %v4751_v3  ;;  %v910_v3 = vmul.f32 %v5141_v31, %v4739_v22  ;;  %v918_v31 = vmul.f32 %v5152_v63, %v4743_v18  ;;  %v9348_v63 = vld [vmem:[#allocation196_spill] sm:$0xff] }
 0x267   : > { %9310 = vst [vmem:[#allocation318_spill] sm:$0xff] %v5214_v26  ;;  %v934_v23 = vadd.f32 %v932_v14, %v929_v44 }
 0x268   : > { %9311 = vst [vmem:[#allocation319_spill] sm:$0xff] %v5221_v42  ;;  %v1061_v28 = vadd.f32 %v1059_v21, %v1056_v46  ;;  %v777_v21 = vmul.f32 %v5115_v62, %v4741_v50 }
 0x269   : > { %v939_v16 = vadd.f32 %v937_v8, %v934_v23  ;;  %9312 = vst [vmem:[#allocation320_spill] sm:$0xff] %v5228_v48  ;;  %v774_v8 = vmul.f32 %v5112_v39, %v4739_v22  ;;  %v792_v22 = vmul.f32 %v5131_v4, %v4762_v0  ;;  %v9350_v4 = vld [vmem:[#allocation198_spill] sm:$0xff] }
 0x26a   : > { %v1066_v14 = vadd.f32 %v1064_v32, %v1061_v28  ;;  %v1045_v28 = vmul.f32 %v5165_v2, %v4741_v50 }
 0x26b   : > { %v5230_v44 = vadd.f32 %v942_v61, %v939_v16  ;;  %v779_v34 = vadd.f32 %v777_v21, %v774_v8  ;;  %v782_v16 = vmul.f32 %v5118_v55, %v4743_v18  ;;  %v913_v61 = vmul.f32 %v5144_v30, %v4741_v50 }
 0x26c   : > { %v1071_v58 = vadd.f32 %v1069_v38, %v1066_v14  ;;  %v1047_v8 = vadd.f32 %v1045_v28, %v1042_v37  ;;  %v1050_v30 = vmul.f32 %v5173_v12, %v4743_v18  ;;  %v797_v37 = vmul.f32 %v5136_v25, %v4768_v47  ;;  %v9360_v12 = vld [vmem:[#allocation203_spill] sm:$0xff] }
 0x26d   : > { %v784_v14 = vadd.f32 %v782_v16, %v779_v34  ;;  %v923_v16 = vmul.f32 %v5170_v11, %v4745_v45 }
 0x26e   : > { %v1076_v23 = vadd.f32 %v1074_v43, %v1071_v58  ;;  %v787_v58 = vmul.f32 %v5126_v19, %v4745_v45  ;;  %v915_v43 = vadd.f32 %v913_v61, %v910_v3  ;;  %v1052_v50 = vadd.f32 %v1050_v30, %v1047_v8 }
 0x26f   : > { %v1055_v3 = vmul.f32 %v5189_v9, %v4745_v45  ;;  %v1060_v30 = vmul.f32 %v5201_v29, %v4762_v0 }
 0x270   : > { %v789_v21 = vadd.f32 %v787_v58, %v784_v14  ;;  %v920_v55 = vadd.f32 %v918_v31, %v915_v43  ;;  %v928_v31 = vmul.f32 %v5180_v53, %v4762_v0  ;;  %v802_v43 = vmul.f32 %v5147_v13, %v4770_v52  ;;  %v9349_v13 = vld [vmem:[#allocation197_spill] sm:$0xff] }
 0x271   : > { %v1057_v18 = vadd.f32 %v1055_v3, %v1052_v50 }
 0x272   : > { %v794_v34 = vadd.f32 %v792_v22, %v789_v21  ;;  %v925_v28 = vadd.f32 %v923_v16, %v920_v55  ;;  %v933_v22 = vmul.f32 %v5194_v17, %v4768_v47  ;;  %v1065_v55 = vmul.f32 %v5211_v35, %v4768_v47 }
 0x273   : > { %v1062_v21 = vadd.f32 %v1060_v30, %v1057_v18  ;;  %v807_v16 = vmul.f32 %v5158_v10, %v4778_v49 }
 0x274   : > { %v799_v58 = vadd.f32 %v797_v37, %v794_v34  ;;  %v930_v8 = vadd.f32 %v928_v31, %v925_v28  ;;  %v938_v31 = vmul.f32 %v5204_v51, %v4770_v52 }
 0x275   : > { %v1067_v3 = vadd.f32 %v1065_v55, %v1062_v21 }
 0x276   : > { %v804_v45 = vadd.f32 %v802_v43, %v799_v58  ;;  %v935_v0 = vadd.f32 %v933_v22, %v930_v8 }
 0x278   : > { %v809_v18 = vadd.f32 %v807_v16, %v804_v45  ;;  %v940_v43 = vadd.f32 %v938_v31, %v935_v0  ;;  %v1075_v45 = vmul.f32 %v5228_v48, %v4778_v49 }
 0x284   : > { %v5240_v46 = vpop.permute.xlu2 %1036 }
 0x285   : > { %v1039_v16 = vsel %vm3696_vm3, %v5240_v46, 0.0 }
 0x293   : > { %v851_v62 = vpop.permute.xlu2 %850 }
 0x2a0   : > { %v853_v32 = vpop.permute.xlu0 %852 }
 0x2a1   : > { %v1119_v34 = vpop.permute.xlu2 %1118  ;;  %v855_v55 = vsel %vm3692_vm2, %v853_v32, 0.0 }
 0x2a6   : > { %v769_v38 = vpop.permute.xlu1 %768 }
 0x2a7   : > { %v771_v37 = vsel %vm3696_vm3, %v769_v38, 0.0  ;;  %v854_v38 = vsel %vm3692_vm2, %v851_v62, 0.0 }
 0x2a8   : > { %v811_v30 = vadd.f32 %v809_v18, %v771_v37  ;;  %v1122_v37 = vsel %vm3692_vm2, %v1119_v34, 0.0 }
 0x2aa   : > { %v857_v0 = vadd.f32 %v855_v55, %v811_v30 }
 0x2ad   : > { %v989_v18 = vpop.permute.xlu2 %988 }
 0x2ae   : > { %v991_v46 = vsel %vm3692_vm2, %v989_v18, 0.0 }
 0x2af   : > { %v767_v61 = vpop.permute.xlu0 %766 }
 0x2b0   : > { %v770_v50 = vsel %vm3696_vm3, %v767_v61, 0.0  ;;  %v1070_v61 = vmul.f32 %v5221_v42, %v4770_v52 }
 0x2b1   : > { %v810_v58 = vadd.f32 %v5191_v24, %v770_v50  ;;  %v943_v24 = vmul.f32 %v5214_v26, %v4778_v49  ;;  %v9343_v26 = vld [vmem:[#allocation193_spill] sm:$0xff] }
 0x2b2   : > { %v905_v14 = vpop.permute.xlu1 %904  ;;  %v1072_v21 = vadd.f32 %v1070_v61, %v1067_v3  ;;  %v859_v61 = vrot.slane %v857_v0, 7 }
 0x2b3   : > { %v856_v22 = vadd.f32 %v854_v38, %v810_v58  ;;  %v907_v52 = vsel %vm3696_vm3, %v905_v14, 0.0  ;;  %v945_v62 = vadd.f32 %v943_v24, %v940_v43 }
 0x2b4   : > { %v1077_v3 = vadd.f32 %v1075_v45, %v1072_v21 }
 0x2b5   : > { %v858_v58 = vrot.slane %v856_v22, 7  ;;  %v947_v49 = vadd.f32 %v945_v62, %v907_v52 }
 0x2b6   : > { %v1079_v31 = vadd.f32 %v1077_v3, %v1039_v16  ;;  %v9342_v16 = vld [vmem:[#allocation192_spill] sm:$0xff] }
 0x2b7   : > { %v860_v34 = vsel %vm296_vm4, %v858_v58, %v859_v61 }
 0x2be   : > { %v903_v28 = vpop.permute.xlu0 %902 }
 0x2c1   : > { %v1035_v47 = vpop.permute.xlu1 %1034 }
 0x2c2   : > { %v1038_v8 = vsel %vm3696_vm3, %v1035_v47, 0.0 }
 0x2c3   : > { %v1078_v50 = vadd.f32 %v1076_v23, %v1038_v8  ;;  %v906_v23 = vsel %vm3696_vm3, %v903_v28, 0.0  ;;  %v993_v8 = vadd.f32 %v991_v46, %v947_v49  ;;  %v861_v28 = vsel %vm296_vm4, %v859_v61, %v858_v58  ;;  %v293_v58 = vld [vmem:[%s5331_s16 + $0x8] sm:$0xff] }
 0x2c4   : > { %v946_v21 = vadd.f32 %v5230_v44, %v906_v23  ;;  %v5322_v44 = vstv %s9314_s0  ;;  %v862_v62 = vsel %vm116_vm0, %v861_v28, 0.0  ;;  %v1142_v49 = vstv %s3992_s28  ;;  %v3450_v23 = vld [vmem:[%s4013_s15 + $0x8] sm:$0xff] }
 0x2c5   : > { %v1124_v47 = vadd.f32 %v1122_v37, %v1078_v50  ;;  %v995_v55 = vadd.f32 %v993_v8, %v860_v34  ;;  %9315 = vst [vmem:[#allocation321_spill] sm:$0xff] %v5322_v44  ;;  %v1139_v61 = vstv %s9317_s21  ;;  %v1144_v46 = vmul.f32 %v1142_v49, %v293_v58 }
 0x2c7   : > { %v1126_v38 = vrot.slane %v1124_v47, 1 }
 0x2ca   : > { %v1121_v32 = vpop.permute.xlu0 %1120 }
 0x2cb   : > { %v1123_v14 = vsel %vm3692_vm2, %v1121_v32, 0.0  ;;  %v292_v32 = vld [vmem:[%s5331_s16] sm:$0xff] }
 0x2cc   : > { %v1125_v30 = vadd.f32 %v1123_v14, %v1079_v31  ;;  %v1143_v8 = vmul.f32 %v1142_v49, %v292_v32 }
 0x2ce   : > { %v1127_v22 = vrot.slane %v1125_v30, 1  ;;  %v987_v24 = vpop.permute.xlu1 %986 }
 0x2cf   : > { %v990_v45 = vsel %vm3692_vm2, %v987_v24, 0.0 }
 0x2d0   : > { %v1129_v52 = vsel %vm551_vm5, %v1127_v22, %v1126_v38  ;;  %v992_v50 = vadd.f32 %v990_v45, %v946_v21  ;;  %v1128_v3 = vsel %vm551_vm5, %v1126_v38, %v1127_v22  ;;  %v3451_v21 = vld [vmem:[%s4013_s15] sm:$0xff]  ;;  %s9608_s15 = ssub.f32 1.0, %s3994_s6 }
 0x2d1   : > { %v1131_v0 = vsel %vm115_vm1, %v1129_v52, 0.0 }
 0x2d2   : > { %v1133_v37 = vadd.f32 %v1131_v0, %v995_v55  ;;  %v994_v18 = vadd.f32 %v992_v50, %v862_v62 }
 0x2d4   : > { %v1136_v31 = vadd.f32 %v5322_v44, %v1133_v37  ;;  %v1132_v47 = vadd.f32 %v1128_v3, %v994_v18 }
 0x2d6   : > { %v1138_v14 = vadd.f32 %v3450_v23, %v1136_v31  ;;  %v1135_v30 = vadd.f32 %v5322_v44, %v1132_v47  ;;  %v9320_v47 = vld [vmem:[#allocation216_spill] sm:$0xff] }
 0x2d8   : > { %v1141_v34 = vmul.f32 %v1139_v61, %v1138_v14  ;;  %v1137_v38 = vadd.f32 %v3451_v21, %v1135_v30  ;;  %v9326_v30 = vld [vmem:[#allocation218_spill] sm:$0xff] }
 0x2da   : > { %v5342_v22 = vadd.f32 %v1144_v46, %v1141_v34  ;;  %v1140_v28 = vmul.f32 %v1139_v61, %v1137_v38  ;;  %v9322_v61 = vld [vmem:[#allocation217_spill] sm:$0xff] }
 0x2dc   : > { %9318 = vst [vmem:[#allocation322_spill] sm:$0xff] %v5342_v22  ;;  %v5344_v24 = vadd.f32 %v1143_v8, %v1140_v28  ;;  %1247 = vrot.lane.b32.xlu2 %v5342_v22, %s9214_s5  ;;  %v1148_v45 = vrot.slane %v5342_v22, 7  ;;  %v1354_v3 = vrot.slane %v5342_v22, 1  ;;  %v5388_v14 = vmul.f32 %v5342_v22, %v9320_v47  ;;  %v9328_v8 = vld [vmem:[#allocation219_spill] sm:$0xff] }
 0x2dd   : > { %v5392_v46 = vmul.f32 %v5342_v22, %v9322_v61  ;;  %v5404_v38 = vmul.f32 %v5342_v22, %v9326_v30  ;;  %v5408_v28 = vmul.f32 %v5342_v22, %v9328_v8 }
 0x2de   : > { %9319 = vst [vmem:[#allocation323_spill] sm:$0xff] %v5344_v24  ;;  %1245 = vrot.lane.b32.xlu1 %v5344_v24, %s9214_s5  ;;  %v1147_v55 = vrot.slane %v5344_v24, 7  ;;  %v1353_v62 = vrot.slane %v5344_v24, 1  ;;  %v5380_v32 = vmul.f32 %v5344_v24, %v9320_v47  ;;  %v5384_v23 = vmul.f32 %v5344_v24, %v9322_v61  ;;  %v9338_v61 = vld [vmem:[#allocation226_spill] sm:$0xff] }
 0x2df   : > { %9324 = vst [vmem:[#allocation326_spill] sm:$0xff] %v5388_v14  ;;  %v5396_v34 = vmul.f32 %v5344_v24, %v9326_v30  ;;  %v5400_v21 = vmul.f32 %v5344_v24, %v9328_v8  ;;  %v5424_v30 = vmul.f32 %v5342_v22, %v9338_v61 }
 0x2e0   : > { %v1149_v52 = vsel %vm296_vm4, %v1147_v55, %v1148_v45  ;;  %v1150_v50 = vsel %vm296_vm4, %v1148_v45, %v1147_v55  ;;  %v1355_v37 = vsel %vm551_vm5, %v1353_v62, %v1354_v3  ;;  %v1356_v18 = vsel %vm551_vm5, %v1354_v3, %v1353_v62  ;;  %9321 = vst [vmem:[#allocation324_spill] sm:$0xff] %v5380_v32  ;;  %v9332_v45 = vld [vmem:[#allocation220_spill] sm:$0xff]  ;;  %v9336_v3 = vld [vmem:[#allocation222_spill] sm:$0xff]  ;;  %v9391_v32 = vld [vmem:[#allocation249_spill] sm:$0xff] }
 0x2e1   : > { %1209 = vrot.lane.b32.xlu0 %v1149_v52, %s9218_s12  ;;  %v1151_v0 = vsel %vm116_vm0, %v1150_v50, 0.0  ;;  %v1358_v58 = vsel %vm115_vm1, %v1356_v18, 0.0  ;;  %9323 = vst [vmem:[#allocation325_spill] sm:$0xff] %v5384_v23  ;;  %v5412_v55 = vmul.f32 %v5342_v22, %v9332_v45  ;;  %v9334_v50 = vld [vmem:[#allocation221_spill] sm:$0xff]  ;;  %v5420_v18 = vmul.f32 %v5342_v22, %v9336_v3 }
 0x2e2   : > { %9325 = vst [vmem:[#allocation327_spill] sm:$0xff] %v5392_v46  ;;  %v5416_v62 = vmul.f32 %v5342_v22, %v9334_v50  ;;  %v5428_v8 = vmul.f32 %v5344_v24, %v9332_v45  ;;  %v5432_v47 = vmul.f32 %v5344_v24, %v9334_v50  ;;  %v5435_v43 = vmul.f32 %v1149_v52, %v9342_v16  ;;  %v9346_v45 = vld [vmem:[#allocation194_spill] sm:$0xff]  ;;  %v9347_v50 = vld [vmem:[#allocation195_spill] sm:$0xff] }
 0x2e3   : > { %9327 = vst [vmem:[#allocation328_spill] sm:$0xff] %v5396_v34  ;;  %v5438_v51 = vmul.f32 %v1149_v52, %v9343_v26  ;;  %v5442_v17 = vmul.f32 %v5344_v24, %v9336_v3  ;;  %v5449_v53 = vmul.f32 %v1149_v52, %v9346_v45  ;;  %v5452_v11 = vmul.f32 %v1149_v52, %v9347_v50  ;;  %v9351_v3 = vld [vmem:[#allocation202_spill] sm:$0xff]  ;;  %v9397_v46 = vld [vmem:[#allocation227_spill] sm:$0xff] }
 0x2e4   : > { %1207 = vrot.lane.b32.xlu2 %v1151_v0, %s9218_s12  ;;  %9329 = vst [vmem:[#allocation329_spill] sm:$0xff] %v5400_v21  ;;  %v5455_v10 = vmul.f32 %v1149_v52, %v9348_v63  ;;  %v5458_v25 = vmul.f32 %v1149_v52, %v9349_v13  ;;  %v5461_v48 = vmul.f32 %v1149_v52, %v9350_v4  ;;  %v9389_v34 = vld [vmem:[#allocation186_spill] sm:$0xff] }
 0x2e5   : > { %9330 = vst [vmem:[#allocation330_spill] sm:$0xff] %v5404_v38  ;;  %v5464_v19 = vmul.f32 %v1149_v52, %v9351_v3  ;;  %v5473_v42 = vmul.f32 %v1151_v0, %v9346_v45  ;;  %v5476_v35 = vmul.f32 %v1151_v0, %v9347_v50  ;;  %v5479_v29 = vmul.f32 %v1151_v0, %v9348_v63 }
 0x2e6   : > { %1155 = vrot.lane.b32.xlu1 %v1149_v52, %s9214_s5  ;;  %9331 = vst [vmem:[#allocation331_spill] sm:$0xff] %v5408_v28  ;;  %v5482_v39 = vmul.f32 %v1151_v0, %v9349_v13  ;;  %v5485_v52 = vmul.f32 %v1151_v0, %v9350_v4  ;;  %v5494_v45 = vmul.f32 %v1355_v37, %v4565_v41  ;;  %v9395_v28 = vld [vmem:[#allocation215_spill] sm:$0xff] }
 0x2e7   : > { %9333 = vst [vmem:[#allocation332_spill] sm:$0xff] %v5412_v55  ;;  %v5497_v50 = vmul.f32 %v1355_v37, %v4568_v15  ;;  %v5500_v63 = vmul.f32 %v1355_v37, %v9162_v20  ;;  %v5503_v13 = vmul.f32 %v1355_v37, %v9163_v57  ;;  %v5506_v4 = vmul.f32 %v1355_v37, %v9164_v60 }
 0x2e8   : > { %9335 = vst [vmem:[#allocation333_spill] sm:$0xff] %v5416_v62  ;;  %v5514_v2 = vmul.f32 %v1355_v37, %v9360_v12  ;;  %v5517_v36 = vmul.f32 %v1358_v58, %v4562_v33  ;;  %v5520_v59 = vmul.f32 %v1358_v58, %v4565_v41  ;;  %v5523_v7 = vmul.f32 %v1358_v58, %v4568_v15  ;;  %v9370_v15 = vld [vmem:[#allocation171_spill] sm:$0xff] }
 0x2e9   : > { %1153 = vrot.lane.b32.xlu0 %v1151_v0, %s9214_s5  ;;  %9337 = vst [vmem:[#allocation334_spill] sm:$0xff] %v5420_v18  ;;  %v5526_v27 = vmul.f32 %v1358_v58, %v9162_v20  ;;  %v5540_v41 = vmul.f32 %v1358_v58, %v9360_v12  ;;  %v9371_v20 = vld [vmem:[#allocation172_spill] sm:$0xff]  ;;  %v9393_v18 = vld [vmem:[#allocation250_spill] sm:$0xff] }
 0x2ea   : > { %9339 = vst [vmem:[#allocation335_spill] sm:$0xff] %v5424_v30 }
 0x2eb   : > { %9340 = vst [vmem:[#allocation336_spill] sm:$0xff] %v5428_v8  ;;  %v9387_v8 = vld [vmem:[#allocation185_spill] sm:$0xff] }
 0x2ec   : > { %1359 = vrot.lane.b32.xlu2 %v1355_v37, %s9214_s5  ;;  %9341 = vst [vmem:[#allocation337_spill] sm:$0xff] %v5432_v47 }
 0x2ed   : > { %9344 = vst [vmem:[#allocation338_spill] sm:$0xff] %v5442_v17 }
 0x2ee   : > { %1317 = vrot.lane.b32.xlu1 %v5342_v22, %s9218_s12  ;;  %v5446_v22 = vmul.f32 %v5344_v24, %v9338_v61  ;;  %v5467_v61 = vmul.f32 %v1151_v0, %v9342_v16  ;;  %v5488_v16 = vmul.f32 %v1151_v0, %v9351_v3  ;;  %9353 = vst [vmem:[#allocation341_spill] sm:$0xff] %v5494_v45  ;;  %v9358_v3 = vld [vmem:[#allocation235_spill] sm:$0xff]  ;;  %v9382_v45 = vld [vmem:[#allocation182_spill] sm:$0xff] }
 0x2ef   : > { %9354 = vst [vmem:[#allocation342_spill] sm:$0xff] %v5497_v50  ;;  %v5511_v9 = vmul.f32 %v1355_v37, %v9358_v3 }
 0x2f0   : > { %9345 = vst [vmem:[#allocation339_spill] sm:$0xff] %v5446_v22  ;;  %v9383_v22 = vld [vmem:[#allocation183_spill] sm:$0xff] }
 0x2f1   : > { %1315 = vrot.lane.b32.xlu0 %v5344_v24, %s9218_s12  ;;  %v5470_v24 = vmul.f32 %v1151_v0, %v9343_v26  ;;  %v5491_v26 = vmul.f32 %v1355_v37, %v4562_v33  ;;  %9355 = vst [vmem:[#allocation343_spill] sm:$0xff] %v5500_v63  ;;  %v5537_v33 = vmul.f32 %v1358_v58, %v9358_v3  ;;  %v9375_v3 = vld [vmem:[#allocation176_spill] sm:$0xff]  ;;  %v9381_v63 = vld [vmem:[#allocation181_spill] sm:$0xff] }
 0x2f2   : > { %9356 = vst [vmem:[#allocation344_spill] sm:$0xff] %v5503_v13 }
 0x2f3   : > { %9352 = vst [vmem:[#allocation340_spill] sm:$0xff] %v5491_v26 }
 0x2f4   : > { %1431 = vrot.lane.b32.xlu2 %v1358_v58, %s9218_s12  ;;  %9357 = vst [vmem:[#allocation345_spill] sm:$0xff] %v5506_v4  ;;  %v9380_v4 = vld [vmem:[#allocation180_spill] sm:$0xff] }
 0x2f5   : > { %9359 = vst [vmem:[#allocation346_spill] sm:$0xff] %v5511_v9 }
 0x2f6   : > { %1429 = vrot.lane.b32.xlu1 %v1355_v37, %s9218_s12  ;;  %9361 = vst [vmem:[#allocation347_spill] sm:$0xff] %v5514_v2  ;;  %v5534_v37 = vmul.f32 %v1358_v58, %v9164_v60  ;;  %v9379_v2 = vld [vmem:[#allocation179_spill] sm:$0xff] }
 0x2f7   : > { %9362 = vst [vmem:[#allocation348_spill] sm:$0xff] %v5517_v36 }
 0x2f8   : > { %9363 = vst [vmem:[#allocation349_spill] sm:$0xff] %v5520_v59  ;;  %v9377_v59 = vld [vmem:[#allocation178_spill] sm:$0xff] }
 0x2f9   : > { %1361 = vrot.lane.b32.xlu0 %v1358_v58, %s9214_s5  ;;  %9364 = vst [vmem:[#allocation350_spill] sm:$0xff] %v5523_v7 }
 0x2fa   : > { %9365 = vst [vmem:[#allocation351_spill] sm:$0xff] %v5526_v27 }
 0x2fb   : > { %9367 = vst [vmem:[#allocation353_spill] sm:$0xff] %v5534_v37  ;;  %v9374_v37 = vld [vmem:[#allocation175_spill] sm:$0xff] }
 0x2fc   : > { %9368 = vst [vmem:[#allocation354_spill] sm:$0xff] %v5537_v33 }
 0x2fd   : > { %9369 = vst [vmem:[#allocation355_spill] sm:$0xff] %v5540_v41 }
 0x336   : > { %v1248_v49 = vpop.permute.xlu2 %1247 }
 0x337   : > { %v1250_v0 = vsel %vm3696_vm3, %v1248_v49, 0.0  ;;  %v5529_v49 = vmul.f32 %v1358_v58, %v9163_v57  ;;  %v9372_v57 = vld [vmem:[#allocation173_spill] sm:$0xff] }
 0x338   : > { %v5543_v54 = vmul.f32 %v1250_v0, %v9370_v15  ;;  %v5546_v40 = vmul.f32 %v1250_v0, %v9371_v20  ;;  %v5549_v56 = vmul.f32 %v1250_v0, %v9372_v57  ;;  %v5555_v27 = vmul.f32 %v1250_v0, %v9374_v37  ;;  %v9376_v58 = vld [vmem:[#allocation177_spill] sm:$0xff] }
 0x339   : > { %9366 = vst [vmem:[#allocation352_spill] sm:$0xff] %v5529_v49  ;;  %v9373_v49 = vld [vmem:[#allocation174_spill] sm:$0xff]  ;;  %v5558_v33 = vmul.f32 %v1250_v0, %v9375_v3  ;;  %v5561_v12 = vmul.f32 %v1250_v0, %v9376_v58  ;;  %v5566_v36 = vmul.f32 %v1250_v0, %v9377_v59 }
 0x33b   : > { %9378 = vst [vmem:[#allocation356_spill] sm:$0xff] %v5566_v36 }
 0x33e   : > { %v1208_v31 = vpop.permute.xlu2 %1207 }
 0x33f   : > { %v1211_v1 = vsel %vm3692_vm2, %v1208_v31, 0.0  ;;  %v5552_v31 = vmul.f32 %v1250_v0, %v9373_v49 }
 0x340   : > { %v5569_v9 = vmul.f32 %v1211_v1, %v9379_v2  ;;  %v5572_v13 = vmul.f32 %v1211_v1, %v9380_v4  ;;  %v5575_v50 = vmul.f32 %v1211_v1, %v9381_v63  ;;  %v5578_v26 = vmul.f32 %v1211_v1, %v9382_v45 }
 0x341   : > { %v5581_v17 = vmul.f32 %v1211_v1, %v9383_v22  ;;  %v5589_v21 = vmul.f32 %v1211_v1, %v9387_v8  ;;  %v5592_v23 = vmul.f32 %v1211_v1, %v9389_v34 }
 0x343   : > { %9384 = vst [vmem:[#allocation180_spill] sm:$0xff] %v5581_v17 }
 0x344   : > { %9388 = vst [vmem:[#allocation358_spill] sm:$0xff] %v5589_v21 }
 0x345   : > { %9390 = vst [vmem:[#allocation359_spill] sm:$0xff] %v5592_v23  ;;  %v9401_v23 = vld [vmem:[#allocation224_spill] sm:$0xff] }
 0x346   : > { %v1360_v44 = vpop.permute.xlu2 %1359 }
 0x347   : > { %v1363_v41 = vsel %vm3696_vm3, %v1360_v44, 0.0  ;;  %v9385_v44 = vld [vmem:[#allocation184_spill] sm:$0xff] }
 0x348   : > { %v5584_v47 = vmul.f32 %v1211_v1, %v9385_v44  ;;  %v5595_v30 = vmul.f32 %v1363_v41, %v9391_v32  ;;  %v5598_v62 = vmul.f32 %v1363_v41, %v9393_v18  ;;  %v5601_v38 = vmul.f32 %v1363_v41, %v9395_v28  ;;  %v9403_v32 = vld [vmem:[#allocation225_spill] sm:$0xff]  ;;  %v9405_v18 = vld [vmem:[#allocation228_spill] sm:$0xff] }
 0x349   : > { %v5604_v14 = vmul.f32 %v1363_v41, %v9397_v46  ;;  %v5612_v21 = vmul.f32 %v1363_v41, %v9401_v23  ;;  %v9407_v28 = vld [vmem:[#allocation204_spill] sm:$0xff]  ;;  %v9409_v46 = vld [vmem:[#allocation205_spill] sm:$0xff] }
 0x34a   : > { %9386 = vst [vmem:[#allocation357_spill] sm:$0xff] %v5584_v47  ;;  %v9413_v47 = vld [vmem:[#allocation207_spill] sm:$0xff]  ;;  %v9415_v23 = vld [vmem:[#allocation208_spill] sm:$0xff] }
 0x34b   : > { %9392 = vst [vmem:[#allocation360_spill] sm:$0xff] %v5595_v30  ;;  %v5615_v30 = vmul.f32 %v1363_v41, %v9403_v32 }
 0x34c   : > { %9394 = vst [vmem:[#allocation361_spill] sm:$0xff] %v5598_v62  ;;  %v5618_v62 = vmul.f32 %v1363_v41, %v9405_v18  ;;  %v9419_v18 = vld [vmem:[#allocation209_spill] sm:$0xff] }
 0x34d   : > { %9396 = vst [vmem:[#allocation362_spill] sm:$0xff] %v5601_v38 }
 0x34e   : > { %v1432_v60 = vpop.permute.xlu2 %1431  ;;  %9398 = vst [vmem:[#allocation363_spill] sm:$0xff] %v5604_v14 }
 0x34f   : > { %v1434_v0 = vsel %vm3692_vm2, %v1432_v60, 0.0  ;;  %v9399_v60 = vld [vmem:[#allocation223_spill] sm:$0xff]  ;;  %9402 = vst [vmem:[#allocation365_spill] sm:$0xff] %v5612_v21 }
 0x350   : > { %v1246_v7 = vpop.permute.xlu1 %1245  ;;  %v5607_v36 = vmul.f32 %v1363_v41, %v9399_v60  ;;  %9404 = vst [vmem:[#allocation366_spill] sm:$0xff] %v5615_v30  ;;  %v5621_v38 = vmul.f32 %v1434_v0, %v9407_v28  ;;  %v5624_v14 = vmul.f32 %v1434_v0, %v9409_v46  ;;  %v9411_v60 = vld [vmem:[#allocation206_spill] sm:$0xff]  ;;  %v5633_v21 = vmul.f32 %v1434_v0, %v9415_v23  ;;  %v9435_v30 = vld [vmem:[#allocation191_spill] sm:$0xff] }
 0x351   : > { %v1249_v1 = vsel %vm3696_vm3, %v1246_v7, 0.0  ;;  %9406 = vst [vmem:[#allocation367_spill] sm:$0xff] %v5618_v62  ;;  %v5630_v7 = vmul.f32 %v1434_v0, %v9413_v47  ;;  %v9421_v46 = vld [vmem:[#allocation210_spill] sm:$0xff] }
 0x352   : > { %9400 = vst [vmem:[#allocation364_spill] sm:$0xff] %v5607_v36  ;;  %v5627_v36 = vmul.f32 %v1434_v0, %v9411_v60  ;;  %v5636_v32 = vmul.f32 %v1249_v1, %v9370_v15  ;;  %v5639_v41 = vmul.f32 %v1249_v1, %v9371_v20  ;;  %v5657_v15 = vmul.f32 %v1249_v1, %v9375_v3  ;;  %v9432_v3 = vld [vmem:[#allocation188_spill] sm:$0xff]  ;;  %v9433_v60 = vld [vmem:[#allocation189_spill] sm:$0xff] }
 0x353   : > { %v1210_v55 = vpop.permute.xlu0 %1209  ;;  %9408 = vst [vmem:[#allocation368_spill] sm:$0xff] %v5621_v38  ;;  %v5642_v38 = vmul.f32 %v1434_v0, %v9419_v18  ;;  %v5660_v23 = vmul.f32 %v1249_v1, %v9376_v58  ;;  %v9434_v58 = vld [vmem:[#allocation190_spill] sm:$0xff] }
 0x354   : > { %9410 = vst [vmem:[#allocation369_spill] sm:$0xff] %v5624_v14  ;;  %v5645_v14 = vmul.f32 %v1434_v0, %v9421_v46 }
 0x355   : > { %9412 = vst [vmem:[#allocation370_spill] sm:$0xff] %v5627_v36  ;;  %v5648_v36 = vmul.f32 %v1249_v1, %v9372_v57  ;;  %v1212_v57 = vsel %vm3692_vm2, %v1210_v55, 0.0 }
 0x356   : > { %9414 = vst [vmem:[#allocation371_spill] sm:$0xff] %v5630_v7  ;;  %v5651_v7 = vmul.f32 %v1249_v1, %v9373_v49  ;;  %v1234_v5 = vmul.f32 %v1212_v57, %v9385_v44  ;;  %v1238_v17 = vmul.f32 %v1212_v57, %v9387_v8 }
 0x357   : > { %9416 = vst [vmem:[#allocation372_spill] sm:$0xff] %v5633_v21  ;;  %v5654_v21 = vmul.f32 %v1249_v1, %v9374_v37  ;;  %v9431_v37 = vld [vmem:[#allocation187_spill] sm:$0xff] }
 0x358   : > { %9417 = vst [vmem:[#allocation373_spill] sm:$0xff] %v5636_v32  ;;  %v1156_v20 = vpop.permute.xlu1 %1155 }
 0x359   : > { %9418 = vst [vmem:[#allocation374_spill] sm:$0xff] %v5639_v41  ;;  %v1158_v49 = vsel %vm3696_vm3, %v1156_v20, 0.0  ;;  %v9438_v20 = vld [vmem:[#allocation201_spill] sm:$0xff]  ;;  %v1230_v41 = vmul.f32 %v1212_v57, %v9383_v22 }
 0x35a   : > { %9420 = vst [vmem:[#allocation375_spill] sm:$0xff] %v5642_v38  ;;  %v5663_v38 = vmul.f32 %v1249_v1, %v9377_v59  ;;  %v1160_v18 = vmul.f32 %v1158_v49, %v9431_v37  ;;  %v1162_v47 = vmul.f32 %v1158_v49, %v9432_v3  ;;  %v1164_v28 = vmul.f32 %v1158_v49, %v9433_v60  ;;  %v9436_v59 = vld [vmem:[#allocation199_spill] sm:$0xff] }
 0x35b   : > { %9422 = vst [vmem:[#allocation376_spill] sm:$0xff] %v5645_v14  ;;  %v9429_v14 = vld [vmem:[#allocation244_spill] sm:$0xff]  ;;  %v1166_v62 = vmul.f32 %v1158_v49, %v9434_v58  ;;  %v1168_v1 = vmul.f32 %v1158_v49, %v9435_v30  ;;  %v1154_v32 = vpop.permute.xlu0 %1153 }
 0x35c   : > { %9423 = vst [vmem:[#allocation377_spill] sm:$0xff] %v5648_v36  ;;  %v5670_v46 = vmul.f32 %v1434_v0, %v9429_v14  ;;  %v1178_v0 = vadd.f32 %v5435_v43, %v1160_v18  ;;  %v1218_v14 = vmul.f32 %v1212_v57, %v9380_v4  ;;  %v1226_v36 = vmul.f32 %v1212_v57, %v9382_v45 }
 0x35d   : > { %9424 = vst [vmem:[#allocation378_spill] sm:$0xff] %v5651_v7  ;;  %v1222_v7 = vmul.f32 %v1212_v57, %v9381_v63  ;;  %v1190_v43 = vadd.f32 %v5452_v11, %v1166_v62  ;;  %v1157_v44 = vsel %vm3696_vm3, %v1154_v32, 0.0 }
 0x35e   : > { %9425 = vst [vmem:[#allocation379_spill] sm:$0xff] %v5654_v21  ;;  %v1174_v21 = vmul.f32 %v1158_v49, %v9438_v20  ;;  %v1159_v8 = vmul.f32 %v1157_v44, %v9431_v37  ;;  %v1165_v11 = vmul.f32 %v1157_v44, %v9434_v58  ;;  %v9518_v37 = vld [vmem:[#allocation349_spill] sm:$0xff] }
 0x35f   : > { %9426 = vst [vmem:[#allocation380_spill] sm:$0xff] %v5657_v15  ;;  %v1214_v15 = vmul.f32 %v1212_v57, %v9379_v2  ;;  %v1242_v2 = vmul.f32 %v1212_v57, %v9389_v34  ;;  %v1161_v57 = vmul.f32 %v1157_v44, %v9432_v3  ;;  %v9554_v34 = vld [vmem:[#allocation270_spill] sm:$0xff] }
 0x360   : > { %9427 = vst [vmem:[#allocation381_spill] sm:$0xff] %v5660_v23  ;;  %v9437_v23 = vld [vmem:[#allocation200_spill] sm:$0xff]  ;;  %v1206_v45 = vadd.f32 %v5464_v19, %v1174_v21  ;;  %v1177_v32 = vadd.f32 %v5467_v61, %v1159_v8 }
 0x361   : > { %9428 = vst [vmem:[#allocation382_spill] sm:$0xff] %v5663_v38  ;;  %v1170_v38 = vmul.f32 %v1158_v49, %v9436_v59  ;;  %v1172_v55 = vmul.f32 %v1158_v49, %v9437_v23  ;;  %v1186_v49 = vadd.f32 %v5449_v53, %v1164_v28  ;;  %v1216_v22 = vadd.f32 %v1214_v15, %v1178_v0  ;;  %v9441_v8 = vld [vmem:[#allocation356_spill] sm:$0xff] }
 0x362   : > { %9430 = vst [vmem:[#allocation383_spill] sm:$0xff] %v5670_v46  ;;  %v1182_v46 = vadd.f32 %v5438_v51, %v1162_v47  ;;  %v1194_v51 = vadd.f32 %v5455_v10, %v1168_v1  ;;  %v1163_v53 = vmul.f32 %v1157_v44, %v9433_v60  ;;  %v1167_v10 = vmul.f32 %v1157_v44, %v9435_v30  ;;  %v9517_v60 = vld [vmem:[#allocation348_spill] sm:$0xff] }
 0x363   : > { %v1198_v47 = vadd.f32 %v5458_v25, %v1170_v38  ;;  %v1202_v18 = vadd.f32 %v5461_v48, %v1172_v55  ;;  %v1169_v25 = vmul.f32 %v1157_v44, %v9436_v59  ;;  %v1171_v48 = vmul.f32 %v1157_v44, %v9437_v23  ;;  %v1318_v59 = vpop.permute.xlu1 %1317 }
 0x364   : > { %v1220_v63 = vadd.f32 %v1218_v14, %v1182_v46  ;;  %v1173_v15 = vmul.f32 %v1157_v44, %v9438_v20  ;;  %v1224_v19 = vadd.f32 %v1222_v7, %v1186_v49  ;;  %v1228_v14 = vadd.f32 %v1226_v36, %v1190_v43  ;;  %v9444_v7 = vld [vmem:[#allocation326_spill] sm:$0xff] }
 0x365   : > { %v1232_v46 = vadd.f32 %v1230_v41, %v1194_v51  ;;  %v1236_v21 = vadd.f32 %v1234_v5, %v1198_v47  ;;  %v1240_v38 = vadd.f32 %v1238_v17, %v1202_v18  ;;  %v1181_v28 = vadd.f32 %v5470_v24, %v1161_v57  ;;  %v9449_v51 = vld [vmem:[#allocation332_spill] sm:$0xff]  ;;  %v9450_v18 = vld [vmem:[#allocation333_spill] sm:$0xff] }
 0x366   : > { %v1185_v62 = vadd.f32 %v5473_v42, %v1163_v53  ;;  %v1244_v1 = vadd.f32 %v1242_v2, %v1206_v45  ;;  %v1189_v55 = vadd.f32 %v5476_v35, %v1165_v11  ;;  %v1193_v0 = vadd.f32 %v5479_v29, %v1167_v10  ;;  %v9442_v45 = vld [vmem:[#allocation358_spill] sm:$0xff] }
 0x367   : > { %v1197_v23 = vadd.f32 %v5482_v39, %v1169_v25  ;;  %v1201_v44 = vadd.f32 %v5485_v52, %v1171_v48  ;;  %v1205_v36 = vadd.f32 %v5488_v16, %v1173_v15  ;;  %v1254_v61 = vadd.f32 %v5543_v54, %v1216_v22  ;;  %v9439_v22 = vld [vmem:[#allocation180_spill] sm:$0xff]  ;;  %v9451_v53 = vld [vmem:[#allocation334_spill] sm:$0xff]  ;;  %v9454_v15 = vld [vmem:[#allocation335_spill] sm:$0xff] }
 0x368   : > { %v1258_v5 = vadd.f32 %v5546_v40, %v1220_v63  ;;  %v1215_v17 = vadd.f32 %v5569_v9, %v1177_v32  ;;  %v1262_v42 = vadd.f32 %v5549_v56, %v1224_v19  ;;  %v1266_v2 = vadd.f32 %v5552_v31, %v1228_v14  ;;  %v9440_v63 = vld [vmem:[#allocation357_spill] sm:$0xff]  ;;  %v9443_v31 = vld [vmem:[#allocation359_spill] sm:$0xff]  ;;  %v9453_v25 = vld [vmem:[#allocation374_spill] sm:$0xff] }
 0x369   : > { %v1270_v35 = vadd.f32 %v5555_v27, %v1232_v46  ;;  %v1219_v29 = vadd.f32 %v5572_v13, %v1181_v28  ;;  %v1223_v39 = vadd.f32 %v5575_v50, %v1185_v62  ;;  %v1274_v24 = vadd.f32 %v5558_v33, %v1236_v21  ;;  %v9455_v14 = vld [vmem:[#allocation236_spill] sm:$0xff]  ;;  %v9456_v32 = vld [vmem:[#allocation237_spill] sm:$0xff]  ;;  %v9458_v62 = vld [vmem:[#allocation239_spill] sm:$0xff] }
 0x36a   : > { %v1278_v16 = vadd.f32 %v5561_v12, %v1240_v38  ;;  %v1227_v54 = vadd.f32 %v5578_v26, %v1189_v55  ;;  %v1231_v40 = vadd.f32 %v9439_v22, %v1193_v0  ;;  %v1235_v9 = vadd.f32 %v9440_v63, %v1197_v23  ;;  %v9446_v12 = vld [vmem:[#allocation327_spill] sm:$0xff]  ;;  %v9447_v26 = vld [vmem:[#allocation330_spill] sm:$0xff]  ;;  %v9459_v55 = vld [vmem:[#allocation240_spill] sm:$0xff]  ;;  %v1316_v63 = vpop.permute.xlu0 %1315 }
 0x36b   : > { %v1282_v56 = vadd.f32 %v9441_v8, %v1244_v1  ;;  %v1239_v52 = vadd.f32 %v9442_v45, %v1201_v44  ;;  %v1243_v27 = vadd.f32 %v9443_v31, %v1205_v36  ;;  %v5731_v13 = vadd.f32 %v9444_v7, %v1254_v61  ;;  %v9448_v23 = vld [vmem:[#allocation331_spill] sm:$0xff]  ;;  %v9457_v38 = vld [vmem:[#allocation238_spill] sm:$0xff]  ;;  %v9460_v44 = vld [vmem:[#allocation241_spill] sm:$0xff]  ;;  %v1430_v8 = vpop.permute.xlu1 %1429 }
 0x36c   : > { %v5735_v33 = vsel %vm3692_vm2, %v1318_v59, 0.0  ;;  %v5738_v41 = vadd.f32 %v9446_v12, %v1258_v5  ;;  %v5741_v49 = vadd.f32 %v9447_v26, %v1262_v42  ;;  %v5744_v43 = vadd.f32 %v9448_v23, %v1266_v2  ;;  %v9452_v59 = vld [vmem:[#allocation373_spill] sm:$0xff]  ;;  %v9461_v61 = vld [vmem:[#allocation242_spill] sm:$0xff]  ;;  %v9468_v12 = vld [vmem:[#allocation324_spill] sm:$0xff] }
 0x36d   : > { %v5747_v47 = vadd.f32 %v9449_v51, %v1270_v35  ;;  %v5750_v57 = vadd.f32 %v9450_v18, %v1274_v24  ;;  %v5753_v11 = vadd.f32 %v9451_v53, %v1278_v16  ;;  %v1253_v10 = vadd.f32 %v9452_v59, %v1215_v17  ;;  %v9462_v17 = vld [vmem:[#allocation377_spill] sm:$0xff]  ;;  %v9463_v2 = vld [vmem:[#allocation378_spill] sm:$0xff]  ;;  %v9465_v16 = vld [vmem:[#allocation380_spill] sm:$0xff] }
 0x36e   : > { %v1257_v48 = vadd.f32 %v9453_v25, %v1219_v29  ;;  %v5758_v19 = vadd.f32 %v9454_v15, %v1282_v56  ;;  %v5762_v46 = vmul.f32 %v5735_v33, %v9455_v14  ;;  %v5766_v21 = vmul.f32 %v5735_v33, %v9456_v32  ;;  %v9464_v29 = vld [vmem:[#allocation379_spill] sm:$0xff]  ;;  %v9466_v56 = vld [vmem:[#allocation381_spill] sm:$0xff]  ;;  %v9467_v31 = vld [vmem:[#allocation382_spill] sm:$0xff] }
 0x36f   : > { %v5770_v28 = vmul.f32 %v5735_v33, %v9457_v38  ;;  %v5774_v1 = vmul.f32 %v5735_v33, %v9458_v62  ;;  %v5778_v0 = vmul.f32 %v5735_v33, %v9459_v55  ;;  %v5782_v36 = vmul.f32 %v5735_v33, %v9460_v44  ;;  %v9469_v23 = vld [vmem:[#allocation325_spill] sm:$0xff]  ;;  %v9470_v18 = vld [vmem:[#allocation328_spill] sm:$0xff] }
 0x370   : > { %v5786_v5 = vmul.f32 %v5735_v33, %v9461_v61  ;;  %v1261_v42 = vadd.f32 %v9462_v17, %v1223_v39  ;;  %v1265_v35 = vadd.f32 %v9463_v2, %v1227_v54  ;;  %v1269_v24 = vadd.f32 %v9464_v29, %v1231_v40  ;;  %v9471_v59 = vld [vmem:[#allocation329_spill] sm:$0xff]  ;;  %v9472_v25 = vld [vmem:[#allocation336_spill] sm:$0xff]  ;;  %v9474_v17 = vld [vmem:[#allocation338_spill] sm:$0xff] }
 0x371   : > { %v1273_v22 = vadd.f32 %v9465_v16, %v1235_v9  ;;  %v1277_v45 = vadd.f32 %v9466_v56, %v1239_v52  ;;  %v1281_v7 = vadd.f32 %v9467_v31, %v1243_v27  ;;  %v1285_v26 = vadd.f32 %v9468_v12, %v1253_v10  ;;  %v9473_v15 = vld [vmem:[#allocation337_spill] sm:$0xff]  ;;  %v9475_v2 = vld [vmem:[#allocation339_spill] sm:$0xff] }
 0x372   : > { %v1289_v51 = vadd.f32 %v9469_v23, %v1257_v48  ;;  %v1293_v53 = vadd.f32 %v9470_v18, %v1261_v42  ;;  %v1297_v39 = vadd.f32 %v9471_v59, %v1265_v35  ;;  %v1301_v54 = vadd.f32 %v9472_v25, %v1269_v24  ;;  %v9476_v56 = vld [vmem:[#allocation243_spill] sm:$0xff]  ;;  %v9477_v25 = vld [vmem:[#allocation360_spill] sm:$0xff] }
 0x373   : > { %v1305_v40 = vadd.f32 %v9473_v15, %v1273_v22  ;;  %v1309_v9 = vadd.f32 %v9474_v17, %v1277_v45  ;;  %v1313_v29 = vadd.f32 %v9475_v2, %v1281_v7  ;;  %v1319_v52 = vsel %vm3692_vm2, %v1316_v63, 0.0  ;;  %v9478_v17 = vld [vmem:[#allocation361_spill] sm:$0xff] }
 0x374   : > { %v1433_v27 = vsel %vm3692_vm2, %v1430_v8, 0.0  ;;  %v1321_v10 = vmul.f32 %v1319_v52, %v9455_v14  ;;  %v1325_v48 = vmul.f32 %v1319_v52, %v9456_v32  ;;  %v1329_v42 = vmul.f32 %v1319_v52, %v9457_v38  ;;  %v9480_v38 = vld [vmem:[#allocation363_spill] sm:$0xff]  ;;  %v9481_v32 = vld [vmem:[#allocation364_spill] sm:$0xff]  ;;  %v9482_v14 = vld [vmem:[#allocation365_spill] sm:$0xff] }
 0x375   : > { %v1333_v35 = vmul.f32 %v1319_v52, %v9458_v62  ;;  %v1337_v24 = vmul.f32 %v1319_v52, %v9459_v55  ;;  %v1341_v16 = vmul.f32 %v1319_v52, %v9460_v44  ;;  %v1345_v22 = vmul.f32 %v1319_v52, %v9461_v61  ;;  %v9479_v62 = vld [vmem:[#allocation362_spill] sm:$0xff] }
 0x376   : > { %v1349_v45 = vmul.f32 %v1319_v52, %v9476_v56  ;;  %v1323_v63 = vadd.f32 %v1321_v10, %v1285_v26  ;;  %v1327_v31 = vadd.f32 %v1325_v48, %v1289_v51  ;;  %v1331_v7 = vadd.f32 %v1329_v42, %v1293_v53  ;;  %v9483_v26 = vld [vmem:[#allocation366_spill] sm:$0xff]  ;;  %v9484_v53 = vld [vmem:[#allocation367_spill] sm:$0xff] }
 0x377   : > { %v1335_v8 = vadd.f32 %v1333_v35, %v1297_v39  ;;  %v1339_v12 = vadd.f32 %v1337_v24, %v1301_v54  ;;  %v1343_v23 = vadd.f32 %v1341_v16, %v1305_v40  ;;  %v1347_v18 = vadd.f32 %v1345_v22, %v1309_v9  ;;  %v9485_v54 = vld [vmem:[#allocation340_spill] sm:$0xff]  ;;  %v9486_v9 = vld [vmem:[#allocation341_spill] sm:$0xff]  ;;  %v9487_v10 = vld [vmem:[#allocation342_spill] sm:$0xff] }
 0x378   : > { %v1351_v59 = vadd.f32 %v1349_v45, %v1313_v29  ;;  %v1367_v15 = vadd.f32 %v9477_v25, %v1323_v63  ;;  %v1371_v2 = vadd.f32 %v9478_v17, %v1327_v31  ;;  %v1375_v55 = vadd.f32 %v9479_v62, %v1331_v7  ;;  %v9488_v42 = vld [vmem:[#allocation343_spill] sm:$0xff]  ;;  %v9489_v24 = vld [vmem:[#allocation344_spill] sm:$0xff]  ;;  %v9490_v16 = vld [vmem:[#allocation345_spill] sm:$0xff] }
 0x379   : > { %v1379_v44 = vadd.f32 %v9480_v38, %v1335_v8  ;;  %v1383_v61 = vadd.f32 %v9481_v32, %v1339_v12  ;;  %v1387_v52 = vadd.f32 %v9482_v14, %v1343_v23  ;;  %v1391_v51 = vadd.f32 %v9483_v26, %v1347_v18  ;;  %v9491_v22 = vld [vmem:[#allocation346_spill] sm:$0xff]  ;;  %v9492_v45 = vld [vmem:[#allocation347_spill] sm:$0xff]  ;;  %v9493_v31 = vld [vmem:[#allocation204_spill] sm:$0xff] }
 0x37a   : > { %v1395_v39 = vadd.f32 %v9484_v53, %v1351_v59  ;;  %v1399_v40 = vadd.f32 %v9485_v54, %v1367_v15  ;;  %v1403_v29 = vadd.f32 %v9486_v9, %v1371_v2  ;;  %v1407_v48 = vadd.f32 %v9487_v10, %v1375_v55  ;;  %v9494_v8 = vld [vmem:[#allocation205_spill] sm:$0xff]  ;;  %v9495_v23 = vld [vmem:[#allocation206_spill] sm:$0xff]  ;;  %v9496_v55 = vld [vmem:[#allocation207_spill] sm:$0xff] }
 0x37b   : > { %v1411_v35 = vadd.f32 %v9488_v42, %v1379_v44  ;;  %v1415_v62 = vadd.f32 %v9489_v24, %v1383_v61  ;;  %v1419_v38 = vadd.f32 %v9490_v16, %v1387_v52  ;;  %v1423_v32 = vadd.f32 %v9491_v22, %v1391_v51  ;;  %v9497_v44 = vld [vmem:[#allocation208_spill] sm:$0xff]  ;;  %v9498_v61 = vld [vmem:[#allocation209_spill] sm:$0xff]  ;;  %v9499_v17 = vld [vmem:[#allocation210_spill] sm:$0xff] }
 0x37c   : > { %v1427_v14 = vadd.f32 %v9492_v45, %v1395_v39  ;;  %v1350_v63 = vmul.f32 %v5735_v33, %v9476_v56  ;;  %v1435_v7 = vmul.f32 %v1433_v27, %v9493_v31  ;;  %v1439_v12 = vmul.f32 %v1433_v27, %v9494_v8  ;;  %v9500_v53 = vld [vmem:[#allocation244_spill] sm:$0xff]  ;;  %v9501_v16 = vld [vmem:[#allocation245_spill] sm:$0xff]  ;;  %v9502_v45 = vld [vmem:[#allocation246_spill] sm:$0xff] }
 0x37d   : > { %v1443_v18 = vmul.f32 %v1433_v27, %v9495_v23  ;;  %v1447_v59 = vmul.f32 %v1433_v27, %v9496_v55  ;;  %v1451_v25 = vmul.f32 %v1433_v27, %v9497_v44  ;;  %v1455_v15 = vmul.f32 %v1433_v27, %v9498_v61  ;;  %v9520_v44 = vld [vmem:[#allocation351_spill] sm:$0xff]  ;;  %v9521_v23 = vld [vmem:[#allocation352_spill] sm:$0xff]  ;;  %v9522_v31 = vld [vmem:[#allocation353_spill] sm:$0xff] }
 0x37e   : > { %v1459_v2 = vmul.f32 %v1433_v27, %v9499_v17  ;;  %v1437_v52 = vadd.f32 %v1435_v7, %v1399_v40  ;;  %v1441_v26 = vadd.f32 %v1439_v12, %v1403_v29  ;;  %v1463_v39 = vmul.f32 %v1433_v27, %v9500_v53  ;;  %v9511_v12 = vld [vmem:[#allocation215_spill] sm:$0xff]  ;;  %v9519_v17 = vld [vmem:[#allocation350_spill] sm:$0xff] }
 0x37f   : > { %v1445_v51 = vadd.f32 %v1443_v18, %v1407_v48  ;;  %v1449_v33 = vadd.f32 %v1447_v59, %v1411_v35  ;;  %v1453_v54 = vadd.f32 %v1451_v25, %v1415_v62  ;;  %v1457_v9 = vadd.f32 %v1455_v15, %v1419_v38  ;;  %v1362_v48 = vpop.permute.xlu0 %1361  ;;  %v9503_v62 = vld [vmem:[#allocation247_spill] sm:$0xff] }
 0x380   : > { %v1461_v10 = vadd.f32 %v1459_v2, %v1423_v32  ;;  %v1324_v42 = vadd.f32 %v5762_v46, %v5731_v13  ;;  %v1465_v24 = vadd.f32 %v1463_v39, %v1427_v14  ;;  %v1467_v22 = vadd.f32 %v1437_v52, %v9501_v16  ;;  %v9506_v32 = vld [vmem:[#allocation251_spill] sm:$0xff]  ;;  %v9514_v52 = vld [vmem:[#allocation224_spill] sm:$0xff] }
 0x381   : > { %v1471_v56 = vadd.f32 %v1441_v26, %v9502_v45  ;;  %v1328_v20 = vadd.f32 %v5766_v21, %v5738_v41  ;;  %v1332_v40 = vadd.f32 %v5770_v28, %v5741_v49  ;;  %v1336_v27 = vadd.f32 %v5774_v1, %v5744_v43  ;;  %v9504_v21 = vld [vmem:[#allocation248_spill] sm:$0xff]  ;;  %v9505_v49 = vld [vmem:[#allocation169_spill] sm:$0xff]  ;;  %v9512_v59 = vld [vmem:[#allocation227_spill] sm:$0xff] }
 0x382   : > { %v1340_v29 = vadd.f32 %v5778_v0, %v5747_v47  ;;  %v1344_v13 = vadd.f32 %v5782_v36, %v5750_v57  ;;  %v1348_v46 = vadd.f32 %v5786_v5, %v5753_v11  ;;  %v1352_v35 = vadd.f32 %v1350_v63, %v5758_v19  ;;  %v9507_v1 = vld [vmem:[#allocation252_spill] sm:$0xff]  ;;  %v9508_v57 = vld [vmem:[#allocation253_spill] sm:$0xff]  ;;  %v9510_v63 = vld [vmem:[#allocation250_spill] sm:$0xff] }
 0x383   : > { %v1475_v41 = vadd.f32 %v1445_v51, %v9503_v62  ;;  %v1479_v38 = vadd.f32 %v1449_v33, %v9504_v21  ;;  %v1483_v28 = vadd.f32 %v1453_v54, %v9505_v49  ;;  %v1487_v43 = vadd.f32 %v1457_v9, %v9506_v32  ;;  %v9509_v19 = vld [vmem:[#allocation249_spill] sm:$0xff]  ;;  %v9513_v15 = vld [vmem:[#allocation223_spill] sm:$0xff]  ;;  %v9516_v39 = vld [vmem:[#allocation228_spill] sm:$0xff] }
 0x384   : > { %v1491_v14 = vadd.f32 %v1461_v10, %v9507_v1  ;;  %v5862_v47 = vmax.f32 %v1467_v22, 0.0  ;;  %v5864_v0 = vmax.f32 %v1471_v56, 0.0  ;;  %v1495_v36 = vadd.f32 %v1465_v24, %v9508_v57  ;;  %v9515_v51 = vld [vmem:[#allocation225_spill] sm:$0xff] }
 0x385   : > { %v1364_v11 = vsel %vm3696_vm3, %v1362_v48, 0.0 }
 0x386   : > { %v1366_v5 = vmul.f32 %v1364_v11, %v9509_v19  ;;  %v1370_v7 = vmul.f32 %v1364_v11, %v9510_v63  ;;  %v1374_v18 = vmul.f32 %v1364_v11, %v9511_v12  ;;  %v1378_v25 = vmul.f32 %v1364_v11, %v9512_v59  ;;  %v9553_v12 = vld [vmem:[#allocation269_spill] sm:$0xff] }
 0x387   : > { %v1382_v2 = vmul.f32 %v1364_v11, %v9513_v15  ;;  %v1386_v26 = vmul.f32 %v1364_v11, %v9514_v52  ;;  %v1390_v56 = vmul.f32 %v1364_v11, %v9515_v51  ;;  %v1394_v33 = vmul.f32 %v1364_v11, %v9516_v39 }
 0x388   : > { %v1368_v54 = vadd.f32 %v1366_v5, %v1324_v42  ;;  %v1372_v9 = vadd.f32 %v1370_v7, %v1328_v20  ;;  %v1376_v10 = vadd.f32 %v1374_v18, %v1332_v40  ;;  %v1380_v24 = vadd.f32 %v1378_v25, %v1336_v27  ;;  %v9523_v42 = vld [vmem:[#allocation354_spill] sm:$0xff]  ;;  %v9524_v40 = vld [vmem:[#allocation355_spill] sm:$0xff]  ;;  %v9529_v18 = vld [vmem:[#allocation372_spill] sm:$0xff] }
 0x389   : > { %v1384_v22 = vadd.f32 %v1382_v2, %v1340_v29  ;;  %v1388_v48 = vadd.f32 %v1386_v26, %v1344_v13  ;;  %v1392_v30 = vadd.f32 %v1390_v56, %v1348_v46  ;;  %v1396_v58 = vadd.f32 %v1394_v33, %v1352_v35  ;;  %v9525_v29 = vld [vmem:[#allocation368_spill] sm:$0xff]  ;;  %v9526_v46 = vld [vmem:[#allocation369_spill] sm:$0xff]  ;;  %v9527_v5 = vld [vmem:[#allocation370_spill] sm:$0xff] }
 0x38a   : > { %v1400_v3 = vadd.f32 %v9517_v60, %v1368_v54  ;;  %v1404_v53 = vadd.f32 %v9518_v37, %v1372_v9  ;;  %v1408_v61 = vadd.f32 %v9519_v17, %v1376_v10  ;;  %v1412_v55 = vadd.f32 %v9520_v44, %v1380_v24  ;;  %v9528_v7 = vld [vmem:[#allocation371_spill] sm:$0xff]  ;;  %v9531_v2 = vld [vmem:[#allocation376_spill] sm:$0xff] }
 0x38b   : > { %v1416_v8 = vadd.f32 %v9521_v23, %v1384_v22  ;;  %v1420_v11 = vadd.f32 %v9522_v31, %v1388_v48  ;;  %v1424_v20 = vadd.f32 %v9523_v42, %v1392_v30  ;;  %v1428_v27 = vadd.f32 %v9524_v40, %v1396_v58  ;;  %v9530_v25 = vld [vmem:[#allocation375_spill] sm:$0xff] }
 0x38c   : > { %v1438_v13 = vadd.f32 %v9525_v29, %v1400_v3  ;;  %v1442_v35 = vadd.f32 %v9526_v46, %v1404_v53  ;;  %v1446_v60 = vadd.f32 %v9527_v5, %v1408_v61  ;;  %v1450_v37 = vadd.f32 %v9528_v7, %v1412_v55  ;;  %v9532_v26 = vld [vmem:[#allocation383_spill] sm:$0xff]  ;;  %v9535_v7 = vld [vmem:[#allocation212_spill] sm:$0xff] }
 0x38d   : > { %v1454_v17 = vadd.f32 %v9529_v18, %v1416_v8  ;;  %v1458_v44 = vadd.f32 %v9530_v25, %v1420_v11  ;;  %v1462_v23 = vadd.f32 %v9531_v2, %v1424_v20  ;;  %v1466_v31 = vadd.f32 %v9532_v26, %v1428_v27  ;;  %v9534_v27 = vld [vmem:[#allocation211_spill] sm:$0xff]  ;;  %v9537_v18 = vld [vmem:[#allocation256_spill] sm:$0xff]  ;;  %v9538_v25 = vld [vmem:[#allocation213_spill] sm:$0xff] }
 0x38e   : > { %v1468_v30 = vadd.f32 %v1438_v13, %v9501_v16  ;;  %v1472_v58 = vadd.f32 %v1442_v35, %v9502_v45  ;;  %v1476_v3 = vadd.f32 %v1446_v60, %v9503_v62  ;;  %v1480_v53 = vadd.f32 %v1450_v37, %v9504_v21  ;;  %v9550_v45 = vld [vmem:[#allocation267_spill] sm:$0xff] }
 0x38f   : > { %v1484_v61 = vadd.f32 %v1454_v17, %v9505_v49  ;;  %v1488_v55 = vadd.f32 %v1458_v44, %v9506_v32  ;;  %v1492_v8 = vadd.f32 %v1462_v23, %v9507_v1  ;;  %v1496_v56 = vadd.f32 %v1466_v31, %v9508_v57  ;;  %v9539_v44 = vld [vmem:[#allocation214_spill] sm:$0xff]  ;;  %v9541_v23 = vld [vmem:[#allocation257_spill] sm:$0xff]  ;;  %v9549_v49 = vld [vmem:[#allocation263_spill] sm:$0xff] }
 0x390   : > { %v5901_v33 = vmax.f32 %v1475_v41, 0.0  ;;  %v5903_v54 = vmax.f32 %v1468_v30, 0.0  ;;  %v5905_v9 = vmax.f32 %v1472_v58, 0.0  ;;  %v5907_v10 = vmax.f32 %v1476_v3, 0.0  ;;  %v9533_v41 = vld [vmem:[#allocation170_spill] sm:$0xff]  ;;  %v9547_v1 = vld [vmem:[#allocation265_spill] sm:$0xff] }
 0x391   : > { %v5909_v24 = vmax.f32 %v1480_v53, 0.0  ;;  %v5911_v22 = vmax.f32 %v1484_v61, 0.0  ;;  %v5913_v48 = vmax.f32 %v1488_v55, 0.0  ;;  %v5915_v11 = vmax.f32 %v1492_v8, 0.0  ;;  %v9542_v58 = vld [vmem:[#allocation258_spill] sm:$0xff]  ;;  %v9543_v53 = vld [vmem:[#allocation264_spill] sm:$0xff] }
 0x392   : > { %v5917_v42 = vmax.f32 %v1479_v38, 0.0  ;;  %v5919_v20 = vmax.f32 %v1483_v28, 0.0  ;;  %v1720_v40 = vmul.f32 %v5903_v54, %v9533_v41  ;;  %v1722_v29 = vmul.f32 %v5905_v9, %v9534_v27  ;;  %v9536_v28 = vld [vmem:[#allocation255_spill] sm:$0xff] }
 0x393   : > { %v5925_v13 = vmax.f32 %v1487_v43, 0.0  ;;  %v5927_v46 = vmax.f32 %v1491_v14, 0.0  ;;  %v5929_v35 = vmax.f32 %v1495_v36, 0.0  ;;  %v5931_v5 = vmax.f32 %v1496_v56, 0.0  ;;  %v9540_v36 = vld [vmem:[#allocation254_spill] sm:$0xff]  ;;  %v9544_v55 = vld [vmem:[#allocation259_spill] sm:$0xff] }
 0x394   : > { %v1724_v60 = vadd.f32 %v1722_v29, %v1720_v40  ;;  %v1726_v38 = vmul.f32 %v5907_v10, %v9535_v7  ;;  %v1568_v37 = vmul.f32 %v5903_v54, %v9536_v28  ;;  %v1570_v17 = vmul.f32 %v5905_v9, %v9537_v18  ;;  %v9545_v56 = vld [vmem:[#allocation260_spill] sm:$0xff]  ;;  %v9546_v29 = vld [vmem:[#allocation261_spill] sm:$0xff] }
 0x395   : > { %v1730_v43 = vmul.f32 %v5909_v24, %v9538_v25  ;;  %v1734_v14 = vmul.f32 %v5911_v22, %v9539_v44  ;;  %v1738_v2 = vmul.f32 %v5913_v48, %v9540_v36  ;;  %v1742_v26 = vmul.f32 %v5915_v11, %v9541_v23 }
 0x396   : > { %v1728_v31 = vadd.f32 %v1726_v38, %v1724_v60  ;;  %v1572_v30 = vadd.f32 %v1570_v17, %v1568_v37  ;;  %v1574_v3 = vmul.f32 %v5907_v10, %v9542_v58  ;;  %v1500_v61 = vmul.f32 %v5903_v54, %v9543_v53  ;;  %v9548_v37 = vld [vmem:[#allocation262_spill] sm:$0xff] }
 0x397   : > { %v1746_v8 = vmul.f32 %v5931_v5, %v9544_v55  ;;  %v1578_v40 = vmul.f32 %v5909_v24, %v9545_v56  ;;  %v1582_v57 = vmul.f32 %v5911_v22, %v9546_v29  ;;  %v1502_v32 = vmul.f32 %v5905_v9, %v9547_v1 }
 0x398   : > { %v1732_v60 = vadd.f32 %v1730_v43, %v1728_v31  ;;  %v1576_v38 = vadd.f32 %v1574_v3, %v1572_v30  ;;  %v1586_v17 = vmul.f32 %v5913_v48, %v9548_v37  ;;  %v1590_v21 = vmul.f32 %v5915_v11, %v9549_v49  ;;  %v9551_v43 = vld [vmem:[#allocation266_spill] sm:$0xff]  ;;  %v9552_v30 = vld [vmem:[#allocation268_spill] sm:$0xff] }
 0x399   : > { %v1504_v62 = vadd.f32 %v1502_v32, %v1500_v61  ;;  %v1506_v16 = vmul.f32 %v5907_v10, %v9550_v45  ;;  %v1567_v39 = vmul.f32 %v5862_v47, %v9536_v28  ;;  %v1569_v51 = vmul.f32 %v5864_v0, %v9537_v18  ;;  %v9555_v18 = vld [vmem:[#allocation271_spill] sm:$0xff] }
 0x39a   : > { %v1736_v52 = vadd.f32 %v1734_v14, %v1732_v60  ;;  %v1580_v15 = vadd.f32 %v1578_v40, %v1576_v38  ;;  %v1594_v31 = vmul.f32 %v5931_v5, %v9551_v43  ;;  %v1510_v3 = vmul.f32 %v5909_v24, %v9552_v30 }
 0x39b   : > { %v1508_v59 = vadd.f32 %v1506_v16, %v1504_v62  ;;  %v1514_v32 = vmul.f32 %v5911_v22, %v9553_v12  ;;  %v1571_v61 = vadd.f32 %v1569_v51, %v1567_v39  ;;  %v1573_v63 = vmul.f32 %v5901_v33, %v9542_v58 }
 0x39c   : > { %v1740_v28 = vadd.f32 %v1738_v2, %v1736_v52  ;;  %v1584_v19 = vadd.f32 %v1582_v57, %v1580_v15  ;;  %v1518_v14 = vmul.f32 %v5913_v48, %v9554_v34  ;;  %v1577_v40 = vmul.f32 %v5917_v42, %v9545_v56 }
 0x39d   : > { %v1512_v60 = vadd.f32 %v1510_v3, %v1508_v59  ;;  %v1575_v38 = vadd.f32 %v1573_v63, %v1571_v61  ;;  %v1499_v16 = vmul.f32 %v5862_v47, %v9543_v53  ;;  %v1501_v62 = vmul.f32 %v5864_v0, %v9547_v1  ;;  %v9556_v61 = vld [vmem:[#allocation272_spill] sm:$0xff] }
 0x39e   : > { %v1744_v51 = vadd.f32 %v1742_v26, %v1740_v28  ;;  %v1588_v39 = vadd.f32 %v1586_v17, %v1584_v19  ;;  %v1522_v52 = vmul.f32 %v5915_v11, %v9555_v18  ;;  %v1581_v57 = vmul.f32 %v5919_v20, %v9546_v29 }
 0x39f   : > { %v1516_v15 = vadd.f32 %v1514_v32, %v1512_v60  ;;  %v1579_v2 = vadd.f32 %v1577_v40, %v1575_v38  ;;  %v1503_v58 = vadd.f32 %v1501_v62, %v1499_v16  ;;  %v1505_v63 = vmul.f32 %v5901_v33, %v9550_v45  ;;  %v9558_v60 = vld [vmem:[#allocation274_spill] sm:$0xff] }
 0x3a0   : > { %v1748_v59 = vadd.f32 %v1746_v8, %v1744_v51  ;;  %v1592_v3 = vadd.f32 %v1590_v21, %v1588_v39  ;;  %v1526_v56 = vmul.f32 %v5931_v5, %v9556_v61  ;;  %v1585_v19 = vmul.f32 %v5925_v13, %v9548_v37  ;;  %v9557_v8 = vld [vmem:[#allocation273_spill] sm:$0xff]  ;;  %v9570_v45 = vld [vmem:[#allocation286_spill] sm:$0xff]  ;;  %v9576_v37 = vld [vmem:[#allocation292_spill] sm:$0xff] }
 0x3a1   : > { %v1520_v28 = vadd.f32 %v1518_v14, %v1516_v15  ;;  %v1583_v26 = vadd.f32 %v1581_v57, %v1579_v2  ;;  %v1507_v17 = vadd.f32 %v1505_v63, %v1503_v58  ;;  %v1509_v1 = vmul.f32 %v5917_v42, %v9552_v30  ;;  %v9559_v57 = vld [vmem:[#allocation275_spill] sm:$0xff] }
 0x3a2   : > { %1751 = vrot.lane.b32.xlu2 %v1748_v59, %s9214_s5  ;;  %v1596_v32 = vadd.f32 %v1594_v31, %v1592_v3  ;;  %v1589_v40 = vmul.f32 %v5927_v46, %v9549_v49  ;;  %v1612_v21 = vmul.f32 %v5903_v54, %v9557_v8  ;;  %v1614_v38 = vmul.f32 %v5905_v9, %v9558_v60  ;;  %v9560_v3 = vld [vmem:[#allocation276_spill] sm:$0xff] }
 0x3a3   : > { %v1524_v16 = vadd.f32 %v1522_v52, %v1520_v28  ;;  %v1587_v62 = vadd.f32 %v1585_v19, %v1583_v26  ;;  %v1511_v14 = vadd.f32 %v1509_v1, %v1507_v17  ;;  %v1513_v58 = vmul.f32 %v5919_v20, %v9553_v12  ;;  %v9561_v28 = vld [vmem:[#allocation278_spill] sm:$0xff]  ;;  %v9562_v17 = vld [vmem:[#allocation279_spill] sm:$0xff]  ;;  %v9566_v12 = vld [vmem:[#allocation281_spill] sm:$0xff] }
 0x3a4   : > { %1599 = vrot.lane.b32.xlu0 %v1596_v32, %s9218_s12  ;;  %v1593_v31 = vmul.f32 %v5929_v35, %v9551_v43  ;;  %v1517_v51 = vmul.f32 %v5925_v13, %v9554_v34  ;;  %v1616_v39 = vadd.f32 %v1614_v38, %v1612_v21  ;;  %v1618_v15 = vmul.f32 %v5907_v10, %v9559_v57 }
 0x3a5   : > { %v1528_v2 = vadd.f32 %v1526_v56, %v1524_v16  ;;  %v1591_v63 = vadd.f32 %v1589_v40, %v1587_v62  ;;  %v1515_v52 = vadd.f32 %v1513_v58, %v1511_v14  ;;  %v1521_v1 = vmul.f32 %v5927_v46, %v9555_v18  ;;  %v9563_v40 = vld [vmem:[#allocation277_spill] sm:$0xff]  ;;  %v9564_v14 = vld [vmem:[#allocation280_spill] sm:$0xff] }
 0x3a6   : > { %v1620_v59 = vadd.f32 %v1618_v15, %v1616_v39  ;;  %v1622_v19 = vmul.f32 %v5909_v24, %v9560_v3  ;;  %v1787_v26 = vmul.f32 %v5862_v47, %v9561_v28  ;;  %v1789_v32 = vmul.f32 %v5864_v0, %v9562_v17  ;;  %v9565_v15 = vld [vmem:[#allocation282_spill] sm:$0xff] }
 0x3a7   : > { %1531 = vrot.lane.b32.xlu1 %v1528_v2, %s9214_s5  ;;  %v1595_v21 = vadd.f32 %v1593_v31, %v1591_v63  ;;  %v1519_v38 = vadd.f32 %v1517_v51, %v1515_v52  ;;  %v1525_v56 = vmul.f32 %v5929_v35, %v9556_v61  ;;  %v1626_v16 = vmul.f32 %v5911_v22, %v9563_v40  ;;  %v9567_v52 = vld [vmem:[#allocation284_spill] sm:$0xff] }
 0x3a8   : > { %v1624_v62 = vadd.f32 %v1622_v19, %v1620_v59  ;;  %v1630_v58 = vmul.f32 %v5913_v48, %v9564_v14  ;;  %v1791_v39 = vadd.f32 %v1789_v32, %v1787_v26  ;;  %v1793_v18 = vmul.f32 %v5901_v33, %v9565_v15  ;;  %v9568_v26 = vld [vmem:[#allocation283_spill] sm:$0xff] }
 0x3a9   : > { %v1523_v34 = vadd.f32 %v1521_v1, %v1519_v38  ;;  %v1634_v2 = vmul.f32 %v5915_v11, %v9566_v12  ;;  %v1611_v31 = vmul.f32 %v5862_v47, %v9557_v8  ;;  %v1613_v51 = vmul.f32 %v5864_v0, %v9558_v60  ;;  %v9569_v38 = vld [vmem:[#allocation285_spill] sm:$0xff] }
 0x3aa   : > { %1597 = vrot.lane.b32.xlu2 %v1595_v21, %s9218_s12  ;;  %v1628_v63 = vadd.f32 %v1626_v16, %v1624_v62  ;;  %v1638_v59 = vmul.f32 %v5931_v5, %v9567_v52  ;;  %v1795_v19 = vadd.f32 %v1793_v18, %v1791_v39  ;;  %v1797_v32 = vmul.f32 %v5917_v42, %v9568_v26  ;;  %v9571_v16 = vld [vmem:[#allocation287_spill] sm:$0xff] }
 0x3ab   : > { %v1527_v1 = vadd.f32 %v1525_v56, %v1523_v34  ;;  %v1801_v61 = vmul.f32 %v5919_v20, %v9569_v38  ;;  %v1615_v30 = vadd.f32 %v1613_v51, %v1611_v31  ;;  %v1617_v8 = vmul.f32 %v5901_v33, %v9559_v57  ;;  %v9572_v51 = vld [vmem:[#allocation288_spill] sm:$0xff] }
 0x3ac   : > { %v1632_v43 = vadd.f32 %v1630_v58, %v1628_v63  ;;  %v1799_v60 = vadd.f32 %v1797_v32, %v1795_v19  ;;  %v1805_v21 = vmul.f32 %v5925_v13, %v9570_v45  ;;  %v1809_v62 = vmul.f32 %v5927_v46, %v9571_v16 }
 0x3ad   : > { %1529 = vrot.lane.b32.xlu0 %v1527_v1, %s9214_s5  ;;  %v1619_v18 = vadd.f32 %v1617_v8, %v1615_v30  ;;  %v1621_v34 = vmul.f32 %v5917_v42, %v9560_v3  ;;  %v1719_v56 = vmul.f32 %v5862_v47, %v9533_v41  ;;  %v1721_v39 = vmul.f32 %v5864_v0, %v9534_v27 }
 0x3ae   : > { %v1636_v58 = vadd.f32 %v1634_v2, %v1632_v43  ;;  %v1803_v31 = vadd.f32 %v1801_v61, %v1799_v60  ;;  %v1813_v63 = vmul.f32 %v5929_v35, %v9572_v51  ;;  %v1625_v19 = vmul.f32 %v5919_v20, %v9563_v40  ;;  %v9573_v61 = vld [vmem:[#allocation289_spill] sm:$0xff] }
 0x3af   : > { %v1623_v32 = vadd.f32 %v1621_v34, %v1619_v18  ;;  %v1629_v30 = vmul.f32 %v5925_v13, %v9564_v14  ;;  %v1723_v8 = vadd.f32 %v1721_v39, %v1719_v56  ;;  %v1725_v1 = vmul.f32 %v5901_v33, %v9535_v7  ;;  %v9574_v34 = vld [vmem:[#allocation290_spill] sm:$0xff] }
 0x3b0   : > { %v1640_v3 = vadd.f32 %v1638_v59, %v1636_v58  ;;  %v1807_v57 = vadd.f32 %v1805_v21, %v1803_v31  ;;  %v1633_v43 = vmul.f32 %v5927_v46, %v9566_v12  ;;  %v1680_v60 = vmul.f32 %v5903_v54, %v9573_v61 }
 0x3b1   : > { %v1627_v2 = vadd.f32 %v1625_v19, %v1623_v32  ;;  %v1727_v49 = vadd.f32 %v1725_v1, %v1723_v8  ;;  %v1729_v18 = vmul.f32 %v5917_v42, %v9538_v25  ;;  %v1682_v14 = vmul.f32 %v5905_v9, %v9574_v34  ;;  %v9575_v32 = vld [vmem:[#allocation291_spill] sm:$0xff] }
 0x3b2   : > { %1643 = vrot.lane.b32.xlu1 %v1640_v3, %s9214_s5  ;;  %v1811_v56 = vadd.f32 %v1809_v62, %v1807_v57  ;;  %v1637_v59 = vmul.f32 %v5929_v35, %v9567_v52  ;;  %v1733_v21 = vmul.f32 %v5919_v20, %v9539_v44  ;;  %v1737_v39 = vmul.f32 %v5925_v13, %v9540_v36 }
 0x3b3   : > { %v1631_v58 = vadd.f32 %v1629_v30, %v1627_v2  ;;  %v1731_v31 = vadd.f32 %v1729_v18, %v1727_v49  ;;  %v1684_v19 = vadd.f32 %v1682_v14, %v1680_v60  ;;  %v1686_v8 = vmul.f32 %v5907_v10, %v9575_v32 }
 0x3b4   : > { %v1815_v1 = vadd.f32 %v1813_v63, %v1811_v56  ;;  %v1741_v3 = vmul.f32 %v5927_v46, %v9541_v23  ;;  %v1788_v57 = vmul.f32 %v5903_v54, %v9561_v28  ;;  %v1790_v62 = vmul.f32 %v5905_v9, %v9562_v17  ;;  %v9577_v63 = vld [vmem:[#allocation293_spill] sm:$0xff] }
 0x3b5   : > { %v1635_v52 = vadd.f32 %v1633_v43, %v1631_v58  ;;  %v1735_v12 = vadd.f32 %v1733_v21, %v1731_v31  ;;  %v1688_v40 = vadd.f32 %v1686_v8, %v1684_v19  ;;  %v1690_v49 = vmul.f32 %v5909_v24, %v9576_v37  ;;  %v9578_v21 = vld [vmem:[#allocation294_spill] sm:$0xff] }
 0x3b6   : > { %1817 = vrot.lane.b32.xlu2 %v1815_v1, %s9218_s12  ;;  %v1745_v14 = vmul.f32 %v5929_v35, %v9544_v55  ;;  %v1694_v30 = vmul.f32 %v5911_v22, %v9577_v63  ;;  %v1792_v60 = vadd.f32 %v1790_v62, %v1788_v57  ;;  %v1794_v2 = vmul.f32 %v5907_v10, %v9565_v15  ;;  %v9659_v55 = vld [vmem:[#allocation203_spill] sm:$0xff] }
 0x3b7   : > { %v1639_v18 = vadd.f32 %v1637_v59, %v1635_v52  ;;  %v1739_v56 = vadd.f32 %v1737_v39, %v1735_v12  ;;  %v1692_v43 = vadd.f32 %v1690_v49, %v1688_v40  ;;  %v1698_v58 = vmul.f32 %v5913_v48, %v9578_v21  ;;  %v9579_v52 = vld [vmem:[#allocation295_spill] sm:$0xff]  ;;  %v9580_v40 = vld [vmem:[#allocation296_spill] sm:$0xff] }
 0x3b8   : > { %v1796_v31 = vadd.f32 %v1794_v2, %v1792_v60  ;;  %v1798_v19 = vmul.f32 %v5909_v24, %v9568_v26  ;;  %v1679_v8 = vmul.f32 %v5862_v47, %v9573_v61  ;;  %v1681_v1 = vmul.f32 %v5864_v0, %v9574_v34 }
 0x3b9   : > { %1641 = vrot.lane.b32.xlu0 %v1639_v18, %s9214_s5  ;;  %v1743_v57 = vadd.f32 %v1741_v3, %v1739_v56  ;;  %v1696_v62 = vadd.f32 %v1694_v30, %v1692_v43  ;;  %v1702_v12 = vmul.f32 %v5915_v11, %v9579_v52  ;;  %v1706_v59 = vmul.f32 %v5931_v5, %v9580_v40  ;;  %v9581_v43 = vld [vmem:[#allocation307_spill] sm:$0xff] }
 0x3ba   : > { %v1800_v39 = vadd.f32 %v1798_v19, %v1796_v31  ;;  %v1802_v49 = vmul.f32 %v5911_v22, %v9569_v38  ;;  %v1683_v60 = vadd.f32 %v1681_v1, %v1679_v8  ;;  %v1685_v2 = vmul.f32 %v5901_v33, %v9575_v32  ;;  %v9582_v19 = vld [vmem:[#allocation309_spill] sm:$0xff] }
 0x3bb   : > { %v1747_v61 = vadd.f32 %v1745_v14, %v1743_v57  ;;  %v1700_v34 = vadd.f32 %v1698_v58, %v1696_v62  ;;  %v1806_v3 = vmul.f32 %v5913_v48, %v9570_v45  ;;  %v1689_v30 = vmul.f32 %v5917_v42, %v9576_v37  ;;  %v9585_v37 = vld [vmem:[#allocation297_spill] sm:$0xff] }
 0x3bc   : > { %v1804_v18 = vadd.f32 %v1802_v49, %v1800_v39  ;;  %v1687_v56 = vadd.f32 %v1685_v2, %v1683_v60  ;;  %v1756_v31 = vmul.f32 %v5903_v54, %v9581_v43  ;;  %v1758_v38 = vmul.f32 %v5905_v9, %v9582_v19  ;;  %v9583_v49 = vld [vmem:[#allocation311_spill] sm:$0xff] }
 0x3bd   : > { %1749 = vrot.lane.b32.xlu1 %v1747_v61, %s9214_s5  ;;  %v1704_v8 = vadd.f32 %v1702_v12, %v1700_v34  ;;  %v1810_v14 = vmul.f32 %v5915_v11, %v9571_v16  ;;  %v1814_v58 = vmul.f32 %v5931_v5, %v9572_v51  ;;  %v1693_v1 = vmul.f32 %v5919_v20, %v9577_v63  ;;  %v9584_v34 = vld [vmem:[#allocation313_spill] sm:$0xff]  ;;  %v9586_v63 = vld [vmem:[#allocation298_spill] sm:$0xff] }
 0x3be   : > { %v1808_v57 = vadd.f32 %v1806_v3, %v1804_v18  ;;  %v1691_v62 = vadd.f32 %v1689_v30, %v1687_v56  ;;  %v1760_v39 = vadd.f32 %v1758_v38, %v1756_v31  ;;  %v1762_v60 = vmul.f32 %v5907_v10, %v9583_v49  ;;  %v9587_v30 = vld [vmem:[#allocation315_spill] sm:$0xff] }
 0x3bf   : > { %v1708_v2 = vadd.f32 %v1706_v59, %v1704_v8  ;;  %v1697_v61 = vmul.f32 %v5925_v13, %v9578_v21  ;;  %v1766_v12 = vmul.f32 %v5909_v24, %v9584_v34  ;;  %v1536_v32 = vmul.f32 %v5903_v54, %v9585_v37  ;;  %v9588_v56 = vld [vmem:[#allocation299_spill] sm:$0xff] }
 0x3c0   : > { %v1812_v51 = vadd.f32 %v1810_v14, %v1808_v57  ;;  %v1695_v16 = vadd.f32 %v1693_v1, %v1691_v62  ;;  %v1764_v45 = vadd.f32 %v1762_v60, %v1760_v39  ;;  %v1538_v3 = vmul.f32 %v5905_v9, %v9586_v63  ;;  %v9589_v62 = vld [vmem:[#allocation317_spill] sm:$0xff]  ;;  %v9590_v60 = vld [vmem:[#allocation319_spill] sm:$0xff] }
 0x3c1   : > { %1711 = vrot.lane.b32.xlu2 %v1708_v2, %s9218_s12  ;;  %v1701_v38 = vmul.f32 %v5927_v46, %v9579_v52  ;;  %v1705_v59 = vmul.f32 %v5929_v35, %v9580_v40  ;;  %v1770_v18 = vmul.f32 %v5911_v22, %v9587_v30  ;;  %v1542_v31 = vmul.f32 %v5907_v10, %v9588_v56 }
 0x3c2   : > { %v1816_v8 = vadd.f32 %v1814_v58, %v1812_v51  ;;  %v1699_v14 = vadd.f32 %v1697_v61, %v1695_v16  ;;  %v1768_v1 = vadd.f32 %v1766_v12, %v1764_v45  ;;  %v1540_v57 = vadd.f32 %v1538_v3, %v1536_v32  ;;  %v9591_v16 = vld [vmem:[#allocation300_spill] sm:$0xff]  ;;  %v9593_v61 = vld [vmem:[#allocation301_spill] sm:$0xff] }
 0x3c3   : > { %v1774_v39 = vmul.f32 %v5913_v48, %v9589_v62  ;;  %v1778_v2 = vmul.f32 %v5915_v11, %v9590_v60  ;;  %v1535_v52 = vmul.f32 %v5862_v47, %v9585_v37  ;;  %v1537_v40 = vmul.f32 %v5864_v0, %v9586_v63  ;;  %v9592_v32 = vld [vmem:[#allocation320_spill] sm:$0xff] }
 0x3c4   : > { %1819 = vrot.lane.b32.xlu0 %v1816_v8, %s9218_s12  ;;  %v1703_v21 = vadd.f32 %v1701_v38, %v1699_v14  ;;  %v1772_v26 = vadd.f32 %v1770_v18, %v1768_v1  ;;  %v1544_v51 = vadd.f32 %v1542_v31, %v1540_v57  ;;  %v1546_v45 = vmul.f32 %v5909_v24, %v9591_v16  ;;  %v9594_v8 = vld [vmem:[#allocation302_spill] sm:$0xff]  ;;  %v9595_v14 = vld [vmem:[#allocation303_spill] sm:$0xff]  ;;  %v9596_v57 = vld [vmem:[#allocation304_spill] sm:$0xff] }
 0x3c5   : > { %v1782_v58 = vmul.f32 %v5931_v5, %v9592_v32  ;;  %v1550_v12 = vmul.f32 %v5911_v22, %v9593_v61  ;;  %v1539_v3 = vadd.f32 %v1537_v40, %v1535_v52  ;;  %v1541_v37 = vmul.f32 %v5901_v33, %v9588_v56 }
 0x3c6   : > { %v1707_v15 = vadd.f32 %v1705_v59, %v1703_v21  ;;  %v1776_v63 = vadd.f32 %v1774_v39, %v1772_v26  ;;  %v1548_v17 = vadd.f32 %v1546_v45, %v1544_v51  ;;  %v1554_v38 = vmul.f32 %v5913_v48, %v9594_v8  ;;  %v9597_v21 = vld [vmem:[#allocation305_spill] sm:$0xff]  ;;  %v9598_v59 = vld [vmem:[#allocation308_spill] sm:$0xff] }
 0x3c7   : > { %v1543_v18 = vadd.f32 %v1541_v37, %v1539_v3  ;;  %v1545_v31 = vmul.f32 %v5917_v42, %v9591_v16  ;;  %v1648_v1 = vmul.f32 %v5903_v54, %v9595_v14  ;;  %v1650_v28 = vmul.f32 %v5905_v9, %v9596_v57  ;;  %v9599_v3 = vld [vmem:[#allocation306_spill] sm:$0xff] }
 0x3c8   : > { %1709 = vrot.lane.b32.xlu1 %v1707_v15, %s9218_s12  ;;  %v1780_v52 = vadd.f32 %v1778_v2, %v1776_v63  ;;  %v1552_v40 = vadd.f32 %v1550_v12, %v1548_v17  ;;  %v1558_v26 = vmul.f32 %v5915_v11, %v9597_v21  ;;  %v1562_v39 = vmul.f32 %v5931_v5, %v9598_v59  ;;  %v9600_v15 = vld [vmem:[#allocation310_spill] sm:$0xff] }
 0x3c9   : > { %v1547_v37 = vadd.f32 %v1545_v31, %v1543_v18  ;;  %v1549_v51 = vmul.f32 %v5919_v20, %v9593_v61  ;;  %v1652_v45 = vadd.f32 %v1650_v28, %v1648_v1  ;;  %v1654_v54 = vmul.f32 %v5907_v10, %v9599_v3 }
 0x3ca   : > { %v6181_v16 = vadd.f32 %v1782_v58, %v1780_v52  ;;  %v1556_v9 = vadd.f32 %v1554_v38, %v1552_v40  ;;  %v1553_v17 = vmul.f32 %v5925_v13, %v9594_v8  ;;  %v1658_v63 = vmul.f32 %v5909_v24, %v9600_v15  ;;  %v9601_v38 = vld [vmem:[#allocation312_spill] sm:$0xff] }
 0x3cb   : > { %v1551_v2 = vadd.f32 %v1549_v51, %v1547_v37  ;;  %v1656_v12 = vadd.f32 %v1654_v54, %v1652_v45  ;;  %v1647_v18 = vmul.f32 %v5862_v47, %v9595_v14  ;;  %v1649_v28 = vmul.f32 %v5864_v0, %v9596_v57  ;;  %v9602_v45 = vld [vmem:[#allocation314_spill] sm:$0xff] }
 0x3cc   : > { %v1560_v31 = vadd.f32 %v1558_v26, %v1556_v9  ;;  %v1557_v10 = vmul.f32 %v5927_v46, %v9597_v21  ;;  %v1561_v58 = vmul.f32 %v5929_v35, %v9598_v59  ;;  %v1662_v1 = vmul.f32 %v5911_v22, %v9601_v38 }
 0x3cd   : > { %v1555_v52 = vadd.f32 %v1553_v17, %v1551_v2  ;;  %v1660_v24 = vadd.f32 %v1658_v63, %v1656_v12  ;;  %v1651_v40 = vadd.f32 %v1649_v28, %v1647_v18  ;;  %v1653_v37 = vmul.f32 %v5901_v33, %v9599_v3  ;;  %v9603_v17 = vld [vmem:[#allocation316_spill] sm:$0xff]  ;;  %v9643_v3 = vld [vmem:[#allocation198_spill] sm:$0xff] }
 0x3ce   : > { %v1564_v51 = vadd.f32 %v1562_v39, %v1560_v31  ;;  %v1666_v54 = vmul.f32 %v5913_v48, %v9602_v45  ;;  %v1657_v26 = vmul.f32 %v5917_v42, %v9600_v15  ;;  %v1755_v9 = vmul.f32 %v5862_v47, %v9581_v43  ;;  %v9604_v47 = vld [vmem:[#allocation318_spill] sm:$0xff] }
 0x3cf   : > { %v1559_v59 = vadd.f32 %v1557_v10, %v1555_v52  ;;  %v1664_v21 = vadd.f32 %v1662_v1, %v1660_v24  ;;  %v1655_v57 = vadd.f32 %v1653_v37, %v1651_v40  ;;  %v1757_v22 = vmul.f32 %v5864_v0, %v9582_v19 }
 0x3d0   : > { %v1670_v63 = vmul.f32 %v5915_v11, %v9603_v17  ;;  %v1661_v39 = vmul.f32 %v5919_v20, %v9601_v38  ;;  %v1761_v48 = vmul.f32 %v5901_v33, %v9583_v49  ;;  %v1674_v31 = vmul.f32 %v5931_v5, %v9604_v47  ;;  %v9642_v38 = vld [vmem:[#allocation197_spill] sm:$0xff] }
 0x3d1   : > { %v1563_v2 = vadd.f32 %v1561_v58, %v1559_v59  ;;  %v1668_v12 = vadd.f32 %v1666_v54, %v1664_v21  ;;  %v1659_v18 = vadd.f32 %v1657_v26, %v1655_v57  ;;  %v1759_v28 = vadd.f32 %v1757_v22, %v1755_v9 }
 0x3d2   : > { %v1665_v10 = vmul.f32 %v5925_v13, %v9602_v45  ;;  %v1765_v11 = vmul.f32 %v5917_v42, %v9584_v34  ;;  %v1669_v24 = vmul.f32 %v5927_v46, %v9603_v17  ;;  %v1769_v57 = vmul.f32 %v5919_v20, %v9587_v30  ;;  %v9641_v17 = vld [vmem:[#allocation196_spill] sm:$0xff] }
 0x3d3   : > { %v1672_v0 = vadd.f32 %v1670_v63, %v1668_v12  ;;  %v1663_v1 = vadd.f32 %v1661_v39, %v1659_v18  ;;  %v1763_v52 = vadd.f32 %v1761_v48, %v1759_v28  ;;  %v1673_v5 = vmul.f32 %v5929_v35, %v9604_v47 }
 0x3d4   : > { %v1773_v37 = vmul.f32 %v5925_v13, %v9589_v62  ;;  %v1777_v42 = vmul.f32 %v5927_v46, %v9590_v60  ;;  %v1781_v22 = vmul.f32 %v5929_v35, %v9592_v32 }
 0x3d5   : > { %v1676_v33 = vadd.f32 %v1674_v31, %v1672_v0  ;;  %v1667_v59 = vadd.f32 %v1665_v10, %v1663_v1  ;;  %v1767_v21 = vadd.f32 %v1765_v11, %v1763_v52 }
 0x3d7   : > { %v1671_v58 = vadd.f32 %v1669_v24, %v1667_v59  ;;  %v1771_v40 = vadd.f32 %v1769_v57, %v1767_v21 }
 0x3d9   : > { %v1675_v54 = vadd.f32 %v1673_v5, %v1671_v58  ;;  %v1775_v26 = vadd.f32 %v1773_v37, %v1771_v40 }
 0x3db   : > { %v1779_v9 = vadd.f32 %v1777_v42, %v1775_v26 }
 0x3dd   : > { %v1783_v63 = vadd.f32 %v1781_v22, %v1779_v9 }
 0x3fc   : > { %v1752_v39 = vpop.permute.xlu2 %1751 }
 0x404   : > { %v1598_v20 = vpop.permute.xlu2 %1597 }
 0x405   : > { %v1601_v35 = vsel %vm3692_vm2, %v1598_v20, 0.0 }
 0x410   : > { %v1818_v18 = vpop.permute.xlu2 %1817 }
 0x416   : > { %v1600_v48 = vpop.permute.xlu0 %1599 }
 0x417   : > { %v1602_v10 = vsel %vm3692_vm2, %v1600_v48, 0.0  ;;  %v1821_v48 = vsel %vm3692_vm2, %v1818_v18, 0.0 }
 0x419   : > { %v1532_v12 = vpop.permute.xlu1 %1531 }
 0x41a   : > { %v1534_v28 = vsel %vm3696_vm3, %v1532_v12, 0.0 }
 0x41b   : > { %v1566_v31 = vadd.f32 %v1564_v51, %v1534_v28  ;;  %v1712_v11 = vpop.permute.xlu2 %1711 }
 0x41c   : > { %v1714_v58 = vsel %vm3692_vm2, %v1712_v11, 0.0 }
 0x41d   : > { %v1604_v0 = vadd.f32 %v1602_v10, %v1566_v31 }
 0x41f   : > { %v1530_v13 = vpop.permute.xlu0 %1529  ;;  %v1606_v59 = vrot.slane %v1604_v0, 7 }
 0x420   : > { %v1533_v46 = vsel %vm3696_vm3, %v1530_v13, 0.0 }
 0x421   : > { %v1565_v1 = vadd.f32 %v1563_v2, %v1533_v46 }
 0x423   : > { %v1603_v52 = vadd.f32 %v1601_v35, %v1565_v1 }
 0x424   : > { %v1644_v24 = vpop.permute.xlu1 %1643 }
 0x425   : > { %v1605_v21 = vrot.slane %v1603_v52, 7  ;;  %v1646_v51 = vsel %vm3696_vm3, %v1644_v24, 0.0 }
 0x426   : > { %v1678_v57 = vadd.f32 %v1676_v33, %v1646_v51  ;;  %v1754_v33 = vsel %vm3696_vm3, %v1752_v39, 0.0  ;;  %v1840_v51 = vstv %s3994_s6 }
 0x427   : > { %v1607_v40 = vsel %vm296_vm4, %v1605_v21, %v1606_v59  ;;  %v1608_v2 = vsel %vm296_vm4, %v1606_v59, %v1605_v21  ;;  %v1786_v12 = vadd.f32 %v6181_v16, %v1754_v33 }
 0x428   : > { %v1716_v37 = vadd.f32 %v1714_v58, %v1678_v57  ;;  %v9607_v57 = vld [vmem:[#allocation321_spill] sm:$0xff] }
 0x42a   : > { %v1718_v26 = vadd.f32 %v1716_v37, %v1607_v40  ;;  %v1837_v37 = vstv %s9608_s15 }
 0x42b   : > { %v1642_v42 = vpop.permute.xlu0 %1641 }
 0x42c   : > { %v1645_v13 = vsel %vm3696_vm3, %v1642_v42, 0.0  ;;  %v9609_v42 = vld [vmem:[#allocation322_spill] sm:$0xff] }
 0x42f   : > { %v1750_v9 = vpop.permute.xlu1 %1749 }
 0x430   : > { %v1753_v22 = vsel %vm3696_vm3, %v1750_v9, 0.0 }
 0x431   : > { %v1785_v20 = vadd.f32 %v1783_v63, %v1753_v22  ;;  %v1677_v63 = vadd.f32 %v1675_v54, %v1645_v13  ;;  %v1609_v54 = vsel %vm116_vm0, %v1608_v2, 0.0  ;;  %v3452_v22 = vld [vmem:[%s5331_s16 + $0x8] sm:$0xff] }
 0x433   : > { %v1823_v28 = vadd.f32 %v1821_v48, %v1785_v20  ;;  %v1842_v20 = vmul.f32 %v3452_v22, %v1840_v51 }
 0x435   : > { %v1825_v0 = vrot.slane %v1823_v28, 1 }
 0x436   : > { %v1820_v31 = vpop.permute.xlu0 %1819 }
 0x437   : > { %v1822_v10 = vsel %vm3692_vm2, %v1820_v31, 0.0  ;;  %v9610_v31 = vld [vmem:[#allocation323_spill] sm:$0xff] }
 0x438   : > { %v1824_v46 = vadd.f32 %v1822_v10, %v1786_v12  ;;  %v3453_v12 = vld [vmem:[%s5331_s16] sm:$0xff] }
 0x439   : > { %v1841_v28 = vmul.f32 %v3453_v12, %v1840_v51 }
 0x43a   : > { %v1826_v39 = vrot.slane %v1824_v46, 1  ;;  %v1710_v1 = vpop.permute.xlu1 %1709 }
 0x43b   : > { %v1713_v18 = vsel %vm3692_vm2, %v1710_v1, 0.0 }
 0x43c   : > { %v1828_v16 = vsel %vm551_vm5, %v1826_v39, %v1825_v0  ;;  %v1827_v35 = vsel %vm551_vm5, %v1825_v0, %v1826_v39  ;;  %v1715_v52 = vadd.f32 %v1713_v18, %v1677_v63 }
 0x43d   : > { %v1830_v24 = vsel %vm115_vm1, %v1828_v16, 0.0 }
 0x43e   : > { %v1832_v59 = vadd.f32 %v1830_v24, %v1718_v26  ;;  %v1717_v21 = vadd.f32 %v1715_v52, %v1609_v54 }
 0x440   : > { %v1834_v58 = vadd.f32 %v1832_v59, %v9607_v57  ;;  %v1831_v40 = vadd.f32 %v1827_v35, %v1717_v21  ;;  %v9613_v21 = vld [vmem:[#allocation216_spill] sm:$0xff] }
 0x442   : > { %v1836_v9 = vadd.f32 %v1834_v58, %v9609_v42  ;;  %v1833_v33 = vadd.f32 %v1831_v40, %v9607_v57  ;;  %v9615_v58 = vld [vmem:[#allocation217_spill] sm:$0xff] }
 0x444   : > { %v1839_v48 = vmul.f32 %v1837_v37, %v1836_v9  ;;  %v1835_v13 = vadd.f32 %v1833_v33, %v9610_v31  ;;  %v9619_v9 = vld [vmem:[#allocation218_spill] sm:$0xff] }
 0x446   : > { %v6277_v2 = vadd.f32 %v1842_v20, %v1839_v48  ;;  %v1838_v26 = vmul.f32 %v1837_v37, %v1835_v13  ;;  %v9621_v20 = vld [vmem:[#allocation219_spill] sm:$0xff]  ;;  %v9627_v13 = vld [vmem:[#allocation221_spill] sm:$0xff] }
 0x448   : > { %9611 = vst [vmem:[#allocation180_spill] sm:$0xff] %v6277_v2  ;;  %v6279_v10 = vadd.f32 %v1841_v28, %v1838_v26  ;;  %1945 = vrot.lane.b32.xlu2 %v6277_v2, %s9214_s5  ;;  %v1846_v46 = vrot.slane %v6277_v2, 7  ;;  %v2052_v16 = vrot.slane %v6277_v2, 1  ;;  %v6323_v37 = vmul.f32 %v6277_v2, %v9613_v21  ;;  %v9625_v28 = vld [vmem:[#allocation220_spill] sm:$0xff] }
 0x449   : > { %v6327_v42 = vmul.f32 %v6277_v2, %v9615_v58  ;;  %v6339_v48 = vmul.f32 %v6277_v2, %v9619_v9  ;;  %v6343_v12 = vmul.f32 %v6277_v2, %v9621_v20  ;;  %v6347_v31 = vmul.f32 %v6277_v2, %v9625_v28 }
 0x44a   : > { %9612 = vst [vmem:[#allocation357_spill] sm:$0xff] %v6279_v10  ;;  %1943 = vrot.lane.b32.xlu1 %v6279_v10, %s9214_s5  ;;  %v1845_v63 = vrot.slane %v6279_v10, 7  ;;  %v2051_v18 = vrot.slane %v6279_v10, 1  ;;  %v6315_v51 = vmul.f32 %v6279_v10, %v9613_v21  ;;  %v6319_v40 = vmul.f32 %v6279_v10, %v9615_v58  ;;  %v9636_v21 = vld [vmem:[#allocation193_spill] sm:$0xff] }
 0x44b   : > { %9617 = vst [vmem:[#allocation359_spill] sm:$0xff] %v6323_v37  ;;  %v6331_v22 = vmul.f32 %v6279_v10, %v9619_v9  ;;  %v6335_v33 = vmul.f32 %v6279_v10, %v9621_v20  ;;  %v6351_v26 = vmul.f32 %v6277_v2, %v9627_v13  ;;  %v9635_v9 = vld [vmem:[#allocation192_spill] sm:$0xff] }
 0x44c   : > { %v1847_v0 = vsel %vm296_vm4, %v1845_v63, %v1846_v46  ;;  %v1848_v39 = vsel %vm296_vm4, %v1846_v46, %v1845_v63  ;;  %v2053_v35 = vsel %vm551_vm5, %v2051_v18, %v2052_v16  ;;  %v2054_v52 = vsel %vm551_vm5, %v2052_v16, %v2051_v18  ;;  %9614 = vst [vmem:[#allocation356_spill] sm:$0xff] %v6315_v51  ;;  %v9629_v46 = vld [vmem:[#allocation222_spill] sm:$0xff]  ;;  %v9689_v51 = vld [vmem:[#allocation249_spill] sm:$0xff] }
 0x44d   : > { %1907 = vrot.lane.b32.xlu0 %v1847_v0, %s9218_s12  ;;  %v1849_v1 = vsel %vm116_vm0, %v1848_v39, 0.0  ;;  %v2056_v24 = vsel %vm115_vm1, %v2054_v52, 0.0  ;;  %9616 = vst [vmem:[#allocation358_spill] sm:$0xff] %v6319_v40  ;;  %v6355_v63 = vmul.f32 %v6277_v2, %v9629_v46  ;;  %v9631_v39 = vld [vmem:[#allocation226_spill] sm:$0xff]  ;;  %v6363_v16 = vmul.f32 %v6279_v10, %v9625_v28 }
 0x44e   : > { %9618 = vst [vmem:[#allocation326_spill] sm:$0xff] %v6327_v42  ;;  %v6359_v18 = vmul.f32 %v6277_v2, %v9631_v39  ;;  %v6367_v52 = vmul.f32 %v6279_v10, %v9627_v13  ;;  %v6370_v58 = vmul.f32 %v1847_v0, %v9635_v9  ;;  %v6373_v57 = vmul.f32 %v1847_v0, %v9636_v21  ;;  %v9639_v28 = vld [vmem:[#allocation194_spill] sm:$0xff]  ;;  %v9640_v13 = vld [vmem:[#allocation195_spill] sm:$0xff] }
 0x44f   : > { %9620 = vst [vmem:[#allocation327_spill] sm:$0xff] %v6331_v22  ;;  %v6377_v11 = vmul.f32 %v6279_v10, %v9629_v46  ;;  %v6384_v5 = vmul.f32 %v1847_v0, %v9639_v28  ;;  %v6387_v47 = vmul.f32 %v1847_v0, %v9640_v13  ;;  %v6390_v45 = vmul.f32 %v1847_v0, %v9641_v17  ;;  %v9644_v46 = vld [vmem:[#allocation202_spill] sm:$0xff]  ;;  %v9695_v42 = vld [vmem:[#allocation227_spill] sm:$0xff] }
 0x450   : > { %1905 = vrot.lane.b32.xlu2 %v1849_v1, %s9218_s12  ;;  %9622 = vst [vmem:[#allocation330_spill] sm:$0xff] %v6335_v33  ;;  %v6393_v15 = vmul.f32 %v1847_v0, %v9642_v38  ;;  %v6396_v14 = vmul.f32 %v1847_v0, %v9643_v3  ;;  %v6399_v8 = vmul.f32 %v1847_v0, %v9644_v46  ;;  %v9687_v22 = vld [vmem:[#allocation186_spill] sm:$0xff] }
 0x451   : > { %9623 = vst [vmem:[#allocation331_spill] sm:$0xff] %v6339_v48  ;;  %v6408_v61 = vmul.f32 %v1849_v1, %v9639_v28  ;;  %v6411_v32 = vmul.f32 %v1849_v1, %v9640_v13  ;;  %v6414_v60 = vmul.f32 %v1849_v1, %v9641_v17  ;;  %v6417_v62 = vmul.f32 %v1849_v1, %v9642_v38  ;;  %v9647_v28 = vld [vmem:[#allocation230_spill] sm:$0xff]  ;;  %v9649_v13 = vld [vmem:[#allocation231_spill] sm:$0xff]  ;;  %v9651_v17 = vld [vmem:[#allocation232_spill] sm:$0xff] }
 0x452   : > { %1853 = vrot.lane.b32.xlu1 %v1847_v0, %s9214_s5  ;;  %9624 = vst [vmem:[#allocation332_spill] sm:$0xff] %v6343_v12  ;;  %v6420_v0 = vmul.f32 %v1849_v1, %v9643_v3  ;;  %v6429_v30 = vmul.f32 %v2053_v35, %v9647_v28  ;;  %v6432_v34 = vmul.f32 %v2053_v35, %v9649_v13  ;;  %v9653_v38 = vld [vmem:[#allocation233_spill] sm:$0xff]  ;;  %v9655_v3 = vld [vmem:[#allocation234_spill] sm:$0xff]  ;;  %v9693_v12 = vld [vmem:[#allocation215_spill] sm:$0xff] }
 0x453   : > { %9626 = vst [vmem:[#allocation333_spill] sm:$0xff] %v6347_v31  ;;  %v6435_v49 = vmul.f32 %v2053_v35, %v9651_v17  ;;  %v6438_v19 = vmul.f32 %v2053_v35, %v9653_v38  ;;  %v6441_v43 = vmul.f32 %v2053_v35, %v9655_v3  ;;  %v6449_v53 = vmul.f32 %v2053_v35, %v9659_v55 }
 0x454   : > { %9628 = vst [vmem:[#allocation334_spill] sm:$0xff] %v6351_v26  ;;  %v6455_v36 = vmul.f32 %v2056_v24, %v9647_v28  ;;  %v6458_v44 = vmul.f32 %v2056_v24, %v9649_v13  ;;  %v6461_v25 = vmul.f32 %v2056_v24, %v9651_v17  ;;  %v6475_v28 = vmul.f32 %v2056_v24, %v9659_v55  ;;  %v9669_v13 = vld [vmem:[#allocation171_spill] sm:$0xff]  ;;  %v9670_v17 = vld [vmem:[#allocation172_spill] sm:$0xff] }
 0x455   : > { %1851 = vrot.lane.b32.xlu0 %v1849_v1, %s9214_s5  ;;  %9630 = vst [vmem:[#allocation373_spill] sm:$0xff] %v6355_v63  ;;  %v9691_v63 = vld [vmem:[#allocation250_spill] sm:$0xff] }
 0x456   : > { %9632 = vst [vmem:[#allocation374_spill] sm:$0xff] %v6359_v18 }
 0x457   : > { %9633 = vst [vmem:[#allocation335_spill] sm:$0xff] %v6363_v16  ;;  %v9685_v16 = vld [vmem:[#allocation185_spill] sm:$0xff] }
 0x458   : > { %2057 = vrot.lane.b32.xlu2 %v2053_v35, %s9214_s5  ;;  %9634 = vst [vmem:[#allocation377_spill] sm:$0xff] %v6367_v52 }
 0x459   : > { %9637 = vst [vmem:[#allocation378_spill] sm:$0xff] %v6377_v11 }
 0x45a   : > { %2015 = vrot.lane.b32.xlu1 %v6277_v2, %s9218_s12  ;;  %v6381_v2 = vmul.f32 %v6279_v10, %v9631_v39  ;;  %v6402_v39 = vmul.f32 %v1849_v1, %v9635_v9  ;;  %v6423_v9 = vmul.f32 %v1849_v1, %v9644_v46  ;;  %9648 = vst [vmem:[#allocation381_spill] sm:$0xff] %v6429_v30  ;;  %v9657_v46 = vld [vmem:[#allocation235_spill] sm:$0xff]  ;;  %v9680_v30 = vld [vmem:[#allocation182_spill] sm:$0xff] }
 0x45b   : > { %9650 = vst [vmem:[#allocation382_spill] sm:$0xff] %v6432_v34  ;;  %v6446_v29 = vmul.f32 %v2053_v35, %v9657_v46 }
 0x45c   : > { %9638 = vst [vmem:[#allocation379_spill] sm:$0xff] %v6381_v2  ;;  %v9681_v2 = vld [vmem:[#allocation183_spill] sm:$0xff] }
 0x45d   : > { %2013 = vrot.lane.b32.xlu0 %v6279_v10, %s9218_s12  ;;  %v6405_v10 = vmul.f32 %v1849_v1, %v9636_v21  ;;  %v9645_v21 = vld [vmem:[#allocation229_spill] sm:$0xff]  ;;  %9652 = vst [vmem:[#allocation324_spill] sm:$0xff] %v6435_v49 }
 0x45e   : > { %v6426_v56 = vmul.f32 %v2053_v35, %v9645_v21  ;;  %9654 = vst [vmem:[#allocation325_spill] sm:$0xff] %v6438_v19  ;;  %v6452_v23 = vmul.f32 %v2056_v24, %v9645_v21  ;;  %v6472_v21 = vmul.f32 %v2056_v24, %v9657_v46  ;;  %v9674_v46 = vld [vmem:[#allocation176_spill] sm:$0xff]  ;;  %v9679_v49 = vld [vmem:[#allocation181_spill] sm:$0xff] }
 0x45f   : > { %9656 = vst [vmem:[#allocation328_spill] sm:$0xff] %v6441_v43 }
 0x460   : > { %2129 = vrot.lane.b32.xlu2 %v2056_v24, %s9218_s12  ;;  %9646 = vst [vmem:[#allocation380_spill] sm:$0xff] %v6426_v56 }
 0x461   : > { %9658 = vst [vmem:[#allocation329_spill] sm:$0xff] %v6446_v29  ;;  %v9678_v29 = vld [vmem:[#allocation179_spill] sm:$0xff] }
 0x462   : > { %2127 = vrot.lane.b32.xlu1 %v2053_v35, %s9218_s12  ;;  %9660 = vst [vmem:[#allocation336_spill] sm:$0xff] %v6449_v53  ;;  %v6469_v35 = vmul.f32 %v2056_v24, %v9655_v3 }
 0x463   : > { %9661 = vst [vmem:[#allocation337_spill] sm:$0xff] %v6452_v23  ;;  %v9676_v23 = vld [vmem:[#allocation178_spill] sm:$0xff] }
 0x464   : > { %9662 = vst [vmem:[#allocation338_spill] sm:$0xff] %v6455_v36 }
 0x465   : > { %2059 = vrot.lane.b32.xlu0 %v2056_v24, %s9214_s5  ;;  %9663 = vst [vmem:[#allocation339_spill] sm:$0xff] %v6458_v44 }
 0x466   : > { %9664 = vst [vmem:[#allocation360_spill] sm:$0xff] %v6461_v25  ;;  %v9672_v25 = vld [vmem:[#allocation174_spill] sm:$0xff] }
 0x467   : > { %9666 = vst [vmem:[#allocation362_spill] sm:$0xff] %v6469_v35  ;;  %v9673_v35 = vld [vmem:[#allocation175_spill] sm:$0xff] }
 0x468   : > { %9667 = vst [vmem:[#allocation363_spill] sm:$0xff] %v6472_v21 }
 0x469   : > { %9668 = vst [vmem:[#allocation364_spill] sm:$0xff] %v6475_v28 }
 0x4a2   : > { %v1946_v54 = vpop.permute.xlu2 %1945 }
 0x4a3   : > { %v1948_v1 = vsel %vm3696_vm3, %v1946_v54, 0.0  ;;  %v6464_v54 = vmul.f32 %v2056_v24, %v9653_v38  ;;  %v9671_v38 = vld [vmem:[#allocation173_spill] sm:$0xff] }
 0x4a4   : > { %v6478_v27 = vmul.f32 %v1948_v1, %v9669_v13  ;;  %v6481_v41 = vmul.f32 %v1948_v1, %v9670_v17  ;;  %v6490_v44 = vmul.f32 %v1948_v1, %v9673_v35  ;;  %v6493_v21 = vmul.f32 %v1948_v1, %v9674_v46  ;;  %v9675_v24 = vld [vmem:[#allocation177_spill] sm:$0xff] }
 0x4a5   : > { %9665 = vst [vmem:[#allocation361_spill] sm:$0xff] %v6464_v54  ;;  %v6484_v54 = vmul.f32 %v1948_v1, %v9671_v38  ;;  %v6496_v55 = vmul.f32 %v1948_v1, %v9675_v24  ;;  %v6501_v53 = vmul.f32 %v1948_v1, %v9676_v23 }
 0x4a7   : > { %9677 = vst [vmem:[#allocation365_spill] sm:$0xff] %v6501_v53 }
 0x4aa   : > { %v1906_v59 = vpop.permute.xlu2 %1905 }
 0x4ab   : > { %v1909_v7 = vsel %vm3692_vm2, %v1906_v59, 0.0  ;;  %v6487_v59 = vmul.f32 %v1948_v1, %v9672_v25 }
 0x4ac   : > { %v6504_v43 = vmul.f32 %v1909_v7, %v9678_v29  ;;  %v6507_v19 = vmul.f32 %v1909_v7, %v9380_v4  ;;  %v6510_v34 = vmul.f32 %v1909_v7, %v9679_v49  ;;  %v6513_v56 = vmul.f32 %v1909_v7, %v9680_v30 }
 0x4ad   : > { %v6516_v11 = vmul.f32 %v1909_v7, %v9681_v2  ;;  %v6524_v33 = vmul.f32 %v1909_v7, %v9685_v16  ;;  %v6527_v40 = vmul.f32 %v1909_v7, %v9687_v22 }
 0x4af   : > { %9682 = vst [vmem:[#allocation366_spill] sm:$0xff] %v6516_v11 }
 0x4b0   : > { %9686 = vst [vmem:[#allocation340_spill] sm:$0xff] %v6524_v33 }
 0x4b1   : > { %9688 = vst [vmem:[#allocation341_spill] sm:$0xff] %v6527_v40  ;;  %v9699_v40 = vld [vmem:[#allocation224_spill] sm:$0xff] }
 0x4b2   : > { %v2058_v20 = vpop.permute.xlu2 %2057 }
 0x4b3   : > { %v2061_v28 = vsel %vm3696_vm3, %v2058_v20, 0.0  ;;  %v9683_v20 = vld [vmem:[#allocation184_spill] sm:$0xff] }
 0x4b4   : > { %v6519_v52 = vmul.f32 %v1909_v7, %v9683_v20  ;;  %v6530_v18 = vmul.f32 %v2061_v28, %v9689_v51  ;;  %v6533_v26 = vmul.f32 %v2061_v28, %v9691_v63  ;;  %v6536_v48 = vmul.f32 %v2061_v28, %v9693_v12  ;;  %v9701_v51 = vld [vmem:[#allocation225_spill] sm:$0xff]  ;;  %v9703_v63 = vld [vmem:[#allocation228_spill] sm:$0xff] }
 0x4b5   : > { %v6539_v37 = vmul.f32 %v2061_v28, %v9695_v42  ;;  %v6547_v33 = vmul.f32 %v2061_v28, %v9699_v40  ;;  %v9705_v12 = vld [vmem:[#allocation204_spill] sm:$0xff]  ;;  %v9707_v42 = vld [vmem:[#allocation205_spill] sm:$0xff] }
 0x4b6   : > { %9684 = vst [vmem:[#allocation367_spill] sm:$0xff] %v6519_v52  ;;  %v9711_v52 = vld [vmem:[#allocation207_spill] sm:$0xff]  ;;  %v9713_v40 = vld [vmem:[#allocation208_spill] sm:$0xff] }
 0x4b7   : > { %9690 = vst [vmem:[#allocation342_spill] sm:$0xff] %v6530_v18  ;;  %v6550_v18 = vmul.f32 %v2061_v28, %v9701_v51 }
 0x4b8   : > { %9692 = vst [vmem:[#allocation343_spill] sm:$0xff] %v6533_v26  ;;  %v6553_v26 = vmul.f32 %v2061_v28, %v9703_v63  ;;  %v9717_v63 = vld [vmem:[#allocation209_spill] sm:$0xff] }
 0x4b9   : > { %9694 = vst [vmem:[#allocation344_spill] sm:$0xff] %v6536_v48 }
 0x4ba   : > { %v2130_v3 = vpop.permute.xlu2 %2129  ;;  %9696 = vst [vmem:[#allocation345_spill] sm:$0xff] %v6539_v37 }
 0x4bb   : > { %v2132_v1 = vsel %vm3692_vm2, %v2130_v3, 0.0  ;;  %v9697_v3 = vld [vmem:[#allocation223_spill] sm:$0xff]  ;;  %9700 = vst [vmem:[#allocation347_spill] sm:$0xff] %v6547_v33 }
 0x4bc   : > { %v1944_v36 = vpop.permute.xlu1 %1943  ;;  %v6542_v53 = vmul.f32 %v2061_v28, %v9697_v3  ;;  %9702 = vst [vmem:[#allocation348_spill] sm:$0xff] %v6550_v18  ;;  %v6556_v48 = vmul.f32 %v2132_v1, %v9705_v12  ;;  %v6559_v37 = vmul.f32 %v2132_v1, %v9707_v42  ;;  %v9709_v3 = vld [vmem:[#allocation206_spill] sm:$0xff]  ;;  %v6568_v33 = vmul.f32 %v2132_v1, %v9713_v40  ;;  %v9733_v18 = vld [vmem:[#allocation191_spill] sm:$0xff] }
 0x4bd   : > { %v1947_v7 = vsel %vm3696_vm3, %v1944_v36, 0.0  ;;  %9704 = vst [vmem:[#allocation349_spill] sm:$0xff] %v6553_v26  ;;  %v6565_v36 = vmul.f32 %v2132_v1, %v9711_v52  ;;  %v9719_v42 = vld [vmem:[#allocation210_spill] sm:$0xff] }
 0x4be   : > { %9698 = vst [vmem:[#allocation346_spill] sm:$0xff] %v6542_v53  ;;  %v6562_v53 = vmul.f32 %v2132_v1, %v9709_v3  ;;  %v6571_v51 = vmul.f32 %v1947_v7, %v9669_v13  ;;  %v6574_v28 = vmul.f32 %v1947_v7, %v9670_v17  ;;  %v6592_v13 = vmul.f32 %v1947_v7, %v9674_v46  ;;  %v9730_v46 = vld [vmem:[#allocation188_spill] sm:$0xff]  ;;  %v9731_v3 = vld [vmem:[#allocation189_spill] sm:$0xff] }
 0x4bf   : > { %v1908_v31 = vpop.permute.xlu0 %1907  ;;  %9706 = vst [vmem:[#allocation350_spill] sm:$0xff] %v6556_v48  ;;  %v6577_v48 = vmul.f32 %v2132_v1, %v9717_v63  ;;  %v6595_v40 = vmul.f32 %v1947_v7, %v9675_v24  ;;  %v9732_v24 = vld [vmem:[#allocation190_spill] sm:$0xff] }
 0x4c0   : > { %9708 = vst [vmem:[#allocation351_spill] sm:$0xff] %v6559_v37  ;;  %v6580_v37 = vmul.f32 %v2132_v1, %v9719_v42 }
 0x4c1   : > { %9710 = vst [vmem:[#allocation352_spill] sm:$0xff] %v6562_v53  ;;  %v6583_v53 = vmul.f32 %v1947_v7, %v9671_v38  ;;  %v1910_v38 = vsel %vm3692_vm2, %v1908_v31, 0.0 }
 0x4c2   : > { %9712 = vst [vmem:[#allocation353_spill] sm:$0xff] %v6565_v36  ;;  %v6586_v36 = vmul.f32 %v1947_v7, %v9672_v25  ;;  %v1932_v50 = vmul.f32 %v1910_v38, %v9683_v20  ;;  %v1936_v11 = vmul.f32 %v1910_v38, %v9685_v16 }
 0x4c3   : > { %9714 = vst [vmem:[#allocation354_spill] sm:$0xff] %v6568_v33  ;;  %v6589_v33 = vmul.f32 %v1947_v7, %v9673_v35  ;;  %v9729_v35 = vld [vmem:[#allocation187_spill] sm:$0xff] }
 0x4c4   : > { %9715 = vst [vmem:[#allocation355_spill] sm:$0xff] %v6571_v51  ;;  %v1854_v17 = vpop.permute.xlu1 %1853 }
 0x4c5   : > { %9716 = vst [vmem:[#allocation368_spill] sm:$0xff] %v6574_v28  ;;  %v1856_v25 = vsel %vm3696_vm3, %v1854_v17, 0.0  ;;  %v9736_v17 = vld [vmem:[#allocation201_spill] sm:$0xff]  ;;  %v1928_v28 = vmul.f32 %v1910_v38, %v9681_v2 }
 0x4c6   : > { %9718 = vst [vmem:[#allocation369_spill] sm:$0xff] %v6577_v48  ;;  %v6598_v48 = vmul.f32 %v1947_v7, %v9676_v23  ;;  %v1858_v63 = vmul.f32 %v1856_v25, %v9729_v35  ;;  %v1860_v52 = vmul.f32 %v1856_v25, %v9730_v46  ;;  %v1862_v12 = vmul.f32 %v1856_v25, %v9731_v3  ;;  %v9734_v23 = vld [vmem:[#allocation199_spill] sm:$0xff] }
 0x4c7   : > { %9720 = vst [vmem:[#allocation370_spill] sm:$0xff] %v6580_v37  ;;  %v9727_v37 = vld [vmem:[#allocation244_spill] sm:$0xff]  ;;  %v1864_v26 = vmul.f32 %v1856_v25, %v9732_v24  ;;  %v1866_v7 = vmul.f32 %v1856_v25, %v9733_v18  ;;  %v1852_v51 = vpop.permute.xlu0 %1851 }
 0x4c8   : > { %9721 = vst [vmem:[#allocation371_spill] sm:$0xff] %v6583_v53  ;;  %v6605_v42 = vmul.f32 %v2132_v1, %v9727_v37  ;;  %v1876_v1 = vadd.f32 %v6370_v58, %v1858_v63  ;;  %v1916_v37 = vmul.f32 %v1910_v38, %v9380_v4  ;;  %v1924_v53 = vmul.f32 %v1910_v38, %v9680_v30 }
 0x4c9   : > { %9722 = vst [vmem:[#allocation372_spill] sm:$0xff] %v6586_v36  ;;  %v1920_v36 = vmul.f32 %v1910_v38, %v9679_v49  ;;  %v1888_v58 = vadd.f32 %v6387_v47, %v1864_v26  ;;  %v1855_v20 = vsel %vm3696_vm3, %v1852_v51, 0.0 }
 0x4ca   : > { %9723 = vst [vmem:[#allocation375_spill] sm:$0xff] %v6589_v33  ;;  %v1872_v33 = vmul.f32 %v1856_v25, %v9736_v17  ;;  %v1857_v16 = vmul.f32 %v1855_v20, %v9729_v35  ;;  %v1863_v47 = vmul.f32 %v1855_v20, %v9732_v24  ;;  %v9816_v35 = vld [vmem:[#allocation338_spill] sm:$0xff] }
 0x4cb   : > { %9724 = vst [vmem:[#allocation376_spill] sm:$0xff] %v6592_v13  ;;  %v1912_v13 = vmul.f32 %v1910_v38, %v9678_v29  ;;  %v1940_v29 = vmul.f32 %v1910_v38, %v9687_v22  ;;  %v1859_v38 = vmul.f32 %v1855_v20, %v9730_v46  ;;  %v9852_v22 = vld [vmem:[#allocation270_spill] sm:$0xff] }
 0x4cc   : > { %9725 = vst [vmem:[#allocation383_spill] sm:$0xff] %v6595_v40  ;;  %v9735_v40 = vld [vmem:[#allocation200_spill] sm:$0xff]  ;;  %v1904_v30 = vadd.f32 %v6399_v8, %v1872_v33  ;;  %v1871_v8 = vmul.f32 %v1855_v20, %v9736_v17  ;;  %v1875_v51 = vadd.f32 %v6402_v39, %v1857_v16 }
 0x4cd   : > { %9726 = vst [vmem:[#allocation322_spill] sm:$0xff] %v6598_v48  ;;  %v1868_v48 = vmul.f32 %v1856_v25, %v9734_v23  ;;  %v1870_v31 = vmul.f32 %v1856_v25, %v9735_v40  ;;  %v1884_v25 = vadd.f32 %v6384_v5, %v1862_v12  ;;  %v1914_v2 = vadd.f32 %v1912_v13, %v1876_v1 }
 0x4ce   : > { %9728 = vst [vmem:[#allocation323_spill] sm:$0xff] %v6605_v42  ;;  %v1880_v42 = vadd.f32 %v6373_v57, %v1860_v52  ;;  %v1892_v57 = vadd.f32 %v6390_v45, %v1866_v7  ;;  %v1861_v5 = vmul.f32 %v1855_v20, %v9731_v3  ;;  %v1865_v45 = vmul.f32 %v1855_v20, %v9733_v18  ;;  %v9815_v3 = vld [vmem:[#allocation337_spill] sm:$0xff] }
 0x4cf   : > { %v1896_v63 = vadd.f32 %v6393_v15, %v1868_v48  ;;  %v1900_v52 = vadd.f32 %v6396_v14, %v1870_v31  ;;  %v1867_v15 = vmul.f32 %v1855_v20, %v9734_v23  ;;  %v1869_v14 = vmul.f32 %v1855_v20, %v9735_v40  ;;  %v2016_v23 = vpop.permute.xlu1 %2015 }
 0x4d0   : > { %v1918_v49 = vadd.f32 %v1916_v37, %v1880_v42  ;;  %v1922_v37 = vadd.f32 %v1920_v36, %v1884_v25  ;;  %v1926_v42 = vadd.f32 %v1924_v53, %v1888_v58  ;;  %v1930_v33 = vadd.f32 %v1928_v28, %v1892_v57  ;;  %v9742_v36 = vld [vmem:[#allocation359_spill] sm:$0xff]  ;;  %v9747_v57 = vld [vmem:[#allocation333_spill] sm:$0xff] }
 0x4d1   : > { %v1934_v48 = vadd.f32 %v1932_v50, %v1896_v63  ;;  %v1938_v12 = vadd.f32 %v1936_v11, %v1900_v52  ;;  %v1879_v13 = vadd.f32 %v6405_v10, %v1859_v38  ;;  %v1883_v26 = vadd.f32 %v6408_v61, %v1861_v5  ;;  %v9748_v52 = vld [vmem:[#allocation334_spill] sm:$0xff]  ;;  %v9749_v5 = vld [vmem:[#allocation373_spill] sm:$0xff] }
 0x4d2   : > { %v1942_v7 = vadd.f32 %v1940_v29, %v1904_v30  ;;  %v1887_v31 = vadd.f32 %v6411_v32, %v1863_v47  ;;  %v1891_v1 = vadd.f32 %v6414_v60, %v1865_v45  ;;  %v1895_v40 = vadd.f32 %v6417_v62, %v1867_v15  ;;  %v9751_v15 = vld [vmem:[#allocation368_spill] sm:$0xff] }
 0x4d3   : > { %v1899_v20 = vadd.f32 %v6420_v0, %v1869_v14  ;;  %v1903_v53 = vadd.f32 %v6423_v9, %v1871_v8  ;;  %v1952_v39 = vadd.f32 %v6478_v27, %v1914_v2  ;;  %v1956_v50 = vadd.f32 %v6481_v41, %v1918_v49  ;;  %v9737_v2 = vld [vmem:[#allocation366_spill] sm:$0xff]  ;;  %v9738_v49 = vld [vmem:[#allocation367_spill] sm:$0xff]  ;;  %v9739_v9 = vld [vmem:[#allocation365_spill] sm:$0xff] }
 0x4d4   : > { %v1913_v11 = vadd.f32 %v6504_v43, %v1875_v51  ;;  %v1960_v61 = vadd.f32 %v6484_v54, %v1922_v37  ;;  %v1964_v29 = vadd.f32 %v6487_v59, %v1926_v42  ;;  %v1968_v30 = vadd.f32 %v6490_v44, %v1930_v33  ;;  %v9740_v0 = vld [vmem:[#allocation340_spill] sm:$0xff]  ;;  %v9741_v59 = vld [vmem:[#allocation341_spill] sm:$0xff]  ;;  %v9752_v8 = vld [vmem:[#allocation374_spill] sm:$0xff] }
 0x4d5   : > { %v1917_v60 = vadd.f32 %v6507_v19, %v1879_v13  ;;  %v1921_v62 = vadd.f32 %v6510_v34, %v1883_v26  ;;  %v1972_v32 = vadd.f32 %v6493_v21, %v1934_v48  ;;  %v1976_v10 = vadd.f32 %v6496_v55, %v1938_v12  ;;  %v9744_v55 = vld [vmem:[#allocation326_spill] sm:$0xff]  ;;  %v9753_v42 = vld [vmem:[#allocation236_spill] sm:$0xff]  ;;  %v9754_v51 = vld [vmem:[#allocation237_spill] sm:$0xff] }
 0x4d6   : > { %v1925_v27 = vadd.f32 %v6513_v56, %v1887_v31  ;;  %v1929_v41 = vadd.f32 %v9737_v2, %v1891_v1  ;;  %v1933_v43 = vadd.f32 %v9738_v49, %v1895_v40  ;;  %v1980_v16 = vadd.f32 %v9739_v9, %v1942_v7  ;;  %v9745_v56 = vld [vmem:[#allocation331_spill] sm:$0xff]  ;;  %v9746_v40 = vld [vmem:[#allocation332_spill] sm:$0xff]  ;;  %v9755_v12 = vld [vmem:[#allocation238_spill] sm:$0xff]  ;;  %v2014_v49 = vpop.permute.xlu0 %2013 }
 0x4d7   : > { %v1937_v54 = vadd.f32 %v9740_v0, %v1899_v20  ;;  %v1941_v44 = vadd.f32 %v9741_v59, %v1903_v53  ;;  %v6666_v19 = vadd.f32 %v9742_v36, %v1952_v39  ;;  %v6670_v21 = vsel %vm3692_vm2, %v2016_v23, 0.0  ;;  %v9750_v23 = vld [vmem:[#allocation355_spill] sm:$0xff]  ;;  %v9757_v31 = vld [vmem:[#allocation240_spill] sm:$0xff]  ;;  %v9758_v20 = vld [vmem:[#allocation241_spill] sm:$0xff]  ;;  %v2128_v9 = vpop.permute.xlu1 %2127 }
 0x4d8   : > { %v6673_v28 = vadd.f32 %v9744_v55, %v1956_v50  ;;  %v6676_v25 = vadd.f32 %v9745_v56, %v1960_v61  ;;  %v6679_v58 = vadd.f32 %v9746_v40, %v1964_v29  ;;  %v6682_v63 = vadd.f32 %v9747_v57, %v1968_v30  ;;  %v9756_v26 = vld [vmem:[#allocation239_spill] sm:$0xff]  ;;  %v9759_v39 = vld [vmem:[#allocation242_spill] sm:$0xff]  ;;  %v9761_v29 = vld [vmem:[#allocation372_spill] sm:$0xff] }
 0x4d9   : > { %v6685_v38 = vadd.f32 %v9748_v52, %v1972_v32  ;;  %v6688_v47 = vadd.f32 %v9749_v5, %v1976_v10  ;;  %v1951_v45 = vadd.f32 %v9750_v23, %v1913_v11  ;;  %v1955_v14 = vadd.f32 %v9751_v15, %v1917_v60  ;;  %v9760_v11 = vld [vmem:[#allocation371_spill] sm:$0xff]  ;;  %v9763_v10 = vld [vmem:[#allocation376_spill] sm:$0xff]  ;;  %v9765_v59 = vld [vmem:[#allocation322_spill] sm:$0xff] }
 0x4da   : > { %v6693_v37 = vadd.f32 %v9752_v8, %v1980_v16  ;;  %v6697_v33 = vmul.f32 %v6670_v21, %v9753_v42  ;;  %v6701_v48 = vmul.f32 %v6670_v21, %v9754_v51  ;;  %v6705_v13 = vmul.f32 %v6670_v21, %v9755_v12  ;;  %v9762_v60 = vld [vmem:[#allocation375_spill] sm:$0xff]  ;;  %v9766_v55 = vld [vmem:[#allocation356_spill] sm:$0xff]  ;;  %v9767_v40 = vld [vmem:[#allocation358_spill] sm:$0xff] }
 0x4db   : > { %v6709_v7 = vmul.f32 %v6670_v21, %v9756_v26  ;;  %v6713_v1 = vmul.f32 %v6670_v21, %v9757_v31  ;;  %v6717_v53 = vmul.f32 %v6670_v21, %v9758_v20  ;;  %v6721_v50 = vmul.f32 %v6670_v21, %v9759_v39  ;;  %v9764_v16 = vld [vmem:[#allocation383_spill] sm:$0xff]  ;;  %v9769_v23 = vld [vmem:[#allocation330_spill] sm:$0xff]  ;;  %v9771_v8 = vld [vmem:[#allocation377_spill] sm:$0xff] }
 0x4dc   : > { %v1959_v61 = vadd.f32 %v9760_v11, %v1921_v62  ;;  %v1963_v30 = vadd.f32 %v9761_v29, %v1925_v27  ;;  %v1967_v32 = vadd.f32 %v9762_v60, %v1929_v41  ;;  %v1971_v2 = vadd.f32 %v9763_v10, %v1933_v43  ;;  %v9768_v52 = vld [vmem:[#allocation327_spill] sm:$0xff]  ;;  %v9772_v11 = vld [vmem:[#allocation378_spill] sm:$0xff] }
 0x4dd   : > { %v1975_v0 = vadd.f32 %v9764_v16, %v1937_v54  ;;  %v1979_v36 = vadd.f32 %v9765_v59, %v1941_v44  ;;  %v1983_v56 = vadd.f32 %v9766_v55, %v1951_v45  ;;  %v1987_v57 = vadd.f32 %v9767_v40, %v1955_v14  ;;  %v9770_v15 = vld [vmem:[#allocation335_spill] sm:$0xff] }
 0x4de   : > { %v1991_v5 = vadd.f32 %v9768_v52, %v1959_v61  ;;  %v1995_v62 = vadd.f32 %v9769_v23, %v1963_v30  ;;  %v1999_v27 = vadd.f32 %v9770_v15, %v1967_v32  ;;  %v2003_v41 = vadd.f32 %v9771_v8, %v1971_v2  ;;  %v9773_v29 = vld [vmem:[#allocation379_spill] sm:$0xff]  ;;  %v9775_v15 = vld [vmem:[#allocation342_spill] sm:$0xff] }
 0x4df   : > { %v2007_v43 = vadd.f32 %v9772_v11, %v1975_v0  ;;  %v2011_v60 = vadd.f32 %v9773_v29, %v1979_v36  ;;  %v2017_v54 = vsel %vm3692_vm2, %v2014_v49, 0.0  ;;  %v2131_v44 = vsel %vm3692_vm2, %v2128_v9, 0.0  ;;  %v9774_v16 = vld [vmem:[#allocation243_spill] sm:$0xff] }
 0x4e0   : > { %v2019_v45 = vmul.f32 %v2017_v54, %v9753_v42  ;;  %v2023_v14 = vmul.f32 %v2017_v54, %v9754_v51  ;;  %v2027_v61 = vmul.f32 %v2017_v54, %v9755_v12  ;;  %v2031_v30 = vmul.f32 %v2017_v54, %v9756_v26  ;;  %v9776_v11 = vld [vmem:[#allocation343_spill] sm:$0xff]  ;;  %v9777_v26 = vld [vmem:[#allocation344_spill] sm:$0xff]  ;;  %v9778_v12 = vld [vmem:[#allocation345_spill] sm:$0xff] }
 0x4e1   : > { %v2035_v32 = vmul.f32 %v2017_v54, %v9757_v31  ;;  %v2039_v10 = vmul.f32 %v2017_v54, %v9758_v20  ;;  %v2043_v2 = vmul.f32 %v2017_v54, %v9759_v39  ;;  %v2047_v0 = vmul.f32 %v2017_v54, %v9774_v16  ;;  %v9779_v51 = vld [vmem:[#allocation346_spill] sm:$0xff]  ;;  %v9780_v42 = vld [vmem:[#allocation347_spill] sm:$0xff] }
 0x4e2   : > { %v2021_v49 = vadd.f32 %v2019_v45, %v1983_v56  ;;  %v2025_v59 = vadd.f32 %v2023_v14, %v1987_v57  ;;  %v2029_v36 = vadd.f32 %v2027_v61, %v1991_v5  ;;  %v2033_v9 = vadd.f32 %v2031_v30, %v1995_v62  ;;  %v9781_v56 = vld [vmem:[#allocation348_spill] sm:$0xff]  ;;  %v9782_v5 = vld [vmem:[#allocation349_spill] sm:$0xff]  ;;  %v9785_v45 = vld [vmem:[#allocation382_spill] sm:$0xff] }
 0x4e3   : > { %v2037_v55 = vadd.f32 %v2035_v32, %v1999_v27  ;;  %v2041_v40 = vadd.f32 %v2039_v10, %v2003_v41  ;;  %v2045_v52 = vadd.f32 %v2043_v2, %v2007_v43  ;;  %v2049_v23 = vadd.f32 %v2047_v0, %v2011_v60  ;;  %v9783_v27 = vld [vmem:[#allocation380_spill] sm:$0xff]  ;;  %v9784_v43 = vld [vmem:[#allocation381_spill] sm:$0xff] }
 0x4e4   : > { %v2065_v8 = vadd.f32 %v9775_v15, %v2021_v49  ;;  %v2069_v29 = vadd.f32 %v9776_v11, %v2025_v59  ;;  %v2073_v31 = vadd.f32 %v9777_v26, %v2029_v36  ;;  %v2077_v20 = vadd.f32 %v9778_v12, %v2033_v9  ;;  %v9786_v61 = vld [vmem:[#allocation324_spill] sm:$0xff]  ;;  %v9787_v32 = vld [vmem:[#allocation325_spill] sm:$0xff]  ;;  %v9797_v11 = vld [vmem:[#allocation210_spill] sm:$0xff] }
 0x4e5   : > { %v2081_v39 = vadd.f32 %v9779_v51, %v2037_v55  ;;  %v2085_v54 = vadd.f32 %v9780_v42, %v2041_v40  ;;  %v2089_v57 = vadd.f32 %v9781_v56, %v2045_v52  ;;  %v2093_v62 = vadd.f32 %v9782_v5, %v2049_v23  ;;  %v9788_v10 = vld [vmem:[#allocation328_spill] sm:$0xff]  ;;  %v9789_v2 = vld [vmem:[#allocation329_spill] sm:$0xff]  ;;  %v9793_v40 = vld [vmem:[#allocation206_spill] sm:$0xff] }
 0x4e6   : > { %v2097_v41 = vadd.f32 %v9783_v27, %v2065_v8  ;;  %v2101_v60 = vadd.f32 %v9784_v43, %v2069_v29  ;;  %v2105_v14 = vadd.f32 %v9785_v45, %v2073_v31  ;;  %v2109_v30 = vadd.f32 %v9786_v61, %v2077_v20  ;;  %v9790_v0 = vld [vmem:[#allocation336_spill] sm:$0xff]  ;;  %v9792_v9 = vld [vmem:[#allocation205_spill] sm:$0xff]  ;;  %v9794_v31 = vld [vmem:[#allocation207_spill] sm:$0xff] }
 0x4e7   : > { %v2113_v26 = vadd.f32 %v9787_v32, %v2081_v39  ;;  %v2117_v12 = vadd.f32 %v9788_v10, %v2085_v54  ;;  %v2121_v51 = vadd.f32 %v9789_v2, %v2089_v57  ;;  %v2125_v42 = vadd.f32 %v9790_v0, %v2093_v62  ;;  %v9791_v59 = vld [vmem:[#allocation204_spill] sm:$0xff]  ;;  %v9796_v39 = vld [vmem:[#allocation209_spill] sm:$0xff]  ;;  %v9800_v0 = vld [vmem:[#allocation246_spill] sm:$0xff] }
 0x4e8   : > { %v2048_v49 = vmul.f32 %v6670_v21, %v9774_v16  ;;  %v2133_v36 = vmul.f32 %v2131_v44, %v9791_v59  ;;  %v2137_v55 = vmul.f32 %v2131_v44, %v9792_v9  ;;  %v2141_v52 = vmul.f32 %v2131_v44, %v9793_v40  ;;  %v9795_v20 = vld [vmem:[#allocation208_spill] sm:$0xff]  ;;  %v9799_v10 = vld [vmem:[#allocation245_spill] sm:$0xff]  ;;  %v9820_v59 = vld [vmem:[#allocation362_spill] sm:$0xff] }
 0x4e9   : > { %v2145_v23 = vmul.f32 %v2131_v44, %v9794_v31  ;;  %v2149_v15 = vmul.f32 %v2131_v44, %v9795_v20  ;;  %v2153_v8 = vmul.f32 %v2131_v44, %v9796_v39  ;;  %v2157_v29 = vmul.f32 %v2131_v44, %v9797_v11  ;;  %v9798_v5 = vld [vmem:[#allocation244_spill] sm:$0xff]  ;;  %v9817_v11 = vld [vmem:[#allocation339_spill] sm:$0xff]  ;;  %v9819_v40 = vld [vmem:[#allocation361_spill] sm:$0xff] }
 0x4ea   : > { %v2135_v54 = vadd.f32 %v2133_v36, %v2097_v41  ;;  %v2139_v56 = vadd.f32 %v2137_v55, %v2101_v60  ;;  %v2143_v57 = vadd.f32 %v2141_v52, %v2105_v14  ;;  %v2161_v62 = vmul.f32 %v2131_v44, %v9798_v5  ;;  %v2060_v14 = vpop.permute.xlu0 %2059  ;;  %v9809_v55 = vld [vmem:[#allocation215_spill] sm:$0xff]  ;;  %v9818_v20 = vld [vmem:[#allocation360_spill] sm:$0xff] }
 0x4eb   : > { %v2147_v21 = vadd.f32 %v2145_v23, %v2109_v30  ;;  %v2151_v27 = vadd.f32 %v2149_v15, %v2113_v26  ;;  %v2155_v43 = vadd.f32 %v2153_v8, %v2117_v12  ;;  %v2159_v45 = vadd.f32 %v2157_v29, %v2121_v51  ;;  %v9801_v26 = vld [vmem:[#allocation247_spill] sm:$0xff] }
 0x4ec   : > { %v2022_v61 = vadd.f32 %v6697_v33, %v6666_v19  ;;  %v2163_v32 = vadd.f32 %v2161_v62, %v2125_v42  ;;  %v2165_v2 = vadd.f32 %v2135_v54, %v9799_v10  ;;  %v2169_v16 = vadd.f32 %v2139_v56, %v9800_v0  ;;  %v9804_v51 = vld [vmem:[#allocation251_spill] sm:$0xff]  ;;  %v9812_v54 = vld [vmem:[#allocation224_spill] sm:$0xff] }
 0x4ed   : > { %v2026_v17 = vadd.f32 %v6701_v48, %v6673_v28  ;;  %v2030_v41 = vadd.f32 %v6705_v13, %v6676_v25  ;;  %v2034_v44 = vadd.f32 %v6709_v7, %v6679_v58  ;;  %v2038_v60 = vadd.f32 %v6713_v1, %v6682_v63  ;;  %v9802_v48 = vld [vmem:[#allocation248_spill] sm:$0xff]  ;;  %v9803_v25 = vld [vmem:[#allocation169_spill] sm:$0xff]  ;;  %v9810_v23 = vld [vmem:[#allocation227_spill] sm:$0xff] }
 0x4ee   : > { %v2042_v19 = vadd.f32 %v6717_v53, %v6685_v38  ;;  %v2046_v33 = vadd.f32 %v6721_v50, %v6688_v47  ;;  %v2050_v30 = vadd.f32 %v2048_v49, %v6693_v37  ;;  %v2173_v28 = vadd.f32 %v2143_v57, %v9801_v26  ;;  %v9805_v7 = vld [vmem:[#allocation252_spill] sm:$0xff]  ;;  %v9806_v38 = vld [vmem:[#allocation253_spill] sm:$0xff]  ;;  %v9808_v49 = vld [vmem:[#allocation250_spill] sm:$0xff] }
 0x4ef   : > { %v2177_v12 = vadd.f32 %v2147_v21, %v9802_v48  ;;  %v2181_v13 = vadd.f32 %v2151_v27, %v9803_v25  ;;  %v2185_v58 = vadd.f32 %v2155_v43, %v9804_v51  ;;  %v2189_v42 = vadd.f32 %v2159_v45, %v9805_v7  ;;  %v9807_v37 = vld [vmem:[#allocation249_spill] sm:$0xff]  ;;  %v9811_v8 = vld [vmem:[#allocation223_spill] sm:$0xff]  ;;  %v9814_v62 = vld [vmem:[#allocation228_spill] sm:$0xff] }
 0x4f0   : > { %v6797_v63 = vmax.f32 %v2165_v2, 0.0  ;;  %v6799_v1 = vmax.f32 %v2169_v16, 0.0  ;;  %v2193_v53 = vadd.f32 %v2163_v32, %v9806_v38  ;;  %v2062_v47 = vsel %vm3696_vm3, %v2060_v14, 0.0  ;;  %v9813_v57 = vld [vmem:[#allocation225_spill] sm:$0xff] }
 0x4f1   : > { %v2064_v50 = vmul.f32 %v2062_v47, %v9807_v37  ;;  %v2068_v36 = vmul.f32 %v2062_v47, %v9808_v49  ;;  %v2072_v52 = vmul.f32 %v2062_v47, %v9809_v55  ;;  %v2076_v15 = vmul.f32 %v2062_v47, %v9810_v23  ;;  %v9851_v55 = vld [vmem:[#allocation269_spill] sm:$0xff] }
 0x4f2   : > { %v2080_v29 = vmul.f32 %v2062_v47, %v9811_v8  ;;  %v2084_v56 = vmul.f32 %v2062_v47, %v9812_v54  ;;  %v2088_v16 = vmul.f32 %v2062_v47, %v9813_v57  ;;  %v2092_v21 = vmul.f32 %v2062_v47, %v9814_v62 }
 0x4f3   : > { %v2066_v27 = vadd.f32 %v2064_v50, %v2022_v61  ;;  %v2070_v43 = vadd.f32 %v2068_v36, %v2026_v17  ;;  %v2074_v45 = vadd.f32 %v2072_v52, %v2030_v41  ;;  %v2078_v32 = vadd.f32 %v2076_v15, %v2034_v44  ;;  %v9821_v61 = vld [vmem:[#allocation363_spill] sm:$0xff]  ;;  %v9822_v41 = vld [vmem:[#allocation364_spill] sm:$0xff]  ;;  %v9826_v36 = vld [vmem:[#allocation353_spill] sm:$0xff] }
 0x4f4   : > { %v2082_v2 = vadd.f32 %v2080_v29, %v2038_v60  ;;  %v2086_v14 = vadd.f32 %v2084_v56, %v2042_v19  ;;  %v2090_v18 = vadd.f32 %v2088_v16, %v2046_v33  ;;  %v2094_v24 = vadd.f32 %v2092_v21, %v2050_v30  ;;  %v9823_v60 = vld [vmem:[#allocation350_spill] sm:$0xff]  ;;  %v9824_v33 = vld [vmem:[#allocation351_spill] sm:$0xff]  ;;  %v9825_v50 = vld [vmem:[#allocation352_spill] sm:$0xff] }
 0x4f5   : > { %v2098_v46 = vadd.f32 %v9815_v3, %v2066_v27  ;;  %v2102_v5 = vadd.f32 %v9816_v35, %v2070_v43  ;;  %v2106_v39 = vadd.f32 %v9817_v11, %v2074_v45  ;;  %v2110_v31 = vadd.f32 %v9818_v20, %v2078_v32  ;;  %v9827_v52 = vld [vmem:[#allocation354_spill] sm:$0xff]  ;;  %v9828_v15 = vld [vmem:[#allocation369_spill] sm:$0xff]  ;;  %v9830_v56 = vld [vmem:[#allocation323_spill] sm:$0xff] }
 0x4f6   : > { %v2114_v9 = vadd.f32 %v9819_v40, %v2082_v2  ;;  %v2118_v47 = vadd.f32 %v9820_v59, %v2086_v14  ;;  %v2122_v17 = vadd.f32 %v9821_v61, %v2090_v18  ;;  %v2126_v44 = vadd.f32 %v9822_v41, %v2094_v24  ;;  %v9829_v29 = vld [vmem:[#allocation370_spill] sm:$0xff] }
 0x4f7   : > { %v2136_v19 = vadd.f32 %v9823_v60, %v2098_v46  ;;  %v2140_v30 = vadd.f32 %v9824_v33, %v2102_v5  ;;  %v2144_v3 = vadd.f32 %v9825_v50, %v2106_v39  ;;  %v2148_v35 = vadd.f32 %v9826_v36, %v2110_v31  ;;  %v9833_v36 = vld [vmem:[#allocation212_spill] sm:$0xff] }
 0x4f8   : > { %v2152_v11 = vadd.f32 %v9827_v52, %v2114_v9  ;;  %v2156_v20 = vadd.f32 %v9828_v15, %v2118_v47  ;;  %v2160_v40 = vadd.f32 %v9829_v29, %v2122_v17  ;;  %v2164_v59 = vadd.f32 %v9830_v56, %v2126_v44  ;;  %v9832_v44 = vld [vmem:[#allocation211_spill] sm:$0xff]  ;;  %v9835_v52 = vld [vmem:[#allocation256_spill] sm:$0xff]  ;;  %v9836_v15 = vld [vmem:[#allocation213_spill] sm:$0xff] }
 0x4f9   : > { %v2166_v18 = vadd.f32 %v2136_v19, %v9799_v10  ;;  %v2170_v24 = vadd.f32 %v2140_v30, %v9800_v0  ;;  %v2174_v46 = vadd.f32 %v2144_v3, %v9801_v26  ;;  %v2178_v5 = vadd.f32 %v2148_v35, %v9802_v48  ;;  %v9848_v0 = vld [vmem:[#allocation267_spill] sm:$0xff] }
 0x4fa   : > { %v2182_v39 = vadd.f32 %v2152_v11, %v9803_v25  ;;  %v2186_v31 = vadd.f32 %v2156_v20, %v9804_v51  ;;  %v2190_v9 = vadd.f32 %v2160_v40, %v9805_v7  ;;  %v2194_v16 = vadd.f32 %v2164_v59, %v9806_v38  ;;  %v9837_v20 = vld [vmem:[#allocation214_spill] sm:$0xff]  ;;  %v9839_v40 = vld [vmem:[#allocation257_spill] sm:$0xff]  ;;  %v9847_v25 = vld [vmem:[#allocation263_spill] sm:$0xff] }
 0x4fb   : > { %v6836_v21 = vmax.f32 %v2173_v28, 0.0  ;;  %v6838_v27 = vmax.f32 %v2166_v18, 0.0  ;;  %v6840_v43 = vmax.f32 %v2170_v24, 0.0  ;;  %v6842_v45 = vmax.f32 %v2174_v46, 0.0  ;;  %v9831_v28 = vld [vmem:[#allocation170_spill] sm:$0xff]  ;;  %v9845_v7 = vld [vmem:[#allocation265_spill] sm:$0xff] }
 0x4fc   : > { %v6844_v32 = vmax.f32 %v2178_v5, 0.0  ;;  %v6846_v2 = vmax.f32 %v2182_v39, 0.0  ;;  %v6848_v14 = vmax.f32 %v2186_v31, 0.0  ;;  %v6850_v47 = vmax.f32 %v2190_v9, 0.0  ;;  %v9840_v24 = vld [vmem:[#allocation258_spill] sm:$0xff]  ;;  %v9841_v5 = vld [vmem:[#allocation264_spill] sm:$0xff] }
 0x4fd   : > { %v6852_v61 = vmax.f32 %v2177_v12, 0.0  ;;  %v6854_v17 = vmax.f32 %v2181_v13, 0.0  ;;  %v2418_v41 = vmul.f32 %v6838_v27, %v9831_v28  ;;  %v2420_v60 = vmul.f32 %v6840_v43, %v9832_v44  ;;  %v9834_v13 = vld [vmem:[#allocation255_spill] sm:$0xff] }
 0x4fe   : > { %v6860_v19 = vmax.f32 %v2185_v58, 0.0  ;;  %v6862_v33 = vmax.f32 %v2189_v42, 0.0  ;;  %v6864_v30 = vmax.f32 %v2193_v53, 0.0  ;;  %v6866_v50 = vmax.f32 %v2194_v16, 0.0  ;;  %v9838_v53 = vld [vmem:[#allocation254_spill] sm:$0xff]  ;;  %v9842_v31 = vld [vmem:[#allocation259_spill] sm:$0xff] }
 0x4ff   : > { %v2422_v3 = vadd.f32 %v2420_v60, %v2418_v41  ;;  %v2424_v12 = vmul.f32 %v6842_v45, %v9833_v36  ;;  %v2266_v35 = vmul.f32 %v6838_v27, %v9834_v13  ;;  %v2268_v11 = vmul.f32 %v6840_v43, %v9835_v52  ;;  %v9843_v16 = vld [vmem:[#allocation260_spill] sm:$0xff]  ;;  %v9844_v60 = vld [vmem:[#allocation261_spill] sm:$0xff] }
 0x500   : > { %v2428_v58 = vmul.f32 %v6844_v32, %v9836_v15  ;;  %v2432_v42 = vmul.f32 %v6846_v2, %v9837_v20  ;;  %v2436_v29 = vmul.f32 %v6848_v14, %v9838_v53  ;;  %v2440_v56 = vmul.f32 %v6850_v47, %v9839_v40 }
 0x501   : > { %v2426_v59 = vadd.f32 %v2424_v12, %v2422_v3  ;;  %v2270_v18 = vadd.f32 %v2268_v11, %v2266_v35  ;;  %v2272_v46 = vmul.f32 %v6842_v45, %v9840_v24  ;;  %v2198_v39 = vmul.f32 %v6838_v27, %v9841_v5  ;;  %v9846_v35 = vld [vmem:[#allocation262_spill] sm:$0xff] }
 0x502   : > { %v2444_v9 = vmul.f32 %v6866_v50, %v9842_v31  ;;  %v2276_v41 = vmul.f32 %v6844_v32, %v9843_v16  ;;  %v2280_v38 = vmul.f32 %v6846_v2, %v9844_v60  ;;  %v2200_v51 = vmul.f32 %v6840_v43, %v9845_v7 }
 0x503   : > { %v2430_v3 = vadd.f32 %v2428_v58, %v2426_v59  ;;  %v2274_v12 = vadd.f32 %v2272_v46, %v2270_v18  ;;  %v2284_v11 = vmul.f32 %v6848_v14, %v9846_v35  ;;  %v2288_v48 = vmul.f32 %v6850_v47, %v9847_v25  ;;  %v9849_v58 = vld [vmem:[#allocation266_spill] sm:$0xff]  ;;  %v9850_v18 = vld [vmem:[#allocation268_spill] sm:$0xff] }
 0x504   : > { %v2202_v26 = vadd.f32 %v2200_v51, %v2198_v39  ;;  %v2204_v10 = vmul.f32 %v6842_v45, %v9848_v0  ;;  %v2265_v62 = vmul.f32 %v6797_v63, %v9834_v13  ;;  %v2267_v57 = vmul.f32 %v6799_v1, %v9835_v52  ;;  %v9853_v52 = vld [vmem:[#allocation271_spill] sm:$0xff] }
 0x505   : > { %v2434_v54 = vadd.f32 %v2432_v42, %v2430_v3  ;;  %v2278_v8 = vadd.f32 %v2276_v41, %v2274_v12  ;;  %v2292_v59 = vmul.f32 %v6866_v50, %v9849_v58  ;;  %v2208_v46 = vmul.f32 %v6844_v32, %v9850_v18 }
 0x506   : > { %v2206_v23 = vadd.f32 %v2204_v10, %v2202_v26  ;;  %v2212_v51 = vmul.f32 %v6846_v2, %v9851_v55  ;;  %v2269_v39 = vadd.f32 %v2267_v57, %v2265_v62  ;;  %v2271_v49 = vmul.f32 %v6836_v21, %v9840_v24 }
 0x507   : > { %v2438_v13 = vadd.f32 %v2436_v29, %v2434_v54  ;;  %v2282_v37 = vadd.f32 %v2280_v38, %v2278_v8  ;;  %v2216_v42 = vmul.f32 %v6848_v14, %v9852_v22  ;;  %v2275_v41 = vmul.f32 %v6852_v61, %v9843_v16 }
 0x508   : > { %v2210_v3 = vadd.f32 %v2208_v46, %v2206_v23  ;;  %v2273_v12 = vadd.f32 %v2271_v49, %v2269_v39  ;;  %v2197_v10 = vmul.f32 %v6797_v63, %v9841_v5  ;;  %v2199_v26 = vmul.f32 %v6799_v1, %v9845_v7  ;;  %v9854_v39 = vld [vmem:[#allocation272_spill] sm:$0xff] }
 0x509   : > { %v2442_v57 = vadd.f32 %v2440_v56, %v2438_v13  ;;  %v2286_v62 = vadd.f32 %v2284_v11, %v2282_v37  ;;  %v2220_v54 = vmul.f32 %v6850_v47, %v9853_v52  ;;  %v2279_v38 = vmul.f32 %v6854_v17, %v9844_v60 }
 0x50a   : > { %v2214_v8 = vadd.f32 %v2212_v51, %v2210_v3  ;;  %v2277_v29 = vadd.f32 %v2275_v41, %v2273_v12  ;;  %v2201_v24 = vadd.f32 %v2199_v26, %v2197_v10  ;;  %v2203_v49 = vmul.f32 %v6836_v21, %v9848_v0  ;;  %v9856_v3 = vld [vmem:[#allocation274_spill] sm:$0xff] }
 0x50b   : > { %v2446_v23 = vadd.f32 %v2444_v9, %v2442_v57  ;;  %v2290_v46 = vadd.f32 %v2288_v48, %v2286_v62  ;;  %v2224_v16 = vmul.f32 %v6866_v50, %v9854_v39  ;;  %v2283_v37 = vmul.f32 %v6860_v19, %v9846_v35  ;;  %v9855_v9 = vld [vmem:[#allocation273_spill] sm:$0xff]  ;;  %v9868_v0 = vld [vmem:[#allocation286_spill] sm:$0xff]  ;;  %v9874_v35 = vld [vmem:[#allocation292_spill] sm:$0xff] }
 0x50c   : > { %v2218_v13 = vadd.f32 %v2216_v42, %v2214_v8  ;;  %v2281_v56 = vadd.f32 %v2279_v38, %v2277_v29  ;;  %v2205_v11 = vadd.f32 %v2203_v49, %v2201_v24  ;;  %v2207_v7 = vmul.f32 %v6852_v61, %v9850_v18  ;;  %v9857_v38 = vld [vmem:[#allocation275_spill] sm:$0xff] }
 0x50d   : > { %2449 = vrot.lane.b32.xlu2 %v2446_v23, %s9214_s5  ;;  %v2294_v51 = vadd.f32 %v2292_v59, %v2290_v46  ;;  %v2287_v41 = vmul.f32 %v6862_v33, %v9847_v25  ;;  %v2310_v48 = vmul.f32 %v6838_v27, %v9855_v9  ;;  %v2312_v12 = vmul.f32 %v6840_v43, %v9856_v3  ;;  %v9858_v46 = vld [vmem:[#allocation276_spill] sm:$0xff] }
 0x50e   : > { %v2222_v10 = vadd.f32 %v2220_v54, %v2218_v13  ;;  %v2285_v26 = vadd.f32 %v2283_v37, %v2281_v56  ;;  %v2209_v42 = vadd.f32 %v2207_v7, %v2205_v11  ;;  %v2211_v24 = vmul.f32 %v6854_v17, %v9851_v55  ;;  %v9859_v13 = vld [vmem:[#allocation278_spill] sm:$0xff]  ;;  %v9860_v11 = vld [vmem:[#allocation279_spill] sm:$0xff]  ;;  %v9864_v55 = vld [vmem:[#allocation281_spill] sm:$0xff] }
 0x50f   : > { %2297 = vrot.lane.b32.xlu0 %v2294_v51, %s9218_s12  ;;  %v2291_v59 = vmul.f32 %v6864_v30, %v9849_v58  ;;  %v2215_v57 = vmul.f32 %v6860_v19, %v9852_v22  ;;  %v2314_v62 = vadd.f32 %v2312_v12, %v2310_v48  ;;  %v2316_v8 = vmul.f32 %v6842_v45, %v9857_v38 }
 0x510   : > { %v2226_v29 = vadd.f32 %v2224_v16, %v2222_v10  ;;  %v2289_v49 = vadd.f32 %v2287_v41, %v2285_v26  ;;  %v2213_v54 = vadd.f32 %v2211_v24, %v2209_v42  ;;  %v2219_v7 = vmul.f32 %v6862_v33, %v9853_v52  ;;  %v9861_v41 = vld [vmem:[#allocation277_spill] sm:$0xff]  ;;  %v9862_v42 = vld [vmem:[#allocation280_spill] sm:$0xff] }
 0x511   : > { %v2318_v23 = vadd.f32 %v2316_v8, %v2314_v62  ;;  %v2320_v37 = vmul.f32 %v6844_v32, %v9858_v46  ;;  %v2485_v56 = vmul.f32 %v6797_v63, %v9859_v13  ;;  %v2487_v51 = vmul.f32 %v6799_v1, %v9860_v11  ;;  %v9863_v8 = vld [vmem:[#allocation282_spill] sm:$0xff] }
 0x512   : > { %2229 = vrot.lane.b32.xlu1 %v2226_v29, %s9214_s5  ;;  %v2293_v48 = vadd.f32 %v2291_v59, %v2289_v49  ;;  %v2217_v12 = vadd.f32 %v2215_v57, %v2213_v54  ;;  %v2223_v16 = vmul.f32 %v6864_v30, %v9854_v39  ;;  %v2324_v10 = vmul.f32 %v6846_v2, %v9861_v41  ;;  %v9865_v54 = vld [vmem:[#allocation284_spill] sm:$0xff] }
 0x513   : > { %v2322_v26 = vadd.f32 %v2320_v37, %v2318_v23  ;;  %v2328_v24 = vmul.f32 %v6848_v14, %v9862_v42  ;;  %v2489_v62 = vadd.f32 %v2487_v51, %v2485_v56  ;;  %v2491_v52 = vmul.f32 %v6836_v21, %v9863_v8  ;;  %v9866_v56 = vld [vmem:[#allocation283_spill] sm:$0xff] }
 0x514   : > { %v2221_v22 = vadd.f32 %v2219_v7, %v2217_v12  ;;  %v2332_v29 = vmul.f32 %v6850_v47, %v9864_v55  ;;  %v2309_v59 = vmul.f32 %v6797_v63, %v9855_v9  ;;  %v2311_v57 = vmul.f32 %v6799_v1, %v9856_v3  ;;  %v9867_v12 = vld [vmem:[#allocation285_spill] sm:$0xff] }
 0x515   : > { %2295 = vrot.lane.b32.xlu2 %v2293_v48, %s9218_s12  ;;  %v2326_v49 = vadd.f32 %v2324_v10, %v2322_v26  ;;  %v2336_v23 = vmul.f32 %v6866_v50, %v9865_v54  ;;  %v2493_v37 = vadd.f32 %v2491_v52, %v2489_v62  ;;  %v2495_v51 = vmul.f32 %v6852_v61, %v9866_v56  ;;  %v9869_v10 = vld [vmem:[#allocation287_spill] sm:$0xff] }
 0x516   : > { %v2225_v7 = vadd.f32 %v2223_v16, %v2221_v22  ;;  %v2499_v39 = vmul.f32 %v6854_v17, %v9867_v12  ;;  %v2313_v18 = vadd.f32 %v2311_v57, %v2309_v59  ;;  %v2315_v9 = vmul.f32 %v6836_v21, %v9857_v38  ;;  %v9870_v57 = vld [vmem:[#allocation288_spill] sm:$0xff] }
 0x517   : > { %v2330_v58 = vadd.f32 %v2328_v24, %v2326_v49  ;;  %v2497_v3 = vadd.f32 %v2495_v51, %v2493_v37  ;;  %v2503_v48 = vmul.f32 %v6860_v19, %v9868_v0  ;;  %v2507_v26 = vmul.f32 %v6862_v33, %v9869_v10 }
 0x518   : > { %2227 = vrot.lane.b32.xlu0 %v2225_v7, %s9214_s5  ;;  %v2317_v52 = vadd.f32 %v2315_v9, %v2313_v18  ;;  %v2319_v22 = vmul.f32 %v6852_v61, %v9858_v46  ;;  %v2417_v16 = vmul.f32 %v6797_v63, %v9831_v28  ;;  %v2419_v62 = vmul.f32 %v6799_v1, %v9832_v44 }
 0x519   : > { %v2334_v24 = vadd.f32 %v2332_v29, %v2330_v58  ;;  %v2501_v59 = vadd.f32 %v2499_v39, %v2497_v3  ;;  %v2511_v49 = vmul.f32 %v6864_v30, %v9870_v57  ;;  %v2323_v37 = vmul.f32 %v6854_v17, %v9861_v41  ;;  %v9871_v39 = vld [vmem:[#allocation289_spill] sm:$0xff] }
 0x51a   : > { %v2321_v51 = vadd.f32 %v2319_v22, %v2317_v52  ;;  %v2327_v18 = vmul.f32 %v6860_v19, %v9862_v42  ;;  %v2421_v9 = vadd.f32 %v2419_v62, %v2417_v16  ;;  %v2423_v7 = vmul.f32 %v6836_v21, %v9833_v36  ;;  %v9872_v22 = vld [vmem:[#allocation290_spill] sm:$0xff] }
 0x51b   : > { %v2338_v46 = vadd.f32 %v2336_v23, %v2334_v24  ;;  %v2505_v38 = vadd.f32 %v2503_v48, %v2501_v59  ;;  %v2331_v58 = vmul.f32 %v6862_v33, %v9864_v55  ;;  %v2378_v3 = vmul.f32 %v6838_v27, %v9871_v39 }
 0x51c   : > { %v2325_v29 = vadd.f32 %v2323_v37, %v2321_v51  ;;  %v2425_v25 = vadd.f32 %v2423_v7, %v2421_v9  ;;  %v2427_v52 = vmul.f32 %v6852_v61, %v9836_v15  ;;  %v2380_v42 = vmul.f32 %v6840_v43, %v9872_v22  ;;  %v9873_v51 = vld [vmem:[#allocation291_spill] sm:$0xff] }
 0x51d   : > { %2341 = vrot.lane.b32.xlu1 %v2338_v46, %s9214_s5  ;;  %v2509_v16 = vadd.f32 %v2507_v26, %v2505_v38  ;;  %v2335_v23 = vmul.f32 %v6864_v30, %v9865_v54  ;;  %v2431_v48 = vmul.f32 %v6854_v17, %v9837_v20  ;;  %v2435_v62 = vmul.f32 %v6860_v19, %v9838_v53 }
 0x51e   : > { %v2329_v24 = vadd.f32 %v2327_v18, %v2325_v29  ;;  %v2429_v59 = vadd.f32 %v2427_v52, %v2425_v25  ;;  %v2382_v37 = vadd.f32 %v2380_v42, %v2378_v3  ;;  %v2384_v9 = vmul.f32 %v6842_v45, %v9873_v51 }
 0x51f   : > { %v2513_v7 = vadd.f32 %v2511_v49, %v2509_v16  ;;  %v2439_v46 = vmul.f32 %v6862_v33, %v9839_v40  ;;  %v2486_v38 = vmul.f32 %v6838_v27, %v9859_v13  ;;  %v2488_v26 = vmul.f32 %v6840_v43, %v9860_v11  ;;  %v9875_v49 = vld [vmem:[#allocation293_spill] sm:$0xff] }
 0x520   : > { %v2333_v54 = vadd.f32 %v2331_v58, %v2329_v24  ;;  %v2433_v55 = vadd.f32 %v2431_v48, %v2429_v59  ;;  %v2386_v41 = vadd.f32 %v2384_v9, %v2382_v37  ;;  %v2388_v25 = vmul.f32 %v6844_v32, %v9874_v35  ;;  %v9876_v48 = vld [vmem:[#allocation294_spill] sm:$0xff] }
 0x521   : > { %2515 = vrot.lane.b32.xlu2 %v2513_v7, %s9218_s12  ;;  %v2443_v42 = vmul.f32 %v6864_v30, %v9842_v31  ;;  %v2392_v18 = vmul.f32 %v6846_v2, %v9875_v49  ;;  %v2490_v3 = vadd.f32 %v2488_v26, %v2486_v38  ;;  %v2492_v29 = vmul.f32 %v6842_v45, %v9863_v8  ;;  %v9957_v31 = vld [vmem:[#allocation203_spill] sm:$0xff] }
 0x522   : > { %v2337_v52 = vadd.f32 %v2335_v23, %v2333_v54  ;;  %v2437_v16 = vadd.f32 %v2435_v62, %v2433_v55  ;;  %v2390_v58 = vadd.f32 %v2388_v25, %v2386_v41  ;;  %v2396_v24 = vmul.f32 %v6848_v14, %v9876_v48  ;;  %v9877_v54 = vld [vmem:[#allocation295_spill] sm:$0xff]  ;;  %v9878_v41 = vld [vmem:[#allocation296_spill] sm:$0xff] }
 0x523   : > { %v2494_v59 = vadd.f32 %v2492_v29, %v2490_v3  ;;  %v2496_v37 = vmul.f32 %v6844_v32, %v9866_v56  ;;  %v2377_v9 = vmul.f32 %v6797_v63, %v9871_v39  ;;  %v2379_v7 = vmul.f32 %v6799_v1, %v9872_v22 }
 0x524   : > { %2339 = vrot.lane.b32.xlu0 %v2337_v52, %s9214_s5  ;;  %v2441_v38 = vadd.f32 %v2439_v46, %v2437_v16  ;;  %v2394_v26 = vadd.f32 %v2392_v18, %v2390_v58  ;;  %v2400_v55 = vmul.f32 %v6850_v47, %v9877_v54  ;;  %v2404_v23 = vmul.f32 %v6866_v50, %v9878_v41  ;;  %v9879_v58 = vld [vmem:[#allocation307_spill] sm:$0xff] }
 0x525   : > { %v2498_v62 = vadd.f32 %v2496_v37, %v2494_v59  ;;  %v2500_v25 = vmul.f32 %v6846_v2, %v9867_v12  ;;  %v2381_v3 = vadd.f32 %v2379_v7, %v2377_v9  ;;  %v2383_v29 = vmul.f32 %v6836_v21, %v9873_v51  ;;  %v9880_v37 = vld [vmem:[#allocation309_spill] sm:$0xff] }
 0x526   : > { %v2445_v39 = vadd.f32 %v2443_v42, %v2441_v38  ;;  %v2398_v22 = vadd.f32 %v2396_v24, %v2394_v26  ;;  %v2504_v46 = vmul.f32 %v6848_v14, %v9868_v0  ;;  %v2387_v18 = vmul.f32 %v6852_v61, %v9874_v35  ;;  %v9883_v35 = vld [vmem:[#allocation297_spill] sm:$0xff] }
 0x527   : > { %v2502_v52 = vadd.f32 %v2500_v25, %v2498_v62  ;;  %v2385_v16 = vadd.f32 %v2383_v29, %v2381_v3  ;;  %v2454_v59 = vmul.f32 %v6838_v27, %v9879_v58  ;;  %v2456_v12 = vmul.f32 %v6840_v43, %v9880_v37  ;;  %v9881_v25 = vld [vmem:[#allocation311_spill] sm:$0xff] }
 0x528   : > { %2447 = vrot.lane.b32.xlu1 %v2445_v39, %s9214_s5  ;;  %v2402_v9 = vadd.f32 %v2400_v55, %v2398_v22  ;;  %v2508_v42 = vmul.f32 %v6850_v47, %v9869_v10  ;;  %v2512_v24 = vmul.f32 %v6866_v50, %v9870_v57  ;;  %v2391_v7 = vmul.f32 %v6854_v17, %v9875_v49  ;;  %v9882_v22 = vld [vmem:[#allocation313_spill] sm:$0xff]  ;;  %v9884_v49 = vld [vmem:[#allocation298_spill] sm:$0xff] }
 0x529   : > { %v2506_v38 = vadd.f32 %v2504_v46, %v2502_v52  ;;  %v2389_v26 = vadd.f32 %v2387_v18, %v2385_v16  ;;  %v2458_v62 = vadd.f32 %v2456_v12, %v2454_v59  ;;  %v2460_v3 = vmul.f32 %v6842_v45, %v9881_v25  ;;  %v9885_v18 = vld [vmem:[#allocation315_spill] sm:$0xff] }
 0x52a   : > { %v2406_v29 = vadd.f32 %v2404_v23, %v2402_v9  ;;  %v2395_v39 = vmul.f32 %v6860_v19, %v9876_v48  ;;  %v2464_v55 = vmul.f32 %v6844_v32, %v9882_v22  ;;  %v2234_v51 = vmul.f32 %v6838_v27, %v9883_v35  ;;  %v9886_v16 = vld [vmem:[#allocation299_spill] sm:$0xff] }
 0x52b   : > { %v2510_v57 = vadd.f32 %v2508_v42, %v2506_v38  ;;  %v2393_v10 = vadd.f32 %v2391_v7, %v2389_v26  ;;  %v2462_v0 = vadd.f32 %v2460_v3, %v2458_v62  ;;  %v2236_v46 = vmul.f32 %v6840_v43, %v9884_v49  ;;  %v9887_v26 = vld [vmem:[#allocation317_spill] sm:$0xff]  ;;  %v9888_v3 = vld [vmem:[#allocation319_spill] sm:$0xff] }
 0x52c   : > { %2409 = vrot.lane.b32.xlu2 %v2406_v29, %s9218_s12  ;;  %v2399_v12 = vmul.f32 %v6862_v33, %v9877_v54  ;;  %v2403_v23 = vmul.f32 %v6864_v30, %v9878_v41  ;;  %v2468_v52 = vmul.f32 %v6846_v2, %v9885_v18  ;;  %v2240_v59 = vmul.f32 %v6842_v45, %v9886_v16 }
 0x52d   : > { %v2514_v9 = vadd.f32 %v2512_v24, %v2510_v57  ;;  %v2397_v42 = vadd.f32 %v2395_v39, %v2393_v10  ;;  %v2466_v7 = vadd.f32 %v2464_v55, %v2462_v0  ;;  %v2238_v38 = vadd.f32 %v2236_v46, %v2234_v51  ;;  %v9889_v10 = vld [vmem:[#allocation300_spill] sm:$0xff]  ;;  %v9891_v39 = vld [vmem:[#allocation301_spill] sm:$0xff] }
 0x52e   : > { %v2472_v62 = vmul.f32 %v6848_v14, %v9887_v26  ;;  %v2476_v29 = vmul.f32 %v6850_v47, %v9888_v3  ;;  %v2233_v54 = vmul.f32 %v6797_v63, %v9883_v35  ;;  %v2235_v41 = vmul.f32 %v6799_v1, %v9884_v49  ;;  %v9890_v51 = vld [vmem:[#allocation320_spill] sm:$0xff] }
 0x52f   : > { %2517 = vrot.lane.b32.xlu0 %v2514_v9, %s9218_s12  ;;  %v2401_v48 = vadd.f32 %v2399_v12, %v2397_v42  ;;  %v2470_v56 = vadd.f32 %v2468_v52, %v2466_v7  ;;  %v2242_v57 = vadd.f32 %v2240_v59, %v2238_v38  ;;  %v2244_v0 = vmul.f32 %v6844_v32, %v9889_v10  ;;  %v9892_v9 = vld [vmem:[#allocation302_spill] sm:$0xff]  ;;  %v9893_v42 = vld [vmem:[#allocation303_spill] sm:$0xff]  ;;  %v9894_v38 = vld [vmem:[#allocation304_spill] sm:$0xff] }
 0x530   : > { %v2480_v24 = vmul.f32 %v6866_v50, %v9890_v51  ;;  %v2248_v55 = vmul.f32 %v6846_v2, %v9891_v39  ;;  %v2237_v46 = vadd.f32 %v2235_v41, %v2233_v54  ;;  %v2239_v35 = vmul.f32 %v6836_v21, %v9886_v16 }
 0x531   : > { %v2405_v8 = vadd.f32 %v2403_v23, %v2401_v48  ;;  %v2474_v49 = vadd.f32 %v2472_v62, %v2470_v56  ;;  %v2246_v11 = vadd.f32 %v2244_v0, %v2242_v57  ;;  %v2252_v12 = vmul.f32 %v6848_v14, %v9892_v9  ;;  %v9895_v48 = vld [vmem:[#allocation305_spill] sm:$0xff]  ;;  %v9896_v23 = vld [vmem:[#allocation308_spill] sm:$0xff] }
 0x532   : > { %v2241_v52 = vadd.f32 %v2239_v35, %v2237_v46  ;;  %v2243_v59 = vmul.f32 %v6852_v61, %v9889_v10  ;;  %v2346_v7 = vmul.f32 %v6838_v27, %v9893_v42  ;;  %v2348_v13 = vmul.f32 %v6840_v43, %v9894_v38  ;;  %v9897_v46 = vld [vmem:[#allocation306_spill] sm:$0xff] }
 0x533   : > { %2407 = vrot.lane.b32.xlu1 %v2405_v8, %s9218_s12  ;;  %v2478_v54 = vadd.f32 %v2476_v29, %v2474_v49  ;;  %v2250_v41 = vadd.f32 %v2248_v55, %v2246_v11  ;;  %v2256_v56 = vmul.f32 %v6850_v47, %v9895_v48  ;;  %v2260_v62 = vmul.f32 %v6866_v50, %v9896_v23  ;;  %v9898_v8 = vld [vmem:[#allocation310_spill] sm:$0xff] }
 0x534   : > { %v2245_v35 = vadd.f32 %v2243_v59, %v2241_v52  ;;  %v2247_v57 = vmul.f32 %v6854_v17, %v9891_v39  ;;  %v2350_v0 = vadd.f32 %v2348_v13, %v2346_v7  ;;  %v2352_v27 = vmul.f32 %v6842_v45, %v9897_v46 }
 0x535   : > { %v7116_v10 = vadd.f32 %v2480_v24, %v2478_v54  ;;  %v2254_v43 = vadd.f32 %v2252_v12, %v2250_v41  ;;  %v2251_v11 = vmul.f32 %v6860_v19, %v9892_v9  ;;  %v2356_v49 = vmul.f32 %v6844_v32, %v9898_v8  ;;  %v9899_v12 = vld [vmem:[#allocation312_spill] sm:$0xff] }
 0x536   : > { %v2249_v29 = vadd.f32 %v2247_v57, %v2245_v35  ;;  %v2354_v55 = vadd.f32 %v2352_v27, %v2350_v0  ;;  %v2345_v52 = vmul.f32 %v6797_v63, %v9893_v42  ;;  %v2347_v13 = vmul.f32 %v6799_v1, %v9894_v38  ;;  %v9900_v0 = vld [vmem:[#allocation314_spill] sm:$0xff] }
 0x537   : > { %v2258_v59 = vadd.f32 %v2256_v56, %v2254_v43  ;;  %v2255_v45 = vmul.f32 %v6862_v33, %v9895_v48  ;;  %v2259_v24 = vmul.f32 %v6864_v30, %v9896_v23  ;;  %v2360_v7 = vmul.f32 %v6846_v2, %v9899_v12 }
 0x538   : > { %v2253_v54 = vadd.f32 %v2251_v11, %v2249_v29  ;;  %v2358_v32 = vadd.f32 %v2356_v49, %v2354_v55  ;;  %v2349_v41 = vadd.f32 %v2347_v13, %v2345_v52  ;;  %v2351_v35 = vmul.f32 %v6836_v21, %v9897_v46  ;;  %v9901_v11 = vld [vmem:[#allocation316_spill] sm:$0xff]  ;;  %v9941_v46 = vld [vmem:[#allocation198_spill] sm:$0xff] }
 0x539   : > { %v2262_v57 = vadd.f32 %v2260_v62, %v2258_v59  ;;  %v2364_v27 = vmul.f32 %v6848_v14, %v9900_v0  ;;  %v2355_v56 = vmul.f32 %v6852_v61, %v9898_v8  ;;  %v2453_v43 = vmul.f32 %v6797_v63, %v9879_v58  ;;  %v9902_v63 = vld [vmem:[#allocation318_spill] sm:$0xff] }
 0x53a   : > { %v2257_v23 = vadd.f32 %v2255_v45, %v2253_v54  ;;  %v2362_v48 = vadd.f32 %v2360_v7, %v2358_v32  ;;  %v2353_v38 = vadd.f32 %v2351_v35, %v2349_v41  ;;  %v2455_v2 = vmul.f32 %v6799_v1, %v9880_v37 }
 0x53b   : > { %v2368_v49 = vmul.f32 %v6850_v47, %v9901_v11  ;;  %v2359_v62 = vmul.f32 %v6854_v17, %v9899_v12  ;;  %v2459_v14 = vmul.f32 %v6836_v21, %v9881_v25  ;;  %v2372_v59 = vmul.f32 %v6866_v50, %v9902_v63  ;;  %v9940_v12 = vld [vmem:[#allocation197_spill] sm:$0xff] }
 0x53c   : > { %v2261_v29 = vadd.f32 %v2259_v24, %v2257_v23  ;;  %v2366_v55 = vadd.f32 %v2364_v27, %v2362_v48  ;;  %v2357_v52 = vadd.f32 %v2355_v56, %v2353_v38  ;;  %v2457_v13 = vadd.f32 %v2455_v2, %v2453_v43 }
 0x53d   : > { %v2363_v45 = vmul.f32 %v6860_v19, %v9900_v0  ;;  %v2463_v47 = vmul.f32 %v6852_v61, %v9882_v22  ;;  %v2367_v32 = vmul.f32 %v6862_v33, %v9901_v11  ;;  %v2467_v38 = vmul.f32 %v6854_v17, %v9885_v18  ;;  %v9939_v11 = vld [vmem:[#allocation196_spill] sm:$0xff] }
 0x53e   : > { %v2370_v1 = vadd.f32 %v2368_v49, %v2366_v55  ;;  %v2361_v7 = vadd.f32 %v2359_v62, %v2357_v52  ;;  %v2461_v54 = vadd.f32 %v2459_v14, %v2457_v13  ;;  %v2371_v50 = vmul.f32 %v6864_v30, %v9902_v63 }
 0x53f   : > { %v2471_v35 = vmul.f32 %v6860_v19, %v9887_v26  ;;  %v2475_v61 = vmul.f32 %v6862_v33, %v9888_v3  ;;  %v2479_v2 = vmul.f32 %v6864_v30, %v9890_v51 }
 0x540   : > { %v2374_v21 = vadd.f32 %v2372_v59, %v2370_v1  ;;  %v2365_v23 = vadd.f32 %v2363_v45, %v2361_v7  ;;  %v2465_v48 = vadd.f32 %v2463_v47, %v2461_v54 }
 0x542   : > { %v2369_v24 = vadd.f32 %v2367_v32, %v2365_v23  ;;  %v2469_v41 = vadd.f32 %v2467_v38, %v2465_v48 }
 0x544   : > { %v2373_v27 = vadd.f32 %v2371_v50, %v2369_v24  ;;  %v2473_v56 = vadd.f32 %v2471_v35, %v2469_v41 }
 0x546   : > { %v2477_v43 = vadd.f32 %v2475_v61, %v2473_v56 }
 0x548   : > { %v2481_v49 = vadd.f32 %v2479_v2, %v2477_v43 }
 0x567   : > { %v2450_v62 = vpop.permute.xlu2 %2449 }
 0x56f   : > { %v2296_v17 = vpop.permute.xlu2 %2295 }
 0x570   : > { %v2299_v30 = vsel %vm3692_vm2, %v2296_v17, 0.0 }
 0x57b   : > { %v2516_v52 = vpop.permute.xlu2 %2515 }
 0x581   : > { %v2298_v14 = vpop.permute.xlu0 %2297 }
 0x582   : > { %v2300_v45 = vsel %vm3692_vm2, %v2298_v14, 0.0  ;;  %v2519_v14 = vsel %vm3692_vm2, %v2516_v52, 0.0 }
 0x584   : > { %v2230_v55 = vpop.permute.xlu1 %2229 }
 0x585   : > { %v2232_v13 = vsel %vm3696_vm3, %v2230_v55, 0.0 }
 0x586   : > { %v2264_v59 = vadd.f32 %v2262_v57, %v2232_v13  ;;  %v2410_v47 = vpop.permute.xlu2 %2409 }
 0x587   : > { %v2412_v24 = vsel %vm3692_vm2, %v2410_v47, 0.0 }
 0x588   : > { %v2302_v1 = vadd.f32 %v2300_v45, %v2264_v59 }
 0x58a   : > { %v2228_v19 = vpop.permute.xlu0 %2227  ;;  %v2304_v23 = vrot.slane %v2302_v1, 7 }
 0x58b   : > { %v2231_v33 = vsel %vm3696_vm3, %v2228_v19, 0.0 }
 0x58c   : > { %v2263_v7 = vadd.f32 %v2261_v29, %v2231_v33 }
 0x58e   : > { %v2301_v54 = vadd.f32 %v2299_v30, %v2263_v7 }
 0x58f   : > { %v2342_v32 = vpop.permute.xlu1 %2341 }
 0x590   : > { %v2303_v48 = vrot.slane %v2301_v54, 7  ;;  %v2344_v57 = vsel %vm3696_vm3, %v2342_v32, 0.0 }
 0x591   : > { %v2376_v38 = vadd.f32 %v2374_v21, %v2344_v57  ;;  %v2452_v21 = vsel %vm3696_vm3, %v2450_v62, 0.0  ;;  %v2538_v57 = vstv %s3996_s19 }
 0x592   : > { %v2305_v41 = vsel %vm296_vm4, %v2303_v48, %v2304_v23  ;;  %v2306_v29 = vsel %vm296_vm4, %v2304_v23, %v2303_v48  ;;  %v2484_v55 = vadd.f32 %v7116_v10, %v2452_v21 }
 0x593   : > { %v2414_v35 = vadd.f32 %v2412_v24, %v2376_v38  ;;  %v9905_v38 = vld [vmem:[#allocation321_spill] sm:$0xff] }
 0x595   : > { %v2416_v56 = vadd.f32 %v2414_v35, %v2305_v41  ;;  %v2535_v35 = vstv %s9906_s1 }
 0x596   : > { %v2340_v61 = vpop.permute.xlu0 %2339 }
 0x597   : > { %v2343_v19 = vsel %vm3696_vm3, %v2340_v61, 0.0  ;;  %v9907_v61 = vld [vmem:[#allocation180_spill] sm:$0xff] }
 0x59a   : > { %v2448_v43 = vpop.permute.xlu1 %2447 }
 0x59b   : > { %v2451_v2 = vsel %vm3696_vm3, %v2448_v43, 0.0 }
 0x59c   : > { %v2483_v17 = vadd.f32 %v2481_v49, %v2451_v2  ;;  %v2375_v49 = vadd.f32 %v2373_v27, %v2343_v19  ;;  %v2307_v27 = vsel %vm116_vm0, %v2306_v29, 0.0  ;;  %v3454_v2 = vld [vmem:[%s5331_s16 + $0x8] sm:$0xff] }
 0x59e   : > { %v2521_v13 = vadd.f32 %v2519_v14, %v2483_v17  ;;  %v2540_v17 = vmul.f32 %v3454_v2, %v2538_v57 }
 0x5a0   : > { %v2523_v1 = vrot.slane %v2521_v13, 1 }
 0x5a1   : > { %v2518_v59 = vpop.permute.xlu0 %2517 }
 0x5a2   : > { %v2520_v45 = vsel %vm3692_vm2, %v2518_v59, 0.0  ;;  %v9908_v59 = vld [vmem:[#allocation357_spill] sm:$0xff] }
 0x5a3   : > { %v2522_v33 = vadd.f32 %v2520_v45, %v2484_v55  ;;  %v3455_v55 = vld [vmem:[%s5331_s16] sm:$0xff] }
 0x5a4   : > { %v2539_v13 = vmul.f32 %v3455_v55, %v2538_v57 }
 0x5a5   : > { %v2524_v62 = vrot.slane %v2522_v33, 1  ;;  %v2408_v7 = vpop.permute.xlu1 %2407 }
 0x5a6   : > { %v2411_v52 = vsel %vm3692_vm2, %v2408_v7, 0.0 }
 0x5a7   : > { %v2526_v10 = vsel %vm551_vm5, %v2524_v62, %v2523_v1  ;;  %v2525_v30 = vsel %vm551_vm5, %v2523_v1, %v2524_v62  ;;  %v2413_v54 = vadd.f32 %v2411_v52, %v2375_v49 }
 0x5a8   : > { %v2528_v32 = vsel %vm115_vm1, %v2526_v10, 0.0 }
 0x5a9   : > { %v2530_v23 = vadd.f32 %v2528_v32, %v2416_v56  ;;  %v2415_v48 = vadd.f32 %v2413_v54, %v2307_v27 }
 0x5ab   : > { %v2532_v24 = vadd.f32 %v2530_v23, %v9905_v38  ;;  %v2529_v41 = vadd.f32 %v2525_v30, %v2415_v48  ;;  %v9911_v48 = vld [vmem:[#allocation216_spill] sm:$0xff] }
 0x5ad   : > { %v2534_v43 = vadd.f32 %v2532_v24, %v9907_v61  ;;  %v2531_v21 = vadd.f32 %v2529_v41, %v9905_v38  ;;  %v9913_v24 = vld [vmem:[#allocation217_spill] sm:$0xff] }
 0x5af   : > { %v2537_v14 = vmul.f32 %v2535_v35, %v2534_v43  ;;  %v2533_v19 = vadd.f32 %v2531_v21, %v9908_v59  ;;  %v9917_v43 = vld [vmem:[#allocation218_spill] sm:$0xff] }
 0x5b1   : > { %v7212_v29 = vadd.f32 %v2540_v17, %v2537_v14  ;;  %v2536_v56 = vmul.f32 %v2535_v35, %v2533_v19  ;;  %v9919_v17 = vld [vmem:[#allocation219_spill] sm:$0xff]  ;;  %v9925_v19 = vld [vmem:[#allocation221_spill] sm:$0xff] }
 0x5b3   : > { %9909 = vst [vmem:[#allocation366_spill] sm:$0xff] %v7212_v29  ;;  %v7214_v45 = vadd.f32 %v2539_v13, %v2536_v56  ;;  %2643 = vrot.lane.b32.xlu2 %v7212_v29, %s9214_s5  ;;  %v2544_v33 = vrot.slane %v7212_v29, 7  ;;  %v2750_v10 = vrot.slane %v7212_v29, 1  ;;  %v7258_v35 = vmul.f32 %v7212_v29, %v9911_v48  ;;  %v9923_v13 = vld [vmem:[#allocation220_spill] sm:$0xff] }
 0x5b4   : > { %v7262_v61 = vmul.f32 %v7212_v29, %v9913_v24  ;;  %v7274_v14 = vmul.f32 %v7212_v29, %v9917_v43  ;;  %v7278_v55 = vmul.f32 %v7212_v29, %v9919_v17  ;;  %v7282_v59 = vmul.f32 %v7212_v29, %v9923_v13 }
 0x5b5   : > { %9910 = vst [vmem:[#allocation367_spill] sm:$0xff] %v7214_v45  ;;  %2641 = vrot.lane.b32.xlu1 %v7214_v45, %s9214_s5  ;;  %v2543_v49 = vrot.slane %v7214_v45, 7  ;;  %v2749_v52 = vrot.slane %v7214_v45, 1  ;;  %v7250_v57 = vmul.f32 %v7214_v45, %v9911_v48  ;;  %v7254_v41 = vmul.f32 %v7214_v45, %v9913_v24  ;;  %v9933_v24 = vld [vmem:[#allocation192_spill] sm:$0xff] }
 0x5b6   : > { %9915 = vst [vmem:[#allocation341_spill] sm:$0xff] %v7258_v35  ;;  %v7266_v2 = vmul.f32 %v7214_v45, %v9917_v43  ;;  %v7270_v21 = vmul.f32 %v7214_v45, %v9919_v17  ;;  %v7286_v56 = vmul.f32 %v7212_v29, %v9925_v19  ;;  %v9934_v17 = vld [vmem:[#allocation193_spill] sm:$0xff] }
 0x5b7   : > { %v2545_v1 = vsel %vm296_vm4, %v2543_v49, %v2544_v33  ;;  %v2546_v62 = vsel %vm296_vm4, %v2544_v33, %v2543_v49  ;;  %v2751_v30 = vsel %vm551_vm5, %v2749_v52, %v2750_v10  ;;  %v2752_v54 = vsel %vm551_vm5, %v2750_v10, %v2749_v52  ;;  %9912 = vst [vmem:[#allocation365_spill] sm:$0xff] %v7250_v57  ;;  %v9927_v33 = vld [vmem:[#allocation222_spill] sm:$0xff]  ;;  %v9987_v57 = vld [vmem:[#allocation249_spill] sm:$0xff] }
 0x5b8   : > { %2605 = vrot.lane.b32.xlu0 %v2545_v1, %s9218_s12  ;;  %v2547_v7 = vsel %vm116_vm0, %v2546_v62, 0.0  ;;  %v2754_v32 = vsel %vm115_vm1, %v2752_v54, 0.0  ;;  %9914 = vst [vmem:[#allocation340_spill] sm:$0xff] %v7254_v41  ;;  %v7290_v49 = vmul.f32 %v7212_v29, %v9927_v33  ;;  %v9929_v62 = vld [vmem:[#allocation226_spill] sm:$0xff]  ;;  %v7298_v10 = vmul.f32 %v7214_v45, %v9923_v13 }
 0x5b9   : > { %9916 = vst [vmem:[#allocation359_spill] sm:$0xff] %v7262_v61  ;;  %v7294_v52 = vmul.f32 %v7212_v29, %v9929_v62  ;;  %v7302_v54 = vmul.f32 %v7214_v45, %v9925_v19  ;;  %v7305_v43 = vmul.f32 %v2545_v1, %v9933_v24  ;;  %v7308_v38 = vmul.f32 %v2545_v1, %v9934_v17  ;;  %v9937_v13 = vld [vmem:[#allocation194_spill] sm:$0xff]  ;;  %v9938_v19 = vld [vmem:[#allocation195_spill] sm:$0xff] }
 0x5ba   : > { %9918 = vst [vmem:[#allocation326_spill] sm:$0xff] %v7266_v2  ;;  %v7312_v47 = vmul.f32 %v7214_v45, %v9927_v33  ;;  %v7319_v50 = vmul.f32 %v2545_v1, %v9937_v13  ;;  %v7322_v63 = vmul.f32 %v2545_v1, %v9938_v19  ;;  %v7325_v0 = vmul.f32 %v2545_v1, %v9939_v11  ;;  %v9942_v33 = vld [vmem:[#allocation202_spill] sm:$0xff]  ;;  %v9993_v61 = vld [vmem:[#allocation227_spill] sm:$0xff] }
 0x5bb   : > { %2603 = vrot.lane.b32.xlu2 %v2547_v7, %s9218_s12  ;;  %9920 = vst [vmem:[#allocation331_spill] sm:$0xff] %v7270_v21  ;;  %v7328_v8 = vmul.f32 %v2545_v1, %v9940_v12  ;;  %v7331_v42 = vmul.f32 %v2545_v1, %v9941_v46  ;;  %v7334_v9 = vmul.f32 %v2545_v1, %v9942_v33  ;;  %v9985_v2 = vld [vmem:[#allocation186_spill] sm:$0xff] }
 0x5bc   : > { %9921 = vst [vmem:[#allocation332_spill] sm:$0xff] %v7274_v14  ;;  %v7343_v39 = vmul.f32 %v2547_v7, %v9937_v13  ;;  %v7346_v51 = vmul.f32 %v2547_v7, %v9938_v19  ;;  %v7349_v3 = vmul.f32 %v2547_v7, %v9939_v11  ;;  %v7352_v26 = vmul.f32 %v2547_v7, %v9940_v12  ;;  %v9945_v13 = vld [vmem:[#allocation230_spill] sm:$0xff]  ;;  %v9947_v19 = vld [vmem:[#allocation231_spill] sm:$0xff]  ;;  %v9949_v11 = vld [vmem:[#allocation232_spill] sm:$0xff] }
 0x5bd   : > { %2551 = vrot.lane.b32.xlu1 %v2545_v1, %s9214_s5  ;;  %9922 = vst [vmem:[#allocation333_spill] sm:$0xff] %v7278_v55  ;;  %v7355_v1 = vmul.f32 %v2547_v7, %v9941_v46  ;;  %v7364_v18 = vmul.f32 %v2751_v30, %v9945_v13  ;;  %v7367_v22 = vmul.f32 %v2751_v30, %v9947_v19  ;;  %v9951_v12 = vld [vmem:[#allocation233_spill] sm:$0xff]  ;;  %v9953_v46 = vld [vmem:[#allocation234_spill] sm:$0xff]  ;;  %v9991_v55 = vld [vmem:[#allocation215_spill] sm:$0xff] }
 0x5be   : > { %9924 = vst [vmem:[#allocation334_spill] sm:$0xff] %v7282_v59  ;;  %v7370_v25 = vmul.f32 %v2751_v30, %v9949_v11  ;;  %v7373_v37 = vmul.f32 %v2751_v30, %v9951_v12  ;;  %v7376_v58 = vmul.f32 %v2751_v30, %v9953_v46  ;;  %v7384_v5 = vmul.f32 %v2751_v30, %v9957_v31 }
 0x5bf   : > { %9926 = vst [vmem:[#allocation373_spill] sm:$0xff] %v7286_v56  ;;  %v7390_v53 = vmul.f32 %v2754_v32, %v9945_v13  ;;  %v7393_v20 = vmul.f32 %v2754_v32, %v9947_v19  ;;  %v7396_v15 = vmul.f32 %v2754_v32, %v9949_v11  ;;  %v7410_v13 = vmul.f32 %v2754_v32, %v9957_v31  ;;  %v9967_v19 = vld [vmem:[#allocation171_spill] sm:$0xff]  ;;  %v9968_v11 = vld [vmem:[#allocation172_spill] sm:$0xff]  ;;  %v9973_v31 = vld [vmem:[#allocation177_spill] sm:$0xff] }
 0x5c0   : > { %2549 = vrot.lane.b32.xlu0 %v2547_v7, %s9214_s5  ;;  %9928 = vst [vmem:[#allocation355_spill] sm:$0xff] %v7290_v49  ;;  %v9989_v49 = vld [vmem:[#allocation250_spill] sm:$0xff] }
 0x5c1   : > { %9930 = vst [vmem:[#allocation368_spill] sm:$0xff] %v7294_v52 }
 0x5c2   : > { %9931 = vst [vmem:[#allocation374_spill] sm:$0xff] %v7298_v10  ;;  %v9983_v10 = vld [vmem:[#allocation185_spill] sm:$0xff] }
 0x5c3   : > { %2755 = vrot.lane.b32.xlu2 %v2751_v30, %s9214_s5  ;;  %9932 = vst [vmem:[#allocation371_spill] sm:$0xff] %v7302_v54 }
 0x5c4   : > { %9935 = vst [vmem:[#allocation372_spill] sm:$0xff] %v7312_v47 }
 0x5c5   : > { %2713 = vrot.lane.b32.xlu1 %v7212_v29, %s9218_s12  ;;  %v7316_v29 = vmul.f32 %v7214_v45, %v9929_v62  ;;  %v7337_v62 = vmul.f32 %v2547_v7, %v9933_v24  ;;  %v7358_v24 = vmul.f32 %v2547_v7, %v9942_v33  ;;  %9946 = vst [vmem:[#allocation383_spill] sm:$0xff] %v7364_v18  ;;  %v9955_v33 = vld [vmem:[#allocation235_spill] sm:$0xff]  ;;  %v9978_v18 = vld [vmem:[#allocation182_spill] sm:$0xff] }
 0x5c6   : > { %9948 = vst [vmem:[#allocation322_spill] sm:$0xff] %v7367_v22  ;;  %v7381_v60 = vmul.f32 %v2751_v30, %v9955_v33 }
 0x5c7   : > { %9936 = vst [vmem:[#allocation375_spill] sm:$0xff] %v7316_v29  ;;  %v9979_v29 = vld [vmem:[#allocation183_spill] sm:$0xff] }
 0x5c8   : > { %2711 = vrot.lane.b32.xlu0 %v7214_v45, %s9218_s12  ;;  %v7340_v45 = vmul.f32 %v2547_v7, %v9934_v17  ;;  %v9943_v17 = vld [vmem:[#allocation229_spill] sm:$0xff]  ;;  %9950 = vst [vmem:[#allocation356_spill] sm:$0xff] %v7370_v25 }
 0x5c9   : > { %v7361_v16 = vmul.f32 %v2751_v30, %v9943_v17  ;;  %9952 = vst [vmem:[#allocation358_spill] sm:$0xff] %v7373_v37  ;;  %v7387_v40 = vmul.f32 %v2754_v32, %v9943_v17  ;;  %v7407_v17 = vmul.f32 %v2754_v32, %v9955_v33  ;;  %v9972_v33 = vld [vmem:[#allocation176_spill] sm:$0xff]  ;;  %v9977_v25 = vld [vmem:[#allocation181_spill] sm:$0xff] }
 0x5ca   : > { %9954 = vst [vmem:[#allocation327_spill] sm:$0xff] %v7376_v58 }
 0x5cb   : > { %2827 = vrot.lane.b32.xlu2 %v2754_v32, %s9218_s12  ;;  %9944 = vst [vmem:[#allocation376_spill] sm:$0xff] %v7361_v16 }
 0x5cc   : > { %9956 = vst [vmem:[#allocation330_spill] sm:$0xff] %v7381_v60  ;;  %v9976_v60 = vld [vmem:[#allocation179_spill] sm:$0xff] }
 0x5cd   : > { %2825 = vrot.lane.b32.xlu1 %v2751_v30, %s9218_s12  ;;  %9958 = vst [vmem:[#allocation335_spill] sm:$0xff] %v7384_v5  ;;  %v7404_v30 = vmul.f32 %v2754_v32, %v9953_v46 }
 0x5ce   : > { %9959 = vst [vmem:[#allocation377_spill] sm:$0xff] %v7387_v40  ;;  %v9974_v40 = vld [vmem:[#allocation178_spill] sm:$0xff] }
 0x5cf   : > { %9960 = vst [vmem:[#allocation378_spill] sm:$0xff] %v7390_v53 }
 0x5d0   : > { %2757 = vrot.lane.b32.xlu0 %v2754_v32, %s9214_s5  ;;  %9961 = vst [vmem:[#allocation379_spill] sm:$0xff] %v7393_v20 }
 0x5d1   : > { %9962 = vst [vmem:[#allocation342_spill] sm:$0xff] %v7396_v15  ;;  %v9970_v15 = vld [vmem:[#allocation174_spill] sm:$0xff] }
 0x5d2   : > { %9964 = vst [vmem:[#allocation344_spill] sm:$0xff] %v7404_v30  ;;  %v9971_v30 = vld [vmem:[#allocation175_spill] sm:$0xff] }
 0x5d3   : > { %9965 = vst [vmem:[#allocation345_spill] sm:$0xff] %v7407_v17 }
 0x5d4   : > { %9966 = vst [vmem:[#allocation346_spill] sm:$0xff] %v7410_v13 }
 0x60d   : > { %v2644_v27 = vpop.permute.xlu2 %2643 }
 0x60e   : > { %v2646_v7 = vsel %vm3696_vm3, %v2644_v27, 0.0  ;;  %v7399_v27 = vmul.f32 %v2754_v32, %v9951_v12  ;;  %v9969_v12 = vld [vmem:[#allocation173_spill] sm:$0xff] }
 0x60f   : > { %v7413_v44 = vmul.f32 %v2646_v7, %v9967_v19  ;;  %v7416_v28 = vmul.f32 %v2646_v7, %v9968_v11  ;;  %v7425_v20 = vmul.f32 %v2646_v7, %v9971_v30  ;;  %v7428_v17 = vmul.f32 %v2646_v7, %v9972_v33 }
 0x610   : > { %9963 = vst [vmem:[#allocation343_spill] sm:$0xff] %v7399_v27  ;;  %v7419_v27 = vmul.f32 %v2646_v7, %v9969_v12  ;;  %v7431_v32 = vmul.f32 %v2646_v7, %v9973_v31  ;;  %v7436_v5 = vmul.f32 %v2646_v7, %v9974_v40 }
 0x612   : > { %9975 = vst [vmem:[#allocation347_spill] sm:$0xff] %v7436_v5 }
 0x615   : > { %v2604_v23 = vpop.permute.xlu2 %2603 }
 0x616   : > { %v2607_v36 = vsel %vm3692_vm2, %v2604_v23, 0.0  ;;  %v7422_v23 = vmul.f32 %v2646_v7, %v9970_v15 }
 0x617   : > { %v7439_v58 = vmul.f32 %v2607_v36, %v9976_v60  ;;  %v7442_v37 = vmul.f32 %v2607_v36, %v9380_v4  ;;  %v7445_v22 = vmul.f32 %v2607_v36, %v9977_v25  ;;  %v7448_v16 = vmul.f32 %v2607_v36, %v9978_v18 }
 0x618   : > { %v7451_v47 = vmul.f32 %v2607_v36, %v9979_v29  ;;  %v7459_v21 = vmul.f32 %v2607_v36, %v9983_v10  ;;  %v7462_v41 = vmul.f32 %v2607_v36, %v9985_v2 }
 0x61a   : > { %9980 = vst [vmem:[#allocation348_spill] sm:$0xff] %v7451_v47 }
 0x61b   : > { %9984 = vst [vmem:[#allocation380_spill] sm:$0xff] %v7459_v21 }
 0x61c   : > { %9986 = vst [vmem:[#allocation381_spill] sm:$0xff] %v7462_v41  ;;  %v9997_v41 = vld [vmem:[#allocation224_spill] sm:$0xff] }
 0x61d   : > { %v2756_v48 = vpop.permute.xlu2 %2755 }
 0x61e   : > { %v2759_v13 = vsel %vm3696_vm3, %v2756_v48, 0.0  ;;  %v9981_v48 = vld [vmem:[#allocation184_spill] sm:$0xff] }
 0x61f   : > { %v7454_v54 = vmul.f32 %v2607_v36, %v9981_v48  ;;  %v7465_v52 = vmul.f32 %v2759_v13, %v9987_v57  ;;  %v7468_v56 = vmul.f32 %v2759_v13, %v9989_v49  ;;  %v7471_v14 = vmul.f32 %v2759_v13, %v9991_v55  ;;  %v9999_v57 = vld [vmem:[#allocation225_spill] sm:$0xff]  ;;  %v10001_v49 = vld [vmem:[#allocation228_spill] sm:$0xff] }
 0x620   : > { %v7474_v35 = vmul.f32 %v2759_v13, %v9993_v61  ;;  %v7482_v21 = vmul.f32 %v2759_v13, %v9997_v41  ;;  %v10003_v55 = vld [vmem:[#allocation204_spill] sm:$0xff]  ;;  %v10005_v61 = vld [vmem:[#allocation205_spill] sm:$0xff] }
 0x621   : > { %9982 = vst [vmem:[#allocation349_spill] sm:$0xff] %v7454_v54  ;;  %v10009_v54 = vld [vmem:[#allocation207_spill] sm:$0xff]  ;;  %v10011_v41 = vld [vmem:[#allocation208_spill] sm:$0xff] }
 0x622   : > { %9988 = vst [vmem:[#allocation382_spill] sm:$0xff] %v7465_v52  ;;  %v7485_v52 = vmul.f32 %v2759_v13, %v9999_v57 }
 0x623   : > { %9990 = vst [vmem:[#allocation324_spill] sm:$0xff] %v7468_v56  ;;  %v7488_v56 = vmul.f32 %v2759_v13, %v10001_v49  ;;  %v10015_v49 = vld [vmem:[#allocation209_spill] sm:$0xff] }
 0x624   : > { %9992 = vst [vmem:[#allocation325_spill] sm:$0xff] %v7471_v14 }
 0x625   : > { %v2828_v46 = vpop.permute.xlu2 %2827  ;;  %9994 = vst [vmem:[#allocation328_spill] sm:$0xff] %v7474_v35 }
 0x626   : > { %v2830_v7 = vsel %vm3692_vm2, %v2828_v46, 0.0  ;;  %v9995_v46 = vld [vmem:[#allocation223_spill] sm:$0xff]  ;;  %9998 = vst [vmem:[#allocation336_spill] sm:$0xff] %v7482_v21 }
 0x627   : > { %v2642_v53 = vpop.permute.xlu1 %2641  ;;  %v7477_v5 = vmul.f32 %v2759_v13, %v9995_v46  ;;  %10000 = vst [vmem:[#allocation337_spill] sm:$0xff] %v7485_v52  ;;  %v7491_v14 = vmul.f32 %v2830_v7, %v10003_v55  ;;  %v7494_v35 = vmul.f32 %v2830_v7, %v10005_v61  ;;  %v10007_v46 = vld [vmem:[#allocation206_spill] sm:$0xff]  ;;  %v7503_v21 = vmul.f32 %v2830_v7, %v10011_v41  ;;  %v10031_v52 = vld [vmem:[#allocation191_spill] sm:$0xff] }
 0x628   : > { %v2645_v36 = vsel %vm3696_vm3, %v2642_v53, 0.0  ;;  %10002 = vst [vmem:[#allocation338_spill] sm:$0xff] %v7488_v56  ;;  %v7500_v53 = vmul.f32 %v2830_v7, %v10009_v54  ;;  %v10017_v61 = vld [vmem:[#allocation210_spill] sm:$0xff] }
 0x629   : > { %9996 = vst [vmem:[#allocation329_spill] sm:$0xff] %v7477_v5  ;;  %v7497_v5 = vmul.f32 %v2830_v7, %v10007_v46  ;;  %v7506_v57 = vmul.f32 %v2645_v36, %v9967_v19  ;;  %v7509_v13 = vmul.f32 %v2645_v36, %v9968_v11  ;;  %v7527_v19 = vmul.f32 %v2645_v36, %v9972_v33  ;;  %v10028_v33 = vld [vmem:[#allocation188_spill] sm:$0xff]  ;;  %v10029_v46 = vld [vmem:[#allocation189_spill] sm:$0xff] }
 0x62a   : > { %v2606_v59 = vpop.permute.xlu0 %2605  ;;  %10004 = vst [vmem:[#allocation339_spill] sm:$0xff] %v7491_v14  ;;  %v7512_v14 = vmul.f32 %v2830_v7, %v10015_v49  ;;  %v7530_v41 = vmul.f32 %v2645_v36, %v9973_v31  ;;  %v10030_v31 = vld [vmem:[#allocation190_spill] sm:$0xff] }
 0x62b   : > { %10006 = vst [vmem:[#allocation360_spill] sm:$0xff] %v7494_v35  ;;  %v7515_v35 = vmul.f32 %v2830_v7, %v10017_v61 }
 0x62c   : > { %10008 = vst [vmem:[#allocation361_spill] sm:$0xff] %v7497_v5  ;;  %v7518_v5 = vmul.f32 %v2645_v36, %v9969_v12  ;;  %v2608_v12 = vsel %vm3692_vm2, %v2606_v59, 0.0 }
 0x62d   : > { %10010 = vst [vmem:[#allocation362_spill] sm:$0xff] %v7500_v53  ;;  %v7521_v53 = vmul.f32 %v2645_v36, %v9970_v15  ;;  %v2630_v34 = vmul.f32 %v2608_v12, %v9981_v48  ;;  %v2634_v47 = vmul.f32 %v2608_v12, %v9983_v10 }
 0x62e   : > { %10012 = vst [vmem:[#allocation363_spill] sm:$0xff] %v7503_v21  ;;  %v7524_v21 = vmul.f32 %v2645_v36, %v9971_v30  ;;  %v10027_v30 = vld [vmem:[#allocation187_spill] sm:$0xff] }
 0x62f   : > { %10013 = vst [vmem:[#allocation364_spill] sm:$0xff] %v7506_v57  ;;  %v2552_v11 = vpop.permute.xlu1 %2551 }
 0x630   : > { %10014 = vst [vmem:[#allocation350_spill] sm:$0xff] %v7509_v13  ;;  %v2554_v15 = vsel %vm3696_vm3, %v2552_v11, 0.0  ;;  %v10034_v11 = vld [vmem:[#allocation201_spill] sm:$0xff]  ;;  %v2626_v13 = vmul.f32 %v2608_v12, %v9979_v29 }
 0x631   : > { %10016 = vst [vmem:[#allocation351_spill] sm:$0xff] %v7512_v14  ;;  %v7533_v14 = vmul.f32 %v2645_v36, %v9974_v40  ;;  %v2556_v49 = vmul.f32 %v2554_v15, %v10027_v30  ;;  %v2558_v54 = vmul.f32 %v2554_v15, %v10028_v33  ;;  %v2560_v55 = vmul.f32 %v2554_v15, %v10029_v46  ;;  %v10032_v36 = vld [vmem:[#allocation199_spill] sm:$0xff] }
 0x632   : > { %10018 = vst [vmem:[#allocation352_spill] sm:$0xff] %v7515_v35  ;;  %v10025_v35 = vld [vmem:[#allocation244_spill] sm:$0xff]  ;;  %v2562_v56 = vmul.f32 %v2554_v15, %v10030_v31  ;;  %v2564_v40 = vmul.f32 %v2554_v15, %v10031_v52  ;;  %v2550_v57 = vpop.permute.xlu0 %2549 }
 0x633   : > { %10019 = vst [vmem:[#allocation353_spill] sm:$0xff] %v7518_v5  ;;  %v7540_v61 = vmul.f32 %v2830_v7, %v10025_v35  ;;  %v2574_v7 = vadd.f32 %v7305_v43, %v2556_v49  ;;  %v2614_v35 = vmul.f32 %v2608_v12, %v9380_v4  ;;  %v2622_v5 = vmul.f32 %v2608_v12, %v9978_v18 }
 0x634   : > { %10020 = vst [vmem:[#allocation354_spill] sm:$0xff] %v7521_v53  ;;  %v2618_v53 = vmul.f32 %v2608_v12, %v9977_v25  ;;  %v2586_v49 = vadd.f32 %v7322_v63, %v2562_v56  ;;  %v2553_v43 = vsel %vm3696_vm3, %v2550_v57, 0.0 }
 0x635   : > { %10021 = vst [vmem:[#allocation369_spill] sm:$0xff] %v7524_v21  ;;  %v2570_v21 = vmul.f32 %v2554_v15, %v10034_v11  ;;  %v2555_v10 = vmul.f32 %v2553_v43, %v10027_v30  ;;  %v2561_v63 = vmul.f32 %v2553_v43, %v10030_v31  ;;  %v10036_v30 = vld [vmem:[#allocation349_spill] sm:$0xff]  ;;  %v10038_v31 = vld [vmem:[#allocation380_spill] sm:$0xff] }
 0x636   : > { %10022 = vst [vmem:[#allocation370_spill] sm:$0xff] %v7527_v19  ;;  %v2610_v19 = vmul.f32 %v2608_v12, %v9976_v60  ;;  %v2638_v60 = vmul.f32 %v2608_v12, %v9985_v2  ;;  %v2557_v2 = vmul.f32 %v2553_v43, %v10028_v33  ;;  %v10037_v33 = vld [vmem:[#allocation347_spill] sm:$0xff] }
 0x637   : > { %10023 = vst [vmem:[#allocation323_spill] sm:$0xff] %v7530_v41  ;;  %v10033_v41 = vld [vmem:[#allocation200_spill] sm:$0xff]  ;;  %v2602_v18 = vadd.f32 %v7334_v9, %v2570_v21  ;;  %v2569_v9 = vmul.f32 %v2553_v43, %v10034_v11  ;;  %v2573_v57 = vadd.f32 %v7337_v62, %v2555_v10  ;;  %v2714_v12 = vpop.permute.xlu1 %2713 }
 0x638   : > { %10024 = vst [vmem:[#allocation180_spill] sm:$0xff] %v7533_v14  ;;  %v2566_v14 = vmul.f32 %v2554_v15, %v10032_v36  ;;  %v2568_v59 = vmul.f32 %v2554_v15, %v10033_v41  ;;  %v2582_v15 = vadd.f32 %v7319_v50, %v2560_v55  ;;  %v2612_v29 = vadd.f32 %v2610_v19, %v2574_v7  ;;  %v10044_v7 = vld [vmem:[#allocation333_spill] sm:$0xff] }
 0x639   : > { %10026 = vst [vmem:[#allocation357_spill] sm:$0xff] %v7540_v61  ;;  %v2578_v61 = vadd.f32 %v7308_v38, %v2558_v54  ;;  %v2590_v38 = vadd.f32 %v7325_v0, %v2564_v40  ;;  %v2559_v50 = vmul.f32 %v2553_v43, %v10029_v46  ;;  %v2563_v0 = vmul.f32 %v2553_v43, %v10031_v52  ;;  %v10039_v40 = vld [vmem:[#allocation381_spill] sm:$0xff] }
 0x63a   : > { %v2594_v4 = vadd.f32 %v7328_v8, %v2566_v14  ;;  %v2598_v25 = vadd.f32 %v7331_v42, %v2568_v59  ;;  %v2565_v8 = vmul.f32 %v2553_v43, %v10032_v36  ;;  %v2567_v42 = vmul.f32 %v2553_v43, %v10033_v41  ;;  %v10040_v36 = vld [vmem:[#allocation341_spill] sm:$0xff]  ;;  %v10049_v43 = vld [vmem:[#allocation350_spill] sm:$0xff] }
 0x63b   : > { %v2616_v54 = vadd.f32 %v2614_v35, %v2578_v61  ;;  %v2620_v35 = vadd.f32 %v2618_v53, %v2582_v15  ;;  %v2624_v61 = vadd.f32 %v2622_v5, %v2586_v49  ;;  %v2628_v21 = vadd.f32 %v2626_v13, %v2590_v38  ;;  %v10035_v13 = vld [vmem:[#allocation348_spill] sm:$0xff]  ;;  %v10045_v15 = vld [vmem:[#allocation334_spill] sm:$0xff]  ;;  %v10046_v38 = vld [vmem:[#allocation373_spill] sm:$0xff] }
 0x63c   : > { %v2632_v14 = vadd.f32 %v2630_v34, %v2594_v4  ;;  %v2636_v55 = vadd.f32 %v2634_v47, %v2598_v25  ;;  %v2577_v56 = vadd.f32 %v7340_v45, %v2557_v2  ;;  %v2581_v48 = vadd.f32 %v7343_v39, %v2559_v50  ;;  %v10047_v25 = vld [vmem:[#allocation355_spill] sm:$0xff]  ;;  %v10050_v2 = vld [vmem:[#allocation368_spill] sm:$0xff] }
 0x63d   : > { %v2640_v46 = vadd.f32 %v2638_v60, %v2602_v18  ;;  %v2585_v52 = vadd.f32 %v7346_v51, %v2561_v63  ;;  %v2589_v19 = vadd.f32 %v7349_v3, %v2563_v0  ;;  %v2593_v41 = vadd.f32 %v7352_v26, %v2565_v8  ;;  %v10051_v63 = vld [vmem:[#allocation236_spill] sm:$0xff]  ;;  %v10052_v8 = vld [vmem:[#allocation237_spill] sm:$0xff] }
 0x63e   : > { %v2597_v53 = vadd.f32 %v7355_v1, %v2567_v42  ;;  %v2601_v5 = vadd.f32 %v7358_v24, %v2569_v9  ;;  %v2650_v62 = vadd.f32 %v7413_v44, %v2612_v29  ;;  %v2654_v34 = vadd.f32 %v7416_v28, %v2616_v54  ;;  %v10048_v29 = vld [vmem:[#allocation364_spill] sm:$0xff]  ;;  %v10053_v9 = vld [vmem:[#allocation238_spill] sm:$0xff] }
 0x63f   : > { %v2611_v47 = vadd.f32 %v7439_v58, %v2573_v57  ;;  %v2658_v39 = vadd.f32 %v7419_v27, %v2620_v35  ;;  %v2662_v45 = vadd.f32 %v7422_v23, %v2624_v61  ;;  %v2666_v51 = vadd.f32 %v7425_v20, %v2628_v21  ;;  %v10054_v61 = vld [vmem:[#allocation239_spill] sm:$0xff]  ;;  %v10055_v57 = vld [vmem:[#allocation240_spill] sm:$0xff] }
 0x640   : > { %v2615_v3 = vadd.f32 %v7442_v37, %v2577_v56  ;;  %v2619_v26 = vadd.f32 %v7445_v22, %v2581_v48  ;;  %v2670_v1 = vadd.f32 %v7428_v17, %v2632_v14  ;;  %v2674_v24 = vadd.f32 %v7431_v32, %v2636_v55  ;;  %v10042_v32 = vld [vmem:[#allocation359_spill] sm:$0xff]  ;;  %v10056_v55 = vld [vmem:[#allocation241_spill] sm:$0xff]  ;;  %v10057_v48 = vld [vmem:[#allocation242_spill] sm:$0xff] }
 0x641   : > { %v2623_v44 = vadd.f32 %v7448_v16, %v2585_v52  ;;  %v2627_v28 = vadd.f32 %v10035_v13, %v2589_v19  ;;  %v2631_v58 = vadd.f32 %v10036_v30, %v2593_v41  ;;  %v2678_v27 = vadd.f32 %v10037_v33, %v2640_v46  ;;  %v10043_v16 = vld [vmem:[#allocation332_spill] sm:$0xff]  ;;  %v10058_v52 = vld [vmem:[#allocation353_spill] sm:$0xff]  ;;  %v10059_v41 = vld [vmem:[#allocation354_spill] sm:$0xff] }
 0x642   : > { %v2635_v23 = vadd.f32 %v10038_v31, %v2597_v53  ;;  %v2639_v20 = vadd.f32 %v10039_v40, %v2601_v5  ;;  %v7601_v37 = vadd.f32 %v10040_v36, %v2650_v62  ;;  %v7605_v17 = vsel %vm3692_vm2, %v2714_v12, 0.0  ;;  %v10060_v53 = vld [vmem:[#allocation369_spill] sm:$0xff]  ;;  %v10061_v62 = vld [vmem:[#allocation370_spill] sm:$0xff]  ;;  %v10065_v30 = vld [vmem:[#allocation340_spill] sm:$0xff] }
 0x643   : > { %v7608_v59 = vadd.f32 %v10042_v32, %v2654_v34  ;;  %v7611_v11 = vadd.f32 %v10043_v16, %v2658_v39  ;;  %v7614_v60 = vadd.f32 %v10044_v7, %v2662_v45  ;;  %v7617_v49 = vadd.f32 %v10045_v15, %v2666_v51  ;;  %v2826_v39 = vpop.permute.xlu1 %2825  ;;  %v10062_v45 = vld [vmem:[#allocation323_spill] sm:$0xff]  ;;  %v10068_v36 = vld [vmem:[#allocation374_spill] sm:$0xff]  ;;  %v10070_v16 = vld [vmem:[#allocation372_spill] sm:$0xff] }
 0x644   : > { %v7620_v4 = vadd.f32 %v10046_v38, %v2670_v1  ;;  %v7623_v18 = vadd.f32 %v10047_v25, %v2674_v24  ;;  %v2649_v54 = vadd.f32 %v10048_v29, %v2611_v47  ;;  %v2653_v10 = vadd.f32 %v10049_v43, %v2615_v3  ;;  %v2712_v47 = vpop.permute.xlu0 %2711  ;;  %v10063_v3 = vld [vmem:[#allocation180_spill] sm:$0xff]  ;;  %v10064_v24 = vld [vmem:[#allocation365_spill] sm:$0xff]  ;;  %v10067_v40 = vld [vmem:[#allocation331_spill] sm:$0xff] }
 0x645   : > { %v7628_v50 = vadd.f32 %v10050_v2, %v2678_v27  ;;  %v7632_v0 = vmul.f32 %v7605_v17, %v10051_v63  ;;  %v7636_v42 = vmul.f32 %v7605_v17, %v10052_v8  ;;  %v7640_v35 = vmul.f32 %v7605_v17, %v10053_v9  ;;  %v10066_v27 = vld [vmem:[#allocation326_spill] sm:$0xff]  ;;  %v10069_v32 = vld [vmem:[#allocation371_spill] sm:$0xff]  ;;  %v10203_v22 = vld [vmem:[#allocation321_spill] sm:$0xff] }
 0x646   : > { %v7644_v21 = vmul.f32 %v7605_v17, %v10054_v61  ;;  %v7648_v14 = vmul.f32 %v7605_v17, %v10055_v57  ;;  %v7652_v56 = vmul.f32 %v7605_v17, %v10056_v55  ;;  %v7656_v46 = vmul.f32 %v7605_v17, %v10057_v48  ;;  %v10071_v7 = vld [vmem:[#allocation375_spill] sm:$0xff] }
 0x647   : > { %v2657_v19 = vadd.f32 %v10058_v52, %v2619_v26  ;;  %v2661_v12 = vadd.f32 %v10059_v41, %v2623_v44  ;;  %v2665_v5 = vadd.f32 %v10060_v53, %v2627_v28  ;;  %v2669_v34 = vadd.f32 %v10061_v62, %v2631_v58  ;;  %v10072_v52 = vld [vmem:[#allocation243_spill] sm:$0xff] }
 0x648   : > { %v2673_v51 = vadd.f32 %v10062_v45, %v2635_v23  ;;  %v2677_v1 = vadd.f32 %v10063_v3, %v2639_v20  ;;  %v2681_v13 = vadd.f32 %v10064_v24, %v2649_v54  ;;  %v2685_v33 = vadd.f32 %v10065_v30, %v2653_v10  ;;  %v10075_v45 = vld [vmem:[#allocation325_spill] sm:$0xff] }
 0x649   : > { %v2689_v31 = vadd.f32 %v10066_v27, %v2657_v19  ;;  %v2693_v26 = vadd.f32 %v10067_v40, %v2661_v12  ;;  %v2697_v44 = vadd.f32 %v10068_v36, %v2665_v5  ;;  %v2701_v28 = vadd.f32 %v10069_v32, %v2669_v34  ;;  %v10077_v3 = vld [vmem:[#allocation329_spill] sm:$0xff] }
 0x64a   : > { %v2705_v58 = vadd.f32 %v10070_v16, %v2673_v51  ;;  %v2709_v15 = vadd.f32 %v10071_v7, %v2677_v1  ;;  %v2715_v23 = vsel %vm3692_vm2, %v2712_v47, 0.0  ;;  %v2829_v20 = vsel %vm3692_vm2, %v2826_v39, 0.0  ;;  %v10073_v47 = vld [vmem:[#allocation382_spill] sm:$0xff]  ;;  %v10074_v39 = vld [vmem:[#allocation324_spill] sm:$0xff] }
 0x64b   : > { %v2717_v38 = vmul.f32 %v2715_v23, %v10051_v63  ;;  %v2721_v25 = vmul.f32 %v2715_v23, %v10052_v8  ;;  %v2725_v29 = vmul.f32 %v2715_v23, %v10053_v9  ;;  %v2729_v54 = vmul.f32 %v2715_v23, %v10054_v61  ;;  %v10076_v51 = vld [vmem:[#allocation328_spill] sm:$0xff] }
 0x64c   : > { %v2733_v43 = vmul.f32 %v2715_v23, %v10055_v57  ;;  %v2737_v10 = vmul.f32 %v2715_v23, %v10056_v55  ;;  %v2741_v2 = vmul.f32 %v2715_v23, %v10057_v48  ;;  %v2745_v19 = vmul.f32 %v2715_v23, %v10072_v52  ;;  %v10078_v1 = vld [vmem:[#allocation336_spill] sm:$0xff] }
 0x64d   : > { %v2719_v41 = vadd.f32 %v2717_v38, %v2681_v13  ;;  %v2723_v12 = vadd.f32 %v2721_v25, %v2685_v33  ;;  %v2727_v53 = vadd.f32 %v2725_v29, %v2689_v31  ;;  %v2731_v5 = vadd.f32 %v2729_v54, %v2693_v26  ;;  %v10079_v13 = vld [vmem:[#allocation337_spill] sm:$0xff]  ;;  %v10080_v33 = vld [vmem:[#allocation338_spill] sm:$0xff]  ;;  %v10081_v31 = vld [vmem:[#allocation376_spill] sm:$0xff] }
 0x64e   : > { %v2735_v62 = vadd.f32 %v2733_v43, %v2697_v44  ;;  %v2739_v63 = vadd.f32 %v2737_v10, %v2701_v28  ;;  %v2743_v34 = vadd.f32 %v2741_v2, %v2705_v58  ;;  %v2747_v8 = vadd.f32 %v2745_v19, %v2709_v15  ;;  %v10082_v26 = vld [vmem:[#allocation383_spill] sm:$0xff]  ;;  %v10083_v44 = vld [vmem:[#allocation322_spill] sm:$0xff]  ;;  %v10084_v28 = vld [vmem:[#allocation356_spill] sm:$0xff] }
 0x64f   : > { %v2763_v9 = vadd.f32 %v10073_v47, %v2719_v41  ;;  %v2767_v61 = vadd.f32 %v10074_v39, %v2723_v12  ;;  %v2771_v57 = vadd.f32 %v10075_v45, %v2727_v53  ;;  %v2775_v55 = vadd.f32 %v10076_v51, %v2731_v5  ;;  %v10085_v58 = vld [vmem:[#allocation358_spill] sm:$0xff]  ;;  %v10086_v15 = vld [vmem:[#allocation327_spill] sm:$0xff]  ;;  %v10089_v10 = vld [vmem:[#allocation204_spill] sm:$0xff] }
 0x650   : > { %v2779_v48 = vadd.f32 %v10077_v3, %v2735_v62  ;;  %v2783_v24 = vadd.f32 %v10078_v1, %v2739_v63  ;;  %v2787_v30 = vadd.f32 %v10079_v13, %v2743_v34  ;;  %v2791_v27 = vadd.f32 %v10080_v33, %v2747_v8  ;;  %v10087_v38 = vld [vmem:[#allocation330_spill] sm:$0xff]  ;;  %v10088_v29 = vld [vmem:[#allocation335_spill] sm:$0xff]  ;;  %v10090_v19 = vld [vmem:[#allocation205_spill] sm:$0xff] }
 0x651   : > { %v2795_v40 = vadd.f32 %v10081_v31, %v2763_v9  ;;  %v2799_v36 = vadd.f32 %v10082_v26, %v2767_v61  ;;  %v2803_v32 = vadd.f32 %v10083_v44, %v2771_v57  ;;  %v2807_v16 = vadd.f32 %v10084_v28, %v2775_v55  ;;  %v10091_v12 = vld [vmem:[#allocation206_spill] sm:$0xff]  ;;  %v10092_v5 = vld [vmem:[#allocation207_spill] sm:$0xff]  ;;  %v10093_v63 = vld [vmem:[#allocation208_spill] sm:$0xff] }
 0x652   : > { %v2811_v7 = vadd.f32 %v10085_v58, %v2779_v48  ;;  %v2815_v23 = vadd.f32 %v10086_v15, %v2783_v24  ;;  %v2819_v25 = vadd.f32 %v10087_v38, %v2787_v30  ;;  %v2823_v54 = vadd.f32 %v10088_v29, %v2791_v27  ;;  %v10094_v8 = vld [vmem:[#allocation209_spill] sm:$0xff]  ;;  %v10095_v9 = vld [vmem:[#allocation210_spill] sm:$0xff]  ;;  %v10096_v51 = vld [vmem:[#allocation244_spill] sm:$0xff] }
 0x653   : > { %v2746_v43 = vmul.f32 %v7605_v17, %v10072_v52  ;;  %v2831_v2 = vmul.f32 %v2829_v20, %v10089_v10  ;;  %v2835_v41 = vmul.f32 %v2829_v20, %v10090_v19  ;;  %v2839_v53 = vmul.f32 %v2829_v20, %v10091_v12  ;;  %v10097_v13 = vld [vmem:[#allocation245_spill] sm:$0xff]  ;;  %v10098_v33 = vld [vmem:[#allocation246_spill] sm:$0xff]  ;;  %v10110_v10 = vld [vmem:[#allocation224_spill] sm:$0xff] }
 0x654   : > { %v2843_v62 = vmul.f32 %v2829_v20, %v10092_v5  ;;  %v2847_v34 = vmul.f32 %v2829_v20, %v10093_v63  ;;  %v2851_v47 = vmul.f32 %v2829_v20, %v10094_v8  ;;  %v2855_v39 = vmul.f32 %v2829_v20, %v10095_v9  ;;  %v10111_v19 = vld [vmem:[#allocation225_spill] sm:$0xff]  ;;  %v10112_v12 = vld [vmem:[#allocation228_spill] sm:$0xff] }
 0x655   : > { %v2833_v61 = vadd.f32 %v2831_v2, %v2795_v40  ;;  %v2837_v45 = vadd.f32 %v2835_v41, %v2799_v36  ;;  %v2841_v57 = vadd.f32 %v2839_v53, %v2803_v32  ;;  %v2859_v55 = vmul.f32 %v2829_v20, %v10096_v51  ;;  %v2758_v36 = vpop.permute.xlu0 %2757  ;;  %v10099_v32 = vld [vmem:[#allocation247_spill] sm:$0xff] }
 0x656   : > { %v2845_v17 = vadd.f32 %v2843_v62, %v2807_v16  ;;  %v2849_v52 = vadd.f32 %v2847_v34, %v2811_v7  ;;  %v2853_v3 = vadd.f32 %v2851_v47, %v2815_v23  ;;  %v2857_v48 = vadd.f32 %v2855_v39, %v2819_v25  ;;  %v10102_v16 = vld [vmem:[#allocation251_spill] sm:$0xff]  ;;  %v10106_v7 = vld [vmem:[#allocation250_spill] sm:$0xff] }
 0x657   : > { %v2720_v1 = vadd.f32 %v7632_v0, %v7601_v37  ;;  %v2861_v24 = vadd.f32 %v2859_v55, %v2823_v54  ;;  %v2863_v30 = vadd.f32 %v2833_v61, %v10097_v13  ;;  %v2867_v27 = vadd.f32 %v2837_v45, %v10098_v33  ;;  %v10107_v23 = vld [vmem:[#allocation215_spill] sm:$0xff]  ;;  %v10113_v61 = vld [vmem:[#allocation377_spill] sm:$0xff] }
 0x658   : > { %v2724_v31 = vadd.f32 %v7636_v42, %v7608_v59  ;;  %v2728_v40 = vadd.f32 %v7640_v35, %v7611_v11  ;;  %v2732_v20 = vadd.f32 %v7644_v21, %v7614_v60  ;;  %v2736_v26 = vadd.f32 %v7648_v14, %v7617_v49  ;;  %v10100_v42 = vld [vmem:[#allocation248_spill] sm:$0xff]  ;;  %v10101_v11 = vld [vmem:[#allocation169_spill] sm:$0xff]  ;;  %v10108_v25 = vld [vmem:[#allocation227_spill] sm:$0xff] }
 0x659   : > { %v2740_v37 = vadd.f32 %v7652_v56, %v7620_v4  ;;  %v2744_v0 = vadd.f32 %v7656_v46, %v7623_v18  ;;  %v2748_v44 = vadd.f32 %v2746_v43, %v7628_v50  ;;  %v2871_v59 = vadd.f32 %v2841_v57, %v10099_v32  ;;  %v10103_v21 = vld [vmem:[#allocation252_spill] sm:$0xff]  ;;  %v10104_v4 = vld [vmem:[#allocation253_spill] sm:$0xff]  ;;  %v10109_v54 = vld [vmem:[#allocation223_spill] sm:$0xff] }
 0x65a   : > { %v2875_v28 = vadd.f32 %v2845_v17, %v10100_v42  ;;  %v2879_v35 = vadd.f32 %v2849_v52, %v10101_v11  ;;  %v2883_v60 = vadd.f32 %v2853_v3, %v10102_v16  ;;  %v2887_v58 = vadd.f32 %v2857_v48, %v10103_v21  ;;  %v10105_v50 = vld [vmem:[#allocation249_spill] sm:$0xff]  ;;  %v10114_v57 = vld [vmem:[#allocation378_spill] sm:$0xff]  ;;  %v10115_v55 = vld [vmem:[#allocation379_spill] sm:$0xff] }
 0x65b   : > { %v7732_v49 = vmax.f32 %v2863_v30, 0.0  ;;  %v7734_v14 = vmax.f32 %v2867_v27, 0.0  ;;  %v2891_v56 = vadd.f32 %v2861_v24, %v10104_v4  ;;  %v2760_v18 = vsel %vm3696_vm3, %v2758_v36, 0.0  ;;  %v10116_v52 = vld [vmem:[#allocation342_spill] sm:$0xff]  ;;  %v10117_v48 = vld [vmem:[#allocation343_spill] sm:$0xff]  ;;  %v10118_v30 = vld [vmem:[#allocation344_spill] sm:$0xff] }
 0x65c   : > { %v2762_v46 = vmul.f32 %v2760_v18, %v10105_v50  ;;  %v2766_v15 = vmul.f32 %v2760_v18, %v10106_v7  ;;  %v2770_v38 = vmul.f32 %v2760_v18, %v10107_v23  ;;  %v2774_v29 = vmul.f32 %v2760_v18, %v10108_v25  ;;  %v10124_v50 = vld [vmem:[#allocation362_spill] sm:$0xff]  ;;  %v10125_v7 = vld [vmem:[#allocation363_spill] sm:$0xff]  ;;  %v10127_v25 = vld [vmem:[#allocation352_spill] sm:$0xff] }
 0x65d   : > { %v2778_v43 = vmul.f32 %v2760_v18, %v10109_v54  ;;  %v2782_v2 = vmul.f32 %v2760_v18, %v10110_v10  ;;  %v2786_v41 = vmul.f32 %v2760_v18, %v10111_v19  ;;  %v2790_v53 = vmul.f32 %v2760_v18, %v10112_v12  ;;  %v10126_v23 = vld [vmem:[#allocation351_spill] sm:$0xff]  ;;  %v10128_v54 = vld [vmem:[#allocation357_spill] sm:$0xff] }
 0x65e   : > { %v2764_v5 = vadd.f32 %v2762_v46, %v2720_v1  ;;  %v2768_v62 = vadd.f32 %v2766_v15, %v2724_v31  ;;  %v2772_v63 = vadd.f32 %v2770_v38, %v2728_v40  ;;  %v2776_v34 = vadd.f32 %v2774_v29, %v2732_v20  ;;  %v10119_v1 = vld [vmem:[#allocation345_spill] sm:$0xff]  ;;  %v10120_v40 = vld [vmem:[#allocation346_spill] sm:$0xff] }
 0x65f   : > { %v2780_v8 = vadd.f32 %v2778_v43, %v2736_v26  ;;  %v2784_v47 = vadd.f32 %v2782_v2, %v2740_v37  ;;  %v2788_v9 = vadd.f32 %v2786_v41, %v2744_v0  ;;  %v2792_v39 = vadd.f32 %v2790_v53, %v2748_v44  ;;  %v10121_v26 = vld [vmem:[#allocation339_spill] sm:$0xff]  ;;  %v10122_v37 = vld [vmem:[#allocation360_spill] sm:$0xff]  ;;  %v10123_v44 = vld [vmem:[#allocation361_spill] sm:$0xff] }
 0x660   : > { %v2796_v45 = vadd.f32 %v10113_v61, %v2764_v5  ;;  %v2800_v51 = vadd.f32 %v10114_v57, %v2768_v62  ;;  %v2804_v17 = vadd.f32 %v10115_v55, %v2772_v63  ;;  %v2808_v3 = vadd.f32 %v10116_v52, %v2776_v34  ;;  %v10131_v55 = vld [vmem:[#allocation212_spill] sm:$0xff] }
 0x661   : > { %v2812_v24 = vadd.f32 %v10117_v48, %v2780_v8  ;;  %v2816_v27 = vadd.f32 %v10118_v30, %v2784_v47  ;;  %v2820_v31 = vadd.f32 %v10119_v1, %v2788_v9  ;;  %v2824_v20 = vadd.f32 %v10120_v40, %v2792_v39  ;;  %v10130_v47 = vld [vmem:[#allocation211_spill] sm:$0xff]  ;;  %v10133_v52 = vld [vmem:[#allocation256_spill] sm:$0xff]  ;;  %v10134_v48 = vld [vmem:[#allocation213_spill] sm:$0xff] }
 0x662   : > { %v2834_v36 = vadd.f32 %v10121_v26, %v2796_v45  ;;  %v2838_v0 = vadd.f32 %v10122_v37, %v2800_v51  ;;  %v2842_v18 = vadd.f32 %v10123_v44, %v2804_v17  ;;  %v2846_v46 = vadd.f32 %v10124_v50, %v2808_v3 }
 0x663   : > { %v2850_v15 = vadd.f32 %v10125_v7, %v2812_v24  ;;  %v2854_v38 = vadd.f32 %v10126_v23, %v2816_v27  ;;  %v2858_v29 = vadd.f32 %v10127_v25, %v2820_v31  ;;  %v2862_v43 = vadd.f32 %v10128_v54, %v2824_v20  ;;  %v10135_v24 = vld [vmem:[#allocation214_spill] sm:$0xff]  ;;  %v10137_v27 = vld [vmem:[#allocation257_spill] sm:$0xff] }
 0x664   : > { %v2864_v10 = vadd.f32 %v2834_v36, %v10097_v13  ;;  %v2868_v2 = vadd.f32 %v2838_v0, %v10098_v33  ;;  %v2872_v19 = vadd.f32 %v2842_v18, %v10099_v32  ;;  %v2876_v41 = vadd.f32 %v2846_v46, %v10100_v42  ;;  %v10138_v20 = vld [vmem:[#allocation258_spill] sm:$0xff]  ;;  %v10139_v36 = vld [vmem:[#allocation264_spill] sm:$0xff]  ;;  %v10140_v0 = vld [vmem:[#allocation259_spill] sm:$0xff] }
 0x665   : > { %v2880_v12 = vadd.f32 %v2850_v15, %v10101_v11  ;;  %v2884_v53 = vadd.f32 %v2854_v38, %v10102_v16  ;;  %v2888_v5 = vadd.f32 %v2858_v29, %v10103_v21  ;;  %v2892_v62 = vadd.f32 %v2862_v43, %v10104_v4  ;;  %v10141_v18 = vld [vmem:[#allocation260_spill] sm:$0xff]  ;;  %v10142_v46 = vld [vmem:[#allocation261_spill] sm:$0xff]  ;;  %v10144_v29 = vld [vmem:[#allocation262_spill] sm:$0xff] }
 0x666   : > { %v7771_v63 = vmax.f32 %v2871_v59, 0.0  ;;  %v7773_v34 = vmax.f32 %v2864_v10, 0.0  ;;  %v7775_v8 = vmax.f32 %v2868_v2, 0.0  ;;  %v7777_v13 = vmax.f32 %v2872_v19, 0.0  ;;  %v10129_v59 = vld [vmem:[#allocation170_spill] sm:$0xff]  ;;  %v10143_v15 = vld [vmem:[#allocation265_spill] sm:$0xff] }
 0x667   : > { %v7779_v33 = vmax.f32 %v2876_v41, 0.0  ;;  %v7781_v32 = vmax.f32 %v2880_v12, 0.0  ;;  %v7783_v42 = vmax.f32 %v2884_v53, 0.0  ;;  %v7785_v11 = vmax.f32 %v2888_v5, 0.0  ;;  %v10145_v43 = vld [vmem:[#allocation263_spill] sm:$0xff] }
 0x668   : > { %v7787_v16 = vmax.f32 %v2875_v28, 0.0  ;;  %v7789_v21 = vmax.f32 %v2879_v35, 0.0  ;;  %v3116_v4 = vmul.f32 %v7773_v34, %v10129_v59  ;;  %v3118_v9 = vmul.f32 %v7775_v8, %v10130_v47  ;;  %v10132_v35 = vld [vmem:[#allocation255_spill] sm:$0xff] }
 0x669   : > { %v7795_v39 = vmax.f32 %v2883_v60, 0.0  ;;  %v7797_v61 = vmax.f32 %v2887_v58, 0.0  ;;  %v7799_v45 = vmax.f32 %v2891_v56, 0.0  ;;  %v7801_v57 = vmax.f32 %v2892_v62, 0.0  ;;  %v10136_v56 = vld [vmem:[#allocation254_spill] sm:$0xff]  ;;  %v10146_v19 = vld [vmem:[#allocation267_spill] sm:$0xff] }
 0x66a   : > { %v3120_v51 = vadd.f32 %v3118_v9, %v3116_v4  ;;  %v3122_v28 = vmul.f32 %v7777_v13, %v10131_v55  ;;  %v2964_v17 = vmul.f32 %v7773_v34, %v10132_v35  ;;  %v2966_v3 = vmul.f32 %v7775_v8, %v10133_v52  ;;  %v10147_v4 = vld [vmem:[#allocation266_spill] sm:$0xff] }
 0x66b   : > { %v3126_v60 = vmul.f32 %v7779_v33, %v10134_v48  ;;  %v3130_v58 = vmul.f32 %v7781_v32, %v10135_v24  ;;  %v3134_v30 = vmul.f32 %v7783_v42, %v10136_v56  ;;  %v3138_v1 = vmul.f32 %v7785_v11, %v10137_v27 }
 0x66c   : > { %v3124_v31 = vadd.f32 %v3122_v28, %v3120_v51  ;;  %v2968_v40 = vadd.f32 %v2966_v3, %v2964_v17  ;;  %v2970_v26 = vmul.f32 %v7777_v13, %v10138_v20  ;;  %v2896_v37 = vmul.f32 %v7773_v34, %v10139_v36  ;;  %v10148_v51 = vld [vmem:[#allocation268_spill] sm:$0xff]  ;;  %v10149_v3 = vld [vmem:[#allocation269_spill] sm:$0xff] }
 0x66d   : > { %v3142_v44 = vmul.f32 %v7801_v57, %v10140_v0  ;;  %v2974_v50 = vmul.f32 %v7779_v33, %v10141_v18  ;;  %v2978_v7 = vmul.f32 %v7781_v32, %v10142_v46  ;;  %v2898_v23 = vmul.f32 %v7775_v8, %v10143_v15 }
 0x66e   : > { %v3128_v38 = vadd.f32 %v3126_v60, %v3124_v31  ;;  %v2972_v25 = vadd.f32 %v2970_v26, %v2968_v40  ;;  %v2982_v54 = vmul.f32 %v7783_v42, %v10144_v29  ;;  %v2986_v10 = vmul.f32 %v7785_v11, %v10145_v43 }
 0x66f   : > { %v2900_v2 = vadd.f32 %v2898_v23, %v2896_v37  ;;  %v2902_v41 = vmul.f32 %v7777_v13, %v10146_v19  ;;  %v2963_v12 = vmul.f32 %v7732_v49, %v10132_v35  ;;  %v2965_v53 = vmul.f32 %v7734_v14, %v10133_v52  ;;  %v10150_v37 = vld [vmem:[#allocation270_spill] sm:$0xff] }
 0x670   : > { %v3132_v5 = vadd.f32 %v3130_v58, %v3128_v38  ;;  %v2976_v62 = vadd.f32 %v2974_v50, %v2972_v25  ;;  %v2990_v9 = vmul.f32 %v7801_v57, %v10147_v4  ;;  %v2906_v28 = vmul.f32 %v7779_v33, %v10148_v51 }
 0x671   : > { %v2904_v17 = vadd.f32 %v2902_v41, %v2900_v2  ;;  %v2910_v60 = vmul.f32 %v7781_v32, %v10149_v3  ;;  %v2967_v31 = vadd.f32 %v2965_v53, %v2963_v12  ;;  %v2969_v40 = vmul.f32 %v7771_v63, %v10138_v20  ;;  %v10151_v12 = vld [vmem:[#allocation271_spill] sm:$0xff] }
 0x672   : > { %v3136_v35 = vadd.f32 %v3134_v30, %v3132_v5  ;;  %v2980_v26 = vadd.f32 %v2978_v7, %v2976_v62  ;;  %v2914_v52 = vmul.f32 %v7783_v42, %v10150_v37  ;;  %v2973_v58 = vmul.f32 %v7787_v16, %v10141_v18 }
 0x673   : > { %v2908_v50 = vadd.f32 %v2906_v28, %v2904_v17  ;;  %v2971_v23 = vadd.f32 %v2969_v40, %v2967_v31  ;;  %v2895_v38 = vmul.f32 %v7732_v49, %v10139_v36  ;;  %v2897_v25 = vmul.f32 %v7734_v14, %v10143_v15  ;;  %v10152_v36 = vld [vmem:[#allocation272_spill] sm:$0xff]  ;;  %v10154_v40 = vld [vmem:[#allocation274_spill] sm:$0xff] }
 0x674   : > { %v3140_v2 = vadd.f32 %v3138_v1, %v3136_v35  ;;  %v2984_v41 = vadd.f32 %v2982_v54, %v2980_v26  ;;  %v2918_v30 = vmul.f32 %v7785_v11, %v10151_v12  ;;  %v2977_v20 = vmul.f32 %v7789_v21, %v10142_v46 }
 0x675   : > { %v2912_v7 = vadd.f32 %v2910_v60, %v2908_v50  ;;  %v2975_v53 = vadd.f32 %v2973_v58, %v2971_v23  ;;  %v2899_v5 = vadd.f32 %v2897_v25, %v2895_v38  ;;  %v2901_v18 = vmul.f32 %v7771_v63, %v10146_v19  ;;  %v10155_v50 = vld [vmem:[#allocation275_spill] sm:$0xff] }
 0x676   : > { %v3144_v62 = vadd.f32 %v3142_v44, %v3140_v2  ;;  %v2988_v28 = vadd.f32 %v2986_v10, %v2984_v41  ;;  %v2922_v17 = vmul.f32 %v7801_v57, %v10152_v36  ;;  %v2981_v1 = vmul.f32 %v7795_v39, %v10144_v29  ;;  %v10153_v44 = vld [vmem:[#allocation273_spill] sm:$0xff] }
 0x677   : > { %v2916_v15 = vadd.f32 %v2914_v52, %v2912_v7  ;;  %v2979_v54 = vadd.f32 %v2977_v20, %v2975_v53  ;;  %v2903_v31 = vadd.f32 %v2901_v18, %v2899_v5  ;;  %v2905_v46 = vmul.f32 %v7787_v16, %v10148_v51  ;;  %v10157_v7 = vld [vmem:[#allocation278_spill] sm:$0xff]  ;;  %v10158_v53 = vld [vmem:[#allocation279_spill] sm:$0xff] }
 0x678   : > { %3147 = vrot.lane.b32.xlu2 %v3144_v62, %s9214_s5  ;;  %v2992_v60 = vadd.f32 %v2990_v9, %v2988_v28  ;;  %v2985_v19 = vmul.f32 %v7797_v61, %v10145_v43  ;;  %v3008_v10 = vmul.f32 %v7773_v34, %v10153_v44  ;;  %v3010_v35 = vmul.f32 %v7775_v8, %v10154_v40  ;;  %v10159_v28 = vld [vmem:[#allocation277_spill] sm:$0xff] }
 0x679   : > { %v2920_v26 = vadd.f32 %v2918_v30, %v2916_v15  ;;  %v2983_v29 = vadd.f32 %v2981_v1, %v2979_v54  ;;  %v2907_v52 = vadd.f32 %v2905_v46, %v2903_v31  ;;  %v2909_v58 = vmul.f32 %v7789_v21, %v10149_v3  ;;  %v10156_v3 = vld [vmem:[#allocation276_spill] sm:$0xff]  ;;  %v10161_v31 = vld [vmem:[#allocation282_spill] sm:$0xff] }
 0x67a   : > { %2995 = vrot.lane.b32.xlu0 %v2992_v60, %s9218_s12  ;;  %v2989_v9 = vmul.f32 %v7799_v45, %v10147_v4  ;;  %v2913_v43 = vmul.f32 %v7795_v39, %v10150_v37  ;;  %v3012_v51 = vadd.f32 %v3010_v35, %v3008_v10  ;;  %v3014_v23 = vmul.f32 %v7777_v13, %v10155_v50  ;;  %v10160_v1 = vld [vmem:[#allocation280_spill] sm:$0xff] }
 0x67b   : > { %v2924_v38 = vadd.f32 %v2922_v17, %v2920_v26  ;;  %v2987_v25 = vadd.f32 %v2985_v19, %v2983_v29  ;;  %v2911_v2 = vadd.f32 %v2909_v58, %v2907_v52  ;;  %v2917_v41 = vmul.f32 %v7797_v61, %v10151_v12  ;;  %v10162_v19 = vld [vmem:[#allocation281_spill] sm:$0xff]  ;;  %v10163_v29 = vld [vmem:[#allocation284_spill] sm:$0xff] }
 0x67c   : > { %v3016_v30 = vadd.f32 %v3014_v23, %v3012_v51  ;;  %v3018_v20 = vmul.f32 %v7779_v33, %v10156_v3  ;;  %v3183_v4 = vmul.f32 %v7732_v49, %v10157_v7  ;;  %v3185_v37 = vmul.f32 %v7734_v14, %v10158_v53  ;;  %v10165_v23 = vld [vmem:[#allocation285_spill] sm:$0xff] }
 0x67d   : > { %2927 = vrot.lane.b32.xlu1 %v2924_v38, %s9214_s5  ;;  %v2991_v5 = vadd.f32 %v2989_v9, %v2987_v25  ;;  %v2915_v18 = vadd.f32 %v2913_v43, %v2911_v2  ;;  %v2921_v62 = vmul.f32 %v7799_v45, %v10152_v36  ;;  %v3022_v12 = vmul.f32 %v7781_v32, %v10159_v28  ;;  %v10164_v9 = vld [vmem:[#allocation283_spill] sm:$0xff] }
 0x67e   : > { %v3020_v17 = vadd.f32 %v3018_v20, %v3016_v30  ;;  %v3026_v15 = vmul.f32 %v7783_v42, %v10160_v1  ;;  %v3187_v54 = vadd.f32 %v3185_v37, %v3183_v4  ;;  %v3189_v46 = vmul.f32 %v7771_v63, %v10161_v31  ;;  %v10167_v20 = vld [vmem:[#allocation287_spill] sm:$0xff] }
 0x67f   : > { %v2919_v60 = vadd.f32 %v2917_v41, %v2915_v18  ;;  %v3030_v10 = vmul.f32 %v7785_v11, %v10162_v19  ;;  %v3007_v35 = vmul.f32 %v7732_v49, %v10153_v44  ;;  %v3009_v36 = vmul.f32 %v7734_v14, %v10154_v40  ;;  %v10166_v41 = vld [vmem:[#allocation286_spill] sm:$0xff] }
 0x680   : > { %2993 = vrot.lane.b32.xlu2 %v2991_v5, %s9218_s12  ;;  %v3024_v26 = vadd.f32 %v3022_v12, %v3020_v17  ;;  %v3034_v52 = vmul.f32 %v7801_v57, %v10163_v29  ;;  %v3191_v58 = vadd.f32 %v3189_v46, %v3187_v54  ;;  %v3193_v43 = vmul.f32 %v7787_v16, %v10164_v9  ;;  %v10168_v17 = vld [vmem:[#allocation288_spill] sm:$0xff] }
 0x681   : > { %v2923_v51 = vadd.f32 %v2921_v62, %v2919_v60  ;;  %v3197_v38 = vmul.f32 %v7789_v21, %v10165_v23  ;;  %v3011_v25 = vadd.f32 %v3009_v36, %v3007_v35  ;;  %v3013_v44 = vmul.f32 %v7771_v63, %v10155_v50 }
 0x682   : > { %v3028_v2 = vadd.f32 %v3026_v15, %v3024_v26  ;;  %v3195_v40 = vadd.f32 %v3193_v43, %v3191_v58  ;;  %v3201_v30 = vmul.f32 %v7795_v39, %v10166_v41  ;;  %v3205_v4 = vmul.f32 %v7797_v61, %v10167_v20 }
 0x683   : > { %2925 = vrot.lane.b32.xlu0 %v2923_v51, %s9214_s5  ;;  %v3015_v37 = vadd.f32 %v3013_v44, %v3011_v25  ;;  %v3017_v5 = vmul.f32 %v7787_v16, %v10156_v3  ;;  %v3115_v18 = vmul.f32 %v7732_v49, %v10129_v59  ;;  %v3117_v50 = vmul.f32 %v7734_v14, %v10130_v47  ;;  %v10170_v51 = vld [vmem:[#allocation290_spill] sm:$0xff] }
 0x684   : > { %v3032_v62 = vadd.f32 %v3030_v10, %v3028_v2  ;;  %v3199_v12 = vadd.f32 %v3197_v38, %v3195_v40  ;;  %v3209_v15 = vmul.f32 %v7799_v45, %v10168_v17  ;;  %v3021_v54 = vmul.f32 %v7789_v21, %v10159_v28  ;;  %v10169_v10 = vld [vmem:[#allocation289_spill] sm:$0xff]  ;;  %v10171_v40 = vld [vmem:[#allocation291_spill] sm:$0xff] }
 0x685   : > { %v3019_v46 = vadd.f32 %v3017_v5, %v3015_v37  ;;  %v3025_v60 = vmul.f32 %v7795_v39, %v10160_v1  ;;  %v3119_v35 = vadd.f32 %v3117_v50, %v3115_v18  ;;  %v3121_v3 = vmul.f32 %v7771_v63, %v10131_v55 }
 0x686   : > { %v3036_v59 = vadd.f32 %v3034_v52, %v3032_v62  ;;  %v3203_v36 = vadd.f32 %v3201_v30, %v3199_v12  ;;  %v3029_v47 = vmul.f32 %v7797_v61, %v10162_v19  ;;  %v3076_v26 = vmul.f32 %v7773_v34, %v10169_v10  ;;  %v10173_v12 = vld [vmem:[#allocation293_spill] sm:$0xff] }
 0x687   : > { %v3023_v58 = vadd.f32 %v3021_v54, %v3019_v46  ;;  %v3123_v43 = vadd.f32 %v3121_v3, %v3119_v35  ;;  %v3125_v28 = vmul.f32 %v7787_v16, %v10134_v48  ;;  %v3078_v1 = vmul.f32 %v7775_v8, %v10170_v51 }
 0x688   : > { %3039 = vrot.lane.b32.xlu1 %v3036_v59, %s9214_s5  ;;  %v3207_v38 = vadd.f32 %v3205_v4, %v3203_v36  ;;  %v3033_v55 = vmul.f32 %v7799_v45, %v10163_v29  ;;  %v3129_v19 = vmul.f32 %v7789_v21, %v10135_v24  ;;  %v3133_v52 = vmul.f32 %v7795_v39, %v10136_v56  ;;  %v10172_v56 = vld [vmem:[#allocation292_spill] sm:$0xff] }
 0x689   : > { %v3027_v25 = vadd.f32 %v3025_v60, %v3023_v58  ;;  %v3127_v44 = vadd.f32 %v3125_v28, %v3123_v43  ;;  %v3080_v2 = vadd.f32 %v3078_v1, %v3076_v26  ;;  %v3082_v48 = vmul.f32 %v7777_v13, %v10171_v40  ;;  %v10174_v60 = vld [vmem:[#allocation294_spill] sm:$0xff]  ;;  %v10175_v26 = vld [vmem:[#allocation295_spill] sm:$0xff]  ;;  %v10176_v43 = vld [vmem:[#allocation296_spill] sm:$0xff] }
 0x68a   : > { %v3211_v30 = vadd.f32 %v3209_v15, %v3207_v38  ;;  %v3137_v37 = vmul.f32 %v7797_v61, %v10137_v27  ;;  %v3184_v4 = vmul.f32 %v7773_v34, %v10157_v7  ;;  %v3186_v29 = vmul.f32 %v7775_v8, %v10158_v53 }
 0x68b   : > { %v3031_v24 = vadd.f32 %v3029_v47, %v3027_v25  ;;  %v3131_v5 = vadd.f32 %v3129_v19, %v3127_v44  ;;  %v3084_v18 = vadd.f32 %v3082_v48, %v3080_v2  ;;  %v3086_v50 = vmul.f32 %v7779_v33, %v10172_v56  ;;  %v10177_v2 = vld [vmem:[#allocation307_spill] sm:$0xff] }
 0x68c   : > { %3213 = vrot.lane.b32.xlu2 %v3211_v30, %s9218_s12  ;;  %v3141_v62 = vmul.f32 %v7799_v45, %v10140_v0  ;;  %v3090_v27 = vmul.f32 %v7781_v32, %v10173_v12  ;;  %v3188_v15 = vadd.f32 %v3186_v29, %v3184_v4  ;;  %v3190_v7 = vmul.f32 %v7777_v13, %v10161_v31  ;;  %v10178_v30 = vld [vmem:[#allocation309_spill] sm:$0xff] }
 0x68d   : > { %v3035_v54 = vadd.f32 %v3033_v55, %v3031_v24  ;;  %v3135_v53 = vadd.f32 %v3133_v52, %v3131_v5  ;;  %v3088_v46 = vadd.f32 %v3086_v50, %v3084_v18  ;;  %v3094_v35 = vmul.f32 %v7783_v42, %v10174_v60  ;;  %v10179_v18 = vld [vmem:[#allocation311_spill] sm:$0xff] }
 0x68e   : > { %v3192_v3 = vadd.f32 %v3190_v7, %v3188_v15  ;;  %v3194_v59 = vmul.f32 %v7779_v33, %v10164_v9  ;;  %v3075_v0 = vmul.f32 %v7732_v49, %v10169_v10  ;;  %v3077_v36 = vmul.f32 %v7734_v14, %v10170_v51 }
 0x68f   : > { %3037 = vrot.lane.b32.xlu0 %v3035_v54, %s9214_s5  ;;  %v3139_v47 = vadd.f32 %v3137_v37, %v3135_v53  ;;  %v3092_v31 = vadd.f32 %v3090_v27, %v3088_v46  ;;  %v3098_v58 = vmul.f32 %v7785_v11, %v10175_v26  ;;  %v3102_v28 = vmul.f32 %v7801_v57, %v10176_v43  ;;  %v10180_v27 = vld [vmem:[#allocation313_spill] sm:$0xff] }
 0x690   : > { %v3196_v1 = vadd.f32 %v3194_v59, %v3192_v3  ;;  %v3198_v9 = vmul.f32 %v7781_v32, %v10165_v23  ;;  %v3079_v38 = vadd.f32 %v3077_v36, %v3075_v0  ;;  %v3081_v10 = vmul.f32 %v7771_v63, %v10171_v40  ;;  %v10183_v3 = vld [vmem:[#allocation315_spill] sm:$0xff] }
 0x691   : > { %v3143_v55 = vadd.f32 %v3141_v62, %v3139_v47  ;;  %v3096_v51 = vadd.f32 %v3094_v35, %v3092_v31  ;;  %v3202_v19 = vmul.f32 %v7783_v42, %v10166_v41  ;;  %v3085_v52 = vmul.f32 %v7787_v16, %v10172_v56  ;;  %v10184_v0 = vld [vmem:[#allocation299_spill] sm:$0xff] }
 0x692   : > { %v3200_v25 = vadd.f32 %v3198_v9, %v3196_v1  ;;  %v3083_v44 = vadd.f32 %v3081_v10, %v3079_v38  ;;  %v3152_v48 = vmul.f32 %v7773_v34, %v10177_v2  ;;  %v3154_v23 = vmul.f32 %v7775_v8, %v10178_v30  ;;  %v10185_v1 = vld [vmem:[#allocation317_spill] sm:$0xff]  ;;  %v10186_v38 = vld [vmem:[#allocation319_spill] sm:$0xff] }
 0x693   : > { %3145 = vrot.lane.b32.xlu1 %v3143_v55, %s9214_s5  ;;  %v3100_v37 = vadd.f32 %v3098_v58, %v3096_v51  ;;  %v3206_v40 = vmul.f32 %v7785_v11, %v10167_v20  ;;  %v3210_v41 = vmul.f32 %v7801_v57, %v10168_v17  ;;  %v3089_v4 = vmul.f32 %v7789_v21, %v10173_v12  ;;  %v10181_v20 = vld [vmem:[#allocation297_spill] sm:$0xff]  ;;  %v10182_v12 = vld [vmem:[#allocation298_spill] sm:$0xff]  ;;  %s10204_s5 = ssub.f32 1.0, %s3998_s2 }
 0x694   : > { %v3204_v29 = vadd.f32 %v3202_v19, %v3200_v25  ;;  %v3087_v24 = vadd.f32 %v3085_v52, %v3083_v44  ;;  %v3156_v5 = vadd.f32 %v3154_v23, %v3152_v48  ;;  %v3158_v56 = vmul.f32 %v7777_v13, %v10179_v18  ;;  %v10187_v52 = vld [vmem:[#allocation300_spill] sm:$0xff]  ;;  %v10189_v23 = vld [vmem:[#allocation301_spill] sm:$0xff] }
 0x695   : > { %v3104_v50 = vadd.f32 %v3102_v28, %v3100_v37  ;;  %v3093_v62 = vmul.f32 %v7795_v39, %v10174_v60  ;;  %v3162_v15 = vmul.f32 %v7779_v33, %v10180_v27  ;;  %v2932_v7 = vmul.f32 %v7773_v34, %v10181_v20  ;;  %v10188_v44 = vld [vmem:[#allocation320_spill] sm:$0xff] }
 0x696   : > { %v3208_v17 = vadd.f32 %v3206_v40, %v3204_v29  ;;  %v3091_v54 = vadd.f32 %v3089_v4, %v3087_v24  ;;  %v3160_v53 = vadd.f32 %v3158_v56, %v3156_v5  ;;  %v2934_v46 = vmul.f32 %v7775_v8, %v10182_v12  ;;  %v10190_v5 = vld [vmem:[#allocation302_spill] sm:$0xff] }
 0x697   : > { %3107 = vrot.lane.b32.xlu2 %v3104_v50, %s9218_s12  ;;  %v3097_v35 = vmul.f32 %v7797_v61, %v10175_v26  ;;  %v3101_v60 = vmul.f32 %v7799_v45, %v10176_v43  ;;  %v3166_v59 = vmul.f32 %v7781_v32, %v10183_v3  ;;  %v2938_v36 = vmul.f32 %v7777_v13, %v10184_v0 }
 0x698   : > { %v3212_v47 = vadd.f32 %v3210_v41, %v3208_v17  ;;  %v3095_v31 = vadd.f32 %v3093_v62, %v3091_v54  ;;  %v3164_v58 = vadd.f32 %v3162_v15, %v3160_v53  ;;  %v2936_v28 = vadd.f32 %v2934_v46, %v2932_v7  ;;  %v10191_v15 = vld [vmem:[#allocation303_spill] sm:$0xff]  ;;  %v10192_v7 = vld [vmem:[#allocation304_spill] sm:$0xff] }
 0x699   : > { %v3170_v9 = vmul.f32 %v7783_v42, %v10185_v1  ;;  %v3174_v10 = vmul.f32 %v7785_v11, %v10186_v38  ;;  %v2931_v26 = vmul.f32 %v7732_v49, %v10181_v20  ;;  %v2933_v43 = vmul.f32 %v7734_v14, %v10182_v12  ;;  %v10193_v12 = vld [vmem:[#allocation305_spill] sm:$0xff] }
 0x69a   : > { %3215 = vrot.lane.b32.xlu0 %v3212_v47, %s9218_s12  ;;  %v3099_v55 = vadd.f32 %v3097_v35, %v3095_v31  ;;  %v3168_v51 = vadd.f32 %v3166_v59, %v3164_v58  ;;  %v2940_v19 = vadd.f32 %v2938_v36, %v2936_v28  ;;  %v2942_v25 = vmul.f32 %v7779_v33, %v10187_v52  ;;  %v10194_v35 = vld [vmem:[#allocation308_spill] sm:$0xff]  ;;  %v10195_v47 = vld [vmem:[#allocation306_spill] sm:$0xff] }
 0x69b   : > { %v3178_v48 = vmul.f32 %v7801_v57, %v10188_v44  ;;  %v2946_v37 = vmul.f32 %v7781_v32, %v10189_v23  ;;  %v2935_v40 = vadd.f32 %v2933_v43, %v2931_v26  ;;  %v2937_v41 = vmul.f32 %v7771_v63, %v10184_v0  ;;  %v10196_v28 = vld [vmem:[#allocation310_spill] sm:$0xff] }
 0x69c   : > { %v3103_v4 = vadd.f32 %v3101_v60, %v3099_v55  ;;  %v3172_v29 = vadd.f32 %v3170_v9, %v3168_v51  ;;  %v2944_v24 = vadd.f32 %v2942_v25, %v2940_v19  ;;  %v2950_v56 = vmul.f32 %v7783_v42, %v10190_v5 }
 0x69d   : > { %v2939_v50 = vadd.f32 %v2937_v41, %v2935_v40  ;;  %v2941_v62 = vmul.f32 %v7787_v16, %v10187_v52  ;;  %v3044_v20 = vmul.f32 %v7773_v34, %v10191_v15  ;;  %v3046_v17 = vmul.f32 %v7775_v8, %v10192_v7  ;;  %v10197_v52 = vld [vmem:[#allocation312_spill] sm:$0xff]  ;;  %v10198_v41 = vld [vmem:[#allocation314_spill] sm:$0xff] }
 0x69e   : > { %3105 = vrot.lane.b32.xlu1 %v3103_v4, %s9218_s12  ;;  %v3176_v54 = vadd.f32 %v3174_v10, %v3172_v29  ;;  %v2948_v53 = vadd.f32 %v2946_v37, %v2944_v24  ;;  %v2954_v46 = vmul.f32 %v7785_v11, %v10193_v12  ;;  %v2958_v60 = vmul.f32 %v7801_v57, %v10194_v35  ;;  %s3241_s12 = scalar_lea.vmem [#allocation15], %s4010_s22 }
 0x69f   : > { %v2943_v59 = vadd.f32 %v2941_v62, %v2939_v50  ;;  %v2945_v0 = vmul.f32 %v7789_v21, %v10189_v23  ;;  %v3048_v36 = vadd.f32 %v3046_v17, %v3044_v20  ;;  %v3050_v34 = vmul.f32 %v7777_v13, %v10195_v47  ;;  %v10199_v62 = vld [vmem:[#allocation316_spill] sm:$0xff] }
 0x6a0   : > { %v8051_v31 = vadd.f32 %v3178_v48, %v3176_v54  ;;  %v2952_v8 = vadd.f32 %v2950_v56, %v2948_v53  ;;  %v2949_v58 = vmul.f32 %v7795_v39, %v10190_v5  ;;  %v3054_v9 = vmul.f32 %v7779_v33, %v10196_v28 }
 0x6a1   : > { %v2947_v10 = vadd.f32 %v2945_v0, %v2943_v59  ;;  %v3052_v26 = vadd.f32 %v3050_v34, %v3048_v36  ;;  %v3043_v43 = vmul.f32 %v7732_v49, %v10191_v15  ;;  %v3045_v55 = vmul.f32 %v7734_v14, %v10192_v7 }
 0x6a2   : > { %v2956_v51 = vadd.f32 %v2954_v46, %v2952_v8  ;;  %v2953_v13 = vmul.f32 %v7797_v61, %v10193_v12  ;;  %v2957_v19 = vmul.f32 %v7799_v45, %v10194_v35  ;;  %v3058_v25 = vmul.f32 %v7781_v32, %v10197_v52 }
 0x6a3   : > { %v2951_v48 = vadd.f32 %v2949_v58, %v2947_v10  ;;  %v3056_v33 = vadd.f32 %v3054_v9, %v3052_v26  ;;  %v3047_v23 = vadd.f32 %v3045_v55, %v3043_v43  ;;  %v3049_v37 = vmul.f32 %v7771_v63, %v10195_v47 }
 0x6a4   : > { %v2960_v40 = vadd.f32 %v2958_v60, %v2956_v51  ;;  %v3062_v4 = vmul.f32 %v7783_v42, %v10198_v41  ;;  %v3053_v29 = vmul.f32 %v7787_v16, %v10196_v28  ;;  %v3151_v24 = vmul.f32 %v7732_v49, %v10177_v2  ;;  %v10200_v49 = vld [vmem:[#allocation318_spill] sm:$0xff] }
 0x6a5   : > { %v2955_v5 = vadd.f32 %v2953_v13, %v2951_v48  ;;  %v3060_v56 = vadd.f32 %v3058_v25, %v3056_v33  ;;  %v3051_v50 = vadd.f32 %v3049_v37, %v3047_v23  ;;  %v3153_v32 = vmul.f32 %v7734_v14, %v10178_v30 }
 0x6a6   : > { %v3066_v15 = vmul.f32 %v7785_v11, %v10199_v62  ;;  %v3057_v20 = vmul.f32 %v7789_v21, %v10197_v52  ;;  %v3157_v42 = vmul.f32 %v7771_v63, %v10179_v18  ;;  %v3070_v2 = vmul.f32 %v7801_v57, %v10200_v49 }
 0x6a7   : > { %v2959_v7 = vadd.f32 %v2957_v19, %v2955_v5  ;;  %v3064_v17 = vadd.f32 %v3062_v4, %v3060_v56  ;;  %v3055_v54 = vadd.f32 %v3053_v29, %v3051_v50  ;;  %v3155_v53 = vadd.f32 %v3153_v32, %v3151_v24 }
 0x6a8   : > { %v3061_v12 = vmul.f32 %v7795_v39, %v10198_v41  ;;  %v3161_v11 = vmul.f32 %v7787_v16, %v10180_v27  ;;  %v3065_v35 = vmul.f32 %v7797_v61, %v10199_v62  ;;  %v3165_v59 = vmul.f32 %v7789_v21, %v10183_v3 }
 0x6a9   : > { %v3068_v14 = vadd.f32 %v3066_v15, %v3064_v17  ;;  %v3059_v30 = vadd.f32 %v3057_v20, %v3055_v54  ;;  %v3159_v46 = vadd.f32 %v3157_v42, %v3155_v53  ;;  %v3069_v57 = vmul.f32 %v7799_v45, %v10200_v49 }
 0x6aa   : > { %v3169_v47 = vmul.f32 %v7795_v39, %v10185_v1  ;;  %v3173_v16 = vmul.f32 %v7797_v61, %v10186_v38  ;;  %v3177_v58 = vmul.f32 %v7799_v45, %v10188_v44 }
 0x6ab   : > { %v3072_v63 = vadd.f32 %v3070_v2, %v3068_v14  ;;  %v3063_v18 = vadd.f32 %v3061_v12, %v3059_v30  ;;  %v3163_v60 = vadd.f32 %v3161_v11, %v3159_v46 }
 0x6ad   : > { %v3067_v0 = vadd.f32 %v3065_v35, %v3063_v18  ;;  %v3167_v36 = vadd.f32 %v3165_v59, %v3163_v60  ;;  %v3236_v59 = vstv %s3998_s2 }
 0x6af   : > { %v3071_v34 = vadd.f32 %v3069_v57, %v3067_v0  ;;  %v3171_v8 = vadd.f32 %v3169_v47, %v3167_v36  ;;  %v3233_v36 = vstv %s10204_s5  ;;  %v10205_v47 = vld [vmem:[#allocation366_spill] sm:$0xff] }
 0x6b1   : > { %v3175_v27 = vadd.f32 %v3173_v16, %v3171_v8  ;;  %v3456_v8 = vld [vmem:[%s5331_s16 + $0x8] sm:$0xff] }
 0x6b2   : > { %v3238_v16 = vmul.f32 %v3456_v8, %v3236_v59 }
 0x6b3   : > { %v3179_v28 = vadd.f32 %v3177_v58, %v3175_v27 }
 0x6d2   : > { %v3148_v9 = vpop.permute.xlu2 %3147 }
 0x6d3   : > { %v3150_v32 = vsel %vm3696_vm3, %v3148_v9, 0.0 }
 0x6d4   : > { %v3182_v15 = vadd.f32 %v8051_v31, %v3150_v32 }
 0x6da   : > { %v2994_v21 = vpop.permute.xlu2 %2993 }
 0x6db   : > { %v2997_v45 = vsel %vm3692_vm2, %v2994_v21, 0.0  ;;  %v10206_v21 = vld [vmem:[#allocation367_spill] sm:$0xff] }
 0x6e6   : > { %v3214_v26 = vpop.permute.xlu2 %3213 }
 0x6e7   : > { %v3217_v62 = vsel %vm3692_vm2, %v3214_v26, 0.0 }
 0x6ec   : > { %v2996_v3 = vpop.permute.xlu0 %2995 }
 0x6ed   : > { %v2998_v1 = vsel %vm3692_vm2, %v2996_v3, 0.0 }
 0x6ef   : > { %v2928_v10 = vpop.permute.xlu1 %2927 }
 0x6f0   : > { %v2930_v43 = vsel %vm3696_vm3, %v2928_v10, 0.0 }
 0x6f1   : > { %v2962_v55 = vadd.f32 %v2960_v40, %v2930_v43  ;;  %v3108_v13 = vpop.permute.xlu2 %3107 }
 0x6f2   : > { %v3110_v23 = vsel %vm3692_vm2, %v3108_v13, 0.0 }
 0x6f3   : > { %v3000_v38 = vadd.f32 %v2998_v1, %v2962_v55 }
 0x6f5   : > { %v2926_v39 = vpop.permute.xlu0 %2925  ;;  %v3002_v52 = vrot.slane %v3000_v38, 7 }
 0x6f6   : > { %v2929_v61 = vsel %vm3696_vm3, %v2926_v39, 0.0 }
 0x6f7   : > { %v2961_v51 = vadd.f32 %v2959_v7, %v2929_v61 }
 0x6f9   : > { %v2999_v44 = vadd.f32 %v2997_v45, %v2961_v51 }
 0x6fa   : > { %v3040_v19 = vpop.permute.xlu1 %3039 }
 0x6fb   : > { %v3001_v25 = vrot.slane %v2999_v44, 7  ;;  %v3042_v48 = vsel %vm3696_vm3, %v3040_v19, 0.0 }
 0x6fc   : > { %v3074_v33 = vadd.f32 %v3072_v63, %v3042_v48 }
 0x6fd   : > { %v3003_v40 = vsel %vm296_vm4, %v3001_v25, %v3002_v52  ;;  %v3004_v41 = vsel %vm296_vm4, %v3002_v52, %v3001_v25 }
 0x6fe   : > { %v3112_v4 = vadd.f32 %v3110_v23, %v3074_v33  ;;  %v3005_v63 = vsel %vm116_vm0, %v3004_v41, 0.0 }
 0x700   : > { %v3114_v29 = vadd.f32 %v3112_v4, %v3003_v40 }
 0x701   : > { %v3038_v24 = vpop.permute.xlu0 %3037 }
 0x702   : > { %v3041_v7 = vsel %vm3696_vm3, %v3038_v24, 0.0 }
 0x703   : > { %v3073_v53 = vadd.f32 %v3071_v34, %v3041_v7 }
 0x705   : > { %v3146_v5 = vpop.permute.xlu1 %3145 }
 0x706   : > { %v3149_v56 = vsel %vm3696_vm3, %v3146_v5, 0.0 }
 0x707   : > { %v3181_v50 = vadd.f32 %v3179_v28, %v3149_v56  ;;  %v3457_v28 = vld [vmem:[%s5331_s16] sm:$0xff] }
 0x708   : > { %v3237_v9 = vmul.f32 %v3457_v28, %v3236_v59 }
 0x709   : > { %v3219_v20 = vadd.f32 %v3217_v62, %v3181_v50 }
 0x70b   : > { %v3221_v49 = vrot.slane %v3219_v20, 1 }
 0x70c   : > { %v3216_v42 = vpop.permute.xlu0 %3215 }
 0x70d   : > { %v3218_v17 = vsel %vm3692_vm2, %v3216_v42, 0.0 }
 0x70e   : > { %v3220_v54 = vadd.f32 %v3218_v17, %v3182_v15 }
 0x710   : > { %v3222_v2 = vrot.slane %v3220_v54, 1  ;;  %v3106_v12 = vpop.permute.xlu1 %3105 }
 0x711   : > { %v3109_v14 = vsel %vm3692_vm2, %v3106_v12, 0.0 }
 0x712   : > { %v3224_v31 = vsel %vm551_vm5, %v3222_v2, %v3221_v49  ;;  %v3223_v30 = vsel %vm551_vm5, %v3221_v49, %v3222_v2  ;;  %v3111_v46 = vadd.f32 %v3109_v14, %v3073_v53 }
 0x713   : > { %v3226_v35 = vsel %vm115_vm1, %v3224_v31, 0.0 }
 0x714   : > { %v3228_v18 = vadd.f32 %v3226_v35, %v3114_v29  ;;  %v3113_v60 = vadd.f32 %v3111_v46, %v3005_v63 }
 0x716   : > { %v3230_v0 = vadd.f32 %v3228_v18, %v10203_v22  ;;  %v3227_v57 = vadd.f32 %v3223_v30, %v3113_v60 }
 0x718   : > { %v3232_v34 = vadd.f32 %v3230_v0, %v10205_v47  ;;  %v3229_v27 = vadd.f32 %v3227_v57, %v10203_v22 }
 0x71a   : > { %v3235_v58 = vmul.f32 %v3233_v36, %v3232_v34  ;;  %v3231_v3 = vadd.f32 %v3229_v27, %v10206_v21 }
 0x71c   : > { %v3240_v10 = vadd.f32 %v3238_v16, %v3235_v58  ;;  %v3234_v26 = vmul.f32 %v3233_v36, %v3231_v3  ;;  %285 = sbr.rel (!%p283_p0) target bundleno = 333 (0x14d), region = 82 }
 0x71e   : > { %3243 = vst [vmem:[%s3241_s12 + $0x8] sm:$0xff] %v3240_v10  ;;  %v3239_v43 = vadd.f32 %v3237_v9, %v3234_v26 }
 0x720   : > { %3242 = vst [vmem:[%s3241_s12] sm:$0xff] %v3239_v43 }
 0x721   :  { %3256 = dma.vmem_to_hbm [thread:$0]  %s3249_s13, 512, %s3251_s25, [#allocation5], %s10209_s7, %s10209_s7, %s10208_s14  }
 0x722   :  { %3592 = dma.done.wait [#allocation5], 512  }
 0x723   :  { %3593 = vsyncadd [#allocation5], 4294966784 }
 0x724   :  { %3261 = vsyncpa [#allocation4], 1 }
 0x725   :  { %3262 = vsyncpa [#allocation8], 1 }
 0x726   :  { %3263 = vsyncpa [#allocation5], 1 }
 0x727   :  { %3264 = vsyncpa [#allocation6], 1 }
 0x728   :  { %3265 = vsyncpa [#allocation11], 1 }
 0x729   :  { %3266 = vsyncpa [#allocation14], 1 }

</bundles_post_ra>
